<compile_context>
chip_gen: v7x
topology: tpu7x:2x2x1
jax: 0.10.0
libtpu: 0.0.40
codegen_flags: <defaults>
</compile_context>

<pallas_src>
import jax
import jax.numpy as jnp
from jax.experimental import pallas as pl
from jax.experimental.pallas import tpu as pltpu

BN_EPS = 1e-5
LRELU_SLOPE = 0.2


def _round_up(x, m):
    return (x + m - 1) // m * m


def _vmem_limit_bytes():
    # ~75% of physical VMEM, clamped; leaves headroom for double buffers.
    try:
        cap = pltpu.get_tpu_info().vmem_capacity_bytes
        return max(32 << 20, min(int(cap * 3 // 4), 96 << 20))
    except Exception:
        return 48 << 20  # safe on v7x (64 MiB/TC) and below


def _pick_tile_m(m, k_pad, cout_pad, vmem_budget):
    """M tile from the VMEM budget: double-buffered bf16 patches + bf16 y tiles,
    plus the resident bf16 weight (counted twice for its pipeline buffers)."""
    weight_bytes = 4 * k_pad * cout_pad          # bf16 weight, 2 pipeline buffers
    per_row = 4 * (k_pad + cout_pad)             # bf16 patches + y, double-buffered
    cap = max(vmem_budget - weight_bytes, per_row * 128) // per_row
    cap = max(128, min(1024, cap // 128 * 128))
    if m <= 256:
        return _round_up(m, 16)                  # bf16 sublane packing
    # keep >= 2 tiles so the "parallel" M axis can split across TensorCores
    half = _round_up((m + 1) // 2, 128)
    return min(cap, half)


def _conv_gemm_stats_kernel(p_ref, w_ref, y_ref, stats_ref):
    """Whole-K GEMM for one M tile (bf16 in, f32 accumulate), bf16 y writeback,
    plus a lane-dense [1, 2*C] row of per-tile channel sum / sum-of-squares."""
    y = jnp.dot(p_ref[...], w_ref[...], preferred_element_type=jnp.float32)
    y_ref[...] = y.astype(y_ref.dtype)
    c = y_ref.shape[-1]
    stats_ref[:, :c] = jnp.sum(y, axis=0, keepdims=True)
    stats_ref[:, c:] = jnp.sum(y * y, axis=0, keepdims=True)


def _bn_lrelu_kernel(y_ref, scale_ref, shift_ref, o_ref):
    """Folded BatchNorm affine + LeakyReLU(0.2); f32 math, lane-dense store."""
    yn = y_ref[...].astype(jnp.float32) * scale_ref[...] + shift_ref[...]
    o_ref[...] = jnp.where(yn >= 0.0, yn, LRELU_SLOPE * yn).astype(o_ref.dtype)


def conv3d_bn_lrelu(x_ndhwc, w, gamma, beta, stride, out_f32=False):
    """One encoder stage. x_ndhwc: [N,D,H,W,Cin_x] (f32 or bf16; Cin_x may be
    lane-padded). w: [Cout, Cin_w, 3,3,3] (PyTorch layout); gamma/beta: [Cout].
    Returns ([N,Do,Ho,Wo,Cout_pad], actual Cout)."""
    N, D, H, W, cin_x = x_ndhwc.shape
    cout, cin_w = w.shape[0], w.shape[1]
    sd, sh, sw = stride
    do = (D - 1) // sd + 1
    ho = (H - 1) // sh + 1
    wo = (W - 1) // sw + 1

    # Lane-dense output channels; zero-pad weight Cin to (possibly padded) input.
    cout_pad = _round_up(cout, 128)
    w = jnp.pad(w, ((0, cout_pad - cout), (0, cin_x - cin_w),
                    (0, 0), (0, 0), (0, 0)))
    gamma_p = jnp.pad(gamma, (0, cout_pad - cout), constant_values=1.0)
    beta_p = jnp.pad(beta, (0, cout_pad - cout))

    # im2col (XLA glue) in bf16: zero halo pad=1, 3x3x3 taps, strided sampling.
    x_bf = x_ndhwc.astype(jnp.bfloat16)
    xp = jnp.pad(x_bf, ((0, 0), (1, 1), (1, 1), (1, 1), (0, 0)))
    taps = []
    for kd in range(3):
        for kh in range(3):
            for kw in range(3):
                taps.append(xp[:, kd:kd + sd * do:sd,
                               kh:kh + sh * ho:sh,
                               kw:kw + sw * wo:sw, :])
    k = 27 * cin_x
    k_pad = _round_up(k, 128)
    if k_pad != k:  # layer 1 (Cin=1): make the GEMM K dimension lane-dense
        taps.append(jnp.zeros((N, do, ho, wo, k_pad - k), jnp.bfloat16))
    m = N * do * ho * wo
    patches = jnp.concatenate(taps, axis=-1).reshape(m, k_pad)

    vmem_limit = _vmem_limit_bytes()
    tile_m = _pick_tile_m(m, k_pad, cout_pad, vmem_limit * 3 // 4)
    m_pad = _round_up(m, tile_m)
    m_tiles = m_pad // tile_m
    if m_pad != m:
        # Zero rows: contribute nothing to sum/sumsq (no conv bias); sliced off later.
        patches = jnp.pad(patches, ((0, m_pad - m), (0, 0)))

    # Weight as [K, Cout] bf16 (tap-major, Cin-minor, matching the patches layout).
    w_mat = jnp.transpose(w, (2, 3, 4, 1, 0)).reshape(k, cout_pad)
    if k_pad != k:
        w_mat = jnp.pad(w_mat, ((0, k_pad - k), (0, 0)))
    w_mat = w_mat.astype(jnp.bfloat16)

    # ---- Pass 1: conv GEMM + partial batch statistics -------------------------
    y, pstats = pl.pallas_call(
        _conv_gemm_stats_kernel,
        out_shape=(
            jax.ShapeDtypeStruct((m_pad, cout_pad), jnp.bfloat16),
            jax.ShapeDtypeStruct((m_tiles, 1, 2 * cout_pad), jnp.float32),
        ),
        grid=(m_tiles,),
        in_specs=[
            pl.BlockSpec((tile_m, k_pad), lambda i: (i, 0)),
            # Constant block index -> weight DMA'd once, VMEM-resident for all tiles.
            pl.BlockSpec((k_pad, cout_pad), lambda i: (0, 0)),
        ],
        out_specs=(
            pl.BlockSpec((tile_m, cout_pad), lambda i: (i, 0)),
            pl.BlockSpec((None, 1, 2 * cout_pad), lambda i: (i, 0, 0)),
        ),
        compiler_params=pltpu.CompilerParams(
            dimension_semantics=("parallel",),
            vmem_limit_bytes=vmem_limit),
    )(patches, w_mat)

    # Finalize BN batch stats (tiny per-channel glue). Conv bias is omitted: with
    # batch-statistics BN it cancels exactly in the forward output.
    stats = jnp.sum(pstats, axis=0)                       # [1, 2*cout_pad]
    mean = stats[0, :cout_pad] / m                        # true row count, not m_pad
    var = jnp.maximum(stats[0, cout_pad:] / m - mean * mean, 0.0)  # biased (training)
    scale = gamma_p * jax.lax.rsqrt(var + BN_EPS)
    shift = beta_p - mean * scale
    scale = scale.reshape(1, cout_pad)
    shift = shift.reshape(1, cout_pad)

    # ---- Pass 2: normalize + affine + LeakyReLU --------------------------------
    out_dtype = jnp.float32 if out_f32 else jnp.bfloat16
    out = pl.pallas_call(
        _bn_lrelu_kernel,
        out_shape=jax.ShapeDtypeStruct((m_pad, cout_pad), out_dtype),
        grid=(m_tiles,),
        in_specs=[
            pl.BlockSpec((tile_m, cout_pad), lambda i: (i, 0)),
            pl.BlockSpec((1, cout_pad), lambda i: (0, 0)),
            pl.BlockSpec((1, cout_pad), lambda i: (0, 0)),
        ],
        out_specs=pl.BlockSpec((tile_m, cout_pad), lambda i: (i, 0)),
        compiler_params=pltpu.CompilerParams(
            dimension_semantics=("parallel",),
            vmem_limit_bytes=vmem_limit),
    )(y, scale, shift)

    out = out[:m].reshape(N, do, ho, wo, cout_pad)
    return out, cout


def init_params(key, chnum_in):
    # Conv3d(chnum_in,96,s=(1,2,2)) -> (96,128,s=2) -> (128,256,s=2) -> (256,256,s=2)
    layer_defs = [
        (chnum_in, 96, (1, 2, 2)),
        (96, 128, (2, 2, 2)),
        (128, 256, (2, 2, 2)),
        (256, 256, (2, 2, 2)),
    ]
    params = []
    for cin, cout, stride in layer_defs:
        key, kw_, kb_ = jax.random.split(key, 3)
        fan_in = cin * 27
        bound = 1.0 / (fan_in ** 0.5)
        w = jax.random.uniform(kw_, (cout, cin, 3, 3, 3), jnp.float32, -bound, bound)
        b = jax.random.uniform(kb_, (cout,), jnp.float32, -bound, bound)
        gamma = jnp.ones((cout,), jnp.float32)   # PyTorch BatchNorm default init
        beta = jnp.zeros((cout,), jnp.float32)
        params.append((w, b, gamma, beta, stride))
    return params


def reconstruction_3d_encoder(x_ncdhw, params):
    # PyTorch NCDHW -> internal NDHWC (channels last, lane-dense)
    x = jnp.transpose(x_ncdhw, (0, 2, 3, 4, 1))
    cout = x.shape[-1]
    n_layers = len(params)
    for li, (w, b, g, be, stride) in enumerate(params):
        # conv bias `b` intentionally unused: cancelled by batch-statistics BN.
        x, cout = conv3d_bn_lrelu(x, w, g, be, stride,
                                  out_f32=(li == n_layers - 1))
    x = x[..., :cout]  # drop lane-padding channels of the final stage (no-op for 256)
    # back to NCDHW to match the torch module's output convention
    return jnp.transpose(x, (0, 4, 1, 2, 3))


if __name__ == "__main__":
    key = jax.random.PRNGKey(0)
    kx, kp = jax.random.split(key)
    chnum_in = 1
    # [N, C, D, H, W] just like the PyTorch module expects.
    x = jax.random.normal(kx, (2, chnum_in, 8, 16, 16), jnp.float32)
    params = init_params(kp, chnum_in)

    fwd = jax.jit(lambda xx: reconstruction_3d_encoder(xx, params))
    out = jax.block_until_ready(fwd(x))

    # Expected: D: 8->8->4->2->1, H/W: 16->8->4->2->1, C -> 256
    assert out.shape == (2, 256, 1, 1, 1), out.shape
    assert out.dtype == jnp.float32
    assert bool(jnp.all(jnp.isfinite(out)))
    print("KERNEL_OK")
</pallas_src>

<mosaic_0001>
module attributes {stable_mosaic.version = 11 : i64} {
  func.func @_conv_gemm_stats_kernel(%arg0: i32, %arg1: memref<512x128xbf16, #tpu.memory_space<vmem>>, %arg2: memref<128x128xbf16, #tpu.memory_space<vmem>>, %arg3: memref<512x128xbf16, #tpu.memory_space<vmem>>, %arg4: memref<1x1x256xf32, #tpu.memory_space<vmem>>) attributes {dimension_semantics = [#tpu.dimension_semantics<parallel>], iteration_bounds = array<i64: 2>, scalar_prefetch = 0 : i64, scratch_operands = 0 : i64, tpu.core_type = #tpu.core_type<tc>, window_params = [{transform_indices = @transform_0, window_bounds = array<i64: 512, 128>}, {pipeline_mode = #tpu.pipeline_mode<synchronous>, transform_indices = @transform_1, window_bounds = array<i64: 128, 128>}, {transform_indices = @transform_2, window_bounds = array<i64: 512, 128>}, {transform_indices = @transform_3, window_bounds = array<i64: 1, 1, 256>}]} {
    %c0 = arith.constant 0 : index
    %c0_0 = arith.constant 0 : index
    %0 = vector.load %arg1[%c0, %c0_0] : memref<512x128xbf16, #tpu.memory_space<vmem>>, vector<512x128xbf16>
    %c0_1 = arith.constant 0 : index
    %c0_2 = arith.constant 0 : index
    %1 = vector.load %arg2[%c0_1, %c0_2] : memref<128x128xbf16, #tpu.memory_space<vmem>>, vector<128x128xbf16>
    %cst = arith.constant dense<0.000000e+00> : vector<512x128xf32>
    %2 = tpu.matmul %0, %1, %cst {dimension_numbers = #tpu.dot_dimension_numbers<[1], [0], [0], [1], [0, 0, 1, 1], [], []>} : vector<512x128xbf16>, vector<128x128xbf16>, vector<512x128xf32> -> vector<512x128xf32>
    %3 = arith.truncf %2 : vector<512x128xf32> to vector<512x128xbf16>
    %c0_3 = arith.constant 0 : index
    %c0_4 = arith.constant 0 : index
    %4 = vector.load %arg3[%c0_3, %c0_4] : memref<512x128xbf16, #tpu.memory_space<vmem>>, vector<512x128xbf16>
    tpu.vector_store %arg3[%c0_3, %c0_4], %3 {strides = array<i32>} : memref<512x128xbf16, #tpu.memory_space<vmem>>, vector<512x128xbf16>,
    %cst_5 = arith.constant dense<0.000000e+00> : vector<128xf32>
    %5 = vector.multi_reduction <add>, %2, %cst_5 [0] : vector<512x128xf32> to vector<128xf32>
    %6 = vector.shape_cast %5 : vector<128xf32> to vector<1x128xf32>
    %c0_6 = arith.constant 0 : index
    %c0_7 = arith.constant 0 : index
    %c0_8 = arith.constant 0 : index
    %7 = vector.load %arg4[%c0_6, %c0_7, %c0_8] : memref<1x1x256xf32, #tpu.memory_space<vmem>>, vector<1x1x128xf32>
    %8 = vector.shape_cast %7 : vector<1x1x128xf32> to vector<1x128xf32>
    %9 = vector.shape_cast %6 : vector<1x128xf32> to vector<1x1x128xf32>
    tpu.vector_store %arg4[%c0_6, %c0_7, %c0_8], %9 {strides = array<i32>} : memref<1x1x256xf32, #tpu.memory_space<vmem>>, vector<1x1x128xf32>,
    %10 = arith.mulf %2, %2 : vector<512x128xf32>
    %cst_9 = arith.constant dense<0.000000e+00> : vector<128xf32>
    %11 = vector.multi_reduction <add>, %10, %cst_9 [0] : vector<512x128xf32> to vector<128xf32>
    %12 = vector.shape_cast %11 : vector<128xf32> to vector<1x128xf32>
    %c0_10 = arith.constant 0 : index
    %c0_11 = arith.constant 0 : index
    %c128 = arith.constant 128 : index
    %13 = vector.load %arg4[%c0_10, %c0_11, %c128] : memref<1x1x256xf32, #tpu.memory_space<vmem>>, vector<1x1x128xf32>
    %14 = vector.shape_cast %13 : vector<1x1x128xf32> to vector<1x128xf32>
    %15 = vector.shape_cast %12 : vector<1x128xf32> to vector<1x1x128xf32>
    tpu.vector_store %arg4[%c0_10, %c0_11, %c128], %15 {strides = array<i32>} : memref<1x1x256xf32, #tpu.memory_space<vmem>>, vector<1x1x128xf32>,
    return
  }
  func.func @transform_0(%arg0: i32) -> (i32, i32) {
    %c0_i32 = arith.constant 0 : i32
    %c0_i32_0 = arith.constant 0 : i32
    return %arg0, %c0_i32 : i32, i32
  }
  func.func @transform_1(%arg0: i32) -> (i32, i32) {
    %c0_i32 = arith.constant 0 : i32
    %c0_i32_0 = arith.constant 0 : i32
    %c0_i32_1 = arith.constant 0 : i32
    return %c0_i32, %c0_i32_0 : i32, i32
  }
  func.func @transform_2(%arg0: i32) -> (i32, i32) {
    %c0_i32 = arith.constant 0 : i32
    %c0_i32_0 = arith.constant 0 : i32
    return %arg0, %c0_i32 : i32, i32
  }
  func.func @transform_3(%arg0: i32) -> (i32, i32, i32) {
    %c0_i32 = arith.constant 0 : i32
    %c0_i32_0 = arith.constant 0 : i32
    %c0_i32_1 = arith.constant 0 : i32
    return %arg0, %c0_i32, %c0_i32_0 : i32, i32, i32
  }
}

module attributes {stable_mosaic.version = 11 : i64} {
  func.func @_bn_lrelu_kernel(%arg0: i32, %arg1: memref<512x128xbf16, #tpu.memory_space<vmem>>, %arg2: memref<1x128xf32, #tpu.memory_space<vmem>>, %arg3: memref<1x128xf32, #tpu.memory_space<vmem>>, %arg4: memref<512x128xbf16, #tpu.memory_space<vmem>>) attributes {dimension_semantics = [#tpu.dimension_semantics<parallel>], iteration_bounds = array<i64: 2>, scalar_prefetch = 0 : i64, scratch_operands = 0 : i64, tpu.core_type = #tpu.core_type<tc>, window_params = [{transform_indices = @transform_0, window_bounds = array<i64: 512, 128>}, {pipeline_mode = #tpu.pipeline_mode<synchronous>, transform_indices = @transform_1, window_bounds = array<i64: 1, 128>}, {pipeline_mode = #tpu.pipeline_mode<synchronous>, transform_indices = @transform_2, window_bounds = array<i64: 1, 128>}, {transform_indices = @transform_3, window_bounds = array<i64: 512, 128>}]} {
    %c0 = arith.constant 0 : index
    %c0_0 = arith.constant 0 : index
    %0 = vector.load %arg1[%c0, %c0_0] : memref<512x128xbf16, #tpu.memory_space<vmem>>, vector<512x128xbf16>
    %1 = arith.extf %0 : vector<512x128xbf16> to vector<512x128xf32>
    %c0_1 = arith.constant 0 : index
    %c0_2 = arith.constant 0 : index
    %2 = vector.load %arg2[%c0_1, %c0_2] : memref<1x128xf32, #tpu.memory_space<vmem>>, vector<1x128xf32>
    %3 = vector.broadcast %2 : vector<1x128xf32> to vector<512x128xf32>
    %4 = arith.mulf %1, %3 : vector<512x128xf32>
    %c0_3 = arith.constant 0 : index
    %c0_4 = arith.constant 0 : index
    %5 = vector.load %arg3[%c0_3, %c0_4] : memref<1x128xf32, #tpu.memory_space<vmem>>, vector<1x128xf32>
    %6 = vector.broadcast %5 : vector<1x128xf32> to vector<512x128xf32>
    %7 = arith.addf %4, %6 : vector<512x128xf32>
    %cst = arith.constant 0.000000e+00 : f32
    %8 = vector.broadcast %cst : f32 to vector<512x128xf32>
    %9 = arith.cmpf oge, %7, %8 : vector<512x128xf32>
    %cst_5 = arith.constant 2.000000e-01 : f32
    %10 = vector.broadcast %cst_5 : f32 to vector<512x128xf32>
    %11 = arith.mulf %10, %7 : vector<512x128xf32>
    %12 = arith.select %9, %7, %11 : vector<512x128xi1>, vector<512x128xf32>
    %13 = arith.truncf %12 : vector<512x128xf32> to vector<512x128xbf16>
    %c0_6 = arith.constant 0 : index
    %c0_7 = arith.constant 0 : index
    %14 = vector.load %arg4[%c0_6, %c0_7] : memref<512x128xbf16, #tpu.memory_space<vmem>>, vector<512x128xbf16>
    tpu.vector_store %arg4[%c0_6, %c0_7], %13 {strides = array<i32>} : memref<512x128xbf16, #tpu.memory_space<vmem>>, vector<512x128xbf16>,
    return
  }
  func.func @transform_0(%arg0: i32) -> (i32, i32) {
    %c0_i32 = arith.constant 0 : i32
    %c0_i32_0 = arith.constant 0 : i32
    return %arg0, %c0_i32 : i32, i32
  }
  func.func @transform_1(%arg0: i32) -> (i32, i32) {
    %c0_i32 = arith.constant 0 : i32
    %c0_i32_0 = arith.constant 0 : i32
    %c0_i32_1 = arith.constant 0 : i32
    return %c0_i32, %c0_i32_0 : i32, i32
  }
  func.func @transform_2(%arg0: i32) -> (i32, i32) {
    %c0_i32 = arith.constant 0 : i32
    %c0_i32_0 = arith.constant 0 : i32
    %c0_i32_1 = arith.constant 0 : i32
    return %c0_i32, %c0_i32_0 : i32, i32
  }
  func.func @transform_3(%arg0: i32) -> (i32, i32) {
    %c0_i32 = arith.constant 0 : i32
    %c0_i32_0 = arith.constant 0 : i32
    return %arg0, %c0_i32 : i32, i32
  }
}

module attributes {stable_mosaic.version = 11 : i64} {
  func.func @_conv_gemm_stats_kernel(%arg0: i32, %arg1: memref<128x3456xbf16, #tpu.memory_space<vmem>>, %arg2: memref<3456x128xbf16, #tpu.memory_space<vmem>>, %arg3: memref<128x128xbf16, #tpu.memory_space<vmem>>, %arg4: memref<1x1x256xf32, #tpu.memory_space<vmem>>) attributes {dimension_semantics = [#tpu.dimension_semantics<parallel>], iteration_bounds = array<i64: 1>, scalar_prefetch = 0 : i64, scratch_operands = 0 : i64, tpu.core_type = #tpu.core_type<tc>, window_params = [{transform_indices = @transform_0, window_bounds = array<i64: 128, 3456>}, {pipeline_mode = #tpu.pipeline_mode<synchronous>, transform_indices = @transform_1, window_bounds = array<i64: 3456, 128>}, {transform_indices = @transform_2, window_bounds = array<i64: 128, 128>}, {transform_indices = @transform_3, window_bounds = array<i64: 1, 1, 256>}]} {
    %c0 = arith.constant 0 : index
    %c0_0 = arith.constant 0 : index
    %0 = vector.load %arg1[%c0, %c0_0] : memref<128x3456xbf16, #tpu.memory_space<vmem>>, vector<128x3456xbf16>
    %c0_1 = arith.constant 0 : index
    %c0_2 = arith.constant 0 : index
    %1 = vector.load %arg2[%c0_1, %c0_2] : memref<3456x128xbf16, #tpu.memory_space<vmem>>, vector<3456x128xbf16>
    %cst = arith.constant dense<0.000000e+00> : vector<128x128xf32>
    %2 = tpu.matmul %0, %1, %cst {dimension_numbers = #tpu.dot_dimension_numbers<[1], [0], [0], [1], [0, 0, 1, 1], [], []>} : vector<128x3456xbf16>, vector<3456x128xbf16>, vector<128x128xf32> -> vector<128x128xf32>
    %3 = arith.truncf %2 : vector<128x128xf32> to vector<128x128xbf16>
    %c0_3 = arith.constant 0 : index
    %c0_4 = arith.constant 0 : index
    %4 = vector.load %arg3[%c0_3, %c0_4] : memref<128x128xbf16, #tpu.memory_space<vmem>>, vector<128x128xbf16>
    tpu.vector_store %arg3[%c0_3, %c0_4], %3 {strides = array<i32>} : memref<128x128xbf16, #tpu.memory_space<vmem>>, vector<128x128xbf16>,
    %cst_5 = arith.constant dense<0.000000e+00> : vector<128xf32>
    %5 = vector.multi_reduction <add>, %2, %cst_5 [0] : vector<128x128xf32> to vector<128xf32>
    %6 = vector.shape_cast %5 : vector<128xf32> to vector<1x128xf32>
    %c0_6 = arith.constant 0 : index
    %c0_7 = arith.constant 0 : index
    %c0_8 = arith.constant 0 : index
    %7 = vector.load %arg4[%c0_6, %c0_7, %c0_8] : memref<1x1x256xf32, #tpu.memory_space<vmem>>, vector<1x1x128xf32>
    %8 = vector.shape_cast %7 : vector<1x1x128xf32> to vector<1x128xf32>
    %9 = vector.shape_cast %6 : vector<1x128xf32> to vector<1x1x128xf32>
    tpu.vector_store %arg4[%c0_6, %c0_7, %c0_8], %9 {strides = array<i32>} : memref<1x1x256xf32, #tpu.memory_space<vmem>>, vector<1x1x128xf32>,
    %10 = arith.mulf %2, %2 : vector<128x128xf32>
    %cst_9 = arith.constant dense<0.000000e+00> : vector<128xf32>
    %11 = vector.multi_reduction <add>, %10, %cst_9 [0] : vector<128x128xf32> to vector<128xf32>
    %12 = vector.shape_cast %11 : vector<128xf32> to vector<1x128xf32>
    %c0_10 = arith.constant 0 : index
    %c0_11 = arith.constant 0 : index
    %c128 = arith.constant 128 : index
    %13 = vector.load %arg4[%c0_10, %c0_11, %c128] : memref<1x1x256xf32, #tpu.memory_space<vmem>>, vector<1x1x128xf32>
    %14 = vector.shape_cast %13 : vector<1x1x128xf32> to vector<1x128xf32>
    %15 = vector.shape_cast %12 : vector<1x128xf32> to vector<1x1x128xf32>
    tpu.vector_store %arg4[%c0_10, %c0_11, %c128], %15 {strides = array<i32>} : memref<1x1x256xf32, #tpu.memory_space<vmem>>, vector<1x1x128xf32>,
    return
  }
  func.func @transform_0(%arg0: i32) -> (i32, i32) {
    %c0_i32 = arith.constant 0 : i32
    %c0_i32_0 = arith.constant 0 : i32
    return %arg0, %c0_i32 : i32, i32
  }
  func.func @transform_1(%arg0: i32) -> (i32, i32) {
    %c0_i32 = arith.constant 0 : i32
    %c0_i32_0 = arith.constant 0 : i32
    %c0_i32_1 = arith.constant 0 : i32
    return %c0_i32, %c0_i32_0 : i32, i32
  }
  func.func @transform_2(%arg0: i32) -> (i32, i32) {
    %c0_i32 = arith.constant 0 : i32
    %c0_i32_0 = arith.constant 0 : i32
    return %arg0, %c0_i32 : i32, i32
  }
  func.func @transform_3(%arg0: i32) -> (i32, i32, i32) {
    %c0_i32 = arith.constant 0 : i32
    %c0_i32_0 = arith.constant 0 : i32
    %c0_i32_1 = arith.constant 0 : i32
    return %arg0, %c0_i32, %c0_i32_0 : i32, i32, i32
  }
}

module attributes {stable_mosaic.version = 11 : i64} {
  func.func @_bn_lrelu_kernel(%arg0: i32, %arg1: memref<128x128xbf16, #tpu.memory_space<vmem>>, %arg2: memref<1x128xf32, #tpu.memory_space<vmem>>, %arg3: memref<1x128xf32, #tpu.memory_space<vmem>>, %arg4: memref<128x128xbf16, #tpu.memory_space<vmem>>) attributes {dimension_semantics = [#tpu.dimension_semantics<parallel>], iteration_bounds = array<i64: 1>, scalar_prefetch = 0 : i64, scratch_operands = 0 : i64, tpu.core_type = #tpu.core_type<tc>, window_params = [{transform_indices = @transform_0, window_bounds = array<i64: 128, 128>}, {pipeline_mode = #tpu.pipeline_mode<synchronous>, transform_indices = @transform_1, window_bounds = array<i64: 1, 128>}, {pipeline_mode = #tpu.pipeline_mode<synchronous>, transform_indices = @transform_2, window_bounds = array<i64: 1, 128>}, {transform_indices = @transform_3, window_bounds = array<i64: 128, 128>}]} {
    %c0 = arith.constant 0 : index
    %c0_0 = arith.constant 0 : index
    %0 = vector.load %arg1[%c0, %c0_0] : memref<128x128xbf16, #tpu.memory_space<vmem>>, vector<128x128xbf16>
    %1 = arith.extf %0 : vector<128x128xbf16> to vector<128x128xf32>
    %c0_1 = arith.constant 0 : index
    %c0_2 = arith.constant 0 : index
    %2 = vector.load %arg2[%c0_1, %c0_2] : memref<1x128xf32, #tpu.memory_space<vmem>>, vector<1x128xf32>
    %3 = vector.broadcast %2 : vector<1x128xf32> to vector<128x128xf32>
    %4 = arith.mulf %1, %3 : vector<128x128xf32>
    %c0_3 = arith.constant 0 : index
    %c0_4 = arith.constant 0 : index
    %5 = vector.load %arg3[%c0_3, %c0_4] : memref<1x128xf32, #tpu.memory_space<vmem>>, vector<1x128xf32>
    %6 = vector.broadcast %5 : vector<1x128xf32> to vector<128x128xf32>
    %7 = arith.addf %4, %6 : vector<128x128xf32>
    %cst = arith.constant 0.000000e+00 : f32
    %8 = vector.broadcast %cst : f32 to vector<128x128xf32>
    %9 = arith.cmpf oge, %7, %8 : vector<128x128xf32>
    %cst_5 = arith.constant 2.000000e-01 : f32
    %10 = vector.broadcast %cst_5 : f32 to vector<128x128xf32>
    %11 = arith.mulf %10, %7 : vector<128x128xf32>
    %12 = arith.select %9, %7, %11 : vector<128x128xi1>, vector<128x128xf32>
    %13 = arith.truncf %12 : vector<128x128xf32> to vector<128x128xbf16>
    %c0_6 = arith.constant 0 : index
    %c0_7 = arith.constant 0 : index
    %14 = vector.load %arg4[%c0_6, %c0_7] : memref<128x128xbf16, #tpu.memory_space<vmem>>, vector<128x128xbf16>
    tpu.vector_store %arg4[%c0_6, %c0_7], %13 {strides = array<i32>} : memref<128x128xbf16, #tpu.memory_space<vmem>>, vector<128x128xbf16>,
    return
  }
  func.func @transform_0(%arg0: i32) -> (i32, i32) {
    %c0_i32 = arith.constant 0 : i32
    %c0_i32_0 = arith.constant 0 : i32
    return %arg0, %c0_i32 : i32, i32
  }
  func.func @transform_1(%arg0: i32) -> (i32, i32) {
    %c0_i32 = arith.constant 0 : i32
    %c0_i32_0 = arith.constant 0 : i32
    %c0_i32_1 = arith.constant 0 : i32
    return %c0_i32, %c0_i32_0 : i32, i32
  }
  func.func @transform_2(%arg0: i32) -> (i32, i32) {
    %c0_i32 = arith.constant 0 : i32
    %c0_i32_0 = arith.constant 0 : i32
    %c0_i32_1 = arith.constant 0 : i32
    return %c0_i32, %c0_i32_0 : i32, i32
  }
  func.func @transform_3(%arg0: i32) -> (i32, i32) {
    %c0_i32 = arith.constant 0 : i32
    %c0_i32_0 = arith.constant 0 : i32
    return %arg0, %c0_i32 : i32, i32
  }
}

module attributes {stable_mosaic.version = 11 : i64} {
  func.func @_conv_gemm_stats_kernel(%arg0: i32, %arg1: memref<16x3456xbf16, #tpu.memory_space<vmem>>, %arg2: memref<3456x256xbf16, #tpu.memory_space<vmem>>, %arg3: memref<16x256xbf16, #tpu.memory_space<vmem>>, %arg4: memref<1x1x512xf32, #tpu.memory_space<vmem>>) attributes {dimension_semantics = [#tpu.dimension_semantics<parallel>], iteration_bounds = array<i64: 1>, scalar_prefetch = 0 : i64, scratch_operands = 0 : i64, tpu.core_type = #tpu.core_type<tc>, window_params = [{transform_indices = @transform_0, window_bounds = array<i64: 16, 3456>}, {pipeline_mode = #tpu.pipeline_mode<synchronous>, transform_indices = @transform_1, window_bounds = array<i64: 3456, 256>}, {transform_indices = @transform_2, window_bounds = array<i64: 16, 256>}, {transform_indices = @transform_3, window_bounds = array<i64: 1, 1, 512>}]} {
    %c0 = arith.constant 0 : index
    %c0_0 = arith.constant 0 : index
    %0 = vector.load %arg1[%c0, %c0_0] : memref<16x3456xbf16, #tpu.memory_space<vmem>>, vector<16x3456xbf16>
    %c0_1 = arith.constant 0 : index
    %c0_2 = arith.constant 0 : index
    %1 = vector.load %arg2[%c0_1, %c0_2] : memref<3456x256xbf16, #tpu.memory_space<vmem>>, vector<3456x256xbf16>
    %cst = arith.constant dense<0.000000e+00> : vector<16x256xf32>
    %2 = tpu.matmul %0, %1, %cst {dimension_numbers = #tpu.dot_dimension_numbers<[1], [0], [0], [1], [0, 0, 1, 1], [], []>} : vector<16x3456xbf16>, vector<3456x256xbf16>, vector<16x256xf32> -> vector<16x256xf32>
    %3 = arith.truncf %2 : vector<16x256xf32> to vector<16x256xbf16>
    %c0_3 = arith.constant 0 : index
    %c0_4 = arith.constant 0 : index
    %4 = vector.load %arg3[%c0_3, %c0_4] : memref<16x256xbf16, #tpu.memory_space<vmem>>, vector<16x256xbf16>
    tpu.vector_store %arg3[%c0_3, %c0_4], %3 {strides = array<i32>} : memref<16x256xbf16, #tpu.memory_space<vmem>>, vector<16x256xbf16>,
    %cst_5 = arith.constant dense<0.000000e+00> : vector<256xf32>
    %5 = vector.multi_reduction <add>, %2, %cst_5 [0] : vector<16x256xf32> to vector<256xf32>
    %6 = vector.shape_cast %5 : vector<256xf32> to vector<1x256xf32>
    %c0_6 = arith.constant 0 : index
    %c0_7 = arith.constant 0 : index
    %c0_8 = arith.constant 0 : index
    %7 = vector.load %arg4[%c0_6, %c0_7, %c0_8] : memref<1x1x512xf32, #tpu.memory_space<vmem>>, vector<1x1x256xf32>
    %8 = vector.shape_cast %7 : vector<1x1x256xf32> to vector<1x256xf32>
    %9 = vector.shape_cast %6 : vector<1x256xf32> to vector<1x1x256xf32>
    tpu.vector_store %arg4[%c0_6, %c0_7, %c0_8], %9 {strides = array<i32>} : memref<1x1x512xf32, #tpu.memory_space<vmem>>, vector<1x1x256xf32>,
    %10 = arith.mulf %2, %2 : vector<16x256xf32>
    %cst_9 = arith.constant dense<0.000000e+00> : vector<256xf32>
    %11 = vector.multi_reduction <add>, %10, %cst_9 [0] : vector<16x256xf32> to vector<256xf32>
    %12 = vector.shape_cast %11 : vector<256xf32> to vector<1x256xf32>
    %c0_10 = arith.constant 0 : index
    %c0_11 = arith.constant 0 : index
    %c256 = arith.constant 256 : index
    %13 = vector.load %arg4[%c0_10, %c0_11, %c256] : memref<1x1x512xf32, #tpu.memory_space<vmem>>, vector<1x1x256xf32>
    %14 = vector.shape_cast %13 : vector<1x1x256xf32> to vector<1x256xf32>
    %15 = vector.shape_cast %12 : vector<1x256xf32> to vector<1x1x256xf32>
    tpu.vector_store %arg4[%c0_10, %c0_11, %c256], %15 {strides = array<i32>} : memref<1x1x512xf32, #tpu.memory_space<vmem>>, vector<1x1x256xf32>,
    return
  }
  func.func @transform_0(%arg0: i32) -> (i32, i32) {
    %c0_i32 = arith.constant 0 : i32
    %c0_i32_0 = arith.constant 0 : i32
    return %arg0, %c0_i32 : i32, i32
  }
  func.func @transform_1(%arg0: i32) -> (i32, i32) {
    %c0_i32 = arith.constant 0 : i32
    %c0_i32_0 = arith.constant 0 : i32
    %c0_i32_1 = arith.constant 0 : i32
    return %c0_i32, %c0_i32_0 : i32, i32
  }
  func.func @transform_2(%arg0: i32) -> (i32, i32) {
    %c0_i32 = arith.constant 0 : i32
    %c0_i32_0 = arith.constant 0 : i32
    return %arg0, %c0_i32 : i32, i32
  }
  func.func @transform_3(%arg0: i32) -> (i32, i32, i32) {
    %c0_i32 = arith.constant 0 : i32
    %c0_i32_0 = arith.constant 0 : i32
    %c0_i32_1 = arith.constant 0 : i32
    return %arg0, %c0_i32, %c0_i32_0 : i32, i32, i32
  }
}

module attributes {stable_mosaic.version = 11 : i64} {
  func.func @_bn_lrelu_kernel(%arg0: i32, %arg1: memref<16x256xbf16, #tpu.memory_space<vmem>>, %arg2: memref<1x256xf32, #tpu.memory_space<vmem>>, %arg3: memref<1x256xf32, #tpu.memory_space<vmem>>, %arg4: memref<16x256xbf16, #tpu.memory_space<vmem>>) attributes {dimension_semantics = [#tpu.dimension_semantics<parallel>], iteration_bounds = array<i64: 1>, scalar_prefetch = 0 : i64, scratch_operands = 0 : i64, tpu.core_type = #tpu.core_type<tc>, window_params = [{transform_indices = @transform_0, window_bounds = array<i64: 16, 256>}, {pipeline_mode = #tpu.pipeline_mode<synchronous>, transform_indices = @transform_1, window_bounds = array<i64: 1, 256>}, {pipeline_mode = #tpu.pipeline_mode<synchronous>, transform_indices = @transform_2, window_bounds = array<i64: 1, 256>}, {transform_indices = @transform_3, window_bounds = array<i64: 16, 256>}]} {
    %c0 = arith.constant 0 : index
    %c0_0 = arith.constant 0 : index
    %0 = vector.load %arg1[%c0, %c0_0] : memref<16x256xbf16, #tpu.memory_space<vmem>>, vector<16x256xbf16>
    %1 = arith.extf %0 : vector<16x256xbf16> to vector<16x256xf32>
    %c0_1 = arith.constant 0 : index
    %c0_2 = arith.constant 0 : index
    %2 = vector.load %arg2[%c0_1, %c0_2] : memref<1x256xf32, #tpu.memory_space<vmem>>, vector<1x256xf32>
    %3 = vector.broadcast %2 : vector<1x256xf32> to vector<16x256xf32>
    %4 = arith.mulf %1, %3 : vector<16x256xf32>
    %c0_3 = arith.constant 0 : index
    %c0_4 = arith.constant 0 : index
    %5 = vector.load %arg3[%c0_3, %c0_4] : memref<1x256xf32, #tpu.memory_space<vmem>>, vector<1x256xf32>
    %6 = vector.broadcast %5 : vector<1x256xf32> to vector<16x256xf32>
    %7 = arith.addf %4, %6 : vector<16x256xf32>
    %cst = arith.constant 0.000000e+00 : f32
    %8 = vector.broadcast %cst : f32 to vector<16x256xf32>
    %9 = arith.cmpf oge, %7, %8 : vector<16x256xf32>
    %cst_5 = arith.constant 2.000000e-01 : f32
    %10 = vector.broadcast %cst_5 : f32 to vector<16x256xf32>
    %11 = arith.mulf %10, %7 : vector<16x256xf32>
    %12 = arith.select %9, %7, %11 : vector<16x256xi1>, vector<16x256xf32>
    %13 = arith.truncf %12 : vector<16x256xf32> to vector<16x256xbf16>
    %c0_6 = arith.constant 0 : index
    %c0_7 = arith.constant 0 : index
    %14 = vector.load %arg4[%c0_6, %c0_7] : memref<16x256xbf16, #tpu.memory_space<vmem>>, vector<16x256xbf16>
    tpu.vector_store %arg4[%c0_6, %c0_7], %13 {strides = array<i32>} : memref<16x256xbf16, #tpu.memory_space<vmem>>, vector<16x256xbf16>,
    return
  }
  func.func @transform_0(%arg0: i32) -> (i32, i32) {
    %c0_i32 = arith.constant 0 : i32
    %c0_i32_0 = arith.constant 0 : i32
    return %arg0, %c0_i32 : i32, i32
  }
  func.func @transform_1(%arg0: i32) -> (i32, i32) {
    %c0_i32 = arith.constant 0 : i32
    %c0_i32_0 = arith.constant 0 : i32
    %c0_i32_1 = arith.constant 0 : i32
    return %c0_i32, %c0_i32_0 : i32, i32
  }
  func.func @transform_2(%arg0: i32) -> (i32, i32) {
    %c0_i32 = arith.constant 0 : i32
    %c0_i32_0 = arith.constant 0 : i32
    %c0_i32_1 = arith.constant 0 : i32
    return %c0_i32, %c0_i32_0 : i32, i32
  }
  func.func @transform_3(%arg0: i32) -> (i32, i32) {
    %c0_i32 = arith.constant 0 : i32
    %c0_i32_0 = arith.constant 0 : i32
    return %arg0, %c0_i32 : i32, i32
  }
}

module attributes {stable_mosaic.version = 11 : i64} {
  func.func @_bn_lrelu_kernel(%arg0: i32, %arg1: memref<16x256xbf16, #tpu.memory_space<vmem>>, %arg2: memref<1x256xf32, #tpu.memory_space<vmem>>, %arg3: memref<1x256xf32, #tpu.memory_space<vmem>>, %arg4: memref<16x256xf32, #tpu.memory_space<vmem>>) attributes {dimension_semantics = [#tpu.dimension_semantics<parallel>], iteration_bounds = array<i64: 1>, scalar_prefetch = 0 : i64, scratch_operands = 0 : i64, tpu.core_type = #tpu.core_type<tc>, window_params = [{transform_indices = @transform_0, window_bounds = array<i64: 16, 256>}, {pipeline_mode = #tpu.pipeline_mode<synchronous>, transform_indices = @transform_1, window_bounds = array<i64: 1, 256>}, {pipeline_mode = #tpu.pipeline_mode<synchronous>, transform_indices = @transform_2, window_bounds = array<i64: 1, 256>}, {transform_indices = @transform_3, window_bounds = array<i64: 16, 256>}]} {
    %c0 = arith.constant 0 : index
    %c0_0 = arith.constant 0 : index
    %0 = vector.load %arg1[%c0, %c0_0] : memref<16x256xbf16, #tpu.memory_space<vmem>>, vector<16x256xbf16>
    %1 = arith.extf %0 : vector<16x256xbf16> to vector<16x256xf32>
    %c0_1 = arith.constant 0 : index
    %c0_2 = arith.constant 0 : index
    %2 = vector.load %arg2[%c0_1, %c0_2] : memref<1x256xf32, #tpu.memory_space<vmem>>, vector<1x256xf32>
    %3 = vector.broadcast %2 : vector<1x256xf32> to vector<16x256xf32>
    %4 = arith.mulf %1, %3 : vector<16x256xf32>
    %c0_3 = arith.constant 0 : index
    %c0_4 = arith.constant 0 : index
    %5 = vector.load %arg3[%c0_3, %c0_4] : memref<1x256xf32, #tpu.memory_space<vmem>>, vector<1x256xf32>
    %6 = vector.broadcast %5 : vector<1x256xf32> to vector<16x256xf32>
    %7 = arith.addf %4, %6 : vector<16x256xf32>
    %cst = arith.constant 0.000000e+00 : f32
    %8 = vector.broadcast %cst : f32 to vector<16x256xf32>
    %9 = arith.cmpf oge, %7, %8 : vector<16x256xf32>
    %cst_5 = arith.constant 2.000000e-01 : f32
    %10 = vector.broadcast %cst_5 : f32 to vector<16x256xf32>
    %11 = arith.mulf %10, %7 : vector<16x256xf32>
    %12 = arith.select %9, %7, %11 : vector<16x256xi1>, vector<16x256xf32>
    %c0_6 = arith.constant 0 : index
    %c0_7 = arith.constant 0 : index
    %13 = vector.load %arg4[%c0_6, %c0_7] : memref<16x256xf32, #tpu.memory_space<vmem>>, vector<16x256xf32>
    tpu.vector_store %arg4[%c0_6, %c0_7], %12 {strides = array<i32>} : memref<16x256xf32, #tpu.memory_space<vmem>>, vector<16x256xf32>,
    return
  }
  func.func @transform_0(%arg0: i32) -> (i32, i32) {
    %c0_i32 = arith.constant 0 : i32
    %c0_i32_0 = arith.constant 0 : i32
    return %arg0, %c0_i32 : i32, i32
  }
  func.func @transform_1(%arg0: i32) -> (i32, i32) {
    %c0_i32 = arith.constant 0 : i32
    %c0_i32_0 = arith.constant 0 : i32
    %c0_i32_1 = arith.constant 0 : i32
    return %c0_i32, %c0_i32_0 : i32, i32
  }
  func.func @transform_2(%arg0: i32) -> (i32, i32) {
    %c0_i32 = arith.constant 0 : i32
    %c0_i32_0 = arith.constant 0 : i32
    %c0_i32_1 = arith.constant 0 : i32
    return %c0_i32, %c0_i32_0 : i32, i32
  }
  func.func @transform_3(%arg0: i32) -> (i32, i32) {
    %c0_i32 = arith.constant 0 : i32
    %c0_i32_0 = arith.constant 0 : i32
    return %arg0, %c0_i32 : i32, i32
  }
}

module attributes {stable_mosaic.version = 11 : i64} {
  func.func @_conv_gemm_stats_kernel(%arg0: i32, %arg1: memref<16x6912xbf16, #tpu.memory_space<vmem>>, %arg2: memref<6912x256xbf16, #tpu.memory_space<vmem>>, %arg3: memref<16x256xbf16, #tpu.memory_space<vmem>>, %arg4: memref<1x1x512xf32, #tpu.memory_space<vmem>>) attributes {dimension_semantics = [#tpu.dimension_semantics<parallel>], iteration_bounds = array<i64: 1>, scalar_prefetch = 0 : i64, scratch_operands = 0 : i64, tpu.core_type = #tpu.core_type<tc>, window_params = [{transform_indices = @transform_0, window_bounds = array<i64: 16, 6912>}, {pipeline_mode = #tpu.pipeline_mode<synchronous>, transform_indices = @transform_1, window_bounds = array<i64: 6912, 256>}, {transform_indices = @transform_2, window_bounds = array<i64: 16, 256>}, {transform_indices = @transform_3, window_bounds = array<i64: 1, 1, 512>}]} {
    %c0 = arith.constant 0 : index
    %c0_0 = arith.constant 0 : index
    %0 = vector.load %arg1[%c0, %c0_0] : memref<16x6912xbf16, #tpu.memory_space<vmem>>, vector<16x6912xbf16>
    %c0_1 = arith.constant 0 : index
    %c0_2 = arith.constant 0 : index
    %1 = vector.load %arg2[%c0_1, %c0_2] : memref<6912x256xbf16, #tpu.memory_space<vmem>>, vector<6912x256xbf16>
    %cst = arith.constant dense<0.000000e+00> : vector<16x256xf32>
    %2 = tpu.matmul %0, %1, %cst {dimension_numbers = #tpu.dot_dimension_numbers<[1], [0], [0], [1], [0, 0, 1, 1], [], []>} : vector<16x6912xbf16>, vector<6912x256xbf16>, vector<16x256xf32> -> vector<16x256xf32>
    %3 = arith.truncf %2 : vector<16x256xf32> to vector<16x256xbf16>
    %c0_3 = arith.constant 0 : index
    %c0_4 = arith.constant 0 : index
    %4 = vector.load %arg3[%c0_3, %c0_4] : memref<16x256xbf16, #tpu.memory_space<vmem>>, vector<16x256xbf16>
    tpu.vector_store %arg3[%c0_3, %c0_4], %3 {strides = array<i32>} : memref<16x256xbf16, #tpu.memory_space<vmem>>, vector<16x256xbf16>,
    %cst_5 = arith.constant dense<0.000000e+00> : vector<256xf32>
    %5 = vector.multi_reduction <add>, %2, %cst_5 [0] : vector<16x256xf32> to vector<256xf32>
    %6 = vector.shape_cast %5 : vector<256xf32> to vector<1x256xf32>
    %c0_6 = arith.constant 0 : index
    %c0_7 = arith.constant 0 : index
    %c0_8 = arith.constant 0 : index
    %7 = vector.load %arg4[%c0_6, %c0_7, %c0_8] : memref<1x1x512xf32, #tpu.memory_space<vmem>>, vector<1x1x256xf32>
    %8 = vector.shape_cast %7 : vector<1x1x256xf32> to vector<1x256xf32>
    %9 = vector.shape_cast %6 : vector<1x256xf32> to vector<1x1x256xf32>
    tpu.vector_store %arg4[%c0_6, %c0_7, %c0_8], %9 {strides = array<i32>} : memref<1x1x512xf32, #tpu.memory_space<vmem>>, vector<1x1x256xf32>,
    %10 = arith.mulf %2, %2 : vector<16x256xf32>
    %cst_9 = arith.constant dense<0.000000e+00> : vector<256xf32>
    %11 = vector.multi_reduction <add>, %10, %cst_9 [0] : vector<16x256xf32> to vector<256xf32>
    %12 = vector.shape_cast %11 : vector<256xf32> to vector<1x256xf32>
    %c0_10 = arith.constant 0 : index
    %c0_11 = arith.constant 0 : index
    %c256 = arith.constant 256 : index
    %13 = vector.load %arg4[%c0_10, %c0_11, %c256] : memref<1x1x512xf32, #tpu.memory_space<vmem>>, vector<1x1x256xf32>
    %14 = vector.shape_cast %13 : vector<1x1x256xf32> to vector<1x256xf32>
    %15 = vector.shape_cast %12 : vector<1x256xf32> to vector<1x1x256xf32>
    tpu.vector_store %arg4[%c0_10, %c0_11, %c256], %15 {strides = array<i32>} : memref<1x1x512xf32, #tpu.memory_space<vmem>>, vector<1x1x256xf32>,
    return
  }
  func.func @transform_0(%arg0: i32) -> (i32, i32) {
    %c0_i32 = arith.constant 0 : i32
    %c0_i32_0 = arith.constant 0 : i32
    return %arg0, %c0_i32 : i32, i32
  }
  func.func @transform_1(%arg0: i32) -> (i32, i32) {
    %c0_i32 = arith.constant 0 : i32
    %c0_i32_0 = arith.constant 0 : i32
    %c0_i32_1 = arith.constant 0 : i32
    return %c0_i32, %c0_i32_0 : i32, i32
  }
  func.func @transform_2(%arg0: i32) -> (i32, i32) {
    %c0_i32 = arith.constant 0 : i32
    %c0_i32_0 = arith.constant 0 : i32
    return %arg0, %c0_i32 : i32, i32
  }
  func.func @transform_3(%arg0: i32) -> (i32, i32, i32) {
    %c0_i32 = arith.constant 0 : i32
    %c0_i32_0 = arith.constant 0 : i32
    %c0_i32_1 = arith.constant 0 : i32
    return %arg0, %c0_i32, %c0_i32_0 : i32, i32, i32
  }
}

</mosaic_0001>

<bundles_post_ra>
// kernel: _lambda_.9
= control target key start
LH: loop header
LB: loop body
LE: loop exit
PB: predicated region body
PF: predicated region fallthrough
CT: control target
= control target key end

     0   :  { %s1539_s12 = smov 0   ;;  %s1770_s0 = inlined_call_operand.vmem [shape: bf16[1024,128], index: 0, kind: input, shape index: {}]   ;;  %s1771_s1 = inlined_call_operand.vmem [shape: f32[1,128], index: 1, kind: input, shape index: {}]   ;;  %s1772_s2 = inlined_call_operand.vmem [shape: f32[1,128], index: 2, kind: input, shape index: {}]   ;;  %s1773_s3 = inlined_call_operand.vmem [shape: bf16[1024,128], index: 3, kind: output, shape index: {}]  }
   0x1 LB: > { %s1012_s13 = sadd.s32 4294967295, %s1517_s12   ;;  %p1016_p0 = scmp.ge.s32.totalorder %s1517_s12, 1  ;;  %s1517_s12 = sphi %s1539_s12, %s13_s12  }
   0x2   : > { %p138_p1 = scmp.lt.s32.totalorder %s1517_s12, 3 }
   0x4   : > { %p139_p2 = pnand %p1016_p0, %p138_p1 }
   0x5   : > { %s1017_s14 = sshll.u32 (!%p139_p2), %s1012_s13, 6  ;;  %v1560_v0 = vld [vmem:[%s1771_s1] ss:$0 sm:$0xff] (!%p139_p2) }
   0x6   : > { %142 = sbr.rel (%p139_p2) target bundleno = 129 (0x81), region = 32  ;;  %p163_p3 = scmp.lt.s32.totalorder (!%p139_p2), %s1017_s14, 127  ;;  %v1569_v9 = vld [vmem:[%s1772_s2] ss:$0 sm:$0xff] (!%p139_p2) }
   0xd   : > { %s1775_s14 = smov (!%p163_p3, %s1017_s14), 127 }
   0xe   : > { %s1018_s15 = sshll.u32 %s1775_s14, 2 }
   0xf   : > { %s1555_s18 = scalar_lea.vmem %s1770_s0, %s1018_s15  ;;  %s1592_s25 = scalar_lea.vmem %s1773_s3, %s1018_s15 }
  0x10   : > { %v1154_v1 = vld [vmem:[%s1555_s18] sm:$0xff]   ;;  %v1441_v2 = vld [vmem:[%s1555_s18 + $0x8] sm:$0xff]   ;;  %v1442_v3 = vld [vmem:[%s1555_s18 + $0x10] sm:$0xff]  }
  0x11   : > { %v1155_v4 = vunpack.c.l.bf16 %v1154_v1  ;;  %v1156_v5 = vunpack.c.h.bf16 %v1154_v1  ;;  %v1159_v6 = vunpack.c.l.bf16 %v1441_v2  ;;  %v1160_v7 = vunpack.c.h.bf16 %v1441_v2  ;;  %v1443_v8 = vld [vmem:[%s1555_s18 + $0x18] sm:$0xff]   ;;  %v1444_v36 = vld [vmem:[%s1555_s18 + $0x20] sm:$0xff]   ;;  %v1445_v41 = vld [vmem:[%s1555_s18 + $0x28] sm:$0xff]  }
  0x12   : > { %v1163_v10 = vunpack.c.l.bf16 %v1442_v3  ;;  %v1164_v11 = vunpack.c.h.bf16 %v1442_v3  ;;  %v1167_v12 = vunpack.c.l.bf16 %v1443_v8  ;;  %v1168_v13 = vunpack.c.h.bf16 %v1443_v8  ;;  %v1446_v52 = vld [vmem:[%s1555_s18 + $0x30] sm:$0xff]   ;;  %v1447_v53 = vld [vmem:[%s1555_s18 + $0x38] sm:$0xff]  }
  0x13   : > { %v309_v14 = vmul.f32 %v1155_v4, %v1560_v0  ;;  %v310_v15 = vmul.f32 %v1156_v5, %v1560_v0  ;;  %v311_v16 = vmul.f32 %v1159_v6, %v1560_v0  ;;  %v312_v17 = vmul.f32 %v1160_v7, %v1560_v0 }
  0x14   : > { %v313_v18 = vmul.f32 %v1163_v10, %v1560_v0  ;;  %v314_v19 = vmul.f32 %v1164_v11, %v1560_v0  ;;  %v315_v20 = vmul.f32 %v1167_v12, %v1560_v0  ;;  %v316_v21 = vmul.f32 %v1168_v13, %v1560_v0 }
  0x15   : > { %v380_v22 = vadd.f32 %v1569_v9, %v309_v14  ;;  %v381_v23 = vadd.f32 %v1569_v9, %v310_v15  ;;  %v382_v24 = vadd.f32 %v1569_v9, %v311_v16  ;;  %v383_v25 = vadd.f32 %v1569_v9, %v312_v17 }
  0x16   : > { %v384_v26 = vadd.f32 %v1569_v9, %v313_v18  ;;  %v385_v27 = vadd.f32 %v1569_v9, %v314_v19  ;;  %v386_v28 = vadd.f32 %v1569_v9, %v315_v20  ;;  %v387_v29 = vadd.f32 %v1569_v9, %v316_v21  ;;  %v1448_v20 = vld [vmem:[%s1555_s18 + $0x40] sm:$0xff]  }
  0x17   : > { %vm444_vm0 = vcmp.ge.f32.partialorder %v380_v22, 0.0  ;;  %vm445_vm1 = vcmp.ge.f32.partialorder %v381_v23, 0.0  ;;  %v508_v30 = vmul.f32 0.2, %v380_v22  ;;  %v509_v31 = vmul.f32 0.2, %v381_v23 }
  0x18   : > { %vm446_vm2 = vcmp.ge.f32.partialorder %v382_v24, 0.0  ;;  %vm447_vm3 = vcmp.ge.f32.partialorder %v383_v25, 0.0  ;;  %v510_v32 = vmul.f32 0.2, %v382_v24  ;;  %v511_v33 = vmul.f32 0.2, %v383_v25 }
  0x19   : > { %v572_v34 = vsel %vm444_vm0, %v380_v22, %v508_v30  ;;  %v573_v35 = vsel %vm445_vm1, %v381_v23, %v509_v31  ;;  %vm448_vm4 = vcmp.ge.f32.partialorder %v384_v26, 0.0  ;;  %vm449_vm5 = vcmp.ge.f32.partialorder %v385_v27, 0.0 }
  0x1a   : > { %v1284_v37 = vpack.c.bf16 %v573_v35, %v572_v34  ;;  %v574_v38 = vsel %vm446_vm2, %v382_v24, %v510_v32  ;;  %v575_v39 = vsel %vm447_vm3, %v383_v25, %v511_v33  ;;  %v512_v40 = vmul.f32 0.2, %v384_v26  ;;  %v1449_v24 = vld [vmem:[%s1555_s18 + $0x48] sm:$0xff]  }
  0x1b   : > { %v1289_v42 = vpack.c.bf16 %v575_v39, %v574_v38  ;;  %v513_v43 = vmul.f32 0.2, %v385_v27  ;;  %vm450_vm6 = vcmp.ge.f32.partialorder %v386_v28, 0.0  ;;  %vm451_vm7 = vcmp.ge.f32.partialorder %v387_v29, 0.0 }
  0x1c   : > { %1285 = vst [vmem:[%s1592_s25] sm:$0xff] %v1284_v37   ;;  %v576_v44 = vsel %vm448_vm4, %v384_v26, %v512_v40  ;;  %v514_v45 = vmul.f32 0.2, %v386_v28  ;;  %v515_v46 = vmul.f32 0.2, %v387_v29  ;;  %v1171_v47 = vunpack.c.l.bf16 %v1444_v36 }
  0x1d   : > { %1472 = vst [vmem:[%s1592_s25 + $0x8] sm:$0xff] %v1289_v42   ;;  %v577_v48 = vsel %vm449_vm5, %v385_v27, %v513_v43  ;;  %v1172_v49 = vunpack.c.h.bf16 %v1444_v36  ;;  %v1175_v50 = vunpack.c.l.bf16 %v1445_v41  ;;  %v1176_v51 = vunpack.c.h.bf16 %v1445_v41  ;;  %v1450_v36 = vld [vmem:[%s1555_s18 + $0x50] sm:$0xff]  }
  0x1e   : > { %v1294_v54 = vpack.c.bf16 %v577_v48, %v576_v44  ;;  %v578_v55 = vsel %vm450_vm6, %v386_v28, %v514_v45  ;;  %v579_v56 = vsel %vm451_vm7, %v387_v29, %v515_v46  ;;  %v317_v57 = vmul.f32 %v1171_v47, %v1560_v0 }
  0x1f   : > { %v1299_v58 = vpack.c.bf16 %v579_v56, %v578_v55  ;;  %v318_v59 = vmul.f32 %v1172_v49, %v1560_v0  ;;  %v319_v60 = vmul.f32 %v1175_v50, %v1560_v0  ;;  %v320_v61 = vmul.f32 %v1176_v51, %v1560_v0  ;;  %v1451_v55 = vld [vmem:[%s1555_s18 + $0x58] sm:$0xff]  }
  0x20   : > { %1473 = vst [vmem:[%s1592_s25 + $0x10] sm:$0xff] %v1294_v54   ;;  %v388_v62 = vadd.f32 %v1569_v9, %v317_v57  ;;  %v1179_v63 = vunpack.c.l.bf16 %v1446_v52  ;;  %v1180_v1 = vunpack.c.h.bf16 %v1446_v52  ;;  %v1183_v2 = vunpack.c.l.bf16 %v1447_v53 }
  0x21   : > { %1474 = vst [vmem:[%s1592_s25 + $0x18] sm:$0xff] %v1299_v58   ;;  %v389_v3 = vadd.f32 %v1569_v9, %v318_v59  ;;  %v390_v4 = vadd.f32 %v1569_v9, %v319_v60  ;;  %v391_v5 = vadd.f32 %v1569_v9, %v320_v61  ;;  %v1184_v6 = vunpack.c.h.bf16 %v1447_v53 }
  0x22   : > { %vm452_vm8 = vcmp.ge.f32.partialorder %v388_v62, 0.0  ;;  %v516_v7 = vmul.f32 0.2, %v388_v62  ;;  %v321_v8 = vmul.f32 %v1179_v63, %v1560_v0  ;;  %v322_v10 = vmul.f32 %v1180_v1, %v1560_v0  ;;  %v1452_v1 = vld [vmem:[%s1555_s18 + $0x60] sm:$0xff]  }
  0x23   : > { %vm453_vm9 = vcmp.ge.f32.partialorder %v389_v3, 0.0  ;;  %v517_v11 = vmul.f32 0.2, %v389_v3  ;;  %vm454_vm10 = vcmp.ge.f32.partialorder %v390_v4, 0.0  ;;  %vm455_vm11 = vcmp.ge.f32.partialorder %v391_v5, 0.0 }
  0x24   : > { %v580_v12 = vsel %vm452_vm8, %v388_v62, %v516_v7  ;;  %v518_v13 = vmul.f32 0.2, %v390_v4  ;;  %v519_v14 = vmul.f32 0.2, %v391_v5  ;;  %v392_v15 = vadd.f32 %v1569_v9, %v321_v8 }
  0x25   : > { %v581_v16 = vsel %vm453_vm9, %v389_v3, %v517_v11  ;;  %v393_v17 = vadd.f32 %v1569_v9, %v322_v10  ;;  %v323_v18 = vmul.f32 %v1183_v2, %v1560_v0  ;;  %v324_v19 = vmul.f32 %v1184_v6, %v1560_v0  ;;  %v1453_v6 = vld [vmem:[%s1555_s18 + $0x68] sm:$0xff]  }
  0x26   : > { %v1304_v21 = vpack.c.bf16 %v581_v16, %v580_v12  ;;  %v582_v22 = vsel %vm454_vm10, %v390_v4, %v518_v13  ;;  %v583_v23 = vsel %vm455_vm11, %v391_v5, %v519_v14  ;;  %vm456_vm12 = vcmp.ge.f32.partialorder %v392_v15, 0.0 }
  0x27   : > { %v1309_v25 = vpack.c.bf16 %v583_v23, %v582_v22  ;;  %vm457_vm13 = vcmp.ge.f32.partialorder %v393_v17, 0.0  ;;  %v520_v26 = vmul.f32 0.2, %v392_v15  ;;  %v521_v27 = vmul.f32 0.2, %v393_v17  ;;  %v1454_v22 = vld [vmem:[%s1555_s18 + $0x70] sm:$0xff]  }
  0x28   : > { %1475 = vst [vmem:[%s1592_s25 + $0x20] sm:$0xff] %v1304_v21   ;;  %v394_v28 = vadd.f32 %v1569_v9, %v323_v18  ;;  %v395_v29 = vadd.f32 %v1569_v9, %v324_v19  ;;  %v1187_v30 = vunpack.c.l.bf16 %v1448_v20  ;;  %v1188_v31 = vunpack.c.h.bf16 %v1448_v20 }
  0x29   : > { %1476 = vst [vmem:[%s1592_s25 + $0x28] sm:$0xff] %v1309_v25   ;;  %v584_v32 = vsel %vm456_vm12, %v392_v15, %v520_v26  ;;  %v585_v33 = vsel %vm457_vm13, %v393_v17, %v521_v27  ;;  %v1191_v34 = vunpack.c.l.bf16 %v1449_v24  ;;  %v1192_v35 = vunpack.c.h.bf16 %v1449_v24 }
  0x2a   : > { %v1314_v37 = vpack.c.bf16 %v585_v33, %v584_v32  ;;  %vm458_vm14 = vcmp.ge.f32.partialorder %v394_v28, 0.0  ;;  %vm459_vm15 = vcmp.ge.f32.partialorder %v395_v29, 0.0  ;;  %v522_v38 = vmul.f32 0.2, %v394_v28 }
  0x2b   : > { %v523_v39 = vmul.f32 0.2, %v395_v29  ;;  %v325_v40 = vmul.f32 %v1187_v30, %v1560_v0  ;;  %v326_v41 = vmul.f32 %v1188_v31, %v1560_v0  ;;  %v327_v42 = vmul.f32 %v1191_v34, %v1560_v0 }
  0x2c   : > { %1477 = vst [vmem:[%s1592_s25 + $0x30] sm:$0xff] %v1314_v37   ;;  %v586_v43 = vsel %vm458_vm14, %v394_v28, %v522_v38  ;;  %v328_v44 = vmul.f32 %v1192_v35, %v1560_v0  ;;  %v1195_v45 = vunpack.c.l.bf16 %v1450_v36  ;;  %v1196_v46 = vunpack.c.h.bf16 %v1450_v36 }
  0x2d   : > { %v587_v47 = vsel %vm459_vm15, %v395_v29, %v523_v39  ;;  %v396_v48 = vadd.f32 %v1569_v9, %v325_v40  ;;  %v397_v49 = vadd.f32 %v1569_v9, %v326_v41  ;;  %v398_v50 = vadd.f32 %v1569_v9, %v327_v42  ;;  %v1455_v41 = vld [vmem:[%s1555_s18 + $0x78] sm:$0xff]  }
  0x2e   : > { %v1319_v51 = vpack.c.bf16 %v587_v47, %v586_v43  ;;  %v399_v52 = vadd.f32 %v1569_v9, %v328_v44  ;;  %v329_v53 = vmul.f32 %v1195_v45, %v1560_v0  ;;  %v330_v54 = vmul.f32 %v1196_v46, %v1560_v0  ;;  %v1456_v46 = vld [vmem:[%s1555_s18 + $0x80] sm:$0xff]   ;;  %v1457_v47 = vld [vmem:[%s1555_s18 + $0x88] sm:$0xff]  }
  0x2f   : > { %vm460_vm0 = vcmp.ge.f32.partialorder %v396_v48, 0.0  ;;  %vm461_vm1 = vcmp.ge.f32.partialorder %v397_v49, 0.0  ;;  %v524_v56 = vmul.f32 0.2, %v396_v48  ;;  %v525_v57 = vmul.f32 0.2, %v397_v49 }
  0x30   : > { %1478 = vst [vmem:[%s1592_s25 + $0x38] sm:$0xff] %v1319_v51   ;;  %vm462_vm2 = vcmp.ge.f32.partialorder %v398_v50, 0.0  ;;  %vm463_vm3 = vcmp.ge.f32.partialorder %v399_v52, 0.0  ;;  %v526_v58 = vmul.f32 0.2, %v398_v50  ;;  %v400_v62 = vadd.f32 %v1569_v9, %v329_v53 }
  0x31   : > { %v527_v59 = vmul.f32 0.2, %v399_v52  ;;  %v588_v60 = vsel %vm460_vm0, %v396_v48, %v524_v56  ;;  %v589_v61 = vsel %vm461_vm1, %v397_v49, %v525_v57  ;;  %v401_v63 = vadd.f32 %v1569_v9, %v330_v54 }
  0x32   : > { %v1324_v2 = vpack.c.bf16 %v589_v61, %v588_v60  ;;  %v590_v3 = vsel %vm462_vm2, %v398_v50, %v526_v58  ;;  %v1199_v5 = vunpack.c.l.bf16 %v1451_v55  ;;  %vm464_vm4 = vcmp.ge.f32.partialorder %v400_v62, 0.0 }
  0x33   : > { %v591_v4 = vsel %vm463_vm3, %v399_v52, %v527_v59  ;;  %vm465_vm5 = vcmp.ge.f32.partialorder %v401_v63, 0.0  ;;  %v528_v8 = vmul.f32 0.2, %v400_v62  ;;  %v529_v10 = vmul.f32 0.2, %v401_v63 }
  0x34   : > { %v1329_v7 = vpack.c.bf16 %v591_v4, %v590_v3  ;;  %1479 = vst [vmem:[%s1592_s25 + $0x40] sm:$0xff] %v1324_v2   ;;  %v1200_v11 = vunpack.c.h.bf16 %v1451_v55  ;;  %v331_v12 = vmul.f32 %v1199_v5, %v1560_v0  ;;  %v1203_v13 = vunpack.c.l.bf16 %v1452_v1 }
  0x35   : > { %v592_v14 = vsel %vm464_vm4, %v400_v62, %v528_v8  ;;  %v1204_v15 = vunpack.c.h.bf16 %v1452_v1  ;;  %v1207_v16 = vunpack.c.l.bf16 %v1453_v6  ;;  %v1208_v17 = vunpack.c.h.bf16 %v1453_v6 }
  0x36   : > { %1480 = vst [vmem:[%s1592_s25 + $0x48] sm:$0xff] %v1329_v7   ;;  %v593_v18 = vsel %vm465_vm5, %v401_v63, %v529_v10  ;;  %v332_v19 = vmul.f32 %v1200_v11, %v1560_v0  ;;  %v402_v20 = vadd.f32 %v1569_v9, %v331_v12  ;;  %v333_v21 = vmul.f32 %v1203_v13, %v1560_v0 }
  0x37   : > { %v1334_v23 = vpack.c.bf16 %v593_v18, %v592_v14  ;;  %v334_v24 = vmul.f32 %v1204_v15, %v1560_v0  ;;  %v335_v25 = vmul.f32 %v1207_v16, %v1560_v0  ;;  %v336_v26 = vmul.f32 %v1208_v17, %v1560_v0  ;;  %v1458_v14 = vld [vmem:[%s1555_s18 + $0x90] sm:$0xff]  }
  0x38   : > { %v403_v27 = vadd.f32 %v1569_v9, %v332_v19  ;;  %vm466_vm6 = vcmp.ge.f32.partialorder %v402_v20, 0.0  ;;  %v530_v28 = vmul.f32 0.2, %v402_v20  ;;  %v404_v29 = vadd.f32 %v1569_v9, %v333_v21 }
  0x39   : > { %1481 = vst [vmem:[%s1592_s25 + $0x50] sm:$0xff] %v1334_v23   ;;  %v405_v30 = vadd.f32 %v1569_v9, %v334_v24  ;;  %v406_v31 = vadd.f32 %v1569_v9, %v335_v25  ;;  %v407_v32 = vadd.f32 %v1569_v9, %v336_v26  ;;  %v1211_v33 = vunpack.c.l.bf16 %v1454_v22  ;;  %v1459_v25 = vld [vmem:[%s1555_s18 + $0x98] sm:$0xff]  }
  0x3a   : > { %vm467_vm7 = vcmp.ge.f32.partialorder %v403_v27, 0.0  ;;  %v531_v34 = vmul.f32 0.2, %v403_v27  ;;  %v594_v35 = vsel %vm466_vm6, %v402_v20, %v530_v28  ;;  %vm468_vm8 = vcmp.ge.f32.partialorder %v404_v29, 0.0 }
  0x3b   : > { %vm469_vm9 = vcmp.ge.f32.partialorder %v405_v30, 0.0  ;;  %v532_v36 = vmul.f32 0.2, %v404_v29  ;;  %v533_v37 = vmul.f32 0.2, %v405_v30  ;;  %vm470_vm10 = vcmp.ge.f32.partialorder %v406_v31, 0.0 }
  0x3c   : > { %v595_v38 = vsel %vm467_vm7, %v403_v27, %v531_v34  ;;  %vm471_vm11 = vcmp.ge.f32.partialorder %v407_v32, 0.0  ;;  %v534_v39 = vmul.f32 0.2, %v406_v31  ;;  %v535_v40 = vmul.f32 0.2, %v407_v32 }
  0x3d   : > { %v1339_v42 = vpack.c.bf16 %v595_v38, %v594_v35  ;;  %v596_v43 = vsel %vm468_vm8, %v404_v29, %v532_v36  ;;  %v597_v44 = vsel %vm469_vm9, %v405_v30, %v533_v37  ;;  %v1212_v45 = vunpack.c.h.bf16 %v1454_v22  ;;  %v1460_v30 = vld [vmem:[%s1555_s18 + $0xa0] sm:$0xff]  }
  0x3e   : > { %v1344_v48 = vpack.c.bf16 %v597_v44, %v596_v43  ;;  %v598_v49 = vsel %vm470_vm10, %v406_v31, %v534_v39  ;;  %v599_v50 = vsel %vm471_vm11, %v407_v32, %v535_v40  ;;  %v337_v51 = vmul.f32 %v1211_v33, %v1560_v0 }
  0x3f   : > { %1482 = vst [vmem:[%s1592_s25 + $0x58] sm:$0xff] %v1339_v42   ;;  %v1349_v52 = vpack.c.bf16 %v599_v50, %v598_v49  ;;  %v338_v53 = vmul.f32 %v1212_v45, %v1560_v0  ;;  %v1215_v54 = vunpack.c.l.bf16 %v1455_v41  ;;  %v1216_v55 = vunpack.c.h.bf16 %v1455_v41  ;;  %v1461_v45 = vld [vmem:[%s1555_s18 + $0xa8] sm:$0xff]  }
  0x40   : > { %1483 = vst [vmem:[%s1592_s25 + $0x60] sm:$0xff] %v1344_v48   ;;  %v408_v56 = vadd.f32 %v1569_v9, %v337_v51  ;;  %v1219_v57 = vunpack.c.l.bf16 %v1456_v46  ;;  %v1220_v58 = vunpack.c.h.bf16 %v1456_v46  ;;  %v1223_v59 = vunpack.c.l.bf16 %v1457_v47 }
  0x41   : > { %1484 = vst [vmem:[%s1592_s25 + $0x68] sm:$0xff] %v1349_v52   ;;  %v409_v60 = vadd.f32 %v1569_v9, %v338_v53  ;;  %v339_v61 = vmul.f32 %v1215_v54, %v1560_v0  ;;  %v340_v62 = vmul.f32 %v1216_v55, %v1560_v0  ;;  %v1224_v63 = vunpack.c.h.bf16 %v1457_v47 }
  0x42   : > { %vm472_vm12 = vcmp.ge.f32.partialorder %v408_v56, 0.0  ;;  %v536_v1 = vmul.f32 0.2, %v408_v56  ;;  %v341_v2 = vmul.f32 %v1219_v57, %v1560_v0  ;;  %v342_v3 = vmul.f32 %v1220_v58, %v1560_v0 }
  0x43   : > { %vm473_vm13 = vcmp.ge.f32.partialorder %v409_v60, 0.0  ;;  %v537_v4 = vmul.f32 0.2, %v409_v60  ;;  %v410_v5 = vadd.f32 %v1569_v9, %v339_v61  ;;  %v411_v6 = vadd.f32 %v1569_v9, %v340_v62  ;;  %v1462_v62 = vld [vmem:[%s1555_s18 + $0xb0] sm:$0xff]  }
  0x44   : > { %v600_v7 = vsel %vm472_vm12, %v408_v56, %v536_v1  ;;  %v412_v8 = vadd.f32 %v1569_v9, %v341_v2  ;;  %v413_v10 = vadd.f32 %v1569_v9, %v342_v3  ;;  %v343_v11 = vmul.f32 %v1223_v59, %v1560_v0  ;;  %v1463_v3 = vld [vmem:[%s1555_s18 + $0xb8] sm:$0xff]  }
  0x45   : > { %v601_v12 = vsel %vm473_vm13, %v409_v60, %v537_v4  ;;  %vm474_vm14 = vcmp.ge.f32.partialorder %v410_v5, 0.0  ;;  %vm475_vm15 = vcmp.ge.f32.partialorder %v411_v6, 0.0  ;;  %v538_v13 = vmul.f32 0.2, %v410_v5 }
  0x46   : > { %v1354_v15 = vpack.c.bf16 %v601_v12, %v600_v7  ;;  %v539_v16 = vmul.f32 0.2, %v411_v6  ;;  %vm476_vm0 = vcmp.ge.f32.partialorder %v412_v8, 0.0  ;;  %vm477_vm1 = vcmp.ge.f32.partialorder %v413_v10, 0.0 }
  0x47   : > { %v602_v17 = vsel %vm474_vm14, %v410_v5, %v538_v13  ;;  %v540_v18 = vmul.f32 0.2, %v412_v8  ;;  %v541_v19 = vmul.f32 0.2, %v413_v10  ;;  %v344_v20 = vmul.f32 %v1224_v63, %v1560_v0 }
  0x48   : > { %1485 = vst [vmem:[%s1592_s25 + $0x70] sm:$0xff] %v1354_v15   ;;  %v603_v21 = vsel %vm475_vm15, %v411_v6, %v539_v16  ;;  %v414_v22 = vadd.f32 %v1569_v9, %v343_v11  ;;  %v1227_v23 = vunpack.c.l.bf16 %v1458_v14  ;;  %v1228_v24 = vunpack.c.h.bf16 %v1458_v14 }
  0x49   : > { %v1359_v26 = vpack.c.bf16 %v603_v21, %v602_v17  ;;  %v604_v27 = vsel %vm476_vm0, %v412_v8, %v540_v18  ;;  %v605_v28 = vsel %vm477_vm1, %v413_v10, %v541_v19  ;;  %v415_v29 = vadd.f32 %v1569_v9, %v344_v20  ;;  %v1464_v20 = vld [vmem:[%s1555_s18 + $0xc0] sm:$0xff]  }
  0x4a   : > { %v1364_v31 = vpack.c.bf16 %v605_v28, %v604_v27  ;;  %vm478_vm2 = vcmp.ge.f32.partialorder %v414_v22, 0.0  ;;  %v542_v32 = vmul.f32 0.2, %v414_v22  ;;  %v345_v33 = vmul.f32 %v1227_v23, %v1560_v0 }
  0x4b   : > { %1486 = vst [vmem:[%s1592_s25 + $0x78] sm:$0xff] %v1359_v26   ;;  %vm479_vm3 = vcmp.ge.f32.partialorder %v415_v29, 0.0  ;;  %v543_v34 = vmul.f32 0.2, %v415_v29  ;;  %v346_v35 = vmul.f32 %v1228_v24, %v1560_v0  ;;  %v1231_v36 = vunpack.c.l.bf16 %v1459_v25 }
  0x4c   : > { %1487 = vst [vmem:[%s1592_s25 + $0x80] sm:$0xff] %v1364_v31   ;;  %v606_v37 = vsel %vm478_vm2, %v414_v22, %v542_v32  ;;  %v416_v38 = vadd.f32 %v1569_v9, %v345_v33  ;;  %v1232_v39 = vunpack.c.h.bf16 %v1459_v25  ;;  %v1235_v40 = vunpack.c.l.bf16 %v1460_v30 }
  0x4d   : > { %v607_v41 = vsel %vm479_vm3, %v415_v29, %v543_v34  ;;  %v417_v42 = vadd.f32 %v1569_v9, %v346_v35  ;;  %v347_v43 = vmul.f32 %v1231_v36, %v1560_v0  ;;  %v1236_v44 = vunpack.c.h.bf16 %v1460_v30  ;;  %v1465_v34 = vld [vmem:[%s1555_s18 + $0xc8] sm:$0xff]  }
  0x4e   : > { %v1369_v46 = vpack.c.bf16 %v607_v41, %v606_v37  ;;  %vm480_vm4 = vcmp.ge.f32.partialorder %v416_v38, 0.0  ;;  %v544_v47 = vmul.f32 0.2, %v416_v38  ;;  %v348_v48 = vmul.f32 %v1232_v39, %v1560_v0 }
  0x4f   : > { %vm481_vm5 = vcmp.ge.f32.partialorder %v417_v42, 0.0  ;;  %v545_v49 = vmul.f32 0.2, %v417_v42  ;;  %v418_v50 = vadd.f32 %v1569_v9, %v347_v43  ;;  %v349_v51 = vmul.f32 %v1235_v40, %v1560_v0 }
  0x50   : > { %1488 = vst [vmem:[%s1592_s25 + $0x88] sm:$0xff] %v1369_v46   ;;  %v608_v52 = vsel %vm480_vm4, %v416_v38, %v544_v47  ;;  %v419_v53 = vadd.f32 %v1569_v9, %v348_v48  ;;  %v350_v54 = vmul.f32 %v1236_v44, %v1560_v0  ;;  %v1239_v55 = vunpack.c.l.bf16 %v1461_v45  ;;  %v1466_v44 = vld [vmem:[%s1555_s18 + $0xd0] sm:$0xff]  }
  0x51   : > { %v609_v56 = vsel %vm481_vm5, %v417_v42, %v545_v49  ;;  %vm482_vm6 = vcmp.ge.f32.partialorder %v418_v50, 0.0  ;;  %v546_v57 = vmul.f32 0.2, %v418_v50  ;;  %v420_v58 = vadd.f32 %v1569_v9, %v349_v51 }
  0x52   : > { %v1374_v59 = vpack.c.bf16 %v609_v56, %v608_v52  ;;  %vm483_vm7 = vcmp.ge.f32.partialorder %v419_v53, 0.0  ;;  %v547_v60 = vmul.f32 0.2, %v419_v53  ;;  %v421_v61 = vadd.f32 %v1569_v9, %v350_v54 }
  0x53   : > { %v610_v63 = vsel %vm482_vm6, %v418_v50, %v546_v57  ;;  %vm484_vm8 = vcmp.ge.f32.partialorder %v420_v58, 0.0  ;;  %v548_v1 = vmul.f32 0.2, %v420_v58  ;;  %v1240_v2 = vunpack.c.h.bf16 %v1461_v45  ;;  %v1467_v45 = vld [vmem:[%s1555_s18 + $0xd8] sm:$0xff]  }
  0x54   : > { %1489 = vst [vmem:[%s1592_s25 + $0x90] sm:$0xff] %v1374_v59   ;;  %v611_v4 = vsel %vm483_vm7, %v419_v53, %v547_v60  ;;  %vm485_vm9 = vcmp.ge.f32.partialorder %v421_v61, 0.0  ;;  %v549_v5 = vmul.f32 0.2, %v421_v61  ;;  %v351_v6 = vmul.f32 %v1239_v55, %v1560_v0 }
  0x55   : > { %v1379_v7 = vpack.c.bf16 %v611_v4, %v610_v63  ;;  %v612_v8 = vsel %vm484_vm8, %v420_v58, %v548_v1  ;;  %v352_v10 = vmul.f32 %v1240_v2, %v1560_v0  ;;  %v1243_v11 = vunpack.c.l.bf16 %v1462_v62 }
  0x56   : > { %v613_v12 = vsel %vm485_vm9, %v421_v61, %v549_v5  ;;  %v422_v13 = vadd.f32 %v1569_v9, %v351_v6  ;;  %v1244_v14 = vunpack.c.h.bf16 %v1462_v62  ;;  %v1247_v15 = vunpack.c.l.bf16 %v1463_v3 }
  0x57   : > { %1490 = vst [vmem:[%s1592_s25 + $0x98] sm:$0xff] %v1379_v7   ;;  %v1384_v16 = vpack.c.bf16 %v613_v12, %v612_v8  ;;  %v423_v17 = vadd.f32 %v1569_v9, %v352_v10  ;;  %v353_v18 = vmul.f32 %v1243_v11, %v1560_v0  ;;  %v1248_v19 = vunpack.c.h.bf16 %v1463_v3  ;;  %v1468_v12 = vld [vmem:[%s1555_s18 + $0xe0] sm:$0xff]  }
  0x58   : > { %vm486_vm10 = vcmp.ge.f32.partialorder %v422_v13, 0.0  ;;  %v550_v21 = vmul.f32 0.2, %v422_v13  ;;  %v354_v22 = vmul.f32 %v1244_v14, %v1560_v0  ;;  %v355_v23 = vmul.f32 %v1247_v15, %v1560_v0 }
  0x59   : > { %1491 = vst [vmem:[%s1592_s25 + $0xa0] sm:$0xff] %v1384_v16   ;;  %vm487_vm11 = vcmp.ge.f32.partialorder %v423_v17, 0.0  ;;  %v551_v24 = vmul.f32 0.2, %v423_v17  ;;  %v424_v25 = vadd.f32 %v1569_v9, %v353_v18  ;;  %v356_v26 = vmul.f32 %v1248_v19, %v1560_v0  ;;  %v1469_v16 = vld [vmem:[%s1555_s18 + $0xe8] sm:$0xff]  }
  0x5a   : > { %v614_v27 = vsel %vm486_vm10, %v422_v13, %v550_v21  ;;  %v425_v28 = vadd.f32 %v1569_v9, %v354_v22  ;;  %v426_v29 = vadd.f32 %v1569_v9, %v355_v23  ;;  %v1251_v30 = vunpack.c.l.bf16 %v1464_v20 }
  0x5b   : > { %v615_v31 = vsel %vm487_vm11, %v423_v17, %v551_v24  ;;  %vm488_vm12 = vcmp.ge.f32.partialorder %v424_v25, 0.0  ;;  %v552_v32 = vmul.f32 0.2, %v424_v25  ;;  %v427_v33 = vadd.f32 %v1569_v9, %v356_v26 }
  0x5c   : > { %v1389_v35 = vpack.c.bf16 %v615_v31, %v614_v27  ;;  %vm489_vm13 = vcmp.ge.f32.partialorder %v425_v28, 0.0  ;;  %v553_v36 = vmul.f32 0.2, %v425_v28  ;;  %vm490_vm14 = vcmp.ge.f32.partialorder %v426_v29, 0.0 }
  0x5d   : > { %v616_v37 = vsel %vm488_vm12, %v424_v25, %v552_v32  ;;  %vm491_vm15 = vcmp.ge.f32.partialorder %v427_v33, 0.0  ;;  %v554_v38 = vmul.f32 0.2, %v426_v29  ;;  %v555_v39 = vmul.f32 0.2, %v427_v33 }
  0x5e   : > { %1492 = vst [vmem:[%s1592_s25 + $0xa8] sm:$0xff] %v1389_v35   ;;  %v617_v40 = vsel %vm489_vm13, %v425_v28, %v553_v36  ;;  %v1252_v41 = vunpack.c.h.bf16 %v1464_v20  ;;  %v357_v42 = vmul.f32 %v1251_v30, %v1560_v0  ;;  %v1255_v43 = vunpack.c.l.bf16 %v1465_v34  ;;  %v1470_v28 = vld [vmem:[%s1555_s18 + $0xf0] sm:$0xff]  }
  0x5f   : > { %v1394_v46 = vpack.c.bf16 %v617_v40, %v616_v37  ;;  %v618_v47 = vsel %vm490_vm14, %v426_v29, %v554_v38  ;;  %v619_v48 = vsel %vm491_vm15, %v427_v33, %v555_v39  ;;  %v1256_v49 = vunpack.c.h.bf16 %v1465_v34 }
  0x60   : > { %v1399_v50 = vpack.c.bf16 %v619_v48, %v618_v47  ;;  %v358_v51 = vmul.f32 %v1252_v41, %v1560_v0  ;;  %v428_v52 = vadd.f32 %v1569_v9, %v357_v42  ;;  %v359_v53 = vmul.f32 %v1255_v43, %v1560_v0  ;;  %v1471_v47 = vld [vmem:[%s1555_s18 + $0xf8] sm:$0xff]  }
  0x61   : > { %1493 = vst [vmem:[%s1592_s25 + $0xb0] sm:$0xff] %v1394_v46   ;;  %v360_v54 = vmul.f32 %v1256_v49, %v1560_v0  ;;  %v1259_v55 = vunpack.c.l.bf16 %v1466_v44  ;;  %v1260_v56 = vunpack.c.h.bf16 %v1466_v44  ;;  %v1263_v57 = vunpack.c.l.bf16 %v1467_v45 }
  0x62   : > { %1494 = vst [vmem:[%s1592_s25 + $0xb8] sm:$0xff] %v1399_v50   ;;  %v429_v58 = vadd.f32 %v1569_v9, %v358_v51  ;;  %vm492_vm0 = vcmp.ge.f32.partialorder %v428_v52, 0.0  ;;  %v556_v59 = vmul.f32 0.2, %v428_v52  ;;  %v430_v60 = vadd.f32 %v1569_v9, %v359_v53 }
  0x63   : > { %v431_v61 = vadd.f32 %v1569_v9, %v360_v54  ;;  %v361_v62 = vmul.f32 %v1259_v55, %v1560_v0  ;;  %v362_v63 = vmul.f32 %v1260_v56, %v1560_v0  ;;  %v1264_v1 = vunpack.c.h.bf16 %v1467_v45 }
  0x64   : > { %vm493_vm1 = vcmp.ge.f32.partialorder %v429_v58, 0.0  ;;  %v557_v2 = vmul.f32 0.2, %v429_v58  ;;  %v620_v3 = vsel %vm492_vm0, %v428_v52, %v556_v59  ;;  %vm494_vm2 = vcmp.ge.f32.partialorder %v430_v60, 0.0 }
  0x65   : > { %vm495_vm3 = vcmp.ge.f32.partialorder %v431_v61, 0.0  ;;  %v558_v4 = vmul.f32 0.2, %v430_v60  ;;  %v559_v5 = vmul.f32 0.2, %v431_v61  ;;  %v432_v6 = vadd.f32 %v1569_v9, %v361_v62 }
  0x66   : > { %v621_v7 = vsel %vm493_vm1, %v429_v58, %v557_v2  ;;  %v433_v8 = vadd.f32 %v1569_v9, %v362_v63  ;;  %v363_v10 = vmul.f32 %v1263_v57, %v1560_v0  ;;  %v364_v11 = vmul.f32 %v1264_v1, %v1560_v0 }
  0x67   : > { %v1404_v13 = vpack.c.bf16 %v621_v7, %v620_v3  ;;  %v622_v14 = vsel %vm494_vm2, %v430_v60, %v558_v4  ;;  %v623_v15 = vsel %vm495_vm3, %v431_v61, %v559_v5  ;;  %vm496_vm4 = vcmp.ge.f32.partialorder %v432_v6, 0.0 }
  0x68   : > { %v1409_v17 = vpack.c.bf16 %v623_v15, %v622_v14  ;;  %vm497_vm5 = vcmp.ge.f32.partialorder %v433_v8, 0.0  ;;  %v560_v18 = vmul.f32 0.2, %v432_v6  ;;  %v561_v19 = vmul.f32 0.2, %v433_v8 }
  0x69   : > { %1495 = vst [vmem:[%s1592_s25 + $0xc0] sm:$0xff] %v1404_v13   ;;  %v434_v20 = vadd.f32 %v1569_v9, %v363_v10  ;;  %v435_v21 = vadd.f32 %v1569_v9, %v364_v11  ;;  %v1267_v22 = vunpack.c.l.bf16 %v1468_v12  ;;  %v1268_v23 = vunpack.c.h.bf16 %v1468_v12 }
  0x6a   : > { %1496 = vst [vmem:[%s1592_s25 + $0xc8] sm:$0xff] %v1409_v17   ;;  %v624_v24 = vsel %vm496_vm4, %v432_v6, %v560_v18  ;;  %v625_v25 = vsel %vm497_vm5, %v433_v8, %v561_v19  ;;  %v1271_v26 = vunpack.c.l.bf16 %v1469_v16  ;;  %v1272_v27 = vunpack.c.h.bf16 %v1469_v16 }
  0x6b   : > { %v1414_v29 = vpack.c.bf16 %v625_v25, %v624_v24  ;;  %vm498_vm6 = vcmp.ge.f32.partialorder %v434_v20, 0.0  ;;  %vm499_vm7 = vcmp.ge.f32.partialorder %v435_v21, 0.0  ;;  %v562_v30 = vmul.f32 0.2, %v434_v20 }
  0x6c   : > { %v563_v31 = vmul.f32 0.2, %v435_v21  ;;  %v365_v32 = vmul.f32 %v1267_v22, %v1560_v0  ;;  %v366_v33 = vmul.f32 %v1268_v23, %v1560_v0  ;;  %v367_v34 = vmul.f32 %v1271_v26, %v1560_v0 }
  0x6d   : > { %1497 = vst [vmem:[%s1592_s25 + $0xd0] sm:$0xff] %v1414_v29   ;;  %v626_v35 = vsel %vm498_vm6, %v434_v20, %v562_v30  ;;  %v368_v36 = vmul.f32 %v1272_v27, %v1560_v0  ;;  %v1275_v37 = vunpack.c.l.bf16 %v1470_v28  ;;  %v1276_v38 = vunpack.c.h.bf16 %v1470_v28 }
  0x6e   : > { %v627_v39 = vsel %vm499_vm7, %v435_v21, %v563_v31  ;;  %v436_v40 = vadd.f32 %v1569_v9, %v365_v32  ;;  %v437_v41 = vadd.f32 %v1569_v9, %v366_v33  ;;  %v438_v42 = vadd.f32 %v1569_v9, %v367_v34 }
  0x6f   : > { %v1419_v43 = vpack.c.bf16 %v627_v39, %v626_v35  ;;  %v439_v44 = vadd.f32 %v1569_v9, %v368_v36  ;;  %v369_v45 = vmul.f32 %v1275_v37, %v1560_v0  ;;  %v370_v46 = vmul.f32 %v1276_v38, %v1560_v0 }
  0x70   : > { %vm500_vm8 = vcmp.ge.f32.partialorder %v436_v40, 0.0  ;;  %vm501_vm9 = vcmp.ge.f32.partialorder %v437_v41, 0.0  ;;  %v564_v48 = vmul.f32 0.2, %v436_v40  ;;  %v565_v49 = vmul.f32 0.2, %v437_v41 }
  0x71   : > { %1498 = vst [vmem:[%s1592_s25 + $0xd8] sm:$0xff] %v1419_v43   ;;  %vm502_vm10 = vcmp.ge.f32.partialorder %v438_v42, 0.0  ;;  %vm503_vm11 = vcmp.ge.f32.partialorder %v439_v44, 0.0  ;;  %v566_v50 = vmul.f32 0.2, %v438_v42  ;;  %v440_v54 = vadd.f32 %v1569_v9, %v369_v45 }
  0x72   : > { %v567_v51 = vmul.f32 0.2, %v439_v44  ;;  %v628_v52 = vsel %vm500_vm8, %v436_v40, %v564_v48  ;;  %v629_v53 = vsel %vm501_vm9, %v437_v41, %v565_v49  ;;  %v441_v55 = vadd.f32 %v1569_v9, %v370_v46 }
  0x73   : > { %v1424_v56 = vpack.c.bf16 %v629_v53, %v628_v52  ;;  %v630_v57 = vsel %vm502_vm10, %v438_v42, %v566_v50  ;;  %v1279_v59 = vunpack.c.l.bf16 %v1471_v47  ;;  %vm504_vm12 = vcmp.ge.f32.partialorder %v440_v54, 0.0 }
  0x74   : > { %v631_v58 = vsel %vm503_vm11, %v439_v44, %v567_v51  ;;  %vm505_vm13 = vcmp.ge.f32.partialorder %v441_v55, 0.0  ;;  %v568_v61 = vmul.f32 0.2, %v440_v54  ;;  %v569_v62 = vmul.f32 0.2, %v441_v55 }
  0x75   : > { %v1429_v60 = vpack.c.bf16 %v631_v58, %v630_v57  ;;  %1499 = vst [vmem:[%s1592_s25 + $0xe0] sm:$0xff] %v1424_v56   ;;  %v1280_v63 = vunpack.c.h.bf16 %v1471_v47  ;;  %v371_v1 = vmul.f32 %v1279_v59, %v1560_v0 }
  0x76   : > { %v632_v2 = vsel %vm504_vm12, %v440_v54, %v568_v61  ;;  %v633_v3 = vsel %vm505_vm13, %v441_v55, %v569_v62 }
  0x77   : > { %1500 = vst [vmem:[%s1592_s25 + $0xe8] sm:$0xff] %v1429_v60   ;;  %v372_v4 = vmul.f32 %v1280_v63, %v1560_v0  ;;  %v442_v5 = vadd.f32 %v1569_v9, %v371_v1  ;;  %v1434_v6 = vpack.c.bf16 %v633_v3, %v632_v2 }
  0x79   : > { %v443_v7 = vadd.f32 %v1569_v9, %v372_v4  ;;  %vm506_vm14 = vcmp.ge.f32.partialorder %v442_v5, 0.0  ;;  %v570_v8 = vmul.f32 0.2, %v442_v5  ;;  %1501 = vst [vmem:[%s1592_s25 + $0xf0] sm:$0xff] %v1434_v6  }
  0x7b   : > { %vm507_vm15 = vcmp.ge.f32.partialorder %v443_v7, 0.0  ;;  %v571_v10 = vmul.f32 0.2, %v443_v7  ;;  %v634_v11 = vsel %vm506_vm14, %v442_v5, %v570_v8 }
  0x7d   : > { %v635_v12 = vsel %vm507_vm15, %v443_v7, %v571_v10 }
  0x7e   : > { %v1439_v13 = vpack.c.bf16 %v635_v12, %v634_v11 }
  0x80   : > { %1502 = vst [vmem:[%s1592_s25 + $0xf8] sm:$0xff] %v1439_v13  }
  0x81 PF: > { %s13_s12 = sadd.s32 1, %s1517_s12  }
  0x82   : > { %p10_p4 = scmp.ge.s32.totalorder %s13_s12, 4  }
  0x84   :  { %12 = sbr.rel (!%p10_p4) target bundleno = 1 (0x1), region = 62 }

// kernel: _lambda_.8
= control target key start
LH: loop header
LB: loop body
LE: loop exit
PB: predicated region body
PF: predicated region fallthrough
CT: control target
= control target key end

     0   :  { %s1993_s12 = smov 0   ;;  %s2309_s0 = inlined_call_operand.vmem [shape: bf16[1024,128], index: 0, kind: input, shape index: {}]   ;;  %s2310_s1 = inlined_call_operand.vmem [shape: bf16[128,128], index: 1, kind: input, shape index: {}]   ;;  %s2311_s2 = inlined_call_operand.vmem [shape: bf16[1024,128], index: 2, kind: output, shape index: {0}]   ;;  %s2312_s3 = inlined_call_operand.vmem [shape: f32[2,1,256], index: 3, kind: output, shape index: {1}]  }
   0x1 LB: > { %s1999_s13 = sadd.s32 4294967295, %s1971_s12   ;;  %p1414_p0 = scmp.ge.s32.totalorder %s1971_s12, 1  ;;  %s1971_s12 = sphi %s1993_s12, %s14_s12  }
   0x2   : > { %p141_p1 = scmp.lt.s32.totalorder %s1971_s12, 3 }
   0x4   : > { %p142_p2 = pnand %p1414_p0, %p141_p1 }
   0x5   : > { %v1925_v0 = vld [vmem:[%s2310_s1] sm:$0xff] (!%p142_p2)   ;;  %s1415_s16 = sshll.u32 (!%p142_p2), %s1999_s13, 6  ;;  %v1926_v1 = vld [vmem:[%s2310_s1 + $0x8] sm:$0xff] (!%p142_p2)   ;;  %v1927_v2 = vld [vmem:[%s2310_s1 + $0x10] sm:$0xff] (!%p142_p2)   ;;  %p181_p4 = scmp.lt.s32.totalorder (!%p142_p2), %s1999_s13, 1 }
   0x6   : > { %145 = sbr.rel (%p142_p2) target bundleno = 394 (0x18a), region = 28  ;;  %p170_p3 = scmp.lt.s32.totalorder (!%p142_p2), %s1415_s16, 127  ;;  %1821 = vmatprep.subr.bf16.mxu0 (!%p142_p2), %v1925_v0  ;;  %1901 = vmatprep.subr.bf16.mxu1 (!%p142_p2), %v1925_v0  ;;  %v1928_v3 = vld [vmem:[%s2310_s1 + $0x18] sm:$0xff] (!%p142_p2)   ;;  %v1929_v5 = vld [vmem:[%s2310_s1 + $0x20] sm:$0xff] (!%p142_p2)   ;;  %v1930_v6 = vld [vmem:[%s2310_s1 + $0x28] sm:$0xff] (!%p142_p2)  }
   0x7   : > { %1822 = vmatpush3.bf16.msra.mxu0 (!%p142_p2), %v1925_v0  ;;  %1909 = vmatpush3.bf16.msra.mxu1 (!%p142_p2), %v1925_v0  ;;  %v1931_v7 = vld [vmem:[%s2310_s1 + $0x30] sm:$0xff] (!%p142_p2)   ;;  %v1932_v8 = vld [vmem:[%s2310_s1 + $0x38] sm:$0xff] (!%p142_p2)  }
   0x8   : > { %1823 = vmatprep.subr.bf16.mxu0 (!%p142_p2), %v1926_v1  ;;  %1902 = vmatprep.subr.bf16.mxu1 (!%p142_p2), %v1926_v1 }
   0xb   : > { %1824 = vmatpush3.bf16.msra.mxu0 (!%p142_p2), %v1926_v1  ;;  %1910 = vmatpush3.bf16.msra.mxu1 (!%p142_p2), %v1926_v1 }
   0xc   : > { %1825 = vmatprep.subr.bf16.mxu0 (!%p142_p2), %v1927_v2  ;;  %1903 = vmatprep.subr.bf16.mxu1 (!%p142_p2), %v1927_v2 }
   0xd   : > { %s2314_s16 = smov (!%p170_p3, %s1415_s16), 127  ;;  %s2316_s13 = smov (!%p181_p4, %s1999_s13), 1 }
   0xe   : > { %s1416_s21 = sshll.u32 %s2314_s16, 2  ;;  %s1419_s11 = sshll.u32 %s2316_s13, 1 }
   0xf   : > { %s2021_s24 = scalar_lea.vmem %s2309_s0, %s1416_s21  ;;  %1826 = vmatpush3.bf16.msra.mxu0 %v1927_v2  ;;  %1911 = vmatpush3.bf16.msra.mxu1 %v1927_v2  ;;  %s2079_s10 = scalar_lea.vmem %s2311_s2, %s1416_s21 }
  0x10   : > { %v1933_v4 = vld [vmem:[%s2021_s24] sm:$0xff]   ;;  %1827 = vmatprep.subr.bf16.mxu0 %v1928_v3  ;;  %1904 = vmatprep.subr.bf16.mxu1 %v1928_v3  ;;  %v1934_v10 = vld [vmem:[%s2021_s24 + $0x8] sm:$0xff]   ;;  %v1935_v11 = vld [vmem:[%s2021_s24 + $0x10] sm:$0xff]   ;;  %s184_s16 = scalar_lea.vmem %s2312_s3, %s1419_s11 }
  0x11   : > { %1837 = vmatprep.mubr.bf16.mxu0 %v1933_v4  ;;  %v1949_v9 = vld [vmem:[%s2021_s24 + $0x80] sm:$0xff]   ;;  %v1950_v12 = vld [vmem:[%s2021_s24 + $0x88] sm:$0xff]   ;;  %v1951_v13 = vld [vmem:[%s2021_s24 + $0x90] sm:$0xff]  }
  0x12   : > { %1869 = vmatprep.mubr.bf16.mxu1 %v1949_v9  ;;  %v1936_v14 = vld [vmem:[%s2021_s24 + $0x18] sm:$0xff]   ;;  %v1937_v15 = vld [vmem:[%s2021_s24 + $0x20] sm:$0xff]   ;;  %v1938_v18 = vld [vmem:[%s2021_s24 + $0x28] sm:$0xff]  }
  0x13   : > { %1828 = vmatpush3.bf16.msra.mxu0 %v1928_v3  ;;  %1912 = vmatpush3.bf16.msra.mxu1 %v1928_v3  ;;  %v1952_v16 = vld [vmem:[%s2021_s24 + $0x98] sm:$0xff]   ;;  %v1953_v17 = vld [vmem:[%s2021_s24 + $0xa0] sm:$0xff]   ;;  %v1954_v19 = vld [vmem:[%s2021_s24 + $0xa8] sm:$0xff]  }
  0x14   : > { %1829 = vmatprep.subr.bf16.mxu0 %v1929_v5  ;;  %1905 = vmatprep.subr.bf16.mxu1 %v1929_v5  ;;  %v1939_v20 = vld [vmem:[%s2021_s24 + $0x30] sm:$0xff]   ;;  %v1940_v22 = vld [vmem:[%s2021_s24 + $0x38] sm:$0xff]   ;;  %v1941_v24 = vld [vmem:[%s2021_s24 + $0x40] sm:$0xff]  }
  0x15   : > { %v1955_v21 = vld [vmem:[%s2021_s24 + $0xb0] sm:$0xff]   ;;  %v1956_v23 = vld [vmem:[%s2021_s24 + $0xb8] sm:$0xff]   ;;  %v1957_v25 = vld [vmem:[%s2021_s24 + $0xc0] sm:$0xff]  }
  0x16   : > { %v1942_v26 = vld [vmem:[%s2021_s24 + $0x48] sm:$0xff]   ;;  %v1943_v28 = vld [vmem:[%s2021_s24 + $0x50] sm:$0xff]   ;;  %v1944_v30 = vld [vmem:[%s2021_s24 + $0x58] sm:$0xff]  }
  0x17   : > { %1830 = vmatpush3.bf16.msra.mxu0 %v1929_v5  ;;  %1913 = vmatpush3.bf16.msra.mxu1 %v1929_v5  ;;  %v1958_v27 = vld [vmem:[%s2021_s24 + $0xc8] sm:$0xff]   ;;  %v1959_v29 = vld [vmem:[%s2021_s24 + $0xd0] sm:$0xff]   ;;  %v1960_v31 = vld [vmem:[%s2021_s24 + $0xd8] sm:$0xff]  }
  0x18   : > { %1831 = vmatprep.subr.bf16.mxu0 %v1930_v6  ;;  %1906 = vmatprep.subr.bf16.mxu1 %v1930_v6  ;;  %v1945_v32 = vld [vmem:[%s2021_s24 + $0x60] sm:$0xff]   ;;  %v1946_v34 = vld [vmem:[%s2021_s24 + $0x68] sm:$0xff]   ;;  %v1947_v36 = vld [vmem:[%s2021_s24 + $0x70] sm:$0xff]  }
  0x19   : > { %v1961_v33 = vld [vmem:[%s2021_s24 + $0xe0] sm:$0xff]   ;;  %v1962_v35 = vld [vmem:[%s2021_s24 + $0xe8] sm:$0xff]   ;;  %v1963_v37 = vld [vmem:[%s2021_s24 + $0xf0] sm:$0xff]  }
  0x1a   : > { %v1948_v38 = vld [vmem:[%s2021_s24 + $0x78] sm:$0xff]  }
  0x1b   : > { %1832 = vmatpush3.bf16.msra.mxu0 %v1930_v6  ;;  %1914 = vmatpush3.bf16.msra.mxu1 %v1930_v6  ;;  %v1964_v39 = vld [vmem:[%s2021_s24 + $0xf8] sm:$0xff]  }
  0x1c   : > { %1833 = vmatprep.subr.bf16.mxu0 %v1931_v7  ;;  %1907 = vmatprep.subr.bf16.mxu1 %v1931_v7 }
  0x1f   : > { %1834 = vmatpush3.bf16.msra.mxu0 %v1931_v7  ;;  %1915 = vmatpush3.bf16.msra.mxu1 %v1931_v7 }
  0x20   : > { %1835 = vmatprep.subr.bf16.mxu0 %v1932_v8  ;;  %1908 = vmatprep.subr.bf16.mxu1 %v1932_v8 }
  0x23   : > { %1836 = vmatpush3.bf16.msra.mxu0 %v1932_v8  ;;  %1916 = vmatpush3.bf16.msra.mxu1 %v1932_v8 }
  0x26   : > { %1838 = vmatmul.mubr.bf16.vlgmr.msra.gmra.mrb[0].mxu0 %v1934_v10  ;;  %1870 = vmatmul.mubr.bf16.vlgmr.msra.gmra.mrb[0].mxu1 %v1950_v12 }
  0x27   : > { %1841 = vmatprep.mubr.bf16.mxu0 %v1935_v11  ;;  %1873 = vmatprep.mubr.bf16.mxu1 %v1951_v13 }
  0x2e   : > { %1842 = vmatmul.mubr.bf16.gmra.mrb[4].mxu0 %v1936_v14  ;;  %1874 = vmatmul.mubr.bf16.gmra.mrb[4].mxu1 %v1952_v16 }
  0x2f   : > { %1845 = vmatprep.mubr.bf16.mxu0 %v1937_v15  ;;  %1877 = vmatprep.mubr.bf16.mxu1 %v1953_v17 }
  0x36   : > { %1846 = vmatmul.mubr.bf16.gmra.mrb[8].mxu0 %v1938_v18  ;;  %1878 = vmatmul.mubr.bf16.gmra.mrb[8].mxu1 %v1954_v19 }
  0x37   : > { %1849 = vmatprep.mubr.bf16.mxu0 %v1939_v20  ;;  %1881 = vmatprep.mubr.bf16.mxu1 %v1955_v21 }
  0x3e   : > { %1850 = vmatmul.mubr.bf16.gmra.mrb[12].mxu0 %v1940_v22  ;;  %1882 = vmatmul.mubr.bf16.gmra.mrb[12].mxu1 %v1956_v23 }
  0x3f   : > { %1853 = vmatprep.mubr.bf16.mxu0 %v1941_v24  ;;  %1885 = vmatprep.mubr.bf16.mxu1 %v1957_v25 }
  0x46   : > { %1854 = vmatmul.mubr.bf16.gmra.mrb[16].mxu0 %v1942_v26  ;;  %1886 = vmatmul.mubr.bf16.gmra.mrb[16].mxu1 %v1958_v27 }
  0x47   : > { %1857 = vmatprep.mubr.bf16.mxu0 %v1943_v28  ;;  %1889 = vmatprep.mubr.bf16.mxu1 %v1959_v29 }
  0x4e   : > { %1858 = vmatmul.mubr.bf16.gmra.mrb[20].mxu0 %v1944_v30  ;;  %1890 = vmatmul.mubr.bf16.gmra.mrb[20].mxu1 %v1960_v31 }
  0x4f   : > { %1861 = vmatprep.mubr.bf16.mxu0 %v1945_v32  ;;  %1893 = vmatprep.mubr.bf16.mxu1 %v1961_v33 }
  0x56   : > { %1862 = vmatmul.mubr.bf16.gmra.mrb[24].mxu0 %v1946_v34  ;;  %1894 = vmatmul.mubr.bf16.gmra.mrb[24].mxu1 %v1962_v35 }
  0x57   : > { %1865 = vmatprep.mubr.bf16.mxu0 %v1947_v36  ;;  %1897 = vmatprep.mubr.bf16.mxu1 %v1963_v37 }
  0x5e   : > { %1866 = vmatmul.mubr.bf16.gmra.mrb[28].mxu0 %v1948_v38  ;;  %1898 = vmatmul.mubr.bf16.gmra.mrb[28].mxu1 %v1964_v39 }
  0xf9   : > { %v1839_v40 = vpop.f32.mrb[0].mxu0  ;;  %v2070_v41 = vpop.f32.mrb[0].mxu1 }
  0xfa   : > { %v540_v42 = vpop.f32.mrb[1].mxu0  ;;  %v2072_v43 = vpop.f32.mrb[1].mxu1  ;;  %v1191_v55 = vmul.f32 %v1839_v40, %v1839_v40 }
  0xfb   : > { %v1840_v44 = vpop.f32.mrb[2].mxu0  ;;  %v2081_v45 = vpop.f32.mrb[2].mxu1  ;;  %v1189_v46 = vmul.f32 %v540_v42, %v540_v42 }
  0xfc   : > { %v1598_v47 = vpack.c.bf16 %v1840_v44, %v1839_v40  ;;  %v543_v48 = vpop.f32.mrb[3].mxu0  ;;  %v1678_v49 = vpack.c.bf16 %v2081_v45, %v2070_v41  ;;  %v2085_v50 = vpop.f32.mrb[3].mxu1  ;;  %v1192_v58 = vmul.f32 %v1840_v44, %v1840_v44 }
  0xfd   : > { %v1593_v51 = vpack.c.bf16 %v543_v48, %v540_v42  ;;  %v1115_v52 = vadd.f32 %v543_v48, %v540_v42  ;;  %v1190_v53 = vmul.f32 %v543_v48, %v543_v48  ;;  %v1673_v54 = vpack.c.bf16 %v2085_v50, %v2072_v43 }
  0xfe   : > { %1750 = vst [vmem:[%s2079_s10 + $0x8] sm:$0xff] %v1598_v47   ;;  %1766 = vst [vmem:[%s2079_s10 + $0x88] sm:$0xff] %v1678_v49  }
  0xff   : > { %1594 = vst [vmem:[%s2079_s10] sm:$0xff] %v1593_v51   ;;  %v1116_v56 = vadd.f32 %v1839_v40, %v1115_v52  ;;  %v1253_v57 = vadd.f32 %v1190_v53, %v1189_v46  ;;  %1765 = vst [vmem:[%s2079_s10 + $0x80] sm:$0xff] %v1673_v54  }
 0x101   : > { %v1254_v59 = vadd.f32 %v1253_v57, %v1191_v55  ;;  %v1843_v60 = vpop.f32.mrb[4].mxu0  ;;  %v1117_v61 = vadd.f32 %v1840_v44, %v1116_v56  ;;  %v2093_v62 = vpop.f32.mrb[4].mxu1 }
 0x102   : > { %v556_v63 = vpop.f32.mrb[5].mxu0  ;;  %v2095_v0 = vpop.f32.mrb[5].mxu1  ;;  %v1195_v15 = vmul.f32 %v1843_v60, %v1843_v60 }
 0x103   : > { %v1118_v1 = vadd.f32 %v1117_v61, %v556_v63  ;;  %v1193_v2 = vmul.f32 %v556_v63, %v556_v63  ;;  %v1255_v3 = vadd.f32 %v1254_v59, %v1192_v58  ;;  %v1844_v4 = vpop.f32.mrb[6].mxu0  ;;  %v2097_v5 = vpop.f32.mrb[6].mxu1 }
 0x104   : > { %v1608_v6 = vpack.c.bf16 %v1844_v4, %v1843_v60  ;;  %v559_v7 = vpop.f32.mrb[7].mxu0  ;;  %v1688_v8 = vpack.c.bf16 %v2097_v5, %v2093_v62  ;;  %v2101_v9 = vpop.f32.mrb[7].mxu1  ;;  %v1196_v18 = vmul.f32 %v1844_v4, %v1844_v4 }
 0x105   : > { %v1256_v10 = vadd.f32 %v1255_v3, %v1193_v2  ;;  %v1603_v11 = vpack.c.bf16 %v559_v7, %v556_v63  ;;  %v1119_v12 = vadd.f32 %v1118_v1, %v559_v7  ;;  %v1194_v13 = vmul.f32 %v559_v7, %v559_v7 }
 0x106   : > { %1752 = vst [vmem:[%s2079_s10 + $0x18] sm:$0xff] %v1608_v6   ;;  %1768 = vst [vmem:[%s2079_s10 + $0x98] sm:$0xff] %v1688_v8   ;;  %v1683_v14 = vpack.c.bf16 %v2101_v9, %v2095_v0 }
 0x107   : > { %1751 = vst [vmem:[%s2079_s10 + $0x10] sm:$0xff] %v1603_v11   ;;  %v1120_v16 = vadd.f32 %v1843_v60, %v1119_v12  ;;  %v1257_v17 = vadd.f32 %v1256_v10, %v1194_v13 }
 0x108   : > { %1767 = vst [vmem:[%s2079_s10 + $0x90] sm:$0xff] %v1683_v14  }
 0x109   : > { %v1258_v19 = vadd.f32 %v1257_v17, %v1195_v15  ;;  %v1847_v20 = vpop.f32.mrb[8].mxu0  ;;  %v1121_v21 = vadd.f32 %v1844_v4, %v1120_v16  ;;  %v2109_v22 = vpop.f32.mrb[8].mxu1 }
 0x10a   : > { %v572_v23 = vpop.f32.mrb[9].mxu0  ;;  %v2111_v24 = vpop.f32.mrb[9].mxu1  ;;  %v1199_v39 = vmul.f32 %v1847_v20, %v1847_v20 }
 0x10b   : > { %v1122_v25 = vadd.f32 %v1121_v21, %v572_v23  ;;  %v1197_v26 = vmul.f32 %v572_v23, %v572_v23  ;;  %v1259_v27 = vadd.f32 %v1258_v19, %v1196_v18  ;;  %v1848_v28 = vpop.f32.mrb[10].mxu0  ;;  %v2113_v29 = vpop.f32.mrb[10].mxu1 }
 0x10c   : > { %v1618_v30 = vpack.c.bf16 %v1848_v28, %v1847_v20  ;;  %v575_v31 = vpop.f32.mrb[11].mxu0  ;;  %v1698_v32 = vpack.c.bf16 %v2113_v29, %v2109_v22  ;;  %v2117_v33 = vpop.f32.mrb[11].mxu1  ;;  %v1200_v44 = vmul.f32 %v1848_v28, %v1848_v28 }
 0x10d   : > { %v1260_v34 = vadd.f32 %v1259_v27, %v1197_v26  ;;  %v1613_v35 = vpack.c.bf16 %v575_v31, %v572_v23  ;;  %v1123_v36 = vadd.f32 %v1122_v25, %v575_v31  ;;  %v1198_v37 = vmul.f32 %v575_v31, %v575_v31 }
 0x10e   : > { %1754 = vst [vmem:[%s2079_s10 + $0x28] sm:$0xff] %v1618_v30   ;;  %1770 = vst [vmem:[%s2079_s10 + $0xa8] sm:$0xff] %v1698_v32   ;;  %v1693_v38 = vpack.c.bf16 %v2117_v33, %v2111_v24 }
 0x10f   : > { %1753 = vst [vmem:[%s2079_s10 + $0x20] sm:$0xff] %v1613_v35   ;;  %v1124_v40 = vadd.f32 %v1847_v20, %v1123_v36  ;;  %v1261_v42 = vadd.f32 %v1260_v34, %v1198_v37 }
 0x110   : > { %1769 = vst [vmem:[%s2079_s10 + $0xa0] sm:$0xff] %v1693_v38  }
 0x111   : > { %v1262_v46 = vadd.f32 %v1261_v42, %v1199_v39  ;;  %v1851_v47 = vpop.f32.mrb[12].mxu0  ;;  %v1125_v48 = vadd.f32 %v1848_v28, %v1124_v40  ;;  %v2125_v49 = vpop.f32.mrb[12].mxu1 }
 0x112   : > { %v588_v51 = vpop.f32.mrb[13].mxu0  ;;  %v2127_v52 = vpop.f32.mrb[13].mxu1  ;;  %v1203_v6 = vmul.f32 %v1851_v47, %v1851_v47 }
 0x113   : > { %v1126_v53 = vadd.f32 %v1125_v48, %v588_v51  ;;  %v1201_v54 = vmul.f32 %v588_v51, %v588_v51  ;;  %v1263_v55 = vadd.f32 %v1262_v46, %v1200_v44  ;;  %v1852_v56 = vpop.f32.mrb[14].mxu0  ;;  %v2129_v57 = vpop.f32.mrb[14].mxu1 }
 0x114   : > { %v1628_v58 = vpack.c.bf16 %v1852_v56, %v1851_v47  ;;  %v591_v59 = vpop.f32.mrb[15].mxu0  ;;  %v1708_v60 = vpack.c.bf16 %v2129_v57, %v2125_v49  ;;  %v2133_v61 = vpop.f32.mrb[15].mxu1  ;;  %v1204_v10 = vmul.f32 %v1852_v56, %v1852_v56 }
 0x115   : > { %v1264_v63 = vadd.f32 %v1263_v55, %v1201_v54  ;;  %v1623_v1 = vpack.c.bf16 %v591_v59, %v588_v51  ;;  %v1127_v2 = vadd.f32 %v1126_v53, %v591_v59  ;;  %v1202_v3 = vmul.f32 %v591_v59, %v591_v59 }
 0x116   : > { %1756 = vst [vmem:[%s2079_s10 + $0x38] sm:$0xff] %v1628_v58   ;;  %1772 = vst [vmem:[%s2079_s10 + $0xb8] sm:$0xff] %v1708_v60   ;;  %v1703_v4 = vpack.c.bf16 %v2133_v61, %v2127_v52 }
 0x117   : > { %1755 = vst [vmem:[%s2079_s10 + $0x30] sm:$0xff] %v1623_v1   ;;  %v1128_v7 = vadd.f32 %v1851_v47, %v1127_v2  ;;  %v1265_v8 = vadd.f32 %v1264_v63, %v1202_v3 }
 0x118   : > { %1771 = vst [vmem:[%s2079_s10 + $0xb0] sm:$0xff] %v1703_v4  }
 0x119   : > { %v1266_v11 = vadd.f32 %v1265_v8, %v1203_v6  ;;  %v1855_v12 = vpop.f32.mrb[16].mxu0  ;;  %v1129_v13 = vadd.f32 %v1852_v56, %v1128_v7  ;;  %v2141_v14 = vpop.f32.mrb[16].mxu1 }
 0x11a   : > { %v604_v15 = vpop.f32.mrb[17].mxu0  ;;  %v2143_v16 = vpop.f32.mrb[17].mxu1  ;;  %v1207_v35 = vmul.f32 %v1855_v12, %v1855_v12 }
 0x11b   : > { %v1130_v17 = vadd.f32 %v1129_v13, %v604_v15  ;;  %v1205_v18 = vmul.f32 %v604_v15, %v604_v15  ;;  %v1267_v19 = vadd.f32 %v1266_v11, %v1204_v10  ;;  %v1856_v20 = vpop.f32.mrb[18].mxu0  ;;  %v2145_v21 = vpop.f32.mrb[18].mxu1 }
 0x11c   : > { %v1638_v23 = vpack.c.bf16 %v1856_v20, %v1855_v12  ;;  %v607_v25 = vpop.f32.mrb[19].mxu0  ;;  %v1718_v26 = vpack.c.bf16 %v2145_v21, %v2141_v14  ;;  %v2149_v27 = vpop.f32.mrb[19].mxu1  ;;  %v1208_v38 = vmul.f32 %v1856_v20, %v1856_v20 }
 0x11d   : > { %v1268_v28 = vadd.f32 %v1267_v19, %v1205_v18  ;;  %v1633_v30 = vpack.c.bf16 %v607_v25, %v604_v15  ;;  %v1131_v31 = vadd.f32 %v1130_v17, %v607_v25  ;;  %v1206_v32 = vmul.f32 %v607_v25, %v607_v25 }
 0x11e   : > { %1758 = vst [vmem:[%s2079_s10 + $0x48] sm:$0xff] %v1638_v23   ;;  %1774 = vst [vmem:[%s2079_s10 + $0xc8] sm:$0xff] %v1718_v26   ;;  %v1713_v34 = vpack.c.bf16 %v2149_v27, %v2143_v16 }
 0x11f   : > { %1757 = vst [vmem:[%s2079_s10 + $0x40] sm:$0xff] %v1633_v30   ;;  %v1132_v36 = vadd.f32 %v1855_v12, %v1131_v31  ;;  %v1269_v37 = vadd.f32 %v1268_v28, %v1206_v32 }
 0x120   : > { %1773 = vst [vmem:[%s2079_s10 + $0xc0] sm:$0xff] %v1713_v34  }
 0x121   : > { %v1270_v39 = vadd.f32 %v1269_v37, %v1207_v35  ;;  %v1859_v40 = vpop.f32.mrb[20].mxu0  ;;  %v1133_v42 = vadd.f32 %v1856_v20, %v1132_v36  ;;  %v2157_v44 = vpop.f32.mrb[20].mxu1 }
 0x122   : > { %v620_v46 = vpop.f32.mrb[21].mxu0  ;;  %v2159_v47 = vpop.f32.mrb[21].mxu1  ;;  %v1211_v6 = vmul.f32 %v1859_v40, %v1859_v40 }
 0x123   : > { %v1134_v48 = vadd.f32 %v1133_v42, %v620_v46  ;;  %v1209_v51 = vmul.f32 %v620_v46, %v620_v46  ;;  %v1271_v53 = vadd.f32 %v1270_v39, %v1208_v38  ;;  %v1860_v54 = vpop.f32.mrb[22].mxu0  ;;  %v2161_v55 = vpop.f32.mrb[22].mxu1 }
 0x124   : > { %v1648_v56 = vpack.c.bf16 %v1860_v54, %v1859_v40  ;;  %v623_v58 = vpop.f32.mrb[23].mxu0  ;;  %v1728_v59 = vpack.c.bf16 %v2161_v55, %v2157_v44  ;;  %v2165_v60 = vpop.f32.mrb[23].mxu1  ;;  %v1212_v10 = vmul.f32 %v1860_v54, %v1860_v54 }
 0x125   : > { %v1272_v63 = vadd.f32 %v1271_v53, %v1209_v51  ;;  %v1643_v1 = vpack.c.bf16 %v623_v58, %v620_v46  ;;  %v1135_v2 = vadd.f32 %v1134_v48, %v623_v58  ;;  %v1210_v3 = vmul.f32 %v623_v58, %v623_v58 }
 0x126   : > { %1760 = vst [vmem:[%s2079_s10 + $0x58] sm:$0xff] %v1648_v56   ;;  %1776 = vst [vmem:[%s2079_s10 + $0xd8] sm:$0xff] %v1728_v59   ;;  %v1723_v4 = vpack.c.bf16 %v2165_v60, %v2159_v47 }
 0x127   : > { %1759 = vst [vmem:[%s2079_s10 + $0x50] sm:$0xff] %v1643_v1   ;;  %v1136_v7 = vadd.f32 %v1859_v40, %v1135_v2  ;;  %v1273_v8 = vadd.f32 %v1272_v63, %v1210_v3 }
 0x128   : > { %1775 = vst [vmem:[%s2079_s10 + $0xd0] sm:$0xff] %v1723_v4  }
 0x129   : > { %v1274_v11 = vadd.f32 %v1273_v8, %v1211_v6  ;;  %v1863_v12 = vpop.f32.mrb[24].mxu0  ;;  %v1137_v13 = vadd.f32 %v1860_v54, %v1136_v7  ;;  %v2173_v15 = vpop.f32.mrb[24].mxu1 }
 0x12a   : > { %v636_v17 = vpop.f32.mrb[25].mxu0  ;;  %v2175_v18 = vpop.f32.mrb[25].mxu1  ;;  %v1215_v39 = vmul.f32 %v1863_v12, %v1863_v12 }
 0x12b   : > { %v1138_v19 = vadd.f32 %v1137_v13, %v636_v17  ;;  %v1213_v20 = vmul.f32 %v636_v17, %v636_v17  ;;  %v1275_v23 = vadd.f32 %v1274_v11, %v1212_v10  ;;  %v1864_v25 = vpop.f32.mrb[26].mxu0  ;;  %v2177_v26 = vpop.f32.mrb[26].mxu1 }
 0x12c   : > { %v1658_v28 = vpack.c.bf16 %v1864_v25, %v1863_v12  ;;  %v639_v30 = vpop.f32.mrb[27].mxu0  ;;  %v1738_v31 = vpack.c.bf16 %v2177_v26, %v2173_v15  ;;  %v2181_v32 = vpop.f32.mrb[27].mxu1  ;;  %v1216_v46 = vmul.f32 %v1864_v25, %v1864_v25 }
 0x12d   : > { %v1276_v34 = vadd.f32 %v1275_v23, %v1213_v20  ;;  %v1653_v35 = vpack.c.bf16 %v639_v30, %v636_v17  ;;  %v1139_v36 = vadd.f32 %v1138_v19, %v639_v30  ;;  %v1214_v37 = vmul.f32 %v639_v30, %v639_v30 }
 0x12e   : > { %1762 = vst [vmem:[%s2079_s10 + $0x68] sm:$0xff] %v1658_v28   ;;  %1778 = vst [vmem:[%s2079_s10 + $0xe8] sm:$0xff] %v1738_v31   ;;  %v1733_v38 = vpack.c.bf16 %v2181_v32, %v2175_v18  ;;  %v1221_v31 = vmul.f32 %v2072_v43, %v2072_v43 }
 0x12f   : > { %1761 = vst [vmem:[%s2079_s10 + $0x60] sm:$0xff] %v1653_v35   ;;  %v1140_v40 = vadd.f32 %v1863_v12, %v1139_v36  ;;  %v1277_v42 = vadd.f32 %v1276_v34, %v1214_v37 }
 0x130   : > { %1777 = vst [vmem:[%s2079_s10 + $0xe0] sm:$0xff] %v1733_v38   ;;  %v1222_v38 = vmul.f32 %v2085_v50, %v2085_v50 }
 0x131   : > { %v1278_v48 = vadd.f32 %v1277_v42, %v1215_v39  ;;  %v1867_v51 = vpop.f32.mrb[28].mxu0  ;;  %v1141_v53 = vadd.f32 %v1864_v25, %v1140_v40  ;;  %v2189_v54 = vpop.f32.mrb[28].mxu1  ;;  %v1223_v39 = vmul.f32 %v2070_v41, %v2070_v41 }
 0x132   : > { %v652_v56 = vpop.f32.mrb[29].mxu0  ;;  %v2191_v58 = vpop.f32.mrb[29].mxu1  ;;  %v1219_v19 = vmul.f32 %v1867_v51, %v1867_v51 }
 0x133   : > { %v1142_v59 = vadd.f32 %v1141_v53, %v652_v56  ;;  %v1217_v63 = vmul.f32 %v652_v56, %v652_v56  ;;  %v1279_v1 = vadd.f32 %v1278_v48, %v1216_v46  ;;  %v1868_v2 = vpop.f32.mrb[30].mxu0  ;;  %v2193_v3 = vpop.f32.mrb[30].mxu1  ;;  %v1224_v46 = vmul.f32 %v2081_v45, %v2081_v45 }
 0x134   : > { %v1668_v4 = vpack.c.bf16 %v1868_v2, %v1867_v51  ;;  %v655_v6 = vpop.f32.mrb[31].mxu0  ;;  %v1748_v7 = vpack.c.bf16 %v2193_v3, %v2189_v54  ;;  %v2197_v8 = vpop.f32.mrb[31].mxu1  ;;  %v1220_v25 = vmul.f32 %v1868_v2, %v1868_v2 }
 0x135   : > { %v1280_v10 = vadd.f32 %v1279_v1, %v1217_v63  ;;  %v1663_v11 = vpack.c.bf16 %v655_v6, %v652_v56  ;;  %v1143_v12 = vadd.f32 %v1142_v59, %v655_v6  ;;  %v1218_v13 = vmul.f32 %v655_v6, %v655_v6 }
 0x136   : > { %1764 = vst [vmem:[%s2079_s10 + $0x78] sm:$0xff] %v1668_v4   ;;  %1780 = vst [vmem:[%s2079_s10 + $0xf8] sm:$0xff] %v1748_v7   ;;  %v1743_v17 = vpack.c.bf16 %v2197_v8, %v2191_v58  ;;  %v1226_v63 = vmul.f32 %v2101_v9, %v2101_v9 }
 0x137   : > { %1763 = vst [vmem:[%s2079_s10 + $0x70] sm:$0xff] %v1663_v11   ;;  %v1144_v20 = vadd.f32 %v1867_v51, %v1143_v12  ;;  %v1281_v23 = vadd.f32 %v1280_v10, %v1218_v13  ;;  %v1230_v12 = vmul.f32 %v2117_v33, %v2117_v33 }
 0x138   : > { %1779 = vst [vmem:[%s2079_s10 + $0xf0] sm:$0xff] %v1743_v17  }
 0x139   : > { %v1282_v28 = vadd.f32 %v1281_v23, %v1219_v19  ;;  %v1145_v30 = vadd.f32 %v1868_v2, %v1144_v20 }
 0x13b   : > { %v1146_v34 = vadd.f32 %v1145_v30, %v2072_v43  ;;  %v1283_v35 = vadd.f32 %v1282_v28, %v1220_v25  ;;  %v1225_v43 = vmul.f32 %v2095_v0, %v2095_v0  ;;  %v1234_v30 = vmul.f32 %v2133_v61, %v2133_v61 }
 0x13d   : > { %v1284_v36 = vadd.f32 %v1283_v35, %v1221_v31  ;;  %v1147_v37 = vadd.f32 %v1146_v34, %v2085_v50 }
 0x13f   : > { %v1148_v40 = vadd.f32 %v2070_v41, %v1147_v37  ;;  %v1285_v42 = vadd.f32 %v1284_v36, %v1222_v38  ;;  %v1227_v41 = vmul.f32 %v2093_v62, %v2093_v62 }
 0x141   : > { %v1286_v48 = vadd.f32 %v1285_v42, %v1223_v39  ;;  %v1149_v51 = vadd.f32 %v2081_v45, %v1148_v40  ;;  %v1228_v45 = vmul.f32 %v2097_v5, %v2097_v5  ;;  %v1238_v40 = vmul.f32 %v2149_v27, %v2149_v27 }
 0x143   : > { %v1150_v53 = vadd.f32 %v1149_v51, %v2095_v0  ;;  %v1287_v56 = vadd.f32 %v1286_v48, %v1224_v46  ;;  %v1229_v0 = vmul.f32 %v2111_v24, %v2111_v24 }
 0x145   : > { %v1288_v59 = vadd.f32 %v1287_v56, %v1225_v43  ;;  %v1151_v50 = vadd.f32 %v1150_v53, %v2101_v9 }
 0x147   : > { %v1152_v1 = vadd.f32 %v2093_v62, %v1151_v50  ;;  %v1289_v2 = vadd.f32 %v1288_v59, %v1226_v63  ;;  %v1231_v62 = vmul.f32 %v2109_v22, %v2109_v22  ;;  %v1242_v59 = vmul.f32 %v2165_v60, %v2165_v60 }
 0x149   : > { %v1290_v4 = vadd.f32 %v1289_v2, %v1227_v41  ;;  %v1153_v6 = vadd.f32 %v2097_v5, %v1152_v1  ;;  %v1232_v5 = vmul.f32 %v2113_v29, %v2113_v29 }
 0x14b   : > { %v1154_v7 = vadd.f32 %v1153_v6, %v2111_v24  ;;  %v1291_v10 = vadd.f32 %v1290_v4, %v1228_v45  ;;  %v1233_v24 = vmul.f32 %v2127_v52, %v2127_v52  ;;  %v1246_v6 = vmul.f32 %v2181_v32, %v2181_v32 }
 0x14d   : > { %v1292_v11 = vadd.f32 %v1291_v10, %v1229_v0  ;;  %v1155_v9 = vadd.f32 %v1154_v7, %v2117_v33 }
 0x14f   : > { %v1156_v13 = vadd.f32 %v2109_v22, %v1155_v9  ;;  %v1293_v17 = vadd.f32 %v1292_v11, %v1230_v12  ;;  %v1235_v22 = vmul.f32 %v2125_v49, %v2125_v49  ;;  %v1249_v11 = vmul.f32 %v2191_v58, %v2191_v58 }
 0x151   : > { %v1294_v19 = vadd.f32 %v1293_v17, %v1231_v62  ;;  %v1157_v20 = vadd.f32 %v2113_v29, %v1156_v13  ;;  %v1236_v29 = vmul.f32 %v2129_v57, %v2129_v57  ;;  %v1251_v13 = vmul.f32 %v2189_v54, %v2189_v54 }
 0x153   : > { %v1158_v23 = vadd.f32 %v1157_v20, %v2127_v52  ;;  %v1295_v25 = vadd.f32 %v1294_v19, %v1232_v5  ;;  %v1237_v52 = vmul.f32 %v2143_v16, %v2143_v16 }
 0x155   : > { %v1296_v28 = vadd.f32 %v1295_v25, %v1233_v24  ;;  %v1159_v33 = vadd.f32 %v1158_v23, %v2133_v61 }
 0x157   : > { %v1160_v31 = vadd.f32 %v2125_v49, %v1159_v33  ;;  %v1297_v34 = vadd.f32 %v1296_v28, %v1234_v30  ;;  %v1239_v49 = vmul.f32 %v2141_v14, %v2141_v14  ;;  %v1184_v33 = vlaneseq }
 0x159   : > { %v1298_v35 = vadd.f32 %v1297_v34, %v1235_v22  ;;  %v1161_v36 = vadd.f32 %v2129_v57, %v1160_v31  ;;  %v1240_v57 = vmul.f32 %v2145_v21, %v2145_v21  ;;  %vm1186_vm0 = vcmp.lt.s32.totalorder %v1184_v33, 128 }
 0x15b   : > { %v1162_v37 = vadd.f32 %v1161_v36, %v2143_v16  ;;  %v1299_v38 = vadd.f32 %v1298_v35, %v1236_v29  ;;  %v1241_v16 = vmul.f32 %v2159_v47, %v2159_v47 }
 0x15d   : > { %v1300_v39 = vadd.f32 %v1299_v38, %v1237_v52  ;;  %v1163_v61 = vadd.f32 %v1162_v37, %v2149_v27 }
 0x15f   : > { %v1164_v42 = vadd.f32 %v2141_v14, %v1163_v61  ;;  %v1301_v46 = vadd.f32 %v1300_v39, %v1238_v40  ;;  %v1243_v14 = vmul.f32 %v2157_v44, %v2157_v44 }
 0x161   : > { %v1302_v48 = vadd.f32 %v1301_v46, %v1239_v49  ;;  %v1165_v51 = vadd.f32 %v2145_v21, %v1164_v42  ;;  %v1244_v21 = vmul.f32 %v2161_v55, %v2161_v55 }
 0x163   : > { %v1166_v43 = vadd.f32 %v1165_v51, %v2159_v47  ;;  %v1303_v53 = vadd.f32 %v1302_v48, %v1240_v57  ;;  %v1245_v47 = vmul.f32 %v2175_v18, %v2175_v18 }
 0x165   : > { %v1304_v56 = vadd.f32 %v1303_v53, %v1241_v16  ;;  %v1167_v27 = vadd.f32 %v1166_v43, %v2165_v60 }
 0x167   : > { %v1168_v50 = vadd.f32 %v2157_v44, %v1167_v27  ;;  %v1305_v63 = vadd.f32 %v1304_v56, %v1242_v59  ;;  %v1247_v44 = vmul.f32 %v2173_v15, %v2173_v15 }
 0x169   : > { %v1306_v41 = vadd.f32 %v1305_v63, %v1243_v14  ;;  %v1169_v1 = vadd.f32 %v2161_v55, %v1168_v50  ;;  %v1248_v55 = vmul.f32 %v2177_v26, %v2177_v26 }
 0x16b   : > { %v1170_v2 = vadd.f32 %v1169_v1, %v2175_v18  ;;  %v1307_v45 = vadd.f32 %v1306_v41, %v1244_v21 }
 0x16d   : > { %v1308_v4 = vadd.f32 %v1307_v45, %v1245_v47  ;;  %v1171_v60 = vadd.f32 %v1170_v2, %v2181_v32 }
 0x16f   : > { %v1172_v0 = vadd.f32 %v2173_v15, %v1171_v60  ;;  %v1309_v7 = vadd.f32 %v1308_v4, %v1246_v6  ;;  %v1250_v15 = vmul.f32 %v2197_v8, %v2197_v8 }
 0x171   : > { %v1310_v10 = vadd.f32 %v1309_v7, %v1247_v44  ;;  %v1173_v18 = vadd.f32 %v2177_v26, %v1172_v0  ;;  %v1252_v26 = vmul.f32 %v2193_v3, %v2193_v3 }
 0x173   : > { %v1174_v9 = vadd.f32 %v1173_v18, %v2191_v58  ;;  %v1311_v32 = vadd.f32 %v1310_v10, %v1248_v55 }
 0x175   : > { %v1312_v12 = vadd.f32 %v1311_v32, %v1249_v11  ;;  %v1175_v62 = vadd.f32 %v1174_v9, %v2197_v8 }
 0x177   : > { %v1176_v17 = vadd.f32 %v2189_v54, %v1175_v62  ;;  %v1313_v5 = vadd.f32 %v1312_v12, %v1250_v15 }
 0x179   : > { %v1177_v19 = vadd.f32 %v2193_v3, %v1176_v17  ;;  %v1314_v58 = vadd.f32 %v1313_v5, %v1251_v13 }
 0x17b   : > { %v1178_v20 = vrot.slane %v1177_v19, 4  ;;  %v1315_v24 = vadd.f32 %v1314_v58, %v1252_v26 }
 0x17d   : > { %v1179_v23 = vadd.f32 %v1178_v20, %v1177_v19  ;;  %v1316_v25 = vrot.slane %v1315_v24, 4 }
 0x17f   : > { %v1180_v28 = vrot.slane %v1179_v23, 2  ;;  %v1317_v8 = vadd.f32 %v1316_v25, %v1315_v24 }
 0x181   : > { %v1181_v30 = vadd.f32 %v1180_v28, %v1179_v23  ;;  %v1318_v22 = vrot.slane %v1317_v8, 2 }
 0x183   : > { %v1182_v54 = vrot.slane %v1181_v30, 1  ;;  %v1319_v31 = vadd.f32 %v1318_v22, %v1317_v8 }
 0x185   : > { %v1183_v3 = vadd.f32 %v1182_v54, %v1181_v30  ;;  %v1320_v34 = vrot.slane %v1319_v31, 1 }
 0x187   : > { %1188 = vst.msk [vmem:[%s184_s16] sm:$0x1] %vm1186_vm0, %v1183_v3  ;;  %v1321_v29 = vadd.f32 %v1320_v34, %v1319_v31 }
 0x189   : > { %1322 = vst.msk [vmem:[%s184_s16 + $0x1] sm:$0x1] %vm1186_vm0, %v1321_v29 }
 0x18a PF: > { %s14_s12 = sadd.s32 1, %s1971_s12  }
 0x18b   : > { %p11_p5 = scmp.ge.s32.totalorder %s14_s12, 4  }
 0x18d   :  { %13 = sbr.rel (!%p11_p5) target bundleno = 1 (0x1), region = 70 }

// kernel: _lambda_.11
= control target key start
LH: loop header
LB: loop body
LE: loop exit
PB: predicated region body
PF: predicated region fallthrough
CT: control target
= control target key end

     0   :  { %s455_s0 = inlined_call_operand.vmem [shape: bf16[128,128], index: 0, kind: input, shape index: {}]   ;;  %s456_s1 = inlined_call_operand.vmem [shape: f32[1,128], index: 1, kind: input, shape index: {}]   ;;  %s457_s2 = inlined_call_operand.vmem [shape: f32[1,128], index: 2, kind: input, shape index: {}]   ;;  %s458_s3 = inlined_call_operand.vmem [shape: bf16[128,128], index: 3, kind: output, shape index: {}]  }
   0x1   :  { %v259_v0 = vld [vmem:[%s455_s0] sm:$0xff]   ;;  %v330_v4 = vld [vmem:[%s455_s0 + $0x8] sm:$0xff]   ;;  %v331_v5 = vld [vmem:[%s455_s0 + $0x10] sm:$0xff]  }
   0x2   :  { %v370_v1 = vld [vmem:[%s456_s1] ss:$0 sm:$0xff]  ;;  %v260_v2 = vunpack.c.l.bf16 %v259_v0  ;;  %v261_v3 = vunpack.c.h.bf16 %v259_v0  ;;  %v332_v6 = vld [vmem:[%s455_s0 + $0x18] sm:$0xff]   ;;  %v264_v8 = vunpack.c.l.bf16 %v330_v4  ;;  %v265_v9 = vunpack.c.h.bf16 %v330_v4  ;;  %v334_v35 = vld [vmem:[%s455_s0 + $0x28] sm:$0xff]  }
   0x3   :  { %v384_v7 = vld [vmem:[%s457_s2] ss:$0 sm:$0xff]  ;;  %v268_v10 = vunpack.c.l.bf16 %v331_v5  ;;  %v269_v11 = vunpack.c.h.bf16 %v331_v5  ;;  %v272_v14 = vunpack.c.l.bf16 %v332_v6  ;;  %v273_v15 = vunpack.c.h.bf16 %v332_v6  ;;  %v335_v48 = vld [vmem:[%s455_s0 + $0x30] sm:$0xff]   ;;  %v336_v4 = vld [vmem:[%s455_s0 + $0x38] sm:$0xff]  }
   0x4   :  { %v53_v12 = vmul.f32 %v260_v2, %v370_v1  ;;  %v54_v13 = vmul.f32 %v261_v3, %v370_v1  ;;  %v55_v16 = vmul.f32 %v264_v8, %v370_v1  ;;  %v56_v17 = vmul.f32 %v265_v9, %v370_v1  ;;  %v333_v34 = vld [vmem:[%s455_s0 + $0x20] sm:$0xff]  }
   0x5   :  { %v57_v18 = vmul.f32 %v268_v10, %v370_v1  ;;  %v58_v19 = vmul.f32 %v269_v11, %v370_v1  ;;  %v59_v22 = vmul.f32 %v272_v14, %v370_v1  ;;  %v60_v23 = vmul.f32 %v273_v15, %v370_v1 }
   0x6   :  { %v76_v20 = vadd.f32 %v384_v7, %v53_v12  ;;  %v77_v21 = vadd.f32 %v384_v7, %v54_v13  ;;  %v78_v24 = vadd.f32 %v384_v7, %v55_v16  ;;  %v79_v25 = vadd.f32 %v384_v7, %v56_v17 }
   0x7   :  { %v80_v26 = vadd.f32 %v384_v7, %v57_v18  ;;  %v81_v27 = vadd.f32 %v384_v7, %v58_v19  ;;  %v82_v42 = vadd.f32 %v384_v7, %v59_v22  ;;  %v83_v43 = vadd.f32 %v384_v7, %v60_v23 }
   0x8   :  { %vm92_vm0 = vcmp.ge.f32.partialorder %v76_v20, 0.0  ;;  %vm93_vm1 = vcmp.ge.f32.partialorder %v77_v21, 0.0  ;;  %v108_v28 = vmul.f32 0.2, %v76_v20  ;;  %v109_v29 = vmul.f32 0.2, %v77_v21 }
   0x9   :  { %vm94_vm2 = vcmp.ge.f32.partialorder %v78_v24, 0.0  ;;  %vm95_vm3 = vcmp.ge.f32.partialorder %v79_v25, 0.0  ;;  %v110_v30 = vmul.f32 0.2, %v78_v24  ;;  %v111_v31 = vmul.f32 0.2, %v79_v25 }
   0xa   :  { %v124_v32 = vsel %vm92_vm0, %v76_v20, %v108_v28  ;;  %v125_v33 = vsel %vm93_vm1, %v77_v21, %v109_v29  ;;  %vm96_vm4 = vcmp.ge.f32.partialorder %v80_v26, 0.0  ;;  %vm97_vm5 = vcmp.ge.f32.partialorder %v81_v27, 0.0 }
   0xb   :  { %v293_v36 = vpack.c.bf16 %v125_v33, %v124_v32  ;;  %v126_v37 = vsel %vm94_vm2, %v78_v24, %v110_v30  ;;  %v127_v38 = vsel %vm95_vm3, %v79_v25, %v111_v31  ;;  %v112_v39 = vmul.f32 0.2, %v80_v26 }
   0xc   :  { %v298_v40 = vpack.c.bf16 %v127_v38, %v126_v37  ;;  %v113_v41 = vmul.f32 0.2, %v81_v27  ;;  %v276_v45 = vunpack.c.l.bf16 %v333_v34  ;;  %v277_v46 = vunpack.c.h.bf16 %v333_v34 }
   0xd   :  { %294 = vst [vmem:[%s458_s3] sm:$0xff] %v293_v36   ;;  %v128_v44 = vsel %vm96_vm4, %v80_v26, %v112_v39  ;;  %v280_v47 = vunpack.c.l.bf16 %v334_v35  ;;  %vm98_vm6 = vcmp.ge.f32.partialorder %v82_v42, 0.0  ;;  %vm99_vm7 = vcmp.ge.f32.partialorder %v83_v43, 0.0 }
   0xe   :  { %337 = vst [vmem:[%s458_s3 + $0x8] sm:$0xff] %v298_v40   ;;  %v129_v49 = vsel %vm97_vm5, %v81_v27, %v113_v41  ;;  %v114_v50 = vmul.f32 0.2, %v82_v42  ;;  %v115_v52 = vmul.f32 0.2, %v83_v43  ;;  %v61_v53 = vmul.f32 %v276_v45, %v370_v1 }
   0xf   :  { %v303_v51 = vpack.c.bf16 %v129_v49, %v128_v44  ;;  %v62_v54 = vmul.f32 %v277_v46, %v370_v1  ;;  %v281_v56 = vunpack.c.h.bf16 %v334_v35  ;;  %v63_v57 = vmul.f32 %v280_v47, %v370_v1 }
  0x10   :  { %v130_v55 = vsel %vm98_vm6, %v82_v42, %v114_v50  ;;  %v284_v58 = vunpack.c.l.bf16 %v335_v48  ;;  %v131_v59 = vsel %vm99_vm7, %v83_v43, %v115_v52  ;;  %v84_v60 = vadd.f32 %v384_v7, %v61_v53 }
  0x11   :  { %338 = vst [vmem:[%s458_s3 + $0x10] sm:$0xff] %v303_v51   ;;  %v85_v61 = vadd.f32 %v384_v7, %v62_v54  ;;  %v285_v62 = vunpack.c.h.bf16 %v335_v48  ;;  %v308_v63 = vpack.c.bf16 %v131_v59, %v130_v55  ;;  %v64_v0 = vmul.f32 %v281_v56, %v370_v1 }
  0x12   :  { %v86_v2 = vadd.f32 %v384_v7, %v63_v57  ;;  %v65_v3 = vmul.f32 %v284_v58, %v370_v1  ;;  %vm100_vm8 = vcmp.ge.f32.partialorder %v84_v60, 0.0  ;;  %v116_v5 = vmul.f32 0.2, %v84_v60 }
  0x13   :  { %vm101_vm9 = vcmp.ge.f32.partialorder %v85_v61, 0.0  ;;  %v117_v6 = vmul.f32 0.2, %v85_v61  ;;  %339 = vst [vmem:[%s458_s3 + $0x18] sm:$0xff] %v308_v63   ;;  %v87_v8 = vadd.f32 %v384_v7, %v64_v0  ;;  %v66_v10 = vmul.f32 %v285_v62, %v370_v1 }
  0x14   :  { %vm102_vm10 = vcmp.ge.f32.partialorder %v86_v2, 0.0  ;;  %v118_v9 = vmul.f32 0.2, %v86_v2  ;;  %v132_v11 = vsel %vm100_vm8, %v84_v60, %v116_v5  ;;  %v88_v13 = vadd.f32 %v384_v7, %v65_v3 }
  0x15   :  { %v133_v12 = vsel %vm101_vm9, %v85_v61, %v117_v6  ;;  %v288_v14 = vunpack.c.l.bf16 %v336_v4  ;;  %vm103_vm11 = vcmp.ge.f32.partialorder %v87_v8, 0.0  ;;  %v119_v16 = vmul.f32 0.2, %v87_v8 }
  0x16   :  { %v313_v15 = vpack.c.bf16 %v133_v12, %v132_v11  ;;  %v134_v17 = vsel %vm102_vm10, %v86_v2, %v118_v9  ;;  %v89_v18 = vadd.f32 %v384_v7, %v66_v10  ;;  %vm104_vm12 = vcmp.ge.f32.partialorder %v88_v13, 0.0 }
  0x17   :  { %v120_v19 = vmul.f32 0.2, %v88_v13  ;;  %v289_v20 = vunpack.c.h.bf16 %v336_v4  ;;  %v135_v21 = vsel %vm103_vm11, %v87_v8, %v119_v16  ;;  %v67_v22 = vmul.f32 %v288_v14, %v370_v1 }
  0x18   :  { %340 = vst [vmem:[%s458_s3 + $0x20] sm:$0xff] %v313_v15   ;;  %v318_v23 = vpack.c.bf16 %v135_v21, %v134_v17  ;;  %vm105_vm13 = vcmp.ge.f32.partialorder %v89_v18, 0.0  ;;  %v121_v24 = vmul.f32 0.2, %v89_v18 }
  0x19   :  { %v136_v25 = vsel %vm104_vm12, %v88_v13, %v120_v19  ;;  %v68_v26 = vmul.f32 %v289_v20, %v370_v1  ;;  %v90_v27 = vadd.f32 %v384_v7, %v67_v22 }
  0x1a   :  { %341 = vst [vmem:[%s458_s3 + $0x28] sm:$0xff] %v318_v23   ;;  %v137_v28 = vsel %vm105_vm13, %v89_v18, %v121_v24 }
  0x1b   :  { %v323_v29 = vpack.c.bf16 %v137_v28, %v136_v25  ;;  %v91_v30 = vadd.f32 %v384_v7, %v68_v26  ;;  %vm106_vm14 = vcmp.ge.f32.partialorder %v90_v27, 0.0  ;;  %v122_v31 = vmul.f32 0.2, %v90_v27 }
  0x1d   :  { %342 = vst [vmem:[%s458_s3 + $0x30] sm:$0xff] %v323_v29   ;;  %vm107_vm15 = vcmp.ge.f32.partialorder %v91_v30, 0.0  ;;  %v123_v32 = vmul.f32 0.2, %v91_v30  ;;  %v138_v33 = vsel %vm106_vm14, %v90_v27, %v122_v31 }
  0x1f   :  { %v139_v1 = vsel %vm107_vm15, %v91_v30, %v123_v32 }
  0x20   :  { %v328_v34 = vpack.c.bf16 %v139_v1, %v138_v33 }
  0x22   :  { %343 = vst [vmem:[%s458_s3 + $0x38] sm:$0xff] %v328_v34  }

// kernel: _lambda_.10
= control target key start
LH: loop header
LB: loop body
LE: loop exit
PB: predicated region body
PF: predicated region fallthrough
CT: control target
= control target key end

     0   :  { %s8144_s1 = inlined_call_operand.vmem [shape: bf16[3456,128], index: 1, kind: input, shape index: {}]   ;;  %s8145_s0 = inlined_call_operand.vmem [shape: bf16[128,3456], index: 0, kind: input, shape index: {}]   ;;  %s8146_s2 = inlined_call_operand.vmem [shape: bf16[128,128], index: 2, kind: output, shape index: {0}]   ;;  %s8147_s3 = inlined_call_operand.vmem [shape: f32[1,1,256], index: 3, kind: output, shape index: {1}]  }
   0x1   :  { %v5955_v0 = vld [vmem:[%s8144_s1 + $0x40] sm:$0xff]   ;;  %v5959_v4 = vld [vmem:[%s8144_s1 + $0x48] sm:$0xff]   ;;  %v5963_v8 = vld [vmem:[%s8144_s1 + $0x50] sm:$0xff]  }
   0x2   :  { %v5956_v1 = vld [vmem:[%s8144_s1 + $0xc0] sm:$0xff]   ;;  %5075 = vmatprep.subr.bf16.mxu0 %v5955_v0  ;;  %v5960_v5 = vld [vmem:[%s8144_s1 + $0xc8] sm:$0xff]   ;;  %v5964_v9 = vld [vmem:[%s8144_s1 + $0xd0] sm:$0xff]  }
   0x3   :  { %v5957_v2 = vld [vmem:[%s8144_s1] sm:$0xff]   ;;  %5139 = vmatprep.subr.bf16.mxu1 %v5956_v1  ;;  %v5961_v6 = vld [vmem:[%s8144_s1 + $0x8] sm:$0xff]   ;;  %v5965_v10 = vld [vmem:[%s8144_s1 + $0x10] sm:$0xff]  }
   0x4   :  { %v5958_v3 = vld [vmem:[%s8144_s1 + $0x80] sm:$0xff]   ;;  %5076 = vmatpush3.bf16.msra.mxu0 %v5957_v2  ;;  %v5962_v7 = vld [vmem:[%s8144_s1 + $0x88] sm:$0xff]   ;;  %v5966_v11 = vld [vmem:[%s8144_s1 + $0x90] sm:$0xff]  }
   0x5   :  { %5140 = vmatpush3.bf16.msra.mxu1 %v5958_v3  ;;  %5077 = vmatprep.subr.bf16.mxu0 %v5959_v4  ;;  %v5967_v12 = vld [vmem:[%s8144_s1 + $0x58] sm:$0xff]   ;;  %v5971_v16 = vld [vmem:[%s8144_s1 + $0x60] sm:$0xff]   ;;  %v5975_v20 = vld [vmem:[%s8144_s1 + $0x68] sm:$0xff]  }
   0x6   :  { %5141 = vmatprep.subr.bf16.mxu1 %v5960_v5  ;;  %v5968_v13 = vld [vmem:[%s8144_s1 + $0xd8] sm:$0xff]   ;;  %v5972_v17 = vld [vmem:[%s8144_s1 + $0xe0] sm:$0xff]   ;;  %v5976_v21 = vld [vmem:[%s8144_s1 + $0xe8] sm:$0xff]  }
   0x7   :  { %v5969_v14 = vld [vmem:[%s8144_s1 + $0x18] sm:$0xff]   ;;  %v5973_v18 = vld [vmem:[%s8144_s1 + $0x20] sm:$0xff]   ;;  %v5977_v22 = vld [vmem:[%s8144_s1 + $0x28] sm:$0xff]  }
   0x8   :  { %5078 = vmatpush3.bf16.msra.mxu0 %v5961_v6  ;;  %v5970_v15 = vld [vmem:[%s8144_s1 + $0x98] sm:$0xff]   ;;  %v5974_v19 = vld [vmem:[%s8144_s1 + $0xa0] sm:$0xff]   ;;  %v5978_v23 = vld [vmem:[%s8144_s1 + $0xa8] sm:$0xff]  }
   0x9   :  { %5142 = vmatpush3.bf16.msra.mxu1 %v5962_v7  ;;  %5079 = vmatprep.subr.bf16.mxu0 %v5963_v8  ;;  %v5979_v24 = vld [vmem:[%s8144_s1 + $0x70] sm:$0xff]   ;;  %v5983_v28 = vld [vmem:[%s8144_s1 + $0x78] sm:$0xff]   ;;  %v5987_v32 = vld [vmem:[%s8145_s0] ss:$108 sps:$4 sm:$0xff]  }
   0xa   :  { %5143 = vmatprep.subr.bf16.mxu1 %v5964_v9  ;;  %v5980_v25 = vld [vmem:[%s8144_s1 + $0xf0] sm:$0xff]   ;;  %v5984_v29 = vld [vmem:[%s8144_s1 + $0xf8] sm:$0xff]   ;;  %v5993_v36 = vld [vmem:[%s8144_s1 + $0x140] sm:$0xff]  }
   0xb   :  { %v5981_v26 = vld [vmem:[%s8144_s1 + $0x30] sm:$0xff]   ;;  %v5985_v30 = vld [vmem:[%s8144_s1 + $0x38] sm:$0xff]   ;;  %v5994_v37 = vld [vmem:[%s8144_s1 + $0x100] sm:$0xff]  }
   0xc   :  { %5080 = vmatpush3.bf16.msra.mxu0 %v5965_v10  ;;  %v5982_v27 = vld [vmem:[%s8144_s1 + $0xb0] sm:$0xff]   ;;  %v5986_v31 = vld [vmem:[%s8144_s1 + $0xb8] sm:$0xff]   ;;  %v6000_v41 = vld [vmem:[%s8145_s0 + $0xe0] ss:$108 sps:$4 sm:$0xff]  }
   0xd   :  { %5144 = vmatpush3.bf16.msra.mxu1 %v5966_v11  ;;  %5081 = vmatprep.subr.bf16.mxu0 %v5967_v12  ;;  %v5989_v33 = vld [vmem:[%s8145_s0 + $0x4] ss:$108 sps:$4 sm:$0xff]   ;;  %v5990_v34 = vld [vmem:[%s8145_s0 + $0x8] ss:$108 sps:$4 sm:$0xff]   ;;  %v5992_v35 = vld [vmem:[%s8145_s0 + $0xc] ss:$108 sps:$4 sm:$0xff]  }
   0xe   :  { %5145 = vmatprep.subr.bf16.mxu1 %v5968_v13  ;;  %3086 = vmatprep.mubr.bf16.mxu0 %v5989_v33  ;;  %v5995_v38 = vld [vmem:[%s8145_s0 + $0xdc] ss:$108 sps:$4 sm:$0xff]   ;;  %v5997_v39 = vld [vmem:[%s8145_s0 + $0xe4] ss:$108 sps:$4 sm:$0xff]   ;;  %v6003_v44 = vld [vmem:[%s8145_s0 + $0x1b4] ss:$108 sps:$4 sm:$0xff]  }
   0xf   :  { %3183 = vmatprep.mubr.bf16.mxu1 %v5992_v35  ;;  %v5999_v40 = vld [vmem:[%s8145_s0 + $0xd8] ss:$108 sps:$4 sm:$0xff]   ;;  %v6001_v42 = vld [vmem:[%s8144_s1 + $0x148] sm:$0xff]   ;;  %v6009_v46 = vld [vmem:[%s8144_s1 + $0x150] sm:$0xff]  }
  0x10   :  { %5082 = vmatpush3.bf16.msra.mxu0 %v5969_v14  ;;  %v6002_v43 = vld [vmem:[%s8144_s1 + $0x108] sm:$0xff]   ;;  %v6010_v47 = vld [vmem:[%s8144_s1 + $0x110] sm:$0xff]   ;;  %v6008_v49 = vld [vmem:[%s8145_s0 + $0x1b8] ss:$108 sps:$4 sm:$0xff]  }
  0x11   :  { %5146 = vmatpush3.bf16.msra.mxu1 %v5970_v15  ;;  %5083 = vmatprep.subr.bf16.mxu0 %v5971_v16  ;;  %v6005_v45 = vld [vmem:[%s8145_s0 + $0x1bc] ss:$108 sps:$4 sm:$0xff]   ;;  %v6011_v50 = vld [vmem:[%s8145_s0 + $0x28c] ss:$108 sps:$4 sm:$0xff]   ;;  %v6013_v51 = vld [vmem:[%s8145_s0 + $0x294] ss:$108 sps:$4 sm:$0xff]  }
  0x12   :  { %5147 = vmatprep.subr.bf16.mxu1 %v5972_v17  ;;  %v6007_v48 = vld [vmem:[%s8145_s0 + $0x1b0] ss:$108 sps:$4 sm:$0xff]   ;;  %v6015_v54 = vld [vmem:[%s8145_s0 + $0x288] ss:$108 sps:$4 sm:$0xff]   ;;  %v6025_v55 = vld [vmem:[%s8144_s1 + $0x160] sm:$0xff]  }
  0x13   :  { %v6017_v52 = vld [vmem:[%s8144_s1 + $0x158] sm:$0xff]   ;;  %v6019_v57 = vld [vmem:[%s8145_s0 + $0x364] ss:$108 sps:$4 sm:$0xff]   ;;  %v6029_v62 = vld [vmem:[%s8144_s1 + $0x1c8] sm:$0xff]  }
  0x14   :  { %5084 = vmatpush3.bf16.msra.mxu0 %v5973_v18  ;;  %v6018_v53 = vld [vmem:[%s8144_s1 + $0x118] sm:$0xff]   ;;  %v6026_v58 = vld [vmem:[%s8144_s1 + $0x1c0] sm:$0xff]   ;;  %v6034_v63 = vld [vmem:[%s8144_s1 + $0x188] sm:$0xff]  }
  0x15   :  { %5148 = vmatpush3.bf16.msra.mxu1 %v5974_v19  ;;  %5085 = vmatprep.subr.bf16.mxu0 %v5975_v20  ;;  %v6016_v56 = vld [vmem:[%s8145_s0 + $0x290] ss:$108 sps:$4 sm:$0xff]   ;;  %v6021_v59 = vld [vmem:[%s8145_s0 + $0x36c] ss:$108 sps:$4 sm:$0xff]   ;;  %v6027_v60 = vld [vmem:[%s8144_s1 + $0x120] sm:$0xff]  }
  0x16   :  { %5149 = vmatprep.subr.bf16.mxu1 %v5976_v21  ;;  %v6028_v61 = vld [vmem:[%s8144_s1 + $0x180] sm:$0xff]   ;;  %v6037_v1 = vld [vmem:[%s8144_s1 + $0x168] sm:$0xff]   ;;  %v6039_v6 = vld [vmem:[%s8144_s1 + $0x1d0] sm:$0xff]  }
  0x17   :  { %v6023_v0 = vld [vmem:[%s8145_s0 + $0x360] ss:$108 sps:$4 sm:$0xff]   ;;  %v6024_v2 = vld [vmem:[%s8145_s0 + $0x368] ss:$108 sps:$4 sm:$0xff]   ;;  %v6032_v5 = vld [vmem:[%s8145_s0 + $0x444] ss:$108 sps:$4 sm:$0xff]  }
  0x18   :  { %5086 = vmatpush3.bf16.msra.mxu0 %v5977_v22  ;;  %v6030_v3 = vld [vmem:[%s8145_s0 + $0x43c] ss:$108 sps:$4 sm:$0xff]   ;;  %v6040_v7 = vld [vmem:[%s8144_s1 + $0x190] sm:$0xff]   ;;  %v6035_v10 = vld [vmem:[%s8145_s0 + $0x438] ss:$108 sps:$4 sm:$0xff]  }
  0x19   :  { %5150 = vmatpush3.bf16.msra.mxu1 %v5978_v23  ;;  %5087 = vmatprep.subr.bf16.mxu0 %v5979_v24  ;;  %v6038_v4 = vld [vmem:[%s8144_s1 + $0x128] sm:$0xff]   ;;  %v6041_v8 = vld [vmem:[%s8144_s1 + $0x1d8] sm:$0xff]   ;;  %v6042_v12 = vld [vmem:[%s8145_s0 + $0x514] ss:$108 sps:$4 sm:$0xff]  }
  0x1a   :  { %5151 = vmatprep.subr.bf16.mxu1 %v5980_v25  ;;  %v6046_v9 = vld [vmem:[%s8144_s1 + $0x198] sm:$0xff]   ;;  %v6036_v11 = vld [vmem:[%s8145_s0 + $0x440] ss:$108 sps:$4 sm:$0xff]   ;;  %v6049_v13 = vld [vmem:[%s8144_s1 + $0x170] sm:$0xff]  }
  0x1b   :  { %v6044_v14 = vld [vmem:[%s8145_s0 + $0x51c] ss:$108 sps:$4 sm:$0xff]   ;;  %v6050_v15 = vld [vmem:[%s8144_s1 + $0x130] sm:$0xff]   ;;  %v6051_v16 = vld [vmem:[%s8144_s1 + $0x1e0] sm:$0xff]  }
  0x1c   :  { %5088 = vmatpush3.bf16.msra.mxu0 %v5981_v26  ;;  %v6052_v17 = vld [vmem:[%s8144_s1 + $0x1a0] sm:$0xff]   ;;  %v6053_v18 = vld [vmem:[%s8144_s1 + $0x1e8] sm:$0xff]   ;;  %v6047_v19 = vld [vmem:[%s8145_s0 + $0x510] ss:$108 sps:$4 sm:$0xff]  }
  0x1d   :  { %5152 = vmatpush3.bf16.msra.mxu1 %v5982_v27  ;;  %5089 = vmatprep.subr.bf16.mxu0 %v5983_v28  ;;  %v6058_v20 = vld [vmem:[%s8144_s1 + $0x1a8] sm:$0xff]   ;;  %v6048_v21 = vld [vmem:[%s8145_s0 + $0x518] ss:$108 sps:$4 sm:$0xff]   ;;  %v6056_v23 = vld [vmem:[%s8145_s0 + $0x5f4] ss:$108 sps:$4 sm:$0xff]  }
  0x1e   :  { %5153 = vmatprep.subr.bf16.mxu1 %v5984_v29  ;;  %v6054_v22 = vld [vmem:[%s8145_s0 + $0x5ec] ss:$108 sps:$4 sm:$0xff]   ;;  %v6063_v26 = vld [vmem:[%s8144_s1 + $0x1f0] sm:$0xff]  }
  0x1f   :  { %v6061_v24 = vld [vmem:[%s8144_s1 + $0x178] sm:$0xff]   ;;  %v6064_v27 = vld [vmem:[%s8144_s1 + $0x1b0] sm:$0xff]  }
  0x20   :  { %5090 = vmatpush3.bf16.msra.mxu0 %v5985_v30  ;;  %v6062_v25 = vld [vmem:[%s8144_s1 + $0x138] sm:$0xff]   ;;  %v6070_v30 = vld [vmem:[%s8144_s1 + $0x240] sm:$0xff]  }
  0x21   :  { %5154 = vmatpush3.bf16.msra.mxu1 %v5986_v31  ;;  %5203 = vmatprep.subr.bf16.mxu0 %v5993_v36  ;;  %v6065_v28 = vld [vmem:[%s8144_s1 + $0x1f8] sm:$0xff]   ;;  %v6059_v31 = vld [vmem:[%s8145_s0 + $0x5e8] ss:$108 sps:$4 sm:$0xff]  }
  0x22   :  { %5267 = vmatprep.subr.bf16.mxu1 %v6026_v58  ;;  %v6069_v29 = vld [vmem:[%s8144_s1 + $0x1b8] sm:$0xff]   ;;  %v6068_v33 = vld [vmem:[%s8145_s0 + $0x14] ss:$108 sps:$4 sm:$0xff]   ;;  %v6112_v58 = vld [vmem:[%s8144_s1 + $0x288] sm:$0xff]  }
  0x23   :  { %3087 = vmatmul.mubr.bf16.vlgmr.msra.gmra.mrb[0].mxu0 %v5987_v32  ;;  %v6060_v32 = vld [vmem:[%s8145_s0 + $0x5f0] ss:$108 sps:$4 sm:$0xff]   ;;  %v6071_v36 = vld [vmem:[%s8145_s0 + $0x18] ss:$108 sps:$4 sm:$0xff]  }
  0x24   :  { %3184 = vmatmul.mubr.bf16.vlgmr.msra.gmra.mrb[0].mxu1 %v5990_v34  ;;  %5204 = vmatpush3.bf16.msra.mxu0 %v5994_v37  ;;  %v6073_v34 = vld [vmem:[%s8145_s0 + $0x1c] ss:$108 sps:$4 sm:$0xff]   ;;  %v6074_v37 = vld [vmem:[%s8144_s1 + $0x200] sm:$0xff]  }
  0x25   :  { %3094 = vmatprep.mubr.bf16.mxu0 %v5995_v38  ;;  %3191 = vmatprep.mubr.bf16.mxu1 %v5997_v39  ;;  %v6066_v35 = vld [vmem:[%s8145_s0 + $0x10] ss:$108 sps:$4 sm:$0xff]   ;;  %v6075_v38 = vld [vmem:[%s8145_s0 + $0xec] ss:$108 sps:$4 sm:$0xff]  }
  0x26   :  { %5205 = vmatprep.subr.bf16.mxu0 %v6001_v42  ;;  %5268 = vmatpush3.bf16.msra.mxu1 %v6028_v61  ;;  %v6078_v39 = vld [vmem:[%s8144_s1 + $0x248] sm:$0xff]  }
  0x27   :  { %5269 = vmatprep.subr.bf16.mxu1 %v6029_v62  ;;  %v6077_v42 = vld [vmem:[%s8145_s0 + $0xe8] ss:$108 sps:$4 sm:$0xff]   ;;  %v6093_v62 = vld [vmem:[%s8145_s0 + $0x298] ss:$108 sps:$4 sm:$0xff]  }
  0x28   :  { %5206 = vmatpush3.bf16.msra.mxu0 %v6002_v43  ;;  %v6086_v43 = vld [vmem:[%s8144_s1 + $0x250] sm:$0xff]   ;;  %v6117_v61 = vld [vmem:[%s8144_s1 + $0x228] sm:$0xff]  }
  0x29   :  { %5207 = vmatprep.subr.bf16.mxu0 %v6009_v46  ;;  %v6087_v46 = vld [vmem:[%s8145_s0 + $0x1cc] ss:$108 sps:$4 sm:$0xff]  }
  0x2a   :  { %5270 = vmatpush3.bf16.msra.mxu1 %v6034_v63  ;;  %v6119_v63 = vld [vmem:[%s8144_s1 + $0x2d0] sm:$0xff]  }
  0x2b   :  { %3095 = vmatmul.mubr.bf16.gmra.mrb[4].mxu0 %v5999_v40  ;;  %5271 = vmatprep.subr.bf16.mxu1 %v6039_v6  ;;  %v6079_v40 = vld [vmem:[%s8145_s0 + $0xf4] ss:$108 sps:$4 sm:$0xff]  }
  0x2c   :  { %3192 = vmatmul.mubr.bf16.gmra.mrb[4].mxu1 %v6000_v41  ;;  %3102 = vmatprep.mubr.bf16.mxu0 %v6003_v44  ;;  %v6081_v41 = vld [vmem:[%s8144_s1 + $0x208] sm:$0xff]   ;;  %v6082_v44 = vld [vmem:[%s8145_s0 + $0xf0] ss:$108 sps:$4 sm:$0xff]  }
  0x2d   :  { %3199 = vmatprep.mubr.bf16.mxu1 %v6005_v45  ;;  %5208 = vmatpush3.bf16.msra.mxu0 %v6010_v47  ;;  %v6083_v45 = vld [vmem:[%s8145_s0 + $0x1c4] ss:$108 sps:$4 sm:$0xff]  }
  0x2e   :  { %5209 = vmatprep.subr.bf16.mxu0 %v6017_v52  ;;  %5272 = vmatpush3.bf16.msra.mxu1 %v6040_v7  ;;  %v6089_v47 = vld [vmem:[%s8144_s1 + $0x210] sm:$0xff]   ;;  %v6102_v52 = vld [vmem:[%s8144_s1 + $0x260] sm:$0xff]  }
  0x2f   :  { %5273 = vmatprep.subr.bf16.mxu1 %v6041_v8  ;;  %v6126_v6 = vld [vmem:[%s8144_s1 + $0x270] sm:$0xff]  }
  0x30   :  { %v6129_v7 = vld [vmem:[%s8144_s1 + $0x230] sm:$0xff]  }
  0x31   :  { %5210 = vmatpush3.bf16.msra.mxu0 %v6018_v53  ;;  %v6107_v53 = vld [vmem:[%s8144_s1 + $0x280] sm:$0xff]   ;;  %v6101_v8 = vld [vmem:[%s8145_s0 + $0x370] ss:$108 sps:$4 sm:$0xff]  }
  0x32   :  { %5211 = vmatprep.subr.bf16.mxu0 %v6025_v55  ;;  %5274 = vmatpush3.bf16.msra.mxu1 %v6046_v9  ;;  %v6109_v55 = vld [vmem:[%s8144_s1 + $0x2c8] sm:$0xff]   ;;  %v6131_v9 = vld [vmem:[%s8144_s1 + $0x2e0] sm:$0xff]  }
  0x33   :  { %3103 = vmatmul.mubr.bf16.gmra.mrb[8].mxu0 %v6007_v48  ;;  %5275 = vmatprep.subr.bf16.mxu1 %v6051_v16  ;;  %v6094_v48 = vld [vmem:[%s8144_s1 + $0x258] sm:$0xff]  }
  0x34   :  { %3200 = vmatmul.mubr.bf16.gmra.mrb[8].mxu1 %v6008_v49  ;;  %3110 = vmatprep.mubr.bf16.mxu0 %v6011_v50  ;;  %v6103_v49 = vld [vmem:[%s8144_s1 + $0x2c0] sm:$0xff]   ;;  %v6097_v50 = vld [vmem:[%s8144_s1 + $0x218] sm:$0xff]  }
  0x35   :  { %3207 = vmatprep.mubr.bf16.mxu1 %v6013_v51  ;;  %5212 = vmatpush3.bf16.msra.mxu0 %v6027_v60  ;;  %v6085_v51 = vld [vmem:[%s8145_s0 + $0x1c0] ss:$108 sps:$4 sm:$0xff]   ;;  %v6138_v16 = vld [vmem:[%s8144_s1 + $0x278] sm:$0xff]  }
  0x36   :  { %5213 = vmatprep.subr.bf16.mxu0 %v6037_v1  ;;  %5276 = vmatpush3.bf16.msra.mxu1 %v6052_v17  ;;  %v6114_v60 = vld [vmem:[%s8144_s1 + $0x268] sm:$0xff]   ;;  %v6120_v1 = vld [vmem:[%s8144_s1 + $0x290] sm:$0xff]  }
  0x37   :  { %5277 = vmatprep.subr.bf16.mxu1 %v6053_v18  ;;  %v6113_v17 = vld [vmem:[%s8145_s0 + $0x448] ss:$108 sps:$4 sm:$0xff]   ;;  %v6141_v18 = vld [vmem:[%s8144_s1 + $0x238] sm:$0xff]  }
  0x39   :  { %5214 = vmatpush3.bf16.msra.mxu0 %v6038_v4  ;;  %v6104_v4 = vld [vmem:[%s8145_s0 + $0x37c] ss:$108 sps:$4 sm:$0xff]  }
  0x3a   :  { %5215 = vmatprep.subr.bf16.mxu0 %v6049_v13  ;;  %5278 = vmatpush3.bf16.msra.mxu1 %v6058_v20  ;;  %v6133_v13 = vld [vmem:[%s8144_s1 + $0x2e8] sm:$0xff]   ;;  %v6122_v20 = vld [vmem:[%s8145_s0 + $0x524] ss:$108 sps:$4 sm:$0xff]  }
  0x3b   :  { %3111 = vmatmul.mubr.bf16.gmra.mrb[12].mxu0 %v6015_v54  ;;  %5279 = vmatprep.subr.bf16.mxu1 %v6063_v26  ;;  %v6090_v54 = vld [vmem:[%s8145_s0 + $0x1c8] ss:$108 sps:$4 sm:$0xff]   ;;  %v6150_v26 = vld [vmem:[%s8144_s1 + $0x340] sm:$0xff]  }
  0x3c   :  { %3208 = vmatmul.mubr.bf16.gmra.mrb[12].mxu1 %v6016_v56  ;;  %3118 = vmatprep.mubr.bf16.mxu0 %v6019_v57  ;;  %v6091_v56 = vld [vmem:[%s8145_s0 + $0x29c] ss:$108 sps:$4 sm:$0xff]   ;;  %v6095_v57 = vld [vmem:[%s8145_s0 + $0x2a4] ss:$108 sps:$4 sm:$0xff]  }
  0x3d   :  { %3215 = vmatprep.mubr.bf16.mxu1 %v6021_v59  ;;  %5216 = vmatpush3.bf16.msra.mxu0 %v6050_v15  ;;  %v6106_v59 = vld [vmem:[%s8144_s1 + $0x220] sm:$0xff]   ;;  %v6136_v15 = vld [vmem:[%s8144_s1 + $0x2a8] sm:$0xff]  }
  0x3e   :  { %5217 = vmatprep.subr.bf16.mxu0 %v6061_v24  ;;  %5280 = vmatpush3.bf16.msra.mxu1 %v6064_v27  ;;  %v6127_v24 = vld [vmem:[%s8145_s0 + $0x52c] ss:$108 sps:$4 sm:$0xff]  }
  0x3f   :  { %5281 = vmatprep.subr.bf16.mxu1 %v6065_v28  ;;  %v6125_v27 = vld [vmem:[%s8145_s0 + $0x520] ss:$108 sps:$4 sm:$0xff]   ;;  %v6130_v28 = vld [vmem:[%s8145_s0 + $0x528] ss:$108 sps:$4 sm:$0xff]  }
  0x41   :  { %5218 = vmatpush3.bf16.msra.mxu0 %v6062_v25  ;;  %v6149_v25 = vld [vmem:[%s8144_s1 + $0x2b8] sm:$0xff]  }
  0x42   :  { %5331 = vmatprep.subr.bf16.mxu0 %v6070_v30  ;;  %5282 = vmatpush3.bf16.msra.mxu1 %v6069_v29  ;;  %v6134_v29 = vld [vmem:[%s8145_s0 + $0x5fc] ss:$108 sps:$4 sm:$0xff]   ;;  %v6139_v30 = vld [vmem:[%s8145_s0 + $0x604] ss:$108 sps:$4 sm:$0xff]  }
  0x43   :  { %3119 = vmatmul.mubr.bf16.gmra.mrb[16].mxu0 %v6023_v0  ;;  %5395 = vmatprep.subr.bf16.mxu1 %v6103_v49  ;;  %v6098_v0 = vld [vmem:[%s8145_s0 + $0x2a0] ss:$108 sps:$4 sm:$0xff]  }
  0x44   :  { %3216 = vmatmul.mubr.bf16.gmra.mrb[16].mxu1 %v6024_v2  ;;  %3126 = vmatprep.mubr.bf16.mxu0 %v6030_v3  ;;  %v6121_v2 = vld [vmem:[%s8144_s1 + $0x2d8] sm:$0xff]   ;;  %v6099_v3 = vld [vmem:[%s8145_s0 + $0x374] ss:$108 sps:$4 sm:$0xff]  }
  0x45   :  { %3223 = vmatprep.mubr.bf16.mxu1 %v6032_v5  ;;  %v6124_v5 = vld [vmem:[%s8144_s1 + $0x298] sm:$0xff]   ;;  %v6163_v49 = vld [vmem:[%s8145_s0 + $0x1d4] ss:$108 sps:$4 sm:$0xff]  }
  0x4b   :  { %3127 = vmatmul.mubr.bf16.gmra.mrb[20].mxu0 %v6035_v10  ;;  %v6108_v10 = vld [vmem:[%s8145_s0 + $0x378] ss:$108 sps:$4 sm:$0xff]  }
  0x4c   :  { %3224 = vmatmul.mubr.bf16.gmra.mrb[20].mxu1 %v6036_v11  ;;  %3134 = vmatprep.mubr.bf16.mxu0 %v6042_v12  ;;  %v6110_v11 = vld [vmem:[%s8145_s0 + $0x44c] ss:$108 sps:$4 sm:$0xff]   ;;  %v6132_v12 = vld [vmem:[%s8144_s1 + $0x2a0] sm:$0xff]  }
  0x4d   :  { %3231 = vmatprep.mubr.bf16.mxu1 %v6044_v14  ;;  %v6115_v14 = vld [vmem:[%s8145_s0 + $0x454] ss:$108 sps:$4 sm:$0xff]  }
  0x53   :  { %3135 = vmatmul.mubr.bf16.gmra.mrb[24].mxu0 %v6047_v19  ;;  %v6118_v19 = vld [vmem:[%s8145_s0 + $0x450] ss:$108 sps:$4 sm:$0xff]  }
  0x54   :  { %3232 = vmatmul.mubr.bf16.gmra.mrb[24].mxu1 %v6048_v21  ;;  %3142 = vmatprep.mubr.bf16.mxu0 %v6054_v22  ;;  %v6143_v21 = vld [vmem:[%s8144_s1 + $0x2f0] sm:$0xff]  }
  0x55   :  { %3239 = vmatprep.mubr.bf16.mxu1 %v6056_v23  ;;  %v6144_v22 = vld [vmem:[%s8144_s1 + $0x2b0] sm:$0xff]   ;;  %v6145_v23 = vld [vmem:[%s8144_s1 + $0x2f8] sm:$0xff]  }
  0x5b   :  { %3143 = vmatmul.mubr.bf16.gmra.mrb[28].mxu0 %v6059_v31  ;;  %v6137_v31 = vld [vmem:[%s8145_s0 + $0x5f8] ss:$108 sps:$4 sm:$0xff]  }
  0x5c   :  { %3240 = vmatmul.mubr.bf16.gmra.mrb[28].mxu1 %v6060_v32  ;;  %3280 = vmatprep.mubr.bf16.mxu0 %v6068_v33  ;;  %v6142_v32 = vld [vmem:[%s8145_s0 + $0x600] ss:$108 sps:$4 sm:$0xff]   ;;  %v6148_v33 = vld [vmem:[%s8145_s0 + $0x24] ss:$108 sps:$4 sm:$0xff]  }
  0x5d   :  { %3377 = vmatprep.mubr.bf16.mxu1 %v6073_v34  ;;  %v6153_v34 = vld [vmem:[%s8145_s0 + $0x2c] ss:$108 sps:$4 sm:$0xff]  }
  0x63   :  { %3281 = vmatmul.mubr.bf16.vlgmr.msra.gmra.mrb[32].mxu0 %v6066_v35  ;;  %v6146_v35 = vld [vmem:[%s8145_s0 + $0x20] ss:$108 sps:$4 sm:$0xff]  }
  0x64   :  { %5332 = vmatpush3.bf16.msra.mxu0 %v6074_v37  ;;  %3378 = vmatmul.mubr.bf16.vlgmr.msra.gmra.mrb[32].mxu1 %v6071_v36  ;;  %v6151_v36 = vld [vmem:[%s8145_s0 + $0x28] ss:$108 sps:$4 sm:$0xff]   ;;  %v6154_v37 = vld [vmem:[%s8144_s1 + $0x300] sm:$0xff]  }
  0x65   :  { %3288 = vmatprep.mubr.bf16.mxu0 %v6075_v38  ;;  %5333 = vmatprep.subr.bf16.mxu0 %v6078_v39  ;;  %v6183_v38 = vld [vmem:[%s8144_s1 + $0x3c0] sm:$0xff]   ;;  %v6155_v39 = vld [vmem:[%s8145_s0 + $0xfc] ss:$108 sps:$4 sm:$0xff]  }
  0x66   :  { %3385 = vmatprep.mubr.bf16.mxu1 %v6079_v40  ;;  %5396 = vmatpush3.bf16.msra.mxu1 %v6107_v53  ;;  %v6158_v40 = vld [vmem:[%s8144_s1 + $0x348] sm:$0xff]   ;;  %v6199_v53 = vld [vmem:[%s8144_s1 + $0x3d0] sm:$0xff]  }
  0x67   :  { %5397 = vmatprep.subr.bf16.mxu1 %v6109_v55  ;;  %v6201_v55 = vld [vmem:[%s8144_s1 + $0x3d8] sm:$0xff]  }
  0x68   :  { %5334 = vmatpush3.bf16.msra.mxu0 %v6081_v41  ;;  %v6159_v41 = vld [vmem:[%s8145_s0 + $0x104] ss:$108 sps:$4 sm:$0xff]  }
  0x69   :  { %5335 = vmatprep.subr.bf16.mxu0 %v6086_v43  ;;  %v6189_v43 = vld [vmem:[%s8144_s1 + $0x3c8] sm:$0xff]  }
  0x6a   :  { %5398 = vmatpush3.bf16.msra.mxu1 %v6112_v58  ;;  %v6170_v58 = vld [vmem:[%s8145_s0 + $0x1d8] ss:$108 sps:$4 sm:$0xff]  }
  0x6b   :  { %3289 = vmatmul.mubr.bf16.gmra.mrb[36].mxu0 %v6077_v42  ;;  %5399 = vmatprep.subr.bf16.mxu1 %v6119_v63  ;;  %v6187_v42 = vld [vmem:[%s8144_s1 + $0x380] sm:$0xff]  }
  0x6c   :  { %3386 = vmatmul.mubr.bf16.gmra.mrb[36].mxu1 %v6082_v44  ;;  %3296 = vmatprep.mubr.bf16.mxu0 %v6083_v45  ;;  %v6161_v44 = vld [vmem:[%s8144_s1 + $0x308] sm:$0xff]   ;;  %v6157_v45 = vld [vmem:[%s8145_s0 + $0xf8] ss:$108 sps:$4 sm:$0xff]  }
  0x6d   :  { %3393 = vmatprep.mubr.bf16.mxu1 %v6087_v46  ;;  %5336 = vmatpush3.bf16.msra.mxu0 %v6089_v47  ;;  %v6166_v46 = vld [vmem:[%s8144_s1 + $0x350] sm:$0xff]   ;;  %v6162_v47 = vld [vmem:[%s8145_s0 + $0x100] ss:$108 sps:$4 sm:$0xff]  }
  0x6e   :  { %5337 = vmatprep.subr.bf16.mxu0 %v6094_v48  ;;  %5400 = vmatpush3.bf16.msra.mxu1 %v6120_v1  ;;  %v6192_v48 = vld [vmem:[%s8144_s1 + $0x388] sm:$0xff]   ;;  %v6186_v63 = vld [vmem:[%s8144_s1 + $0x320] sm:$0xff]  }
  0x6f   :  { %5401 = vmatprep.subr.bf16.mxu1 %v6121_v2  ;;  %v6197_v1 = vld [vmem:[%s8144_s1 + $0x328] sm:$0xff]   ;;  %v6211_v2 = vld [vmem:[%s8144_s1 + $0x3e0] sm:$0xff]  }
  0x71   :  { %5338 = vmatpush3.bf16.msra.mxu0 %v6097_v50  ;;  %v6167_v50 = vld [vmem:[%s8145_s0 + $0x1dc] ss:$108 sps:$4 sm:$0xff]  }
  0x72   :  { %5339 = vmatprep.subr.bf16.mxu0 %v6102_v52  ;;  %5402 = vmatpush3.bf16.msra.mxu1 %v6124_v5  ;;  %v6174_v52 = vld [vmem:[%s8144_s1 + $0x358] sm:$0xff]   ;;  %v6213_v5 = vld [vmem:[%s8144_s1 + $0x3e8] sm:$0xff]  }
  0x73   :  { %3297 = vmatmul.mubr.bf16.gmra.mrb[40].mxu0 %v6085_v51  ;;  %5403 = vmatprep.subr.bf16.mxu1 %v6131_v9  ;;  %v6169_v51 = vld [vmem:[%s8144_s1 + $0x310] sm:$0xff]   ;;  %v6216_v9 = vld [vmem:[%s8144_s1 + $0x3a8] sm:$0xff]  }
  0x74   :  { %3394 = vmatmul.mubr.bf16.gmra.mrb[40].mxu1 %v6090_v54  ;;  %3304 = vmatprep.mubr.bf16.mxu0 %v6091_v56  ;;  %v6200_v54 = vld [vmem:[%s8144_s1 + $0x390] sm:$0xff]  }
  0x75   :  { %3401 = vmatprep.mubr.bf16.mxu1 %v6095_v57  ;;  %5340 = vmatpush3.bf16.msra.mxu0 %v6106_v59  ;;  %v6165_v56 = vld [vmem:[%s8145_s0 + $0x1d0] ss:$108 sps:$4 sm:$0xff]   ;;  %v6171_v59 = vld [vmem:[%s8145_s0 + $0x2ac] ss:$108 sps:$4 sm:$0xff]  }
  0x76   :  { %5341 = vmatprep.subr.bf16.mxu0 %v6114_v60  ;;  %5404 = vmatpush3.bf16.msra.mxu1 %v6132_v12  ;;  %v6177_v57 = vld [vmem:[%s8144_s1 + $0x318] sm:$0xff]   ;;  %v6182_v60 = vld [vmem:[%s8144_s1 + $0x360] sm:$0xff]  }
  0x77   :  { %5405 = vmatprep.subr.bf16.mxu1 %v6133_v13  ;;  %v6218_v12 = vld [vmem:[%s8144_s1 + $0x378] sm:$0xff]  }
  0x78   :  { %v6221_v13 = vld [vmem:[%s8144_s1 + $0x338] sm:$0xff]  }
  0x79   :  { %5342 = vmatpush3.bf16.msra.mxu0 %v6117_v61  ;;  %v6204_v61 = vld [vmem:[%s8144_s1 + $0x398] sm:$0xff]  }
  0x7a   :  { %5343 = vmatprep.subr.bf16.mxu0 %v6126_v6  ;;  %5406 = vmatpush3.bf16.msra.mxu1 %v6136_v15  ;;  %v6178_v6 = vld [vmem:[%s8145_s0 + $0x2b0] ss:$108 sps:$4 sm:$0xff]  }
  0x7b   :  { %3305 = vmatmul.mubr.bf16.gmra.mrb[44].mxu0 %v6093_v62  ;;  %5407 = vmatprep.subr.bf16.mxu1 %v6143_v21  ;;  %v6175_v62 = vld [vmem:[%s8145_s0 + $0x2b4] ss:$108 sps:$4 sm:$0xff]   ;;  %v6229_v21 = vld [vmem:[%s8144_s1 + $0x3b8] sm:$0xff]  }
  0x7c   :  { %3402 = vmatmul.mubr.bf16.gmra.mrb[44].mxu1 %v6098_v0  ;;  %3312 = vmatprep.mubr.bf16.mxu0 %v6099_v3  ;;  %v6194_v0 = vld [vmem:[%s8144_s1 + $0x368] sm:$0xff]   ;;  %v6212_v3 = vld [vmem:[%s8144_s1 + $0x3a0] sm:$0xff]   ;;  %v6224_v15 = vld [vmem:[%s8144_s1 + $0x3b0] sm:$0xff]  }
  0x7d   :  { %3409 = vmatprep.mubr.bf16.mxu1 %v6104_v4  ;;  %5344 = vmatpush3.bf16.msra.mxu0 %v6129_v7  ;;  %v6173_v4 = vld [vmem:[%s8145_s0 + $0x2a8] ss:$108 sps:$4 sm:$0xff]  }
  0x7e   :  { %5345 = vmatprep.subr.bf16.mxu0 %v6138_v16  ;;  %5408 = vmatpush3.bf16.msra.mxu1 %v6144_v22  ;;  %v6206_v7 = vld [vmem:[%s8144_s1 + $0x370] sm:$0xff]   ;;  %v6181_v16 = vld [vmem:[%s8145_s0 + $0x380] ss:$108 sps:$4 sm:$0xff]  }
  0x7f   :  { %5409 = vmatprep.subr.bf16.mxu1 %v6145_v23  ;;  %v6230_v22 = vld [vmem:[%s8144_s1 + $0x440] sm:$0xff]  }
  0x80   :  { %v6193_v23 = vld [vmem:[%s8145_s0 + $0x458] ss:$108 sps:$4 sm:$0xff]  }
  0x81   :  { %5346 = vmatpush3.bf16.msra.mxu0 %v6141_v18  ;;  %v6188_v18 = vld [vmem:[%s8145_s0 + $0x388] ss:$108 sps:$4 sm:$0xff]  }
  0x82   :  { %5410 = vmatpush3.bf16.msra.mxu1 %v6149_v25  ;;  %5459 = vmatprep.subr.bf16.mxu0 %v6150_v26  ;;  %v6202_v25 = vld [vmem:[%s8145_s0 + $0x534] ss:$108 sps:$4 sm:$0xff]   ;;  %v6207_v26 = vld [vmem:[%s8145_s0 + $0x53c] ss:$108 sps:$4 sm:$0xff]  }
  0x83   :  { %3313 = vmatmul.mubr.bf16.gmra.mrb[48].mxu0 %v6101_v8  ;;  %5523 = vmatprep.subr.bf16.mxu1 %v6183_v38  ;;  %v6179_v8 = vld [vmem:[%s8145_s0 + $0x384] ss:$108 sps:$4 sm:$0xff]  }
  0x84   :  { %3410 = vmatmul.mubr.bf16.gmra.mrb[48].mxu1 %v6108_v10  ;;  %3320 = vmatprep.mubr.bf16.mxu0 %v6110_v11  ;;  %v6184_v10 = vld [vmem:[%s8145_s0 + $0x38c] ss:$108 sps:$4 sm:$0xff]   ;;  %v6209_v11 = vld [vmem:[%s8144_s1 + $0x330] sm:$0xff]   ;;  %v6234_v38 = vld [vmem:[%s8144_s1 + $0x400] sm:$0xff]  }
  0x85   :  { %3417 = vmatprep.mubr.bf16.mxu1 %v6115_v14  ;;  %v6223_v14 = vld [vmem:[%s8144_s1 + $0x3f0] sm:$0xff]  }
  0x8b   :  { %3321 = vmatmul.mubr.bf16.gmra.mrb[52].mxu0 %v6113_v17  ;;  %v6225_v17 = vld [vmem:[%s8144_s1 + $0x3f8] sm:$0xff]  }
  0x8c   :  { %3418 = vmatmul.mubr.bf16.gmra.mrb[52].mxu1 %v6118_v19  ;;  %3328 = vmatprep.mubr.bf16.mxu0 %v6122_v20  ;;  %v6190_v19 = vld [vmem:[%s8145_s0 + $0x45c] ss:$108 sps:$4 sm:$0xff]   ;;  %v6195_v20 = vld [vmem:[%s8145_s0 + $0x464] ss:$108 sps:$4 sm:$0xff]  }
  0x8d   :  { %3425 = vmatprep.mubr.bf16.mxu1 %v6127_v24  ;;  %v6198_v24 = vld [vmem:[%s8145_s0 + $0x460] ss:$108 sps:$4 sm:$0xff]  }
  0x93   :  { %3329 = vmatmul.mubr.bf16.gmra.mrb[56].mxu0 %v6125_v27  ;;  %v6205_v27 = vld [vmem:[%s8145_s0 + $0x530] ss:$108 sps:$4 sm:$0xff]  }
  0x94   :  { %3426 = vmatmul.mubr.bf16.gmra.mrb[56].mxu1 %v6130_v28  ;;  %3336 = vmatprep.mubr.bf16.mxu0 %v6134_v29  ;;  %v6210_v28 = vld [vmem:[%s8145_s0 + $0x538] ss:$108 sps:$4 sm:$0xff]  }
  0x95   :  { %3433 = vmatprep.mubr.bf16.mxu1 %v6139_v30  ;;  %v6214_v29 = vld [vmem:[%s8145_s0 + $0x60c] ss:$108 sps:$4 sm:$0xff]   ;;  %v6219_v30 = vld [vmem:[%s8145_s0 + $0x614] ss:$108 sps:$4 sm:$0xff]  }
  0x9b   :  { %3337 = vmatmul.mubr.bf16.gmra.mrb[60].mxu0 %v6137_v31  ;;  %v6263_v31 = vld [vmem:[%s8144_s1 + $0x4c0] sm:$0xff]  }
  0x9c   :  { %3434 = vmatmul.mubr.bf16.gmra.mrb[60].mxu1 %v6142_v32  ;;  %3474 = vmatprep.mubr.bf16.mxu0 %v6148_v33  ;;  %v6217_v32 = vld [vmem:[%s8145_s0 + $0x608] ss:$108 sps:$4 sm:$0xff]   ;;  %v6222_v33 = vld [vmem:[%s8145_s0 + $0x610] ss:$108 sps:$4 sm:$0xff]  }
  0x9d   :  { %3571 = vmatprep.mubr.bf16.mxu1 %v6153_v34  ;;  %v6228_v34 = vld [vmem:[%s8145_s0 + $0x34] ss:$108 sps:$4 sm:$0xff]  }
  0xa3   :  { %3475 = vmatmul.mubr.bf16.vlgmr.msra.gmra.mrb[64].mxu0 %v6146_v35  ;;  %v6233_v35 = vld [vmem:[%s8145_s0 + $0x3c] ss:$108 sps:$4 sm:$0xff]  }
  0xa4   :  { %5460 = vmatpush3.bf16.msra.mxu0 %v6154_v37  ;;  %3572 = vmatmul.mubr.bf16.vlgmr.msra.gmra.mrb[64].mxu1 %v6151_v36  ;;  %v6226_v36 = vld [vmem:[%s8145_s0 + $0x30] ss:$108 sps:$4 sm:$0xff]   ;;  %v6231_v37 = vld [vmem:[%s8145_s0 + $0x38] ss:$108 sps:$4 sm:$0xff]  }
  0xa5   :  { %3482 = vmatprep.mubr.bf16.mxu0 %v6155_v39  ;;  %5461 = vmatprep.subr.bf16.mxu0 %v6158_v40  ;;  %v6235_v39 = vld [vmem:[%s8145_s0 + $0x10c] ss:$108 sps:$4 sm:$0xff]  }
  0xa6   :  { %3579 = vmatprep.mubr.bf16.mxu1 %v6159_v41  ;;  %5524 = vmatpush3.bf16.msra.mxu1 %v6187_v42  ;;  %v6238_v40 = vld [vmem:[%s8144_s1 + $0x448] sm:$0xff]   ;;  %v6239_v41 = vld [vmem:[%s8145_s0 + $0x114] ss:$108 sps:$4 sm:$0xff]  }
  0xa7   :  { %5525 = vmatprep.subr.bf16.mxu1 %v6189_v43  ;;  %v6267_v42 = vld [vmem:[%s8144_s1 + $0x480] sm:$0xff]   ;;  %v6269_v43 = vld [vmem:[%s8144_s1 + $0x4c8] sm:$0xff]  }
  0xa8   :  { %5462 = vmatpush3.bf16.msra.mxu0 %v6161_v44  ;;  %v6241_v44 = vld [vmem:[%s8144_s1 + $0x408] sm:$0xff]  }
  0xa9   :  { %5463 = vmatprep.subr.bf16.mxu0 %v6166_v46  ;;  %v6246_v46 = vld [vmem:[%s8144_s1 + $0x450] sm:$0xff]  }
  0xaa   :  { %5526 = vmatpush3.bf16.msra.mxu1 %v6192_v48  ;;  %v6243_v48 = vld [vmem:[%s8145_s0 + $0x1e4] ss:$108 sps:$4 sm:$0xff]  }
  0xab   :  { %3483 = vmatmul.mubr.bf16.gmra.mrb[68].mxu0 %v6157_v45  ;;  %5527 = vmatprep.subr.bf16.mxu1 %v6199_v53  ;;  %v6237_v45 = vld [vmem:[%s8145_s0 + $0x108] ss:$108 sps:$4 sm:$0xff]   ;;  %v6254_v53 = vld [vmem:[%s8144_s1 + $0x458] sm:$0xff]  }
  0xac   :  { %3580 = vmatmul.mubr.bf16.gmra.mrb[68].mxu1 %v6162_v47  ;;  %3490 = vmatprep.mubr.bf16.mxu0 %v6163_v49  ;;  %v6242_v47 = vld [vmem:[%s8145_s0 + $0x110] ss:$108 sps:$4 sm:$0xff]   ;;  %v6272_v49 = vld [vmem:[%s8144_s1 + $0x488] sm:$0xff]  }
  0xad   :  { %3587 = vmatprep.mubr.bf16.mxu1 %v6167_v50  ;;  %5464 = vmatpush3.bf16.msra.mxu0 %v6169_v51  ;;  %v6247_v50 = vld [vmem:[%s8145_s0 + $0x1ec] ss:$108 sps:$4 sm:$0xff]   ;;  %v6279_v51 = vld [vmem:[%s8144_s1 + $0x4d0] sm:$0xff]  }
  0xae   :  { %5465 = vmatprep.subr.bf16.mxu0 %v6174_v52  ;;  %5528 = vmatpush3.bf16.msra.mxu1 %v6200_v54  ;;  %v6249_v52 = vld [vmem:[%s8144_s1 + $0x410] sm:$0xff]  }
  0xaf   :  { %5529 = vmatprep.subr.bf16.mxu1 %v6201_v55  ;;  %v6280_v54 = vld [vmem:[%s8144_s1 + $0x490] sm:$0xff]   ;;  %v6281_v55 = vld [vmem:[%s8144_s1 + $0x4d8] sm:$0xff]  }
  0xb1   :  { %5466 = vmatpush3.bf16.msra.mxu0 %v6177_v57  ;;  %v6245_v57 = vld [vmem:[%s8145_s0 + $0x1e0] ss:$108 sps:$4 sm:$0xff]  }
  0xb2   :  { %5467 = vmatprep.subr.bf16.mxu0 %v6182_v60  ;;  %5530 = vmatpush3.bf16.msra.mxu1 %v6204_v61  ;;  %v6251_v60 = vld [vmem:[%s8145_s0 + $0x2bc] ss:$108 sps:$4 sm:$0xff]  }
  0xb3   :  { %3491 = vmatmul.mubr.bf16.gmra.mrb[72].mxu0 %v6165_v56  ;;  %5531 = vmatprep.subr.bf16.mxu1 %v6211_v2  ;;  %v6257_v56 = vld [vmem:[%s8144_s1 + $0x418] sm:$0xff]   ;;  %v6292_v2 = vld [vmem:[%s8144_s1 + $0x4a0] sm:$0xff]  }
  0xb4   :  { %3588 = vmatmul.mubr.bf16.gmra.mrb[72].mxu1 %v6170_v58  ;;  %3498 = vmatprep.mubr.bf16.mxu0 %v6171_v59  ;;  %v6262_v58 = vld [vmem:[%s8144_s1 + $0x460] sm:$0xff]   ;;  %v6250_v59 = vld [vmem:[%s8145_s0 + $0x1e8] ss:$108 sps:$4 sm:$0xff]   ;;  %v6284_v61 = vld [vmem:[%s8144_s1 + $0x498] sm:$0xff]  }
  0xb5   :  { %3595 = vmatprep.mubr.bf16.mxu1 %v6175_v62  ;;  %5468 = vmatpush3.bf16.msra.mxu0 %v6186_v63  ;;  %v6255_v62 = vld [vmem:[%s8145_s0 + $0x2c4] ss:$108 sps:$4 sm:$0xff]  }
  0xb6   :  { %5469 = vmatprep.subr.bf16.mxu0 %v6194_v0  ;;  %5532 = vmatpush3.bf16.msra.mxu1 %v6212_v3  ;;  %v6291_v63 = vld [vmem:[%s8144_s1 + $0x4e0] sm:$0xff]   ;;  %v6293_v3 = vld [vmem:[%s8144_s1 + $0x4e8] sm:$0xff]  }
  0xb7   :  { %5533 = vmatprep.subr.bf16.mxu1 %v6213_v5  ;;  %v6266_v0 = vld [vmem:[%s8144_s1 + $0x420] sm:$0xff]  }
  0xb8   :  { %v6253_v5 = vld [vmem:[%s8145_s0 + $0x2b8] ss:$108 sps:$4 sm:$0xff]  }
  0xb9   :  { %5470 = vmatpush3.bf16.msra.mxu0 %v6197_v1  ;;  %v6274_v1 = vld [vmem:[%s8144_s1 + $0x468] sm:$0xff]  }
  0xba   :  { %5471 = vmatprep.subr.bf16.mxu0 %v6206_v7  ;;  %5534 = vmatpush3.bf16.msra.mxu1 %v6216_v9  ;;  %v6259_v9 = vld [vmem:[%s8145_s0 + $0x394] ss:$108 sps:$4 sm:$0xff]  }
  0xbb   :  { %3499 = vmatmul.mubr.bf16.gmra.mrb[76].mxu0 %v6173_v4  ;;  %5535 = vmatprep.subr.bf16.mxu1 %v6223_v14  ;;  %v6277_v4 = vld [vmem:[%s8144_s1 + $0x428] sm:$0xff]   ;;  %v6303_v14 = vld [vmem:[%s8144_s1 + $0x4f0] sm:$0xff]  }
  0xbc   :  { %3596 = vmatmul.mubr.bf16.gmra.mrb[76].mxu1 %v6178_v6  ;;  %3506 = vmatprep.mubr.bf16.mxu0 %v6179_v8  ;;  %v6286_v6 = vld [vmem:[%s8144_s1 + $0x470] sm:$0xff]   ;;  %v6258_v8 = vld [vmem:[%s8145_s0 + $0x2c0] ss:$108 sps:$4 sm:$0xff]  }
  0xbd   :  { %3603 = vmatprep.mubr.bf16.mxu1 %v6184_v10  ;;  %5472 = vmatpush3.bf16.msra.mxu0 %v6209_v11  ;;  %v6296_v10 = vld [vmem:[%s8144_s1 + $0x4a8] sm:$0xff]  }
  0xbe   :  { %5473 = vmatprep.subr.bf16.mxu0 %v6218_v12  ;;  %5536 = vmatpush3.bf16.msra.mxu1 %v6224_v15 }
  0xbf   :  { %5537 = vmatprep.subr.bf16.mxu1 %v6225_v17 }
  0xc1   :  { %5474 = vmatpush3.bf16.msra.mxu0 %v6221_v13  ;;  %v6264_v13 = vld [vmem:[%s8145_s0 + $0x39c] ss:$108 sps:$4 sm:$0xff]  }
  0xc2   :  { %5538 = vmatpush3.bf16.msra.mxu1 %v6229_v21  ;;  %5587 = vmatprep.subr.bf16.mxu0 %v6230_v22 }
  0xc3   :  { %3507 = vmatmul.mubr.bf16.gmra.mrb[80].mxu0 %v6181_v16  ;;  %5651 = vmatprep.subr.bf16.mxu1 %v6263_v31  ;;  %v6301_v31 = vld [vmem:[%s8144_s1 + $0x438] sm:$0xff]  }
  0xc4   :  { %3604 = vmatmul.mubr.bf16.gmra.mrb[80].mxu1 %v6188_v18  ;;  %3514 = vmatprep.mubr.bf16.mxu0 %v6190_v19  ;;  %v6289_v18 = vld [vmem:[%s8144_s1 + $0x430] sm:$0xff]  }
  0xc5   :  { %3611 = vmatprep.mubr.bf16.mxu1 %v6195_v20 }
  0xcb   :  { %3515 = vmatmul.mubr.bf16.gmra.mrb[84].mxu0 %v6193_v23 }
  0xcc   :  { %3612 = vmatmul.mubr.bf16.gmra.mrb[84].mxu1 %v6198_v24  ;;  %3522 = vmatprep.mubr.bf16.mxu0 %v6202_v25  ;;  %v6298_v24 = vld [vmem:[%s8144_s1 + $0x478] sm:$0xff]   ;;  %v6304_v25 = vld [vmem:[%s8144_s1 + $0x4b0] sm:$0xff]  }
  0xcd   :  { %3619 = vmatprep.mubr.bf16.mxu1 %v6207_v26  ;;  %v6305_v26 = vld [vmem:[%s8144_s1 + $0x4f8] sm:$0xff]  }
  0xd3   :  { %3523 = vmatmul.mubr.bf16.gmra.mrb[88].mxu0 %v6205_v27 }
  0xd4   :  { %3620 = vmatmul.mubr.bf16.gmra.mrb[88].mxu1 %v6210_v28  ;;  %3530 = vmatprep.mubr.bf16.mxu0 %v6214_v29 }
  0xd5   :  { %3627 = vmatprep.mubr.bf16.mxu1 %v6219_v30  ;;  %v6261_v30 = vld [vmem:[%s8145_s0 + $0x390] ss:$108 sps:$4 sm:$0xff]  }
  0xdb   :  { %3531 = vmatmul.mubr.bf16.gmra.mrb[92].mxu0 %v6217_v32  ;;  %v6309_v32 = vld [vmem:[%s8144_s1 + $0x4b8] sm:$0xff]  }
  0xdc   :  { %3628 = vmatmul.mubr.bf16.gmra.mrb[92].mxu1 %v6222_v33  ;;  %3668 = vmatprep.mubr.bf16.mxu0 %v6228_v34  ;;  %v6268_v34 = vld [vmem:[%s8145_s0 + $0x398] ss:$108 sps:$4 sm:$0xff]  }
  0xdd   :  { %3765 = vmatprep.mubr.bf16.mxu1 %v6233_v35  ;;  %v6310_v35 = vld [vmem:[%s8144_s1 + $0x540] sm:$0xff]  }
  0xe3   :  { %3669 = vmatmul.mubr.bf16.vlgmr.msra.gmra.mrb[96].mxu0 %v6226_v36 }
  0xe4   :  { %5588 = vmatpush3.bf16.msra.mxu0 %v6234_v38  ;;  %3766 = vmatmul.mubr.bf16.vlgmr.msra.gmra.mrb[96].mxu1 %v6231_v37  ;;  %v6270_v38 = vld [vmem:[%s8145_s0 + $0x46c] ss:$108 sps:$4 sm:$0xff]  }
  0xe5   :  { %3676 = vmatprep.mubr.bf16.mxu0 %v6235_v39  ;;  %5589 = vmatprep.subr.bf16.mxu0 %v6238_v40 }
  0xe6   :  { %3773 = vmatprep.mubr.bf16.mxu1 %v6239_v41  ;;  %5652 = vmatpush3.bf16.msra.mxu1 %v6267_v42 }
  0xe7   :  { %5653 = vmatprep.subr.bf16.mxu1 %v6269_v43 }
  0xe8   :  { %5590 = vmatpush3.bf16.msra.mxu0 %v6241_v44 }
  0xe9   :  { %5591 = vmatprep.subr.bf16.mxu0 %v6246_v46 }
  0xea   :  { %5654 = vmatpush3.bf16.msra.mxu1 %v6272_v49 }
  0xeb   :  { %3677 = vmatmul.mubr.bf16.gmra.mrb[100].mxu0 %v6237_v45  ;;  %5655 = vmatprep.subr.bf16.mxu1 %v6279_v51  ;;  %v6275_v45 = vld [vmem:[%s8145_s0 + $0x474] ss:$108 sps:$4 sm:$0xff]  }
  0xec   :  { %3774 = vmatmul.mubr.bf16.gmra.mrb[100].mxu1 %v6242_v47  ;;  %3684 = vmatprep.mubr.bf16.mxu0 %v6243_v48 }
  0xed   :  { %3781 = vmatprep.mubr.bf16.mxu1 %v6247_v50  ;;  %5592 = vmatpush3.bf16.msra.mxu0 %v6249_v52  ;;  %v6273_v52 = vld [vmem:[%s8145_s0 + $0x468] ss:$108 sps:$4 sm:$0xff]  }
  0xee   :  { %5593 = vmatprep.subr.bf16.mxu0 %v6254_v53  ;;  %5656 = vmatpush3.bf16.msra.mxu1 %v6280_v54 }
  0xef   :  { %5657 = vmatprep.subr.bf16.mxu1 %v6281_v55  ;;  %v6278_v55 = vld [vmem:[%s8145_s0 + $0x470] ss:$108 sps:$4 sm:$0xff]  }
  0xf1   :  { %5594 = vmatpush3.bf16.msra.mxu0 %v6257_v56 }
  0xf2   :  { %5595 = vmatprep.subr.bf16.mxu0 %v6262_v58  ;;  %5658 = vmatpush3.bf16.msra.mxu1 %v6284_v61 }
  0xf3   :  { %3685 = vmatmul.mubr.bf16.gmra.mrb[104].mxu0 %v6245_v57  ;;  %5659 = vmatprep.subr.bf16.mxu1 %v6291_v63  ;;  %v6287_v63 = vld [vmem:[%s8145_s0 + $0x54c] ss:$108 sps:$4 sm:$0xff]  }
  0xf4   :  { %3782 = vmatmul.mubr.bf16.gmra.mrb[104].mxu1 %v6250_v59  ;;  %3692 = vmatprep.mubr.bf16.mxu0 %v6251_v60  ;;  %v6282_v59 = vld [vmem:[%s8145_s0 + $0x544] ss:$108 sps:$4 sm:$0xff]  }
  0xf5   :  { %3789 = vmatprep.mubr.bf16.mxu1 %v6255_v62  ;;  %5596 = vmatpush3.bf16.msra.mxu0 %v6266_v0 }
  0xf6   :  { %v5091_v7 = vpop.f32.mrb[0].mxu0  ;;  %5597 = vmatprep.subr.bf16.mxu0 %v6274_v1  ;;  %5660 = vmatpush3.bf16.msra.mxu1 %v6292_v2 }
  0xf7   :  { %v5155_v11 = vpop.f32.mrb[0].mxu1  ;;  %v5092_v12 = vpop.f32.mrb[1].mxu0  ;;  %5661 = vmatprep.subr.bf16.mxu1 %v6293_v3 }
  0xf8   :  { %v5093_v15 = vadd.f32 %v5092_v12, %v5091_v7  ;;  %v5156_v16 = vpop.f32.mrb[1].mxu1  ;;  %v5094_v17 = vpop.f32.mrb[2].mxu0 }
  0xf9   :  { %v5157_v19 = vadd.f32 %v5156_v16, %v5155_v11  ;;  %v5158_v20 = vpop.f32.mrb[2].mxu1  ;;  %v5095_v21 = vpop.f32.mrb[3].mxu0  ;;  %5598 = vmatpush3.bf16.msra.mxu0 %v6277_v4  ;;  %v6343_v4 = vld [vmem:[%s8144_s1 + $0x5c0] sm:$0xff]  }
  0xfa   :  { %v5096_v22 = vadd.f32 %v5095_v21, %v5094_v17  ;;  %v5159_v23 = vpop.f32.mrb[3].mxu1  ;;  %5599 = vmatprep.subr.bf16.mxu0 %v6286_v6  ;;  %5662 = vmatpush3.bf16.msra.mxu1 %v6296_v10  ;;  %v6285_v6 = vld [vmem:[%s8145_s0 + $0x540] ss:$108 sps:$4 sm:$0xff]  }
  0xfb   :  { %v7327_v27 = vadd.f32 %v5157_v19, %v5093_v15  ;;  %v5160_v28 = vadd.f32 %v5159_v23, %v5158_v20  ;;  %3693 = vmatmul.mubr.bf16.gmra.mrb[108].mxu0 %v6253_v5  ;;  %5663 = vmatprep.subr.bf16.mxu1 %v6303_v14  ;;  %v6294_v14 = vld [vmem:[%s8145_s0 + $0x61c] ss:$108 sps:$4 sm:$0xff]  }
  0xfc   :  { %3790 = vmatmul.mubr.bf16.gmra.mrb[108].mxu1 %v6258_v8  ;;  %3700 = vmatprep.mubr.bf16.mxu0 %v6259_v9  ;;  %v6290_v8 = vld [vmem:[%s8145_s0 + $0x548] ss:$108 sps:$4 sm:$0xff]  }
  0xfd   :  { %v7329_v29 = vadd.f32 %v5160_v28, %v5096_v22  ;;  %3797 = vmatprep.mubr.bf16.mxu1 %v6264_v13  ;;  %5600 = vmatpush3.bf16.msra.mxu0 %v6289_v18  ;;  %v6299_v18 = vld [vmem:[%s8145_s0 + $0x624] ss:$108 sps:$4 sm:$0xff]  }
  0xfe   :  { %v5097_v33 = vpop.f32.mrb[4].mxu0  ;;  %5601 = vmatprep.subr.bf16.mxu0 %v6298_v24  ;;  %5664 = vmatpush3.bf16.msra.mxu1 %v6304_v25  ;;  %v6297_v24 = vld [vmem:[%s8145_s0 + $0x618] ss:$108 sps:$4 sm:$0xff]  }
  0xff   :  { %v5161_v36 = vpop.f32.mrb[4].mxu1  ;;  %v5098_v37 = vpop.f32.mrb[5].mxu0  ;;  %5665 = vmatprep.subr.bf16.mxu1 %v6305_v26  ;;  %v6302_v26 = vld [vmem:[%s8145_s0 + $0x620] ss:$108 sps:$4 sm:$0xff]   ;;  %v6308_v28 = vld [vmem:[%s8145_s0 + $0x44] ss:$108 sps:$4 sm:$0xff]  }
 0x100   :  { %v5099_v39 = vadd.f32 %v5098_v37, %v5097_v33  ;;  %v5162_v40 = vpop.f32.mrb[5].mxu1  ;;  %v5100_v41 = vpop.f32.mrb[6].mxu0 }
 0x101   :  { %v5163_v42 = vadd.f32 %v5162_v40, %v5161_v36  ;;  %v5164_v43 = vpop.f32.mrb[6].mxu1  ;;  %v5101_v44 = vpop.f32.mrb[7].mxu0  ;;  %5602 = vmatpush3.bf16.msra.mxu0 %v6301_v31 }
 0x102   :  { %v5102_v46 = vadd.f32 %v5101_v44, %v5100_v41  ;;  %v5165_v47 = vpop.f32.mrb[7].mxu1  ;;  %5666 = vmatpush3.bf16.msra.mxu1 %v6309_v32  ;;  %5715 = vmatprep.subr.bf16.mxu0 %v6310_v35  ;;  %v6313_v35 = vld [vmem:[%s8145_s0 + $0x4c] ss:$108 sps:$4 sm:$0xff]  }
 0x103   :  { %v7352_v48 = vadd.f32 %v5163_v42, %v5099_v39  ;;  %v5166_v49 = vadd.f32 %v5165_v47, %v5164_v43  ;;  %3701 = vmatmul.mubr.bf16.gmra.mrb[112].mxu0 %v6261_v30  ;;  %5779 = vmatprep.subr.bf16.mxu1 %v6343_v4  ;;  %v6306_v44 = vld [vmem:[%s8145_s0 + $0x40] ss:$108 sps:$4 sm:$0xff]  }
 0x104   :  { %3798 = vmatmul.mubr.bf16.gmra.mrb[112].mxu1 %v6268_v34  ;;  %3708 = vmatprep.mubr.bf16.mxu0 %v6270_v38  ;;  %v6314_v47 = vld [vmem:[%s8144_s1 + $0x500] sm:$0xff]   ;;  %v6321_v4 = vld [vmem:[%s8144_s1 + $0x508] sm:$0xff]  }
 0x105   :  { %v7354_v50 = vadd.f32 %v5166_v49, %v5102_v46  ;;  %3805 = vmatprep.mubr.bf16.mxu1 %v6275_v45  ;;  %v6311_v46 = vld [vmem:[%s8145_s0 + $0x48] ss:$108 sps:$4 sm:$0xff]  }
 0x106   :  { %v5103_v51 = vpop.f32.mrb[8].mxu0 }
 0x107   :  { %v5167_v53 = vpop.f32.mrb[8].mxu1  ;;  %v5104_v54 = vpop.f32.mrb[9].mxu0 }
 0x108   :  { %v5105_v56 = vadd.f32 %v5104_v54, %v5103_v51  ;;  %v5168_v57 = vpop.f32.mrb[9].mxu1  ;;  %v5106_v58 = vpop.f32.mrb[10].mxu0 }
 0x109   :  { %v5169_v60 = vadd.f32 %v5168_v57, %v5167_v53  ;;  %v5170_v61 = vpop.f32.mrb[10].mxu1  ;;  %v5107_v62 = vpop.f32.mrb[11].mxu0 }
 0x10a   :  { %v5108_v0 = vadd.f32 %v5107_v62, %v5106_v58  ;;  %v5171_v1 = vpop.f32.mrb[11].mxu1 }
 0x10b   :  { %v7368_v2 = vadd.f32 %v5169_v60, %v5105_v56  ;;  %v5172_v3 = vadd.f32 %v5171_v1, %v5170_v61  ;;  %3709 = vmatmul.mubr.bf16.gmra.mrb[116].mxu0 %v6273_v52  ;;  %v6315_v52 = vld [vmem:[%s8145_s0 + $0x11c] ss:$108 sps:$4 sm:$0xff]   ;;  %v6319_v56 = vld [vmem:[%s8145_s0 + $0x124] ss:$108 sps:$4 sm:$0xff]  }
 0x10c   :  { %3806 = vmatmul.mubr.bf16.gmra.mrb[116].mxu1 %v6278_v55  ;;  %3716 = vmatprep.mubr.bf16.mxu0 %v6282_v59  ;;  %v6318_v60 = vld [vmem:[%s8144_s1 + $0x548] sm:$0xff]   ;;  %v6347_v61 = vld [vmem:[%s8144_s1 + $0x580] sm:$0xff]  }
 0x10d   :  { %v7373_v5 = vadd.f32 %v5172_v3, %v5108_v0  ;;  %3813 = vmatprep.mubr.bf16.mxu1 %v6287_v63  ;;  %v6349_v0 = vld [vmem:[%s8144_s1 + $0x5c8] sm:$0xff]  }
 0x10e   :  { %v5109_v7 = vpop.f32.mrb[12].mxu0 }
 0x10f   :  { %v5173_v9 = vpop.f32.mrb[12].mxu1  ;;  %v5110_v10 = vpop.f32.mrb[13].mxu0 }
 0x110   :  { %v5111_v11 = vadd.f32 %v5110_v10, %v5109_v7  ;;  %v5174_v12 = vpop.f32.mrb[13].mxu1  ;;  %v5112_v13 = vpop.f32.mrb[14].mxu0  ;;  %v6317_v7 = vld [vmem:[%s8145_s0 + $0x118] ss:$108 sps:$4 sm:$0xff]   ;;  %v6322_v10 = vld [vmem:[%s8145_s0 + $0x120] ss:$108 sps:$4 sm:$0xff]  }
 0x111   :  { %v5175_v15 = vadd.f32 %v5174_v12, %v5173_v9  ;;  %v5176_v16 = vpop.f32.mrb[14].mxu1  ;;  %v5113_v17 = vpop.f32.mrb[15].mxu0  ;;  %v6352_v12 = vld [vmem:[%s8144_s1 + $0x588] sm:$0xff]  }
 0x112   :  { %v5114_v19 = vadd.f32 %v5113_v17, %v5112_v13  ;;  %v5177_v20 = vpop.f32.mrb[15].mxu1 }
 0x113   :  { %v7387_v21 = vadd.f32 %v5175_v15, %v5111_v11  ;;  %v5178_v22 = vadd.f32 %v5177_v20, %v5176_v16  ;;  %3717 = vmatmul.mubr.bf16.gmra.mrb[120].mxu0 %v6285_v6  ;;  %v6323_v11 = vld [vmem:[%s8145_s0 + $0x1f4] ss:$108 sps:$4 sm:$0xff]   ;;  %v6327_v15 = vld [vmem:[%s8145_s0 + $0x1fc] ss:$108 sps:$4 sm:$0xff]  }
 0x114   :  { %3814 = vmatmul.mubr.bf16.gmra.mrb[120].mxu1 %v6290_v8  ;;  %3724 = vmatprep.mubr.bf16.mxu0 %v6294_v14  ;;  %v6326_v8 = vld [vmem:[%s8144_s1 + $0x550] sm:$0xff]  }
 0x115   :  { %v7389_v23 = vadd.f32 %v5178_v22, %v5114_v19  ;;  %3821 = vmatprep.mubr.bf16.mxu1 %v6299_v18  ;;  %v6359_v16 = vld [vmem:[%s8144_s1 + $0x5d0] sm:$0xff]  }
 0x116   :  { %v5115_v25 = vpop.f32.mrb[16].mxu0 }
 0x117   :  { %v5179_v30 = vpop.f32.mrb[16].mxu1  ;;  %v5116_v31 = vpop.f32.mrb[17].mxu0 }
 0x118   :  { %v5117_v32 = vadd.f32 %v5116_v31, %v5115_v25  ;;  %v5180_v33 = vpop.f32.mrb[17].mxu1  ;;  %v5118_v34 = vpop.f32.mrb[18].mxu0  ;;  %v6329_v25 = vld [vmem:[%s8144_s1 + $0x510] sm:$0xff]  }
 0x119   :  { %v5181_v36 = vadd.f32 %v5180_v33, %v5179_v30  ;;  %v5182_v37 = vpop.f32.mrb[18].mxu1  ;;  %v5119_v38 = vpop.f32.mrb[19].mxu0  ;;  %v6360_v31 = vld [vmem:[%s8144_s1 + $0x590] sm:$0xff]  }
 0x11a   :  { %v5120_v39 = vadd.f32 %v5119_v38, %v5118_v34  ;;  %v5183_v40 = vpop.f32.mrb[19].mxu1  ;;  %v6361_v34 = vld [vmem:[%s8144_s1 + $0x5d8] sm:$0xff]   ;;  %v6342_v38 = vld [vmem:[%s8144_s1 + $0x560] sm:$0xff]  }
 0x11b   :  { %v7403_v41 = vadd.f32 %v5181_v36, %v5117_v32  ;;  %v5184_v42 = vadd.f32 %v5183_v40, %v5182_v37  ;;  %3725 = vmatmul.mubr.bf16.gmra.mrb[124].mxu0 %v6297_v24  ;;  %v6325_v37 = vld [vmem:[%s8145_s0 + $0x1f0] ss:$108 sps:$4 sm:$0xff]  }
 0x11c   :  { %3822 = vmatmul.mubr.bf16.gmra.mrb[124].mxu1 %v6302_v26  ;;  %3862 = vmatprep.mubr.bf16.mxu0 %v6308_v28  ;;  %v6334_v26 = vld [vmem:[%s8144_s1 + $0x558] sm:$0xff]  }
 0x11d   :  { %v7405_v43 = vadd.f32 %v5184_v42, %v5120_v39  ;;  %3959 = vmatprep.mubr.bf16.mxu1 %v6313_v35  ;;  %v6337_v35 = vld [vmem:[%s8144_s1 + $0x518] sm:$0xff]  }
 0x11e   :  { %v5121_v45 = vpop.f32.mrb[20].mxu0  ;;  %v6364_v39 = vld [vmem:[%s8144_s1 + $0x598] sm:$0xff]  }
 0x11f   :  { %v5185_v49 = vpop.f32.mrb[20].mxu1  ;;  %v5122_v51 = vpop.f32.mrb[21].mxu0  ;;  %v6330_v42 = vld [vmem:[%s8145_s0 + $0x1f8] ss:$108 sps:$4 sm:$0xff]  }
 0x120   :  { %v5123_v53 = vadd.f32 %v5122_v51, %v5121_v45  ;;  %v5186_v54 = vpop.f32.mrb[21].mxu1  ;;  %v5124_v55 = vpop.f32.mrb[22].mxu0 }
 0x121   :  { %v5187_v57 = vadd.f32 %v5186_v54, %v5185_v49  ;;  %v5188_v58 = vpop.f32.mrb[22].mxu1  ;;  %v5125_v59 = vpop.f32.mrb[23].mxu0 }
 0x122   :  { %v5126_v62 = vadd.f32 %v5125_v59, %v5124_v55  ;;  %v5189_v63 = vpop.f32.mrb[23].mxu1 }
 0x123   :  { %v7431_v1 = vadd.f32 %v5187_v57, %v5123_v53  ;;  %v5190_v3 = vadd.f32 %v5189_v63, %v5188_v58  ;;  %3863 = vmatmul.mubr.bf16.vlgmr.msra.gmra.mrb[128].mxu0 %v6306_v44  ;;  %v6371_v44 = vld [vmem:[%s8144_s1 + $0x5e0] sm:$0xff]   ;;  %v6354_v58 = vld [vmem:[%s8144_s1 + $0x568] sm:$0xff]  }
 0x124   :  { %5716 = vmatpush3.bf16.msra.mxu0 %v6314_v47  ;;  %3960 = vmatmul.mubr.bf16.vlgmr.msra.gmra.mrb[128].mxu1 %v6311_v46  ;;  %v6346_v57 = vld [vmem:[%s8144_s1 + $0x520] sm:$0xff]  }
 0x125   :  { %v7436_v6 = vadd.f32 %v5190_v3, %v5126_v62  ;;  %3870 = vmatprep.mubr.bf16.mxu0 %v6315_v52  ;;  %5717 = vmatprep.subr.bf16.mxu0 %v6318_v60  ;;  %v6331_v52 = vld [vmem:[%s8145_s0 + $0x2cc] ss:$108 sps:$4 sm:$0xff]  }
 0x126   :  { %v5127_v9 = vpop.f32.mrb[24].mxu0  ;;  %3967 = vmatprep.mubr.bf16.mxu1 %v6319_v56  ;;  %5780 = vmatpush3.bf16.msra.mxu1 %v6347_v61  ;;  %v6335_v56 = vld [vmem:[%s8145_s0 + $0x2d4] ss:$108 sps:$4 sm:$0xff]  }
 0x127   :  { %v5191_v13 = vpop.f32.mrb[24].mxu1  ;;  %v5128_v14 = vpop.f32.mrb[25].mxu0  ;;  %5781 = vmatprep.subr.bf16.mxu1 %v6349_v0  ;;  %v6372_v61 = vld [vmem:[%s8144_s1 + $0x5a0] sm:$0xff]   ;;  %v6373_v0 = vld [vmem:[%s8144_s1 + $0x5e8] sm:$0xff]  }
 0x128   :  { %v5129_v17 = vadd.f32 %v5128_v14, %v5127_v9  ;;  %v5192_v18 = vpop.f32.mrb[25].mxu1  ;;  %v5130_v19 = vpop.f32.mrb[26].mxu0  ;;  %5718 = vmatpush3.bf16.msra.mxu0 %v6321_v4  ;;  %v6333_v4 = vld [vmem:[%s8145_s0 + $0x2c8] ss:$108 sps:$4 sm:$0xff]   ;;  %v6338_v9 = vld [vmem:[%s8145_s0 + $0x2d0] ss:$108 sps:$4 sm:$0xff]  }
 0x129   :  { %v5193_v20 = vadd.f32 %v5192_v18, %v5191_v13  ;;  %v5194_v22 = vpop.f32.mrb[26].mxu1  ;;  %v5131_v24 = vpop.f32.mrb[27].mxu0  ;;  %5719 = vmatprep.subr.bf16.mxu0 %v6326_v8 }
 0x12a   :  { %v5132_v28 = vadd.f32 %v5131_v24, %v5130_v19  ;;  %v5195_v30 = vpop.f32.mrb[27].mxu1  ;;  %5782 = vmatpush3.bf16.msra.mxu1 %v6352_v12  ;;  %v6376_v12 = vld [vmem:[%s8144_s1 + $0x5a8] sm:$0xff]  }
 0x12b   :  { %v7468_v32 = vadd.f32 %v5193_v20, %v5129_v17  ;;  %v5196_v33 = vadd.f32 %v5195_v30, %v5194_v22  ;;  %3871 = vmatmul.mubr.bf16.gmra.mrb[132].mxu0 %v6317_v7  ;;  %5783 = vmatprep.subr.bf16.mxu1 %v6359_v16  ;;  %v6357_v7 = vld [vmem:[%s8144_s1 + $0x528] sm:$0xff]  }
 0x12c   :  { %3968 = vmatmul.mubr.bf16.gmra.mrb[132].mxu1 %v6322_v10  ;;  %3878 = vmatprep.mubr.bf16.mxu0 %v6323_v11  ;;  %v6339_v10 = vld [vmem:[%s8145_s0 + $0x3a4] ss:$108 sps:$4 sm:$0xff]   ;;  %v6344_v19 = vld [vmem:[%s8145_s0 + $0x3ac] ss:$108 sps:$4 sm:$0xff]  }
 0x12d   :  { %v7476_v36 = vadd.f32 %v5196_v33, %v5132_v28  ;;  %3975 = vmatprep.mubr.bf16.mxu1 %v6327_v15  ;;  %5720 = vmatpush3.bf16.msra.mxu0 %v6329_v25  ;;  %v6366_v11 = vld [vmem:[%s8144_s1 + $0x570] sm:$0xff]  }
 0x12e   :  { %v5133_v40 = vpop.f32.mrb[28].mxu0  ;;  %5721 = vmatprep.subr.bf16.mxu0 %v6334_v26  ;;  %5784 = vmatpush3.bf16.msra.mxu1 %v6360_v31  ;;  %v6383_v15 = vld [vmem:[%s8144_s1 + $0x5f0] sm:$0xff]   ;;  %v6378_v26 = vld [vmem:[%s8144_s1 + $0x578] sm:$0xff]  }
 0x12f   :  { %v5197_v45 = vpop.f32.mrb[28].mxu1  ;;  %v5134_v46 = vpop.f32.mrb[29].mxu0  ;;  %5785 = vmatprep.subr.bf16.mxu1 %v6361_v34  ;;  %v6369_v25 = vld [vmem:[%s8144_s1 + $0x530] sm:$0xff]  }
 0x130   :  { %v5135_v47 = vadd.f32 %v5134_v46, %v5133_v40  ;;  %v5198_v49 = vpop.f32.mrb[29].mxu1  ;;  %v5136_v51 = vpop.f32.mrb[30].mxu0  ;;  %v6384_v33 = vld [vmem:[%s8144_s1 + $0x5b0] sm:$0xff]   ;;  %v6390_v46 = vld [vmem:[%s8144_s1 + $0x640] sm:$0xff]  }
 0x131   :  { %v5199_v53 = vadd.f32 %v5198_v49, %v5197_v45  ;;  %v5200_v54 = vpop.f32.mrb[30].mxu1  ;;  %v5137_v55 = vpop.f32.mrb[31].mxu0  ;;  %5722 = vmatpush3.bf16.msra.mxu0 %v6337_v35  ;;  %v6385_v35 = vld [vmem:[%s8144_s1 + $0x5f8] sm:$0xff]  }
 0x132   :  { %v5138_v59 = vadd.f32 %v5137_v55, %v5136_v51  ;;  %v5201_v60 = vpop.f32.mrb[31].mxu1  ;;  %5723 = vmatprep.subr.bf16.mxu0 %v6342_v38  ;;  %5786 = vmatpush3.bf16.msra.mxu1 %v6364_v39  ;;  %v6381_v39 = vld [vmem:[%s8144_s1 + $0x538] sm:$0xff]  }
 0x133   :  { %v7508_v62 = vadd.f32 %v5199_v53, %v5135_v47  ;;  %v5202_v63 = vadd.f32 %v5201_v60, %v5200_v54  ;;  %3879 = vmatmul.mubr.bf16.gmra.mrb[136].mxu0 %v6325_v37  ;;  %5787 = vmatprep.subr.bf16.mxu1 %v6371_v44  ;;  %v6350_v44 = vld [vmem:[%s8145_s0 + $0x47c] ss:$108 sps:$4 sm:$0xff]   ;;  %v6355_v54 = vld [vmem:[%s8145_s0 + $0x484] ss:$108 sps:$4 sm:$0xff]  }
 0x134   :  { %3976 = vmatmul.mubr.bf16.gmra.mrb[136].mxu1 %v6330_v42  ;;  %3886 = vmatprep.mubr.bf16.mxu0 %v6331_v52  ;;  %v6389_v45 = vld [vmem:[%s8144_s1 + $0x5b8] sm:$0xff]  }
 0x135   :  { %v7513_v3 = vadd.f32 %v5202_v63, %v5138_v59  ;;  %3983 = vmatprep.mubr.bf16.mxu1 %v6335_v56  ;;  %5724 = vmatpush3.bf16.msra.mxu0 %v6346_v57 }
 0x136   :  { %v5219_v8 = vpop.f32.mrb[32].mxu0  ;;  %5725 = vmatprep.subr.bf16.mxu0 %v6354_v58  ;;  %5788 = vmatpush3.bf16.msra.mxu1 %v6372_v61 }
 0x137   :  { %v5220_v13 = vpop.f32.mrb[33].mxu0  ;;  %v5283_v14 = vpop.f32.mrb[32].mxu1  ;;  %5789 = vmatprep.subr.bf16.mxu1 %v6373_v0 }
 0x138   :  { %v5221_v16 = vadd.f32 %v5220_v13, %v5219_v8  ;;  %v5222_v17 = vpop.f32.mrb[34].mxu0  ;;  %v5284_v18 = vpop.f32.mrb[33].mxu1  ;;  %v6353_v8 = vld [vmem:[%s8145_s0 + $0x478] ss:$108 sps:$4 sm:$0xff]  }
 0x139   :  { %v5223_v20 = vpop.f32.mrb[35].mxu0  ;;  %v5285_v22 = vadd.f32 %v5284_v18, %v5283_v14  ;;  %v5286_v24 = vpop.f32.mrb[34].mxu1  ;;  %5726 = vmatpush3.bf16.msra.mxu0 %v6357_v7  ;;  %v6362_v14 = vld [vmem:[%s8145_s0 + $0x554] ss:$108 sps:$4 sm:$0xff]   ;;  %v6367_v18 = vld [vmem:[%s8145_s0 + $0x55c] ss:$108 sps:$4 sm:$0xff]  }
 0x13a   :  { %v3283_v28 = vadd.f32 %v5221_v16, %v7327_v27  ;;  %v5224_v30 = vadd.f32 %v5223_v20, %v5222_v17  ;;  %v5287_v31 = vpop.f32.mrb[35].mxu1  ;;  %5727 = vmatprep.subr.bf16.mxu0 %v6366_v11  ;;  %5790 = vmatpush3.bf16.msra.mxu1 %v6376_v12  ;;  %v6341_v27 = vld [vmem:[%s8145_s0 + $0x3a0] ss:$108 sps:$4 sm:$0xff]  }
 0x13b   :  { %v5288_v34 = vadd.f32 %v5287_v31, %v5286_v24  ;;  %3887 = vmatmul.mubr.bf16.gmra.mrb[140].mxu0 %v6333_v4  ;;  %5791 = vmatprep.subr.bf16.mxu1 %v6383_v15  ;;  %v7585_v4 = vld [vmem:[%s8144_s1 + $0x680] sm:$0xff]  }
 0x13c   :  { %v3286_v37 = vadd.f32 %v5224_v30, %v7329_v29  ;;  %v7553_v38 = vadd.f32 %v5285_v22, %v3283_v28  ;;  %3984 = vmatmul.mubr.bf16.gmra.mrb[140].mxu1 %v6338_v9  ;;  %3894 = vmatprep.mubr.bf16.mxu0 %v6339_v10  ;;  %v6348_v29 = vld [vmem:[%s8145_s0 + $0x3a8] ss:$108 sps:$4 sm:$0xff]   ;;  %v6365_v28 = vld [vmem:[%s8145_s0 + $0x550] ss:$108 sps:$4 sm:$0xff]  }
 0x13d   :  { %3991 = vmatprep.mubr.bf16.mxu1 %v6344_v19  ;;  %5728 = vmatpush3.bf16.msra.mxu0 %v6369_v25 }
 0x13e   :  { %v7561_v40 = vadd.f32 %v5288_v34, %v3286_v37  ;;  %v5225_v42 = vpop.f32.mrb[36].mxu0  ;;  %5729 = vmatprep.subr.bf16.mxu0 %v6378_v26  ;;  %5792 = vmatpush3.bf16.msra.mxu1 %v6384_v33  ;;  %v6370_v34 = vld [vmem:[%s8145_s0 + $0x558] ss:$108 sps:$4 sm:$0xff]  }
 0x13f   :  { %v5226_v47 = vpop.f32.mrb[37].mxu0  ;;  %v5289_v49 = vpop.f32.mrb[36].mxu1  ;;  %5793 = vmatprep.subr.bf16.mxu1 %v6385_v35 }
 0x140   :  { %v5227_v51 = vadd.f32 %v5226_v47, %v5225_v42  ;;  %v5228_v52 = vpop.f32.mrb[38].mxu0  ;;  %v5290_v53 = vpop.f32.mrb[37].mxu1 }
 0x141   :  { %v5229_v55 = vpop.f32.mrb[39].mxu0  ;;  %v5291_v56 = vadd.f32 %v5290_v53, %v5289_v49  ;;  %v5292_v57 = vpop.f32.mrb[38].mxu1  ;;  %5730 = vmatpush3.bf16.msra.mxu0 %v6381_v39  ;;  %v6377_v53 = vld [vmem:[%s8145_s0 + $0x628] ss:$108 sps:$4 sm:$0xff]  }
 0x142   :  { %v3291_v58 = vadd.f32 %v5227_v51, %v7352_v48  ;;  %v5230_v59 = vadd.f32 %v5229_v55, %v5228_v52  ;;  %v5293_v60 = vpop.f32.mrb[39].mxu1  ;;  %5794 = vmatpush3.bf16.msra.mxu1 %v6389_v45  ;;  %5843 = vmatprep.subr.bf16.mxu0 %v6390_v46 }
 0x143   :  { %v5294_v61 = vadd.f32 %v5293_v60, %v5292_v57  ;;  %3895 = vmatmul.mubr.bf16.gmra.mrb[144].mxu0 %v6341_v27  ;;  %5923 = vmatprep.subr.bf16.mxu1 %v7585_v4  ;;  %v6374_v27 = vld [vmem:[%s8145_s0 + $0x62c] ss:$108 sps:$4 sm:$0xff]  }
 0x144   :  { %v3294_v63 = vadd.f32 %v5230_v59, %v7354_v50  ;;  %v7580_v0 = vadd.f32 %v5291_v56, %v3291_v58  ;;  %3992 = vmatmul.mubr.bf16.gmra.mrb[144].mxu1 %v6348_v29  ;;  %3902 = vmatprep.mubr.bf16.mxu0 %v6350_v44  ;;  %v6358_v50 = vld [vmem:[%s8145_s0 + $0x480] ss:$108 sps:$4 sm:$0xff]  }
 0x145   :  { %3999 = vmatprep.mubr.bf16.mxu1 %v6355_v54  ;;  %v6379_v44 = vld [vmem:[%s8145_s0 + $0x634] ss:$108 sps:$4 sm:$0xff]  }
 0x146   :  { %v7587_v7 = vadd.f32 %v5294_v61, %v3294_v63  ;;  %v5231_v48 = vpop.f32.mrb[40].mxu0  ;;  %v6393_v61 = vld [vmem:[%s8145_s0 + $0x5c] ss:$108 sps:$4 sm:$0xff]  }
 0x147   :  { %v5232_v9 = vpop.f32.mrb[41].mxu0  ;;  %v5295_v10 = vpop.f32.mrb[40].mxu1 }
 0x148   :  { %v5233_v11 = vadd.f32 %v5232_v9, %v5231_v48  ;;  %v5234_v12 = vpop.f32.mrb[42].mxu0  ;;  %v5296_v13 = vpop.f32.mrb[41].mxu1 }
 0x149   :  { %v5235_v15 = vpop.f32.mrb[43].mxu0  ;;  %v5297_v16 = vadd.f32 %v5296_v13, %v5295_v10  ;;  %v5298_v17 = vpop.f32.mrb[42].mxu1 }
 0x14a   :  { %v3299_v19 = vadd.f32 %v5233_v11, %v7368_v2  ;;  %v5236_v20 = vadd.f32 %v5235_v15, %v5234_v12  ;;  %v5299_v22 = vpop.f32.mrb[43].mxu1 }
 0x14b   :  { %v5300_v24 = vadd.f32 %v5299_v22, %v5298_v17  ;;  %3903 = vmatmul.mubr.bf16.gmra.mrb[148].mxu0 %v6353_v8 }
 0x14c   :  { %v3302_v25 = vadd.f32 %v5236_v20, %v7373_v5  ;;  %v7604_v26 = vadd.f32 %v5297_v16, %v3299_v19  ;;  %4000 = vmatmul.mubr.bf16.gmra.mrb[148].mxu1 %v6358_v50  ;;  %3910 = vmatprep.mubr.bf16.mxu0 %v6362_v14  ;;  %v6386_v16 = vld [vmem:[%s8145_s0 + $0x50] ss:$108 sps:$4 sm:$0xff]   ;;  %v6395_v19 = vld [vmem:[%s8145_s0 + $0x12c] ss:$108 sps:$4 sm:$0xff]  }
 0x14d   :  { %4007 = vmatprep.mubr.bf16.mxu1 %v6367_v18 }
 0x14e   :  { %v7609_v30 = vadd.f32 %v5300_v24, %v3302_v25  ;;  %v5237_v31 = vpop.f32.mrb[44].mxu0 }
 0x14f   :  { %v5238_v33 = vpop.f32.mrb[45].mxu0  ;;  %v5301_v2 = vpop.f32.mrb[44].mxu1 }
 0x150   :  { %v5239_v35 = vadd.f32 %v5238_v33, %v5237_v31  ;;  %v5240_v5 = vpop.f32.mrb[46].mxu0  ;;  %v5302_v37 = vpop.f32.mrb[45].mxu1  ;;  %v6398_v33 = vld [vmem:[%s8144_s1 + $0x648] sm:$0xff]  }
 0x151   :  { %v5241_v39 = vpop.f32.mrb[47].mxu0  ;;  %v5303_v42 = vadd.f32 %v5302_v37, %v5301_v2  ;;  %v5304_v29 = vpop.f32.mrb[46].mxu1 }
 0x152   :  { %v3307_v45 = vadd.f32 %v5239_v35, %v7387_v21  ;;  %v5242_v46 = vadd.f32 %v5241_v39, %v5240_v5  ;;  %v5305_v47 = vpop.f32.mrb[47].mxu1  ;;  %v6382_v21 = vld [vmem:[%s8145_s0 + $0x630] ss:$108 sps:$4 sm:$0xff]   ;;  %v6399_v5 = vld [vmem:[%s8145_s0 + $0x134] ss:$108 sps:$4 sm:$0xff]  }
 0x153   :  { %v5306_v49 = vadd.f32 %v5305_v47, %v5304_v29  ;;  %3911 = vmatmul.mubr.bf16.gmra.mrb[152].mxu0 %v6365_v28  ;;  %v6397_v29 = vld [vmem:[%s8145_s0 + $0x128] ss:$108 sps:$4 sm:$0xff]   ;;  %v6403_v47 = vld [vmem:[%s8145_s0 + $0x204] ss:$108 sps:$4 sm:$0xff]  }
 0x154   :  { %v3310_v51 = vadd.f32 %v5242_v46, %v7389_v23  ;;  %v7622_v52 = vadd.f32 %v5303_v42, %v3307_v45  ;;  %4008 = vmatmul.mubr.bf16.gmra.mrb[152].mxu1 %v6370_v34  ;;  %3918 = vmatprep.mubr.bf16.mxu0 %v6374_v27  ;;  %v6388_v23 = vld [vmem:[%s8145_s0 + $0x54] ss:$108 sps:$4 sm:$0xff]   ;;  %v6432_v27 = vld [vmem:[%s8144_s1 + $0x688] sm:$0xff]   ;;  %v6402_v46 = vld [vmem:[%s8145_s0 + $0x130] ss:$108 sps:$4 sm:$0xff]  }
 0x155   :  { %4015 = vmatprep.mubr.bf16.mxu1 %v6379_v44  ;;  %v6406_v44 = vld [vmem:[%s8144_s1 + $0x650] sm:$0xff]  }
 0x156   :  { %v7627_v54 = vadd.f32 %v5306_v49, %v3310_v51  ;;  %v5243_v55 = vpop.f32.mrb[48].mxu0 }
 0x157   :  { %v5244_v56 = vpop.f32.mrb[49].mxu0  ;;  %v5307_v57 = vpop.f32.mrb[48].mxu1 }
 0x158   :  { %v5245_v58 = vadd.f32 %v5244_v56, %v5243_v55  ;;  %v5246_v59 = vpop.f32.mrb[50].mxu0  ;;  %v5308_v60 = vpop.f32.mrb[49].mxu1 }
 0x159   :  { %v5247_v63 = vpop.f32.mrb[51].mxu0  ;;  %v5309_v48 = vadd.f32 %v5308_v60, %v5307_v57  ;;  %v5310_v8 = vpop.f32.mrb[50].mxu1  ;;  %v6407_v57 = vld [vmem:[%s8145_s0 + $0x20c] ss:$108 sps:$4 sm:$0xff]  }
 0x15a   :  { %v3315_v9 = vadd.f32 %v5245_v58, %v7403_v41  ;;  %v5248_v10 = vadd.f32 %v5247_v63, %v5246_v59  ;;  %v5311_v50 = vpop.f32.mrb[51].mxu1  ;;  %v6391_v41 = vld [vmem:[%s8145_s0 + $0x58] ss:$108 sps:$4 sm:$0xff]  }
 0x15b   :  { %v5312_v11 = vadd.f32 %v5311_v50, %v5310_v8  ;;  %3919 = vmatmul.mubr.bf16.gmra.mrb[156].mxu0 %v6377_v53  ;;  %v6437_v53 = vld [vmem:[%s8144_s1 + $0x690] sm:$0xff]  }
 0x15c   :  { %v3318_v12 = vadd.f32 %v5248_v10, %v7405_v43  ;;  %v7640_v13 = vadd.f32 %v5309_v48, %v3315_v9  ;;  %4016 = vmatmul.mubr.bf16.gmra.mrb[156].mxu1 %v6382_v21  ;;  %4056 = vmatprep.mubr.bf16.mxu0 %v6388_v23  ;;  %v6394_v43 = vld [vmem:[%s8144_s1 + $0x600] sm:$0xff]   ;;  %v6414_v48 = vld [vmem:[%s8144_s1 + $0x658] sm:$0xff]  }
 0x15d   :  { %4153 = vmatprep.mubr.bf16.mxu1 %v6393_v61  ;;  %v6442_v9 = vld [vmem:[%s8144_s1 + $0x698] sm:$0xff]  }
 0x15e   :  { %v7642_v14 = vadd.f32 %v5312_v11, %v3318_v12  ;;  %v5249_v15 = vpop.f32.mrb[52].mxu0  ;;  %v6417_v11 = vld [vmem:[%s8144_s1 + $0x618] sm:$0xff]  }
 0x15f   :  { %v5250_v17 = vpop.f32.mrb[53].mxu0  ;;  %v5313_v18 = vpop.f32.mrb[52].mxu1 }
 0x160   :  { %v5251_v20 = vadd.f32 %v5250_v17, %v5249_v15  ;;  %v5252_v22 = vpop.f32.mrb[54].mxu0  ;;  %v5314_v24 = vpop.f32.mrb[53].mxu1 }
 0x161   :  { %v5253_v25 = vpop.f32.mrb[55].mxu0  ;;  %v5315_v28 = vadd.f32 %v5314_v24, %v5313_v18  ;;  %v5316_v31 = vpop.f32.mrb[54].mxu1  ;;  %v6415_v24 = vld [vmem:[%s8145_s0 + $0x2e4] ss:$108 sps:$4 sm:$0xff]  }
 0x162   :  { %v3323_v2 = vadd.f32 %v5251_v20, %v7431_v1  ;;  %v5254_v34 = vadd.f32 %v5253_v25, %v5252_v22  ;;  %v5317_v35 = vpop.f32.mrb[55].mxu1  ;;  %v6401_v1 = vld [vmem:[%s8144_s1 + $0x608] sm:$0xff]  }
 0x163   :  { %v5318_v37 = vadd.f32 %v5317_v35, %v5316_v31  ;;  %4057 = vmatmul.mubr.bf16.vlgmr.msra.gmra.mrb[160].mxu0 %v6386_v16  ;;  %v6411_v16 = vld [vmem:[%s8145_s0 + $0x2dc] ss:$108 sps:$4 sm:$0xff]  }
 0x164   :  { %v3326_v39 = vadd.f32 %v5254_v34, %v7436_v6  ;;  %v7667_v42 = vadd.f32 %v5315_v28, %v3323_v2  ;;  %5844 = vmatpush3.bf16.msra.mxu0 %v6394_v43  ;;  %4154 = vmatmul.mubr.bf16.vlgmr.msra.gmra.mrb[160].mxu1 %v6391_v41  ;;  %v6422_v41 = vld [vmem:[%s8144_s1 + $0x660] sm:$0xff]  }
 0x165   :  { %4064 = vmatprep.mubr.bf16.mxu0 %v6395_v19  ;;  %5845 = vmatprep.subr.bf16.mxu0 %v6398_v33  ;;  %v6447_v43 = vld [vmem:[%s8144_s1 + $0x6a0] sm:$0xff]  }
 0x166   :  { %v7678_v45 = vadd.f32 %v5318_v37, %v3326_v39  ;;  %v5255_v6 = vpop.f32.mrb[56].mxu0  ;;  %4161 = vmatprep.mubr.bf16.mxu1 %v6399_v5  ;;  %5924 = vmatpush3.bf16.msra.mxu1 %v7585_v4  ;;  %v6409_v4 = vld [vmem:[%s8144_s1 + $0x610] sm:$0xff]   ;;  %v6426_v33 = vld [vmem:[%s8144_s1 + $0x620] sm:$0xff]   ;;  %v6431_v5 = vld [vmem:[%s8144_s1 + $0x668] sm:$0xff]  }
 0x167   :  { %v5256_v49 = vpop.f32.mrb[57].mxu0  ;;  %v5319_v51 = vpop.f32.mrb[56].mxu1  ;;  %5925 = vmatprep.subr.bf16.mxu1 %v6432_v27 }
 0x168   :  { %v5257_v55 = vadd.f32 %v5256_v49, %v5255_v6  ;;  %v5258_v21 = vpop.f32.mrb[58].mxu0  ;;  %v5320_v56 = vpop.f32.mrb[57].mxu1  ;;  %5846 = vmatpush3.bf16.msra.mxu0 %v6401_v1  ;;  %v6441_v6 = vld [vmem:[%s8144_s1 + $0x670] sm:$0xff]  }
 0x169   :  { %v5259_v23 = vpop.f32.mrb[59].mxu0  ;;  %v5321_v58 = vadd.f32 %v5320_v56, %v5319_v51  ;;  %v5322_v59 = vpop.f32.mrb[58].mxu1  ;;  %5847 = vmatprep.subr.bf16.mxu0 %v6406_v44  ;;  %v6457_v49 = vld [vmem:[%s8144_s1 + $0x6b0] sm:$0xff]  }
 0x16a   :  { %v3331_v60 = vadd.f32 %v5257_v55, %v7468_v32  ;;  %v5260_v61 = vadd.f32 %v5259_v23, %v5258_v21  ;;  %v5323_v63 = vpop.f32.mrb[59].mxu1  ;;  %5926 = vmatpush3.bf16.msra.mxu1 %v6432_v27  ;;  %v6405_v32 = vld [vmem:[%s8145_s0 + $0x200] ss:$108 sps:$4 sm:$0xff]  }
 0x16b   :  { %v5324_v8 = vadd.f32 %v5323_v63, %v5322_v59  ;;  %4065 = vmatmul.mubr.bf16.gmra.mrb[164].mxu0 %v6397_v29  ;;  %5927 = vmatprep.subr.bf16.mxu1 %v6437_v53  ;;  %v6452_v27 = vld [vmem:[%s8144_s1 + $0x6a8] sm:$0xff]   ;;  %v6419_v56 = vld [vmem:[%s8145_s0 + $0x3b4] ss:$108 sps:$4 sm:$0xff]  }
 0x16c   :  { %v3334_v10 = vadd.f32 %v5260_v61, %v7476_v36  ;;  %v7704_v50 = vadd.f32 %v5321_v58, %v3331_v60  ;;  %4162 = vmatmul.mubr.bf16.gmra.mrb[164].mxu1 %v6402_v46  ;;  %4072 = vmatprep.mubr.bf16.mxu0 %v6403_v47  ;;  %v6410_v36 = vld [vmem:[%s8145_s0 + $0x208] ss:$108 sps:$4 sm:$0xff]   ;;  %v6413_v47 = vld [vmem:[%s8145_s0 + $0x2d8] ss:$108 sps:$4 sm:$0xff]   ;;  %v6418_v21 = vld [vmem:[%s8145_s0 + $0x2e0] ss:$108 sps:$4 sm:$0xff]  }
 0x16d   :  { %4169 = vmatprep.mubr.bf16.mxu1 %v6407_v57  ;;  %5848 = vmatpush3.bf16.msra.mxu0 %v6409_v4  ;;  %v6424_v59 = vld [vmem:[%s8145_s0 + $0x3bc] ss:$108 sps:$4 sm:$0xff]   ;;  %v6445_v4 = vld [vmem:[%s8144_s1 + $0x630] sm:$0xff]  }
 0x16e   :  { %v7712_v12 = vadd.f32 %v5324_v8, %v3334_v10  ;;  %v5261_v15 = vpop.f32.mrb[60].mxu0  ;;  %5849 = vmatprep.subr.bf16.mxu0 %v6414_v48  ;;  %5928 = vmatpush3.bf16.msra.mxu1 %v6437_v53  ;;  %v6451_v48 = vld [vmem:[%s8144_s1 + $0x678] sm:$0xff]  }
 0x16f   :  { %v5262_v17 = vpop.f32.mrb[61].mxu0  ;;  %v5325_v18 = vpop.f32.mrb[60].mxu1  ;;  %5929 = vmatprep.subr.bf16.mxu1 %v6442_v9 }
 0x170   :  { %v5263_v19 = vadd.f32 %v5262_v17, %v5261_v15  ;;  %v5264_v20 = vpop.f32.mrb[62].mxu0  ;;  %v5326_v22 = vpop.f32.mrb[61].mxu1 }
 0x171   :  { %v5265_v25 = vpop.f32.mrb[63].mxu0  ;;  %v5327_v28 = vadd.f32 %v5326_v22, %v5325_v18  ;;  %v5328_v31 = vpop.f32.mrb[62].mxu1  ;;  %5850 = vmatpush3.bf16.msra.mxu0 %v6417_v11  ;;  %v6427_v18 = vld [vmem:[%s8145_s0 + $0x3b8] ss:$108 sps:$4 sm:$0xff]  }
 0x172   :  { %v3339_v2 = vadd.f32 %v5263_v19, %v7508_v62  ;;  %v5266_v34 = vadd.f32 %v5265_v25, %v5264_v20  ;;  %v5329_v35 = vpop.f32.mrb[63].mxu1  ;;  %5851 = vmatprep.subr.bf16.mxu0 %v6422_v41  ;;  %5930 = vmatpush3.bf16.msra.mxu1 %v6442_v9  ;;  %v6435_v62 = vld [vmem:[%s8144_s1 + $0x628] sm:$0xff]   ;;  %v6461_v9 = vld [vmem:[%s8144_s1 + $0x6b8] sm:$0xff]   ;;  %v6433_v25 = vld [vmem:[%s8145_s0 + $0x494] ss:$108 sps:$4 sm:$0xff]  }
 0x173   :  { %v5330_v37 = vadd.f32 %v5329_v35, %v5328_v31  ;;  %4073 = vmatmul.mubr.bf16.gmra.mrb[168].mxu0 %v6405_v32  ;;  %5931 = vmatprep.subr.bf16.mxu1 %v6447_v43  ;;  %v6428_v19 = vld [vmem:[%s8145_s0 + $0x48c] ss:$108 sps:$4 sm:$0xff]  }
 0x174   :  { %v3342_v39 = vadd.f32 %v5266_v34, %v7513_v3  ;;  %v7740_v1 = vadd.f32 %v5327_v28, %v3339_v2  ;;  %4170 = vmatmul.mubr.bf16.gmra.mrb[168].mxu1 %v6410_v36  ;;  %4080 = vmatprep.mubr.bf16.mxu0 %v6411_v16 }
 0x175   :  { %4177 = vmatprep.mubr.bf16.mxu1 %v6415_v24  ;;  %5852 = vmatpush3.bf16.msra.mxu0 %v6426_v33 }
 0x176   :  { %v7745_v29 = vadd.f32 %v5330_v37, %v3342_v39  ;;  %v5347_v44 = vpop.f32.mrb[64].mxu0  ;;  %5853 = vmatprep.subr.bf16.mxu0 %v6431_v5  ;;  %5932 = vmatpush3.bf16.msra.mxu1 %v6447_v43 }
 0x177   :  { %v5348_v3 = vpop.f32.mrb[65].mxu0  ;;  %v5411_v46 = vpop.f32.mrb[64].mxu1  ;;  %5933 = vmatprep.subr.bf16.mxu1 %v6452_v27 }
 0x178   :  { %v5349_v51 = vadd.f32 %v5348_v3, %v5347_v44  ;;  %v5350_v53 = vpop.f32.mrb[66].mxu0  ;;  %v5412_v55 = vpop.f32.mrb[65].mxu1  ;;  %v6438_v3 = vld [vmem:[%s8145_s0 + $0x564] ss:$108 sps:$4 sm:$0xff]  }
 0x179   :  { %v5351_v57 = vpop.f32.mrb[67].mxu0  ;;  %v5413_v23 = vadd.f32 %v5412_v55, %v5411_v46  ;;  %v5414_v58 = vpop.f32.mrb[66].mxu1  ;;  %5854 = vmatpush3.bf16.msra.mxu0 %v6435_v62 }
 0x17a   :  { %v3477_v60 = vadd.f32 %v5349_v51, %v7553_v38  ;;  %v5352_v61 = vadd.f32 %v5351_v57, %v5350_v53  ;;  %v5415_v63 = vpop.f32.mrb[67].mxu1  ;;  %5855 = vmatprep.subr.bf16.mxu0 %v6441_v6  ;;  %5934 = vmatpush3.bf16.msra.mxu1 %v6452_v27  ;;  %v6455_v38 = vld [vmem:[%s8144_s1 + $0x638] sm:$0xff]  }
 0x17b   :  { %v5416_v8 = vadd.f32 %v5415_v63, %v5414_v58  ;;  %4081 = vmatmul.mubr.bf16.gmra.mrb[172].mxu0 %v6413_v47  ;;  %5935 = vmatprep.subr.bf16.mxu1 %v6457_v49  ;;  %v6443_v51 = vld [vmem:[%s8145_s0 + $0x56c] ss:$108 sps:$4 sm:$0xff]  }
 0x17c   :  { %v3480_v10 = vadd.f32 %v5352_v61, %v7561_v40  ;;  %v7776_v32 = vadd.f32 %v5413_v23, %v3477_v60  ;;  %4178 = vmatmul.mubr.bf16.gmra.mrb[172].mxu1 %v6418_v21  ;;  %4088 = vmatprep.mubr.bf16.mxu0 %v6419_v56  ;;  %v6421_v40 = vld [vmem:[%s8145_s0 + $0x3b0] ss:$108 sps:$4 sm:$0xff]  }
 0x17d   :  { %4185 = vmatprep.mubr.bf16.mxu1 %v6424_v59  ;;  %5856 = vmatpush3.bf16.msra.mxu0 %v6445_v4 }
 0x17e   :  { %v7781_v11 = vadd.f32 %v5416_v8, %v3480_v10  ;;  %v5353_v15 = vpop.f32.mrb[68].mxu0  ;;  %5857 = vmatprep.subr.bf16.mxu0 %v6451_v48  ;;  %5936 = vmatpush3.bf16.msra.mxu1 %v6457_v49  ;;  %v6448_v8 = vld [vmem:[%s8145_s0 + $0x63c] ss:$108 sps:$4 sm:$0xff]  }
 0x17f   :  { %v5354_v36 = vpop.f32.mrb[69].mxu0  ;;  %v5417_v16 = vpop.f32.mrb[68].mxu1  ;;  %5937 = vmatprep.subr.bf16.mxu1 %v6461_v9 }
 0x180   :  { %v5355_v41 = vadd.f32 %v5354_v36, %v5353_v15  ;;  %v5356_v43 = vpop.f32.mrb[70].mxu0  ;;  %v5418_v17 = vpop.f32.mrb[69].mxu1  ;;  %v6453_v15 = vld [vmem:[%s8145_s0 + $0x644] ss:$108 sps:$4 sm:$0xff]  }
 0x181   :  { %v5357_v20 = vpop.f32.mrb[71].mxu0  ;;  %v5419_v22 = vadd.f32 %v5418_v17, %v5417_v16  ;;  %v5420_v24 = vpop.f32.mrb[70].mxu1  ;;  %5858 = vmatpush3.bf16.msra.mxu0 %v6455_v38 }
 0x182   :  { %v3485_v28 = vadd.f32 %v5355_v41, %v7580_v0  ;;  %v5358_v31 = vadd.f32 %v5357_v20, %v5356_v43  ;;  %v5421_v33 = vpop.f32.mrb[71].mxu1  ;;  %5938 = vmatpush3.bf16.msra.mxu1 %v6461_v9  ;;  %v6430_v0 = vld [vmem:[%s8145_s0 + $0x488] ss:$108 sps:$4 sm:$0xff]  }
 0x183   :  { %v5422_v2 = vadd.f32 %v5421_v33, %v5420_v24  ;;  %4089 = vmatmul.mubr.bf16.gmra.mrb[176].mxu0 %v6421_v40 }
 0x184   :  { %v3488_v34 = vadd.f32 %v5358_v31, %v7587_v7  ;;  %v7797_v35 = vadd.f32 %v5419_v22, %v3485_v28  ;;  %4186 = vmatmul.mubr.bf16.gmra.mrb[176].mxu1 %v6427_v18  ;;  %4096 = vmatprep.mubr.bf16.mxu0 %v6428_v19  ;;  %v6436_v7 = vld [vmem:[%s8145_s0 + $0x490] ss:$108 sps:$4 sm:$0xff]  }
 0x185   :  { %4193 = vmatprep.mubr.bf16.mxu1 %v6433_v25  ;;  %v6460_v31 = vld [vmem:[%s8145_s0 + $0x64] ss:$108 sps:$4 sm:$0xff]  }
 0x186   :  { %v7799_v5 = vadd.f32 %v5422_v2, %v3488_v34  ;;  %v5359_v37 = vpop.f32.mrb[72].mxu0 }
 0x187   :  { %v5360_v27 = vpop.f32.mrb[73].mxu0  ;;  %v5423_v39 = vpop.f32.mrb[72].mxu1 }
 0x188   :  { %v5361_v62 = vadd.f32 %v5360_v27, %v5359_v37  ;;  %v5362_v44 = vpop.f32.mrb[74].mxu0  ;;  %v5424_v6 = vpop.f32.mrb[73].mxu1  ;;  %v6462_v37 = vld [vmem:[%s8145_s0 + $0x68] ss:$108 sps:$4 sm:$0xff]  }
 0x189   :  { %v5363_v46 = vpop.f32.mrb[75].mxu0  ;;  %v5425_v47 = vadd.f32 %v5424_v6, %v5423_v39  ;;  %v5426_v49 = vpop.f32.mrb[74].mxu1 }
 0x18a   :  { %v3493_v53 = vadd.f32 %v5361_v62, %v7604_v26  ;;  %v5364_v55 = vadd.f32 %v5363_v46, %v5362_v44  ;;  %v5427_v21 = vpop.f32.mrb[75].mxu1  ;;  %v6440_v26 = vld [vmem:[%s8145_s0 + $0x560] ss:$108 sps:$4 sm:$0xff]  }
 0x18b   :  { %v5428_v56 = vadd.f32 %v5427_v21, %v5426_v49  ;;  %4097 = vmatmul.mubr.bf16.gmra.mrb[180].mxu0 %v6430_v0 }
 0x18c   :  { %v3496_v57 = vadd.f32 %v5364_v55, %v7609_v30  ;;  %v7815_v23 = vadd.f32 %v5425_v47, %v3493_v53  ;;  %4194 = vmatmul.mubr.bf16.gmra.mrb[180].mxu1 %v6436_v7  ;;  %4104 = vmatprep.mubr.bf16.mxu0 %v6438_v3  ;;  %v6446_v30 = vld [vmem:[%s8145_s0 + $0x568] ss:$108 sps:$4 sm:$0xff]  }
 0x18d   :  { %4201 = vmatprep.mubr.bf16.mxu1 %v6443_v51  ;;  %v6464_v55 = vld [vmem:[%s8145_s0 + $0x13c] ss:$108 sps:$4 sm:$0xff]  }
 0x18e   :  { %v7817_v58 = vadd.f32 %v5428_v56, %v3496_v57  ;;  %v5365_v59 = vpop.f32.mrb[76].mxu0 }
 0x18f   :  { %v5366_v4 = vpop.f32.mrb[77].mxu0  ;;  %v5429_v60 = vpop.f32.mrb[76].mxu1 }
 0x190   :  { %v5367_v61 = vadd.f32 %v5366_v4, %v5365_v59  ;;  %v5368_v63 = vpop.f32.mrb[78].mxu0  ;;  %v5430_v48 = vpop.f32.mrb[77].mxu1  ;;  %v6470_v59 = vld [vmem:[%s8145_s0 + $0x218] ss:$108 sps:$4 sm:$0xff]  }
 0x191   :  { %v5369_v9 = vpop.f32.mrb[79].mxu0  ;;  %v5431_v10 = vadd.f32 %v5430_v48, %v5429_v60  ;;  %v5432_v38 = vpop.f32.mrb[78].mxu1 }
 0x192   :  { %v3501_v36 = vadd.f32 %v5367_v61, %v7622_v52  ;;  %v5370_v16 = vadd.f32 %v5369_v9, %v5368_v63  ;;  %v5433_v40 = vpop.f32.mrb[79].mxu1  ;;  %v6450_v52 = vld [vmem:[%s8145_s0 + $0x638] ss:$108 sps:$4 sm:$0xff]  }
 0x193   :  { %v5434_v41 = vadd.f32 %v5433_v40, %v5432_v38  ;;  %4105 = vmatmul.mubr.bf16.gmra.mrb[184].mxu0 %v6440_v26 }
 0x194   :  { %v3504_v43 = vadd.f32 %v5370_v16, %v7627_v54  ;;  %v7833_v17 = vadd.f32 %v5431_v10, %v3501_v36  ;;  %4202 = vmatmul.mubr.bf16.gmra.mrb[184].mxu1 %v6446_v30  ;;  %4112 = vmatprep.mubr.bf16.mxu0 %v6448_v8  ;;  %v6456_v54 = vld [vmem:[%s8145_s0 + $0x640] ss:$108 sps:$4 sm:$0xff]   ;;  %v6471_v16 = vld [vmem:[%s8145_s0 + $0x2f0] ss:$108 sps:$4 sm:$0xff]  }
 0x195   :  { %4209 = vmatprep.mubr.bf16.mxu1 %v6453_v15 }
 0x196   :  { %v7835_v18 = vadd.f32 %v5434_v41, %v3504_v43  ;;  %v5371_v19 = vpop.f32.mrb[80].mxu0 }
 0x197   :  { %v5372_v20 = vpop.f32.mrb[81].mxu0  ;;  %v5435_v22 = vpop.f32.mrb[80].mxu1 }
 0x198   :  { %v5373_v24 = vadd.f32 %v5372_v20, %v5371_v19  ;;  %v5374_v25 = vpop.f32.mrb[82].mxu0  ;;  %v5436_v28 = vpop.f32.mrb[81].mxu1  ;;  %v6478_v19 = vld [vmem:[%s8145_s0 + $0x3c8] ss:$108 sps:$4 sm:$0xff]  }
 0x199   :  { %v5375_v33 = vpop.f32.mrb[83].mxu0  ;;  %v5437_v2 = vadd.f32 %v5436_v28, %v5435_v22  ;;  %v5438_v34 = vpop.f32.mrb[82].mxu1 }
 0x19a   :  { %v3509_v27 = vadd.f32 %v5373_v24, %v7640_v13  ;;  %v5376_v39 = vadd.f32 %v5375_v33, %v5374_v25  ;;  %v5439_v0 = vpop.f32.mrb[83].mxu1  ;;  %v6458_v13 = vld [vmem:[%s8145_s0 + $0x60] ss:$108 sps:$4 sm:$0xff]  }
 0x19b   :  { %v5440_v62 = vadd.f32 %v5439_v0, %v5438_v34  ;;  %4113 = vmatmul.mubr.bf16.gmra.mrb[188].mxu0 %v6450_v52 }
 0x19c   :  { %v3512_v44 = vadd.f32 %v5376_v39, %v7642_v14  ;;  %v7851_v6 = vadd.f32 %v5437_v2, %v3509_v27  ;;  %4210 = vmatmul.mubr.bf16.gmra.mrb[188].mxu1 %v6456_v54  ;;  %4250 = vmatprep.mubr.bf16.mxu0 %v6460_v31  ;;  %v6463_v14 = vld [vmem:[%s8145_s0 + $0x140] ss:$108 sps:$4 sm:$0xff]  }
 0x19d   :  { %5939 = vmatprep.mubr.bf16.mxu1 %v6462_v37  ;;  %v6479_v39 = vld [vmem:[%s8145_s0 + $0x4a0] ss:$108 sps:$4 sm:$0xff]  }
 0x19e   :  { %v7853_v7 = vadd.f32 %v5440_v62, %v3512_v44  ;;  %v5377_v3 = vpop.f32.mrb[84].mxu0 }
 0x19f   :  { %v5378_v46 = vpop.f32.mrb[85].mxu0  ;;  %v5441_v47 = vpop.f32.mrb[84].mxu1 }
 0x1a0   :  { %v5379_v49 = vadd.f32 %v5378_v46, %v5377_v3  ;;  %v5380_v51 = vpop.f32.mrb[86].mxu0  ;;  %v5442_v53 = vpop.f32.mrb[85].mxu1  ;;  %v6486_v3 = vld [vmem:[%s8145_s0 + $0x578] ss:$108 sps:$4 sm:$0xff]  }
 0x1a1   :  { %v5381_v21 = vpop.f32.mrb[87].mxu0  ;;  %v5443_v56 = vadd.f32 %v5442_v53, %v5441_v47  ;;  %v5444_v57 = vpop.f32.mrb[86].mxu1 }
 0x1a2   :  { %v3517_v4 = vadd.f32 %v5379_v49, %v7667_v42  ;;  %v5382_v60 = vadd.f32 %v5381_v21, %v5380_v51  ;;  %v5445_v26 = vpop.f32.mrb[87].mxu1  ;;  %v6466_v42 = vld [vmem:[%s8145_s0 + $0x138] ss:$108 sps:$4 sm:$0xff]  }
 0x1a3   :  { %v5446_v61 = vadd.f32 %v5445_v26, %v5444_v57  ;;  %4251 = vmatmul.mubr.bf16.vlgmr.msra.gmra.mrb[192].mxu0 %v6458_v13 }
 0x1a4   :  { %v3520_v63 = vadd.f32 %v5382_v60, %v7678_v45  ;;  %v7869_v48 = vadd.f32 %v5443_v56, %v3517_v4  ;;  %5940 = vmatmul.mubr.bf16.vlgmr.msra.gmra.mrb[192].mxu1 %v6463_v14  ;;  %4258 = vmatprep.mubr.bf16.mxu0 %v6464_v55  ;;  %v6467_v45 = vld [vmem:[%s8145_s0 + $0x214] ss:$108 sps:$4 sm:$0xff]   ;;  %v6487_v60 = vld [vmem:[%s8145_s0 + $0x650] ss:$108 sps:$4 sm:$0xff]  }
 0x1a5   :  { %5943 = vmatprep.mubr.bf16.mxu1 %v6470_v59 }
 0x1a6   :  { %v7871_v30 = vadd.f32 %v5446_v61, %v3520_v63  ;;  %v5383_v8 = vpop.f32.mrb[88].mxu0 }
 0x1a7   :  { %v5384_v9 = vpop.f32.mrb[89].mxu0  ;;  %v5447_v10 = vpop.f32.mrb[88].mxu1 }
 0x1a8   :  { %v5385_v38 = vadd.f32 %v5384_v9, %v5383_v8  ;;  %v5386_v15 = vpop.f32.mrb[90].mxu0  ;;  %v5448_v36 = vpop.f32.mrb[89].mxu1 }
 0x1a9   :  { %v5387_v40 = vpop.f32.mrb[91].mxu0  ;;  %v5449_v41 = vadd.f32 %v5448_v36, %v5447_v10  ;;  %v5450_v43 = vpop.f32.mrb[90].mxu1 }
 0x1aa   :  { %v3525_v20 = vadd.f32 %v5385_v38, %v7704_v50  ;;  %v5388_v22 = vadd.f32 %v5387_v40, %v5386_v15  ;;  %v5451_v52 = vpop.f32.mrb[91].mxu1  ;;  %v6469_v50 = vld [vmem:[%s8145_s0 + $0x210] ss:$108 sps:$4 sm:$0xff]  }
 0x1ab   :  { %v5452_v24 = vadd.f32 %v5451_v52, %v5450_v43  ;;  %4259 = vmatmul.mubr.bf16.gmra.mrb[196].mxu0 %v6466_v42 }
 0x1ac   :  { %v3528_v25 = vadd.f32 %v5388_v22, %v7712_v12  ;;  %v7887_v28 = vadd.f32 %v5449_v41, %v3525_v20  ;;  %4266 = vmatprep.mubr.bf16.mxu0 %v6467_v45  ;;  %5944 = vmatmul.mubr.bf16.gmra.mrb[196].mxu1 %v6471_v16  ;;  %v6472_v12 = vld [vmem:[%s8145_s0 + $0x2ec] ss:$108 sps:$4 sm:$0xff]  }
 0x1ad   :  { %5947 = vmatprep.mubr.bf16.mxu1 %v6478_v19  ;;  %v6477_v41 = vld [vmem:[%s8145_s0 + $0x3c0] ss:$108 sps:$4 sm:$0xff]  }
 0x1ae   :  { %v7889_v54 = vadd.f32 %v5452_v24, %v3528_v25  ;;  %v5389_v31 = vpop.f32.mrb[92].mxu0 }
 0x1af   :  { %v5390_v33 = vpop.f32.mrb[93].mxu0  ;;  %v5453_v2 = vpop.f32.mrb[92].mxu1 }
 0x1b0   :  { %v5391_v34 = vadd.f32 %v5390_v33, %v5389_v31  ;;  %v5392_v37 = vpop.f32.mrb[94].mxu0  ;;  %v5454_v27 = vpop.f32.mrb[93].mxu1 }
 0x1b1   :  { %v5393_v0 = vpop.f32.mrb[95].mxu0  ;;  %v5455_v62 = vadd.f32 %v5454_v27, %v5453_v2  ;;  %v5456_v44 = vpop.f32.mrb[94].mxu1 }
 0x1b2   :  { %v3533_v46 = vadd.f32 %v5391_v34, %v7740_v1  ;;  %v5394_v47 = vadd.f32 %v5393_v0, %v5392_v37  ;;  %v5457_v13 = vpop.f32.mrb[95].mxu1  ;;  %v6474_v1 = vld [vmem:[%s8145_s0 + $0x2e8] ss:$108 sps:$4 sm:$0xff]  }
 0x1b3   :  { %v5458_v49 = vadd.f32 %v5457_v13, %v5456_v44  ;;  %4267 = vmatmul.mubr.bf16.gmra.mrb[200].mxu0 %v6469_v50  ;;  %v6483_v44 = vld [vmem:[%s8145_s0 + $0x574] ss:$108 sps:$4 sm:$0xff]  }
 0x1b4   :  { %v3536_v51 = vadd.f32 %v5394_v47, %v7745_v29  ;;  %v7905_v53 = vadd.f32 %v5455_v62, %v3533_v46  ;;  %4274 = vmatprep.mubr.bf16.mxu0 %v6472_v12  ;;  %5948 = vmatmul.mubr.bf16.gmra.mrb[200].mxu1 %v6479_v39  ;;  %v6475_v29 = vld [vmem:[%s8145_s0 + $0x3c4] ss:$108 sps:$4 sm:$0xff]  }
 0x1b5   :  { %5951 = vmatprep.mubr.bf16.mxu1 %v6486_v3  ;;  %v6482_v39 = vld [vmem:[%s8145_s0 + $0x498] ss:$108 sps:$4 sm:$0xff]  }
 0x1b6   :  { %v7907_v14 = vadd.f32 %v5458_v49, %v3536_v51  ;;  %v5475_v55 = vpop.f32.mrb[96].mxu0 }
 0x1b7   :  { %v5476_v21 = vpop.f32.mrb[97].mxu0  ;;  %v5539_v56 = vpop.f32.mrb[96].mxu1 }
 0x1b8   :  { %v5477_v57 = vadd.f32 %v5476_v21, %v5475_v55  ;;  %v5478_v59 = vpop.f32.mrb[98].mxu0  ;;  %v5540_v4 = vpop.f32.mrb[97].mxu1 }
 0x1b9   :  { %v5479_v26 = vpop.f32.mrb[99].mxu0  ;;  %v5541_v61 = vadd.f32 %v5540_v4, %v5539_v56  ;;  %v5542_v63 = vpop.f32.mrb[98].mxu1  ;;  %v6485_v4 = vld [vmem:[%s8145_s0 + $0x570] ss:$108 sps:$4 sm:$0xff]  }
 0x1ba   :  { %v3671_v8 = vadd.f32 %v5477_v57, %v7776_v32  ;;  %v5480_v9 = vadd.f32 %v5479_v26, %v5478_v59  ;;  %v5543_v10 = vpop.f32.mrb[99].mxu1  ;;  %v6488_v26 = vld [vmem:[%s8145_s0 + $0x64c] ss:$108 sps:$4 sm:$0xff]  }
 0x1bb   :  { %v5544_v42 = vadd.f32 %v5543_v10, %v5542_v63  ;;  %4275 = vmatmul.mubr.bf16.gmra.mrb[204].mxu0 %v6474_v1 }
 0x1bc   :  { %v3674_v38 = vadd.f32 %v5480_v9, %v7781_v11  ;;  %v7920_v15 = vadd.f32 %v5541_v61, %v3671_v8  ;;  %4282 = vmatprep.mubr.bf16.mxu0 %v6475_v29  ;;  %5952 = vmatmul.mubr.bf16.gmra.mrb[204].mxu1 %v6487_v60  ;;  %v6480_v11 = vld [vmem:[%s8145_s0 + $0x49c] ss:$108 sps:$4 sm:$0xff]  }
 0x1be   :  { %v7922_v36 = vadd.f32 %v5544_v42, %v3674_v38  ;;  %v5481_v45 = vpop.f32.mrb[100].mxu0 }
 0x1bf   :  { %v5482_v16 = vpop.f32.mrb[101].mxu0  ;;  %v5545_v40 = vpop.f32.mrb[100].mxu1 }
 0x1c0   :  { %v5483_v32 = vadd.f32 %v5482_v16, %v5481_v45  ;;  %v5484_v43 = vpop.f32.mrb[102].mxu0  ;;  %v5546_v19 = vpop.f32.mrb[101].mxu1 }
 0x1c1   :  { %v5485_v20 = vpop.f32.mrb[103].mxu0  ;;  %v5547_v22 = vadd.f32 %v5546_v19, %v5545_v40  ;;  %v5548_v52 = vpop.f32.mrb[102].mxu1 }
 0x1c2   :  { %v3679_v24 = vadd.f32 %v5483_v32, %v7797_v35  ;;  %v5486_v25 = vadd.f32 %v5485_v20, %v5484_v43  ;;  %v5549_v31 = vpop.f32.mrb[103].mxu1  ;;  %v6490_v43 = vld [vmem:[%s8145_s0 + $0x648] ss:$108 sps:$4 sm:$0xff]  }
 0x1c3   :  { %v5550_v33 = vadd.f32 %v5549_v31, %v5548_v52  ;;  %4283 = vmatmul.mubr.bf16.gmra.mrb[208].mxu0 %v6477_v41 }
 0x1c4   :  { %v3682_v2 = vadd.f32 %v5486_v25, %v7799_v5  ;;  %v7932_v50 = vadd.f32 %v5547_v22, %v3679_v24  ;;  %4290 = vmatprep.mubr.bf16.mxu0 %v6480_v11 }
 0x1c6   :  { %v7934_v34 = vadd.f32 %v5550_v33, %v3682_v2  ;;  %v5487_v37 = vpop.f32.mrb[104].mxu0 }
 0x1c7   :  { %v5488_v27 = vpop.f32.mrb[105].mxu0  ;;  %v5551_v12 = vpop.f32.mrb[104].mxu1 }
 0x1c8   :  { %v5489_v0 = vadd.f32 %v5488_v27, %v5487_v37  ;;  %v5490_v35 = vpop.f32.mrb[106].mxu0  ;;  %v5552_v62 = vpop.f32.mrb[105].mxu1 }
 0x1c9   :  { %v5491_v5 = vpop.f32.mrb[107].mxu0  ;;  %v5553_v3 = vadd.f32 %v5552_v62, %v5551_v12  ;;  %v5554_v46 = vpop.f32.mrb[106].mxu1 }
 0x1ca   :  { %v3687_v47 = vadd.f32 %v5489_v0, %v7815_v23  ;;  %v5492_v13 = vadd.f32 %v5491_v5, %v5490_v35  ;;  %v5555_v49 = vpop.f32.mrb[107].mxu1 }
 0x1cb   :  { %v5556_v51 = vadd.f32 %v5555_v49, %v5554_v46  ;;  %4291 = vmatmul.mubr.bf16.gmra.mrb[212].mxu0 %v6482_v39 }
 0x1cc   :  { %v3690_v55 = vadd.f32 %v5492_v13, %v7817_v58  ;;  %v7944_v21 = vadd.f32 %v5553_v3, %v3687_v47  ;;  %4298 = vmatprep.mubr.bf16.mxu0 %v6483_v44 }
 0x1ce   :  { %v7946_v56 = vadd.f32 %v5556_v51, %v3690_v55  ;;  %v5493_v1 = vpop.f32.mrb[108].mxu0 }
 0x1cf   :  { %v5494_v57 = vpop.f32.mrb[109].mxu0  ;;  %v5557_v59 = vpop.f32.mrb[108].mxu1 }
 0x1d0   :  { %v5495_v29 = vadd.f32 %v5494_v57, %v5493_v1  ;;  %v5496_v23 = vpop.f32.mrb[110].mxu0  ;;  %v5558_v60 = vpop.f32.mrb[109].mxu1 }
 0x1d1   :  { %v5497_v58 = vpop.f32.mrb[111].mxu0  ;;  %v5559_v61 = vadd.f32 %v5558_v60, %v5557_v59  ;;  %v5560_v63 = vpop.f32.mrb[110].mxu1 }
 0x1d2   :  { %v3695_v8 = vadd.f32 %v5495_v29, %v7833_v17  ;;  %v5498_v9 = vadd.f32 %v5497_v58, %v5496_v23  ;;  %v5561_v10 = vpop.f32.mrb[111].mxu1 }
 0x1d3   :  { %v5562_v42 = vadd.f32 %v5561_v10, %v5560_v63  ;;  %4299 = vmatmul.mubr.bf16.gmra.mrb[216].mxu0 %v6485_v4 }
 0x1d4   :  { %v3698_v38 = vadd.f32 %v5498_v9, %v7835_v18  ;;  %v7956_v45 = vadd.f32 %v5559_v61, %v3695_v8  ;;  %4306 = vmatprep.mubr.bf16.mxu0 %v6488_v26 }
 0x1d6   :  { %v7958_v16 = vadd.f32 %v5562_v42, %v3698_v38  ;;  %v5499_v40 = vpop.f32.mrb[112].mxu0 }
 0x1d7   :  { %v5500_v41 = vpop.f32.mrb[113].mxu0  ;;  %v5563_v32 = vpop.f32.mrb[112].mxu1 }
 0x1d8   :  { %v5501_v19 = vadd.f32 %v5500_v41, %v5499_v40  ;;  %v5502_v17 = vpop.f32.mrb[114].mxu0  ;;  %v5564_v11 = vpop.f32.mrb[113].mxu1 }
 0x1d9   :  { %v5503_v20 = vpop.f32.mrb[115].mxu0  ;;  %v5565_v22 = vadd.f32 %v5564_v11, %v5563_v32  ;;  %v5566_v52 = vpop.f32.mrb[114].mxu1 }
 0x1da   :  { %v3703_v18 = vadd.f32 %v5501_v19, %v7851_v6  ;;  %v5504_v24 = vadd.f32 %v5503_v20, %v5502_v17  ;;  %v5567_v25 = vpop.f32.mrb[115].mxu1 }
 0x1db   :  { %v5568_v31 = vadd.f32 %v5567_v25, %v5566_v52  ;;  %4307 = vmatmul.mubr.bf16.gmra.mrb[220].mxu0 %v6490_v43 }
 0x1dc   :  { %v3706_v33 = vadd.f32 %v5504_v24, %v7853_v7  ;;  %v7965_v2 = vadd.f32 %v5565_v22, %v3703_v18 }
 0x1de   :  { %v7967_v37 = vadd.f32 %v5568_v31, %v3706_v33  ;;  %v5505_v27 = vpop.f32.mrb[116].mxu0 }
 0x1df   :  { %v5506_v12 = vpop.f32.mrb[117].mxu0  ;;  %v5569_v39 = vpop.f32.mrb[116].mxu1 }
 0x1e0   :  { %v5507_v0 = vadd.f32 %v5506_v12, %v5505_v27  ;;  %v5508_v35 = vpop.f32.mrb[118].mxu0  ;;  %v5570_v62 = vpop.f32.mrb[117].mxu1 }
 0x1e1   :  { %v5509_v44 = vpop.f32.mrb[119].mxu0  ;;  %v5571_v5 = vadd.f32 %v5570_v62, %v5569_v39  ;;  %v5572_v3 = vpop.f32.mrb[118].mxu1 }
 0x1e2   :  { %v3711_v6 = vadd.f32 %v5507_v0, %v7869_v48  ;;  %v5510_v46 = vadd.f32 %v5509_v44, %v5508_v35  ;;  %v5573_v47 = vpop.f32.mrb[119].mxu1 }
 0x1e3   :  { %v5574_v13 = vadd.f32 %v5573_v47, %v5572_v3 }
 0x1e4   :  { %v3714_v7 = vadd.f32 %v5510_v46, %v7871_v30  ;;  %v7971_v49 = vadd.f32 %v5571_v5, %v3711_v6 }
 0x1e6   :  { %v7973_v51 = vadd.f32 %v5574_v13, %v3714_v7  ;;  %v5511_v55 = vpop.f32.mrb[120].mxu0 }
 0x1e7   :  { %v5512_v1 = vpop.f32.mrb[121].mxu0  ;;  %v5575_v57 = vpop.f32.mrb[120].mxu1 }
 0x1e8   :  { %v5513_v59 = vadd.f32 %v5512_v1, %v5511_v55  ;;  %v5514_v4 = vpop.f32.mrb[122].mxu0  ;;  %v5576_v29 = vpop.f32.mrb[121].mxu1 }
 0x1e9   :  { %v5515_v23 = vpop.f32.mrb[123].mxu0  ;;  %v5577_v60 = vadd.f32 %v5576_v29, %v5575_v57  ;;  %v5578_v26 = vpop.f32.mrb[122].mxu1 }
 0x1ea   :  { %v3719_v48 = vadd.f32 %v5513_v59, %v7887_v28  ;;  %v5516_v58 = vadd.f32 %v5515_v23, %v5514_v4  ;;  %v5579_v61 = vpop.f32.mrb[123].mxu1 }
 0x1eb   :  { %v5580_v63 = vadd.f32 %v5579_v61, %v5578_v26 }
 0x1ec   :  { %v3722_v30 = vadd.f32 %v5516_v58, %v7889_v54  ;;  %v7977_v8 = vadd.f32 %v5577_v60, %v3719_v48 }
 0x1ee   :  { %v7979_v9 = vadd.f32 %v5580_v63, %v3722_v30  ;;  %v5517_v10 = vpop.f32.mrb[124].mxu0 }
 0x1ef   :  { %v5518_v42 = vpop.f32.mrb[125].mxu0  ;;  %v5581_v38 = vpop.f32.mrb[124].mxu1 }
 0x1f0   :  { %v5519_v40 = vadd.f32 %v5518_v42, %v5517_v10  ;;  %v5520_v41 = vpop.f32.mrb[126].mxu0  ;;  %v5582_v32 = vpop.f32.mrb[125].mxu1 }
 0x1f1   :  { %v5521_v43 = vpop.f32.mrb[127].mxu0  ;;  %v5583_v19 = vadd.f32 %v5582_v32, %v5581_v38  ;;  %v5584_v17 = vpop.f32.mrb[126].mxu1 }
 0x1f2   :  { %v3727_v28 = vadd.f32 %v5519_v40, %v7905_v53  ;;  %v5522_v11 = vadd.f32 %v5521_v43, %v5520_v41  ;;  %v5585_v20 = vpop.f32.mrb[127].mxu1 }
 0x1f3   :  { %v5586_v22 = vadd.f32 %v5585_v20, %v5584_v17 }
 0x1f4   :  { %v3730_v54 = vadd.f32 %v5522_v11, %v7907_v14  ;;  %v7983_v52 = vadd.f32 %v5583_v19, %v3727_v28 }
 0x1f6   :  { %v7985_v18 = vadd.f32 %v5586_v22, %v3730_v54  ;;  %v5603_v24 = vpop.f32.mrb[128].mxu0 }
 0x1f7   :  { %v5604_v25 = vpop.f32.mrb[129].mxu0  ;;  %v5667_v31 = vpop.f32.mrb[128].mxu1 }
 0x1f8   :  { %v5605_v33 = vadd.f32 %v5604_v25, %v5603_v24  ;;  %v5606_v27 = vpop.f32.mrb[130].mxu0  ;;  %v5668_v12 = vpop.f32.mrb[129].mxu1 }
 0x1f9   :  { %v5607_v39 = vpop.f32.mrb[131].mxu0  ;;  %v5669_v0 = vadd.f32 %v5668_v12, %v5667_v31  ;;  %v5670_v35 = vpop.f32.mrb[130].mxu1 }
 0x1fa   :  { %v3865_v53 = vadd.f32 %v5605_v33, %v7920_v15  ;;  %v5608_v62 = vadd.f32 %v5607_v39, %v5606_v27  ;;  %v5671_v44 = vpop.f32.mrb[131].mxu1 }
 0x1fb   :  { %v5672_v5 = vadd.f32 %v5671_v44, %v5670_v35 }
 0x1fc   :  { %v3868_v14 = vadd.f32 %v5608_v62, %v7922_v36  ;;  %v7989_v3 = vadd.f32 %v5669_v0, %v3865_v53 }
 0x1fe   :  { %v7991_v6 = vadd.f32 %v5672_v5, %v3868_v14  ;;  %v5609_v46 = vpop.f32.mrb[132].mxu0 }
 0x1ff   :  { %v5610_v47 = vpop.f32.mrb[133].mxu0  ;;  %v5673_v13 = vpop.f32.mrb[132].mxu1 }
 0x200   :  { %v5611_v7 = vadd.f32 %v5610_v47, %v5609_v46  ;;  %v5612_v55 = vpop.f32.mrb[134].mxu0  ;;  %v5674_v1 = vpop.f32.mrb[133].mxu1 }
 0x201   :  { %v5613_v57 = vpop.f32.mrb[135].mxu0  ;;  %v5675_v59 = vadd.f32 %v5674_v1, %v5673_v13  ;;  %v5676_v4 = vpop.f32.mrb[134].mxu1 }
 0x202   :  { %v3873_v15 = vadd.f32 %v5611_v7, %v7932_v50  ;;  %v5614_v29 = vadd.f32 %v5613_v57, %v5612_v55  ;;  %v5677_v23 = vpop.f32.mrb[135].mxu1 }
 0x203   :  { %v5678_v60 = vadd.f32 %v5677_v23, %v5676_v4 }
 0x204   :  { %v3876_v36 = vadd.f32 %v5614_v29, %v7934_v34  ;;  %v7995_v26 = vadd.f32 %v5675_v59, %v3873_v15 }
 0x206   :  { %v7997_v48 = vadd.f32 %v5678_v60, %v3876_v36  ;;  %v5615_v58 = vpop.f32.mrb[136].mxu0 }
 0x207   :  { %v5616_v61 = vpop.f32.mrb[137].mxu0  ;;  %v5679_v63 = vpop.f32.mrb[136].mxu1 }
 0x208   :  { %v5617_v30 = vadd.f32 %v5616_v61, %v5615_v58  ;;  %v5618_v10 = vpop.f32.mrb[138].mxu0  ;;  %v5680_v42 = vpop.f32.mrb[137].mxu1 }
 0x209   :  { %v5619_v38 = vpop.f32.mrb[139].mxu0  ;;  %v5681_v40 = vadd.f32 %v5680_v42, %v5679_v63  ;;  %v5682_v41 = vpop.f32.mrb[138].mxu1 }
 0x20a   :  { %v3881_v50 = vadd.f32 %v5617_v30, %v7944_v21  ;;  %v5620_v32 = vadd.f32 %v5619_v38, %v5618_v10  ;;  %v5683_v43 = vpop.f32.mrb[139].mxu1 }
 0x20b   :  { %v5684_v19 = vadd.f32 %v5683_v43, %v5682_v41 }
 0x20c   :  { %v3884_v34 = vadd.f32 %v5620_v32, %v7946_v56  ;;  %v8001_v17 = vadd.f32 %v5681_v40, %v3881_v50 }
 0x20e   :  { %v8003_v28 = vadd.f32 %v5684_v19, %v3884_v34  ;;  %v5621_v11 = vpop.f32.mrb[140].mxu0 }
 0x20f   :  { %v5622_v20 = vpop.f32.mrb[141].mxu0  ;;  %v5685_v22 = vpop.f32.mrb[140].mxu1 }
 0x210   :  { %v5623_v54 = vadd.f32 %v5622_v20, %v5621_v11  ;;  %v5624_v24 = vpop.f32.mrb[142].mxu0  ;;  %v5686_v25 = vpop.f32.mrb[141].mxu1 }
 0x211   :  { %v5625_v31 = vpop.f32.mrb[143].mxu0  ;;  %v5687_v33 = vadd.f32 %v5686_v25, %v5685_v22  ;;  %v5688_v27 = vpop.f32.mrb[142].mxu1 }
 0x212   :  { %v3889_v21 = vadd.f32 %v5623_v54, %v7956_v45  ;;  %v5626_v12 = vadd.f32 %v5625_v31, %v5624_v24  ;;  %v5689_v39 = vpop.f32.mrb[143].mxu1 }
 0x213   :  { %v5690_v0 = vadd.f32 %v5689_v39, %v5688_v27 }
 0x214   :  { %v3892_v56 = vadd.f32 %v5626_v12, %v7958_v16  ;;  %v8007_v35 = vadd.f32 %v5687_v33, %v3889_v21 }
 0x216   :  { %v8009_v53 = vadd.f32 %v5690_v0, %v3892_v56  ;;  %v5627_v62 = vpop.f32.mrb[144].mxu0 }
 0x217   :  { %v5628_v44 = vpop.f32.mrb[145].mxu0  ;;  %v5691_v5 = vpop.f32.mrb[144].mxu1 }
 0x218   :  { %v5629_v14 = vadd.f32 %v5628_v44, %v5627_v62  ;;  %v5630_v46 = vpop.f32.mrb[146].mxu0  ;;  %v5692_v47 = vpop.f32.mrb[145].mxu1 }
 0x219   :  { %v5631_v13 = vpop.f32.mrb[147].mxu0  ;;  %v5693_v7 = vadd.f32 %v5692_v47, %v5691_v5  ;;  %v5694_v55 = vpop.f32.mrb[146].mxu1 }
 0x21a   :  { %v3897_v45 = vadd.f32 %v5629_v14, %v7965_v2  ;;  %v5632_v1 = vadd.f32 %v5631_v13, %v5630_v46  ;;  %v5695_v57 = vpop.f32.mrb[147].mxu1 }
 0x21b   :  { %v5696_v59 = vadd.f32 %v5695_v57, %v5694_v55 }
 0x21c   :  { %v3900_v16 = vadd.f32 %v5632_v1, %v7967_v37  ;;  %v8013_v4 = vadd.f32 %v5693_v7, %v3897_v45 }
 0x21e   :  { %v8015_v15 = vadd.f32 %v5696_v59, %v3900_v16  ;;  %v5633_v29 = vpop.f32.mrb[148].mxu0 }
 0x21f   :  { %v5634_v23 = vpop.f32.mrb[149].mxu0  ;;  %v5697_v60 = vpop.f32.mrb[148].mxu1 }
 0x220   :  { %v5635_v36 = vadd.f32 %v5634_v23, %v5633_v29  ;;  %v5636_v58 = vpop.f32.mrb[150].mxu0  ;;  %v5698_v61 = vpop.f32.mrb[149].mxu1 }
 0x221   :  { %v5637_v63 = vpop.f32.mrb[151].mxu0  ;;  %v5699_v30 = vadd.f32 %v5698_v61, %v5697_v60  ;;  %v5700_v10 = vpop.f32.mrb[150].mxu1 }
 0x222   :  { %v3905_v2 = vadd.f32 %v5635_v36, %v7971_v49  ;;  %v5638_v42 = vadd.f32 %v5637_v63, %v5636_v58  ;;  %v5701_v38 = vpop.f32.mrb[151].mxu1 }
 0x223   :  { %v5702_v40 = vadd.f32 %v5701_v38, %v5700_v10 }
 0x224   :  { %v3908_v37 = vadd.f32 %v5638_v42, %v7973_v51  ;;  %v8019_v41 = vadd.f32 %v5699_v30, %v3905_v2 }
 0x226   :  { %v8021_v50 = vadd.f32 %v5702_v40, %v3908_v37  ;;  %v5639_v32 = vpop.f32.mrb[152].mxu0 }
 0x227   :  { %v5640_v43 = vpop.f32.mrb[153].mxu0  ;;  %v5703_v19 = vpop.f32.mrb[152].mxu1 }
 0x228   :  { %v5641_v34 = vadd.f32 %v5640_v43, %v5639_v32  ;;  %v5642_v11 = vpop.f32.mrb[154].mxu0  ;;  %v5704_v20 = vpop.f32.mrb[153].mxu1 }
 0x229   :  { %v5643_v22 = vpop.f32.mrb[155].mxu0  ;;  %v5705_v54 = vadd.f32 %v5704_v20, %v5703_v19  ;;  %v5706_v24 = vpop.f32.mrb[154].mxu1 }
 0x22a   :  { %v3913_v49 = vadd.f32 %v5641_v34, %v7977_v8  ;;  %v5644_v25 = vadd.f32 %v5643_v22, %v5642_v11  ;;  %v5707_v31 = vpop.f32.mrb[155].mxu1 }
 0x22b   :  { %v5708_v33 = vadd.f32 %v5707_v31, %v5706_v24 }
 0x22c   :  { %v3916_v51 = vadd.f32 %v5644_v25, %v7979_v9  ;;  %v8025_v27 = vadd.f32 %v5705_v54, %v3913_v49 }
 0x22e   :  { %v8027_v21 = vadd.f32 %v5708_v33, %v3916_v51  ;;  %v5645_v12 = vpop.f32.mrb[156].mxu0 }
 0x22f   :  { %v5646_v39 = vpop.f32.mrb[157].mxu0  ;;  %v5709_v0 = vpop.f32.mrb[156].mxu1 }
 0x230   :  { %v5647_v56 = vadd.f32 %v5646_v39, %v5645_v12  ;;  %v5648_v62 = vpop.f32.mrb[158].mxu0  ;;  %v5710_v44 = vpop.f32.mrb[157].mxu1 }
 0x231   :  { %v5649_v5 = vpop.f32.mrb[159].mxu0  ;;  %v5711_v14 = vadd.f32 %v5710_v44, %v5709_v0  ;;  %v5712_v46 = vpop.f32.mrb[158].mxu1 }
 0x232   :  { %v3921_v8 = vadd.f32 %v5647_v56, %v7983_v52  ;;  %v5650_v47 = vadd.f32 %v5649_v5, %v5648_v62  ;;  %v5713_v13 = vpop.f32.mrb[159].mxu1 }
 0x233   :  { %v5714_v7 = vadd.f32 %v5713_v13, %v5712_v46 }
 0x234   :  { %v3924_v9 = vadd.f32 %v5650_v47, %v7985_v18  ;;  %v8031_v55 = vadd.f32 %v5711_v14, %v3921_v8 }
 0x236   :  { %v8033_v45 = vadd.f32 %v5714_v7, %v3924_v9  ;;  %v5731_v1 = vpop.f32.mrb[160].mxu0 }
 0x237   :  { %v5732_v57 = vpop.f32.mrb[161].mxu0  ;;  %v5795_v59 = vpop.f32.mrb[160].mxu1 }
 0x238   :  { %v5733_v16 = vadd.f32 %v5732_v57, %v5731_v1  ;;  %v5734_v29 = vpop.f32.mrb[162].mxu0  ;;  %v5796_v23 = vpop.f32.mrb[161].mxu1 }
 0x239   :  { %v5735_v60 = vpop.f32.mrb[163].mxu0  ;;  %v5797_v36 = vadd.f32 %v5796_v23, %v5795_v59  ;;  %v5798_v58 = vpop.f32.mrb[162].mxu1 }
 0x23a   :  { %v4059_v52 = vadd.f32 %v5733_v16, %v7989_v3  ;;  %v5736_v61 = vadd.f32 %v5735_v60, %v5734_v29  ;;  %v5799_v63 = vpop.f32.mrb[163].mxu1 }
 0x23b   :  { %v5800_v30 = vadd.f32 %v5799_v63, %v5798_v58 }
 0x23c   :  { %v4062_v18 = vadd.f32 %v5736_v61, %v7991_v6  ;;  %v8037_v10 = vadd.f32 %v5797_v36, %v4059_v52 }
 0x23e   :  { %v8039_v2 = vadd.f32 %v5800_v30, %v4062_v18  ;;  %v5737_v42 = vpop.f32.mrb[164].mxu0 }
 0x23f   :  { %v5738_v38 = vpop.f32.mrb[165].mxu0  ;;  %v5801_v40 = vpop.f32.mrb[164].mxu1 }
 0x240   :  { %v5739_v37 = vadd.f32 %v5738_v38, %v5737_v42  ;;  %v5740_v32 = vpop.f32.mrb[166].mxu0  ;;  %v5802_v43 = vpop.f32.mrb[165].mxu1 }
 0x241   :  { %v5741_v19 = vpop.f32.mrb[167].mxu0  ;;  %v5803_v34 = vadd.f32 %v5802_v43, %v5801_v40  ;;  %v5804_v11 = vpop.f32.mrb[166].mxu1 }
 0x242   :  { %v4067_v3 = vadd.f32 %v5739_v37, %v7995_v26  ;;  %v5742_v20 = vadd.f32 %v5741_v19, %v5740_v32  ;;  %v5805_v22 = vpop.f32.mrb[167].mxu1 }
 0x243   :  { %v5806_v54 = vadd.f32 %v5805_v22, %v5804_v11 }
 0x244   :  { %v4070_v6 = vadd.f32 %v5742_v20, %v7997_v48  ;;  %v8043_v24 = vadd.f32 %v5803_v34, %v4067_v3 }
 0x246   :  { %v8045_v49 = vadd.f32 %v5806_v54, %v4070_v6  ;;  %v5743_v25 = vpop.f32.mrb[168].mxu0 }
 0x247   :  { %v5744_v31 = vpop.f32.mrb[169].mxu0  ;;  %v5807_v33 = vpop.f32.mrb[168].mxu1 }
 0x248   :  { %v5745_v51 = vadd.f32 %v5744_v31, %v5743_v25  ;;  %v5746_v12 = vpop.f32.mrb[170].mxu0  ;;  %v5808_v39 = vpop.f32.mrb[169].mxu1 }
 0x249   :  { %v5747_v0 = vpop.f32.mrb[171].mxu0  ;;  %v5809_v56 = vadd.f32 %v5808_v39, %v5807_v33  ;;  %v5810_v62 = vpop.f32.mrb[170].mxu1 }
 0x24a   :  { %v4075_v26 = vadd.f32 %v5745_v51, %v8001_v17  ;;  %v5748_v44 = vadd.f32 %v5747_v0, %v5746_v12  ;;  %v5811_v5 = vpop.f32.mrb[171].mxu1 }
 0x24b   :  { %v5812_v14 = vadd.f32 %v5811_v5, %v5810_v62 }
 0x24c   :  { %v4078_v48 = vadd.f32 %v5748_v44, %v8003_v28  ;;  %v8049_v46 = vadd.f32 %v5809_v56, %v4075_v26 }
 0x24e   :  { %v8051_v8 = vadd.f32 %v5812_v14, %v4078_v48  ;;  %v5749_v47 = vpop.f32.mrb[172].mxu0 }
 0x24f   :  { %v5750_v13 = vpop.f32.mrb[173].mxu0  ;;  %v5813_v7 = vpop.f32.mrb[172].mxu1 }
 0x250   :  { %v5751_v9 = vadd.f32 %v5750_v13, %v5749_v47  ;;  %v5752_v1 = vpop.f32.mrb[174].mxu0  ;;  %v5814_v57 = vpop.f32.mrb[173].mxu1 }
 0x251   :  { %v5753_v59 = vpop.f32.mrb[175].mxu0  ;;  %v5815_v16 = vadd.f32 %v5814_v57, %v5813_v7  ;;  %v5816_v29 = vpop.f32.mrb[174].mxu1 }
 0x252   :  { %v4083_v17 = vadd.f32 %v5751_v9, %v8007_v35  ;;  %v5754_v23 = vadd.f32 %v5753_v59, %v5752_v1  ;;  %v5817_v60 = vpop.f32.mrb[175].mxu1 }
 0x253   :  { %v5818_v36 = vadd.f32 %v5817_v60, %v5816_v29 }
 0x254   :  { %v4086_v28 = vadd.f32 %v5754_v23, %v8009_v53  ;;  %v8055_v58 = vadd.f32 %v5815_v16, %v4083_v17 }
 0x256   :  { %v8057_v52 = vadd.f32 %v5818_v36, %v4086_v28  ;;  %v5755_v61 = vpop.f32.mrb[176].mxu0 }
 0x257   :  { %v5756_v63 = vpop.f32.mrb[177].mxu0  ;;  %v5819_v30 = vpop.f32.mrb[176].mxu1 }
 0x258   :  { %v5757_v18 = vadd.f32 %v5756_v63, %v5755_v61  ;;  %v5758_v42 = vpop.f32.mrb[178].mxu0  ;;  %v5820_v38 = vpop.f32.mrb[177].mxu1 }
 0x259   :  { %v5759_v40 = vpop.f32.mrb[179].mxu0  ;;  %v5821_v37 = vadd.f32 %v5820_v38, %v5819_v30  ;;  %v5822_v32 = vpop.f32.mrb[178].mxu1 }
 0x25a   :  { %v4091_v35 = vadd.f32 %v5757_v18, %v8013_v4  ;;  %v5760_v43 = vadd.f32 %v5759_v40, %v5758_v42  ;;  %v5823_v19 = vpop.f32.mrb[179].mxu1 }
 0x25b   :  { %v5824_v34 = vadd.f32 %v5823_v19, %v5822_v32 }
 0x25c   :  { %v4094_v53 = vadd.f32 %v5760_v43, %v8015_v15  ;;  %v8061_v11 = vadd.f32 %v5821_v37, %v4091_v35 }
 0x25e   :  { %v8063_v3 = vadd.f32 %v5824_v34, %v4094_v53  ;;  %v5761_v20 = vpop.f32.mrb[180].mxu0 }
 0x25f   :  { %v5762_v22 = vpop.f32.mrb[181].mxu0  ;;  %v5825_v54 = vpop.f32.mrb[180].mxu1 }
 0x260   :  { %v5763_v6 = vadd.f32 %v5762_v22, %v5761_v20  ;;  %v5764_v25 = vpop.f32.mrb[182].mxu0  ;;  %v5826_v31 = vpop.f32.mrb[181].mxu1 }
 0x261   :  { %v5765_v33 = vpop.f32.mrb[183].mxu0  ;;  %v5827_v51 = vadd.f32 %v5826_v31, %v5825_v54  ;;  %v5828_v12 = vpop.f32.mrb[182].mxu1 }
 0x262   :  { %v4099_v4 = vadd.f32 %v5763_v6, %v8019_v41  ;;  %v5766_v39 = vadd.f32 %v5765_v33, %v5764_v25  ;;  %v5829_v0 = vpop.f32.mrb[183].mxu1 }
 0x263   :  { %v5830_v56 = vadd.f32 %v5829_v0, %v5828_v12 }
 0x264   :  { %v4102_v15 = vadd.f32 %v5766_v39, %v8021_v50  ;;  %v8067_v62 = vadd.f32 %v5827_v51, %v4099_v4 }
 0x266   :  { %v8069_v26 = vadd.f32 %v5830_v56, %v4102_v15  ;;  %v5767_v44 = vpop.f32.mrb[184].mxu0 }
 0x267   :  { %v5768_v5 = vpop.f32.mrb[185].mxu0  ;;  %v5831_v14 = vpop.f32.mrb[184].mxu1 }
 0x268   :  { %v5769_v48 = vadd.f32 %v5768_v5, %v5767_v44  ;;  %v5770_v47 = vpop.f32.mrb[186].mxu0  ;;  %v5832_v13 = vpop.f32.mrb[185].mxu1 }
 0x269   :  { %v5771_v7 = vpop.f32.mrb[187].mxu0  ;;  %v5833_v9 = vadd.f32 %v5832_v13, %v5831_v14  ;;  %v5834_v1 = vpop.f32.mrb[186].mxu1 }
 0x26a   :  { %v4107_v41 = vadd.f32 %v5769_v48, %v8025_v27  ;;  %v5772_v57 = vadd.f32 %v5771_v7, %v5770_v47  ;;  %v5835_v59 = vpop.f32.mrb[187].mxu1 }
 0x26b   :  { %v5836_v16 = vadd.f32 %v5835_v59, %v5834_v1 }
 0x26c   :  { %v4110_v50 = vadd.f32 %v5772_v57, %v8027_v21  ;;  %v8073_v29 = vadd.f32 %v5833_v9, %v4107_v41 }
 0x26e   :  { %v8075_v17 = vadd.f32 %v5836_v16, %v4110_v50  ;;  %v5773_v23 = vpop.f32.mrb[188].mxu0 }
 0x26f   :  { %v5774_v60 = vpop.f32.mrb[189].mxu0  ;;  %v5837_v36 = vpop.f32.mrb[188].mxu1 }
 0x270   :  { %v5775_v28 = vadd.f32 %v5774_v60, %v5773_v23  ;;  %v5776_v61 = vpop.f32.mrb[190].mxu0  ;;  %v5838_v63 = vpop.f32.mrb[189].mxu1 }
 0x271   :  { %v5777_v30 = vpop.f32.mrb[191].mxu0  ;;  %v5839_v18 = vadd.f32 %v5838_v63, %v5837_v36  ;;  %v5840_v42 = vpop.f32.mrb[190].mxu1 }
 0x272   :  { %v4115_v27 = vadd.f32 %v5775_v28, %v8031_v55  ;;  %v5778_v38 = vadd.f32 %v5777_v30, %v5776_v61  ;;  %v5841_v40 = vpop.f32.mrb[191].mxu1 }
 0x273   :  { %v5842_v37 = vadd.f32 %v5841_v40, %v5840_v42 }
 0x274   :  { %v4118_v21 = vadd.f32 %v5778_v38, %v8033_v45  ;;  %v8079_v32 = vadd.f32 %v5839_v18, %v4115_v27 }
 0x276   :  { %v8081_v35 = vadd.f32 %v5842_v37, %v4118_v21  ;;  %v5859_v43 = vpop.f32.mrb[192].mxu0 }
 0x277   :  { %v5860_v19 = vpop.f32.mrb[193].mxu0  ;;  %v5941_v34 = vpop.f32.mrb[192].mxu1 }
 0x278   :  { %v5861_v53 = vadd.f32 %v5860_v19, %v5859_v43  ;;  %v5862_v20 = vpop.f32.mrb[194].mxu0  ;;  %v4349_v22 = vpop.f32.mrb[193].mxu1 }
 0x279   :  { %v5863_v54 = vpop.f32.mrb[195].mxu0  ;;  %v5942_v6 = vpop.f32.mrb[194].mxu1 }
 0x27a   :  { %v5864_v25 = vadd.f32 %v5863_v54, %v5862_v20  ;;  %v4253_v55 = vadd.f32 %v5861_v53, %v8037_v10  ;;  %v4352_v31 = vpop.f32.mrb[195].mxu1 }
 0x27c   :  { %v4350_v33 = vadd.f32 %v4349_v22, %v4253_v55  ;;  %v4256_v51 = vadd.f32 %v5864_v25, %v8039_v2 }
 0x27e   :  { %v4353_v45 = vadd.f32 %v4352_v31, %v4256_v51  ;;  %v5865_v12 = vpop.f32.mrb[196].mxu0  ;;  %v4518_v4 = vmul.f32 %v4350_v33, %v4350_v33 }
 0x27f   :  { %v5866_v39 = vpop.f32.mrb[197].mxu0  ;;  %v5945_v0 = vpop.f32.mrb[196].mxu1 }
 0x280   :  { %v5031_v56 = vpack.c.bf16 %v4353_v45, %v4350_v33  ;;  %v4492_v15 = vadd.f32 %v4353_v45, %v4350_v33  ;;  %v4519_v44 = vmul.f32 %v4353_v45, %v4353_v45  ;;  %v5867_v5 = vadd.f32 %v5866_v39, %v5865_v12  ;;  %v5868_v14 = vpop.f32.mrb[198].mxu0  ;;  %v4365_v48 = vpop.f32.mrb[197].mxu1 }
 0x281   :  { %v5869_v47 = vpop.f32.mrb[199].mxu0  ;;  %v5946_v13 = vpop.f32.mrb[198].mxu1 }
 0x282   :  { %5032 = vst [vmem:[%s8146_s2] sm:$0xff] %v5031_v56   ;;  %v4534_v10 = vadd.f32 %v4519_v44, %v4518_v4  ;;  %v4261_v2 = vadd.f32 %v5867_v5, %v8043_v24  ;;  %v5870_v7 = vadd.f32 %v5869_v47, %v5868_v14  ;;  %v4368_v9 = vpop.f32.mrb[199].mxu1 }
 0x284   :  { %v4358_v1 = vadd.f32 %v5941_v34, %v4261_v2  ;;  %v4264_v41 = vadd.f32 %v5870_v7, %v8045_v49 }
 0x286   :  { %v4520_v57 = vmul.f32 %v4358_v1, %v4358_v1  ;;  %v4361_v59 = vadd.f32 %v5942_v6, %v4264_v41  ;;  %v5871_v16 = vpop.f32.mrb[200].mxu0  ;;  %v4493_v50 = vadd.f32 %v4492_v15, %v4358_v1 }
 0x287   :  { %v5872_v23 = vpop.f32.mrb[201].mxu0  ;;  %v8090_v60 = vpop.f32.mrb[200].mxu1 }
 0x288   :  { %v5036_v36 = vpack.c.bf16 %v4361_v59, %v4358_v1  ;;  %v4521_v28 = vmul.f32 %v4361_v59, %v4361_v59  ;;  %v5873_v61 = vadd.f32 %v5872_v23, %v5871_v16  ;;  %v5874_v63 = vpop.f32.mrb[202].mxu0  ;;  %v4494_v30 = vadd.f32 %v4493_v50, %v4361_v59  ;;  %v4381_v18 = vpop.f32.mrb[201].mxu1 }
 0x289   :  { %v5875_v42 = vpop.f32.mrb[203].mxu0  ;;  %v4535_v24 = vadd.f32 %v4534_v10, %v4520_v57  ;;  %v8092_v27 = vpop.f32.mrb[202].mxu1 }
 0x28a   :  { %5068 = vst [vmem:[%s8146_s2 + $0x8] sm:$0xff] %v5036_v36   ;;  %v5876_v49 = vadd.f32 %v5875_v42, %v5874_v63  ;;  %v4269_v38 = vadd.f32 %v5873_v61, %v8049_v46  ;;  %v4384_v40 = vpop.f32.mrb[203].mxu1 }
 0x28b   :  { %v4536_v37 = vadd.f32 %v4535_v24, %v4521_v28 }
 0x28c   :  { %v4366_v21 = vadd.f32 %v4365_v48, %v4269_v38  ;;  %v4272_v43 = vadd.f32 %v5876_v49, %v8051_v8 }
 0x28e   :  { %v4495_v19 = vadd.f32 %v4494_v30, %v4366_v21  ;;  %v4522_v34 = vmul.f32 %v4366_v21, %v4366_v21  ;;  %v4369_v53 = vadd.f32 %v4368_v9, %v4272_v43  ;;  %v5877_v20 = vpop.f32.mrb[204].mxu0 }
 0x28f   :  { %v5878_v22 = vpop.f32.mrb[205].mxu0  ;;  %v8099_v54 = vpop.f32.mrb[204].mxu1 }
 0x290   :  { %v4537_v6 = vadd.f32 %v4536_v37, %v4522_v34  ;;  %v5041_v25 = vpack.c.bf16 %v4369_v53, %v4366_v21  ;;  %v4496_v55 = vadd.f32 %v4495_v19, %v4369_v53  ;;  %v4523_v31 = vmul.f32 %v4369_v53, %v4369_v53  ;;  %v5880_v33 = vpop.f32.mrb[206].mxu0  ;;  %v8101_v51 = vpop.f32.mrb[205].mxu1 }
 0x291   :  { %v5879_v46 = vadd.f32 %v5878_v22, %v5877_v20  ;;  %v5881_v45 = vpop.f32.mrb[207].mxu0  ;;  %v8103_v12 = vpop.f32.mrb[206].mxu1 }
 0x292   :  { %5069 = vst [vmem:[%s8146_s2 + $0x10] sm:$0xff] %v5041_v25   ;;  %v4538_v8 = vadd.f32 %v4537_v6, %v4523_v31  ;;  %v5882_v4 = vadd.f32 %v5881_v45, %v5880_v33  ;;  %v4400_v39 = vpop.f32.mrb[207].mxu1 }
 0x293   :  { %v4277_v56 = vadd.f32 %v5879_v46, %v8055_v58 }
 0x294   :  { %v4280_v15 = vadd.f32 %v5882_v4, %v8057_v52 }
 0x295   :  { %v4374_v44 = vadd.f32 %v5945_v0, %v4277_v56 }
 0x296   :  { %v4377_v5 = vadd.f32 %v5946_v13, %v4280_v15  ;;  %v5883_v14 = vpop.f32.mrb[208].mxu0 }
 0x297   :  { %v4524_v48 = vmul.f32 %v4374_v44, %v4374_v44  ;;  %v5884_v47 = vpop.f32.mrb[209].mxu0  ;;  %v4497_v10 = vadd.f32 %v4496_v55, %v4374_v44 }
 0x298   :  { %v5046_v2 = vpack.c.bf16 %v4377_v5, %v4374_v44  ;;  %v4525_v7 = vmul.f32 %v4377_v5, %v4377_v5  ;;  %v5885_v9 = vadd.f32 %v5884_v47, %v5883_v14  ;;  %v5886_v1 = vpop.f32.mrb[210].mxu0 }
 0x299   :  { %v5887_v41 = vpop.f32.mrb[211].mxu0  ;;  %v4498_v57 = vadd.f32 %v4497_v10, %v4377_v5  ;;  %v4539_v59 = vadd.f32 %v4538_v8, %v4524_v48 }
 0x29a   :  { %5070 = vst [vmem:[%s8146_s2 + $0x18] sm:$0xff] %v5046_v2   ;;  %v5888_v58 = vadd.f32 %v5887_v41, %v5886_v1  ;;  %v4285_v52 = vadd.f32 %v5885_v9, %v8061_v11 }
 0x29b   :  { %v4540_v0 = vadd.f32 %v4539_v59, %v4525_v7 }
 0x29c   :  { %v4382_v13 = vadd.f32 %v4381_v18, %v4285_v52  ;;  %v4288_v16 = vadd.f32 %v5888_v58, %v8063_v3 }
 0x29e   :  { %v4499_v50 = vadd.f32 %v4498_v57, %v4382_v13  ;;  %v4526_v23 = vmul.f32 %v4382_v13, %v4382_v13  ;;  %v4385_v36 = vadd.f32 %v4384_v40, %v4288_v16  ;;  %v5889_v28 = vpop.f32.mrb[212].mxu0 }
 0x29f   :  { %v5890_v61 = vpop.f32.mrb[213].mxu0 }
 0x2a0   :  { %v4541_v63 = vadd.f32 %v4540_v0, %v4526_v23  ;;  %v5051_v30 = vpack.c.bf16 %v4385_v36, %v4382_v13  ;;  %v4500_v42 = vadd.f32 %v4499_v50, %v4385_v36  ;;  %v4527_v24 = vmul.f32 %v4385_v36, %v4385_v36  ;;  %v5892_v49 = vpop.f32.mrb[214].mxu0 }
 0x2a1   :  { %v5891_v38 = vadd.f32 %v5890_v61, %v5889_v28  ;;  %v5893_v37 = vpop.f32.mrb[215].mxu0  ;;  %v4513_v36 = vlaneseq }
 0x2a2   :  { %5071 = vst [vmem:[%s8146_s2 + $0x20] sm:$0xff] %v5051_v30   ;;  %v4542_v11 = vadd.f32 %v4541_v63, %v4527_v24  ;;  %v5894_v18 = vadd.f32 %v5893_v37, %v5892_v49 }
 0x2a3   :  { %v4293_v3 = vadd.f32 %v5891_v38, %v8067_v62  ;;  %vm4515_vm0 = vcmp.lt.s32.totalorder %v4513_v36, 128 }
 0x2a4   :  { %v4296_v21 = vadd.f32 %v5894_v18, %v8069_v26 }
 0x2a5   :  { %v4390_v40 = vadd.f32 %v8090_v60, %v4293_v3 }
 0x2a6   :  { %v4393_v43 = vadd.f32 %v8092_v27, %v4296_v21  ;;  %v5895_v19 = vpop.f32.mrb[216].mxu0 }
 0x2a7   :  { %v4528_v34 = vmul.f32 %v4390_v40, %v4390_v40  ;;  %v5896_v53 = vpop.f32.mrb[217].mxu0  ;;  %v4501_v20 = vadd.f32 %v4500_v42, %v4390_v40 }
 0x2a8   :  { %v5056_v22 = vpack.c.bf16 %v4393_v43, %v4390_v40  ;;  %v4529_v6 = vmul.f32 %v4393_v43, %v4393_v43  ;;  %v5897_v25 = vadd.f32 %v5896_v53, %v5895_v19  ;;  %v5898_v55 = vpop.f32.mrb[218].mxu0 }
 0x2a9   :  { %v5899_v31 = vpop.f32.mrb[219].mxu0  ;;  %v4502_v33 = vadd.f32 %v4501_v20, %v4393_v43  ;;  %v4543_v46 = vadd.f32 %v4542_v11, %v4528_v34 }
 0x2aa   :  { %5072 = vst [vmem:[%s8146_s2 + $0x28] sm:$0xff] %v5056_v22   ;;  %v5900_v62 = vadd.f32 %v5899_v31, %v5898_v55  ;;  %v4301_v26 = vadd.f32 %v5897_v25, %v8073_v29 }
 0x2ab   :  { %v4544_v60 = vadd.f32 %v4543_v46, %v4529_v6 }
 0x2ac   :  { %v4398_v27 = vadd.f32 %v8101_v51, %v4301_v26  ;;  %v4304_v45 = vadd.f32 %v5900_v62, %v8075_v17 }
 0x2ae   :  { %v4503_v8 = vadd.f32 %v4502_v33, %v4398_v27  ;;  %v4530_v4 = vmul.f32 %v4398_v27, %v4398_v27  ;;  %v4401_v56 = vadd.f32 %v4400_v39, %v4304_v45  ;;  %v5901_v15 = vpop.f32.mrb[220].mxu0 }
 0x2af   :  { %v5902_v44 = vpop.f32.mrb[221].mxu0 }
 0x2b0   :  { %v4545_v5 = vadd.f32 %v4544_v60, %v4530_v4  ;;  %v5061_v14 = vpack.c.bf16 %v4401_v56, %v4398_v27  ;;  %v4504_v48 = vadd.f32 %v4503_v8, %v4401_v56  ;;  %v4531_v47 = vmul.f32 %v4401_v56, %v4401_v56  ;;  %v5904_v10 = vpop.f32.mrb[222].mxu0 }
 0x2b1   :  { %v5903_v2 = vadd.f32 %v5902_v44, %v5901_v15  ;;  %v5905_v7 = vpop.f32.mrb[223].mxu0 }
 0x2b2   :  { %5073 = vst [vmem:[%s8146_s2 + $0x30] sm:$0xff] %v5061_v14   ;;  %v4546_v29 = vadd.f32 %v4545_v5, %v4531_v47  ;;  %v5906_v51 = vadd.f32 %v5905_v7, %v5904_v10 }
 0x2b3   :  { %v4309_v17 = vadd.f32 %v5903_v2, %v8079_v32 }
 0x2b4   :  { %v4312_v9 = vadd.f32 %v5906_v51, %v8081_v35 }
 0x2b5   :  { %v4406_v39 = vadd.f32 %v8099_v54, %v4309_v17 }
 0x2b6   :  { %v4409_v1 = vadd.f32 %v8103_v12, %v4312_v9 }
 0x2b7   :  { %v4505_v41 = vadd.f32 %v4504_v48, %v4406_v39  ;;  %v4532_v57 = vmul.f32 %v4406_v39, %v4406_v39 }
 0x2b8   :  { %v5066_v59 = vpack.c.bf16 %v4409_v1, %v4406_v39  ;;  %v4533_v58 = vmul.f32 %v4409_v1, %v4409_v1 }
 0x2b9   :  { %v4547_v52 = vadd.f32 %v4546_v29, %v4532_v57  ;;  %v4506_v0 = vadd.f32 %v4505_v41, %v4409_v1 }
 0x2ba   :  { %5074 = vst [vmem:[%s8146_s2 + $0x38] sm:$0xff] %v5066_v59  }
 0x2bb   :  { %v4507_v13 = vrot.slane %v4506_v0, 4  ;;  %v4548_v16 = vadd.f32 %v4547_v52, %v4533_v58 }
 0x2bd   :  { %v4508_v50 = vadd.f32 %v4507_v13, %v4506_v0  ;;  %v4549_v32 = vrot.slane %v4548_v16, 4 }
 0x2bf   :  { %v4509_v23 = vrot.slane %v4508_v50, 2  ;;  %v4550_v35 = vadd.f32 %v4549_v32, %v4548_v16 }
 0x2c1   :  { %v4510_v54 = vadd.f32 %v4509_v23, %v4508_v50  ;;  %v4551_v28 = vrot.slane %v4550_v35, 2 }
 0x2c3   :  { %v4511_v12 = vrot.slane %v4510_v54, 1  ;;  %v4552_v61 = vadd.f32 %v4551_v28, %v4550_v35 }
 0x2c5   :  { %v4512_v63 = vadd.f32 %v4511_v12, %v4510_v54  ;;  %v4553_v30 = vrot.slane %v4552_v61, 1 }
 0x2c7   :  { %4517 = vst.msk [vmem:[%s8147_s3] sm:$0x1] %vm4515_vm0, %v4512_v63  ;;  %v4554_v42 = vadd.f32 %v4553_v30, %v4552_v61 }
 0x2c9   :  { %4555 = vst.msk [vmem:[%s8147_s3 + $0x1] sm:$0x1] %vm4515_vm0, %v4554_v42 }

// kernel: _lambda_.13
= control target key start
LH: loop header
LB: loop body
LE: loop exit
PB: predicated region body
PF: predicated region fallthrough
CT: control target
= control target key end

     0   :  { %v22_v0 = vlaneseq  ;;  %s124_s0 = inlined_call_operand.vmem [shape: bf16[16,256], index: 0, kind: input, shape index: {}]   ;;  %s125_s1 = inlined_call_operand.vmem [shape: f32[1,256], index: 1, kind: input, shape index: {}]   ;;  %s126_s2 = inlined_call_operand.vmem [shape: f32[1,256], index: 2, kind: input, shape index: {}]   ;;  %s127_s3 = inlined_call_operand.vmem [shape: bf16[16,256], index: 3, kind: output, shape index: {}]  }
   0x1   :  { %v14_v1 = vld [vmem:[%s124_s0] sm:$0xff]  ;;  %v15_v3 = vld [vmem:[%s124_s0 + $0x8] sm:$0xff] }
   0x2   :  { %v23_v2 = vshrl.u32 %v22_v0, 7  ;;  %v16_v4 = vunpack.c.l.bf16 %v14_v1  ;;  %v17_v5 = vunpack.c.h.bf16 %v14_v1  ;;  %v20_v6 = vld [vmem:[%s125_s1] sm:$0x3]  ;;  %v18_v10 = vunpack.c.l.bf16 %v15_v3 }
   0x3   :  { %v36_v7 = vld [vmem:[%s126_s2] sm:$0x3]  ;;  %v19_v11 = vunpack.c.h.bf16 %v15_v3 }
   0x4   :  { %v24_v8 = vsub.s32 0, %v23_v2  ;;  %v28_v9 = vsub.s32 1, %v23_v2 }
   0x6   :  { %v25_v12 = vrot.slane %v20_v6, %v24_v8  ;;  %v29_v13 = vrot.slane %v20_v6, %v28_v9  ;;  %v41_v14 = vrot.slane %v36_v7, %v24_v8  ;;  %v45_v15 = vrot.slane %v36_v7, %v28_v9 }
   0x8   :  { %v32_v16 = vmul.f32 %v25_v12, %v16_v4  ;;  %v33_v17 = vmul.f32 %v29_v13, %v17_v5  ;;  %v34_v18 = vmul.f32 %v25_v12, %v18_v10  ;;  %v35_v19 = vmul.f32 %v29_v13, %v19_v11 }
   0xa   :  { %v48_v20 = vadd.f32 %v41_v14, %v32_v16  ;;  %v49_v21 = vadd.f32 %v45_v15, %v33_v17  ;;  %v50_v22 = vadd.f32 %v41_v14, %v34_v18  ;;  %v51_v23 = vadd.f32 %v45_v15, %v35_v19 }
   0xc   :  { %vm52_vm0 = vcmp.ge.f32.partialorder %v48_v20, 0.0  ;;  %vm53_vm1 = vcmp.ge.f32.partialorder %v49_v21, 0.0  ;;  %v56_v24 = vmul.f32 0.2, %v48_v20  ;;  %v57_v25 = vmul.f32 0.2, %v49_v21 }
   0xd   :  { %vm54_vm2 = vcmp.ge.f32.partialorder %v50_v22, 0.0  ;;  %vm55_vm3 = vcmp.ge.f32.partialorder %v51_v23, 0.0  ;;  %v58_v26 = vmul.f32 0.2, %v50_v22  ;;  %v59_v27 = vmul.f32 0.2, %v51_v23 }
   0xe   :  { %v60_v28 = vsel %vm52_vm0, %v48_v20, %v56_v24  ;;  %v61_v29 = vsel %vm53_vm1, %v49_v21, %v57_v25 }
   0xf   :  { %v84_v30 = vpack.c.bf16 %v61_v29, %v60_v28  ;;  %v62_v31 = vsel %vm54_vm2, %v50_v22, %v58_v26  ;;  %v63_v32 = vsel %vm55_vm3, %v51_v23, %v59_v27 }
  0x10   :  { %v85_v33 = vpack.c.bf16 %v63_v32, %v62_v31 }
  0x11   :  { %76 = vst [vmem:[%s127_s3] sm:$0xff] %v84_v30 }
  0x12   :  { %77 = vst [vmem:[%s127_s3 + $0x8] sm:$0xff] %v85_v33 }

// kernel: _lambda_.12
= control target key start
LH: loop header
LB: loop body
LE: loop exit
PB: predicated region body
PF: predicated region fallthrough
CT: control target
= control target key end

     0   :  { %s6084_s1 = inlined_call_operand.vmem [shape: bf16[3456,256], index: 1, kind: input, shape index: {}]   ;;  %s6085_s0 = inlined_call_operand.vmem [shape: bf16[16,3456], index: 0, kind: input, shape index: {}]   ;;  %s6086_s2 = inlined_call_operand.vmem [shape: bf16[16,256], index: 2, kind: output, shape index: {0}]   ;;  %s6087_s3 = inlined_call_operand.vmem [shape: f32[1,1,512], index: 3, kind: output, shape index: {1}]  }
   0x1   :  { %v3985_v0 = vld [vmem:[%s6084_s1 + $0x4] ss:$8 sps:$4 sm:$0xff]   ;;  %v3989_v2 = vld [vmem:[%s6084_s1] ss:$8 sps:$4 sm:$0xff]   ;;  %v3991_v4 = vld [vmem:[%s6084_s1 + $0x14] ss:$8 sps:$4 sm:$0xff]  }
   0x2   :  { %v3987_v1 = vld [vmem:[%s6084_s1 + $0x704] ss:$8 sps:$4 sm:$0xff]   ;;  %2770 = vmatprep.subr.bf16.mxu1 %v3985_v0  ;;  %v3990_v3 = vld [vmem:[%s6084_s1 + $0x700] ss:$8 sps:$4 sm:$0xff]   ;;  %v3993_v5 = vld [vmem:[%s6084_s1 + $0x714] ss:$8 sps:$4 sm:$0xff]  }
   0x3   :  { %3071 = vmatprep.subr.bf16.mxu0 %v3987_v1  ;;  %2771 = vmatpush1.bf16.msra.mxu1 %v3989_v2  ;;  %v3995_v6 = vld [vmem:[%s6084_s1 + $0x10] ss:$8 sps:$4 sm:$0xff]   ;;  %v3997_v8 = vld [vmem:[%s6084_s1 + $0x24] ss:$8 sps:$4 sm:$0xff]   ;;  %v4001_v10 = vld [vmem:[%s6084_s1 + $0x20] ss:$8 sps:$4 sm:$0xff]  }
   0x4   :  { %3072 = vmatpush1.bf16.msra.mxu0 %v3990_v3  ;;  %2772 = vmatprep.subr.bf16.mxu1 %v3991_v4  ;;  %v3996_v7 = vld [vmem:[%s6084_s1 + $0x710] ss:$8 sps:$4 sm:$0xff]   ;;  %v3999_v9 = vld [vmem:[%s6084_s1 + $0x724] ss:$8 sps:$4 sm:$0xff]   ;;  %v4002_v11 = vld [vmem:[%s6084_s1 + $0x720] ss:$8 sps:$4 sm:$0xff]  }
   0x5   :  { %3073 = vmatprep.subr.bf16.mxu0 %v3993_v5  ;;  %v4003_v12 = vld [vmem:[%s6084_s1 + $0x34] ss:$8 sps:$4 sm:$0xff]   ;;  %v4007_v14 = vld [vmem:[%s6084_s1 + $0x30] ss:$8 sps:$4 sm:$0xff]   ;;  %v4009_v16 = vld [vmem:[%s6084_s1 + $0x44] ss:$8 sps:$4 sm:$0xff]  }
   0x6   :  { %v4005_v13 = vld [vmem:[%s6084_s1 + $0x734] ss:$8 sps:$4 sm:$0xff]   ;;  %v4008_v15 = vld [vmem:[%s6084_s1 + $0x730] ss:$8 sps:$4 sm:$0xff]   ;;  %v4011_v17 = vld [vmem:[%s6084_s1 + $0x744] ss:$8 sps:$4 sm:$0xff]  }
   0x7   :  { %2773 = vmatpush1.bf16.msra.mxu1 %v3995_v6  ;;  %v4013_v18 = vld [vmem:[%s6084_s1 + $0x40] ss:$8 sps:$4 sm:$0xff]   ;;  %v4015_v20 = vld [vmem:[%s6084_s1 + $0x54] ss:$8 sps:$4 sm:$0xff]   ;;  %v4019_v22 = vld [vmem:[%s6084_s1 + $0x50] ss:$8 sps:$4 sm:$0xff]  }
   0x8   :  { %3074 = vmatpush1.bf16.msra.mxu0 %v3996_v7  ;;  %2774 = vmatprep.subr.bf16.mxu1 %v3997_v8  ;;  %v4014_v19 = vld [vmem:[%s6084_s1 + $0x740] ss:$8 sps:$4 sm:$0xff]   ;;  %v4017_v21 = vld [vmem:[%s6084_s1 + $0x754] ss:$8 sps:$4 sm:$0xff]   ;;  %v4020_v23 = vld [vmem:[%s6084_s1 + $0x750] ss:$8 sps:$4 sm:$0xff]  }
   0x9   :  { %3075 = vmatprep.subr.bf16.mxu0 %v3999_v9  ;;  %v4021_v24 = vld [vmem:[%s6084_s1 + $0x64] ss:$8 sps:$4 sm:$0xff]   ;;  %v4025_v26 = vld [vmem:[%s6084_s1 + $0x60] ss:$8 sps:$4 sm:$0xff]   ;;  %v4027_v28 = vld [vmem:[%s6084_s1 + $0x74] ss:$8 sps:$4 sm:$0xff]  }
   0xa   :  { %v4023_v25 = vld [vmem:[%s6084_s1 + $0x764] ss:$8 sps:$4 sm:$0xff]   ;;  %v4026_v27 = vld [vmem:[%s6084_s1 + $0x760] ss:$8 sps:$4 sm:$0xff]   ;;  %v4029_v29 = vld [vmem:[%s6084_s1 + $0x774] ss:$8 sps:$4 sm:$0xff]  }
   0xb   :  { %2775 = vmatpush1.bf16.msra.mxu1 %v4001_v10  ;;  %v4031_v30 = vld [vmem:[%s6084_s1 + $0x70] ss:$8 sps:$4 sm:$0xff]   ;;  %v4033_v32 = vld [vmem:[%s6084_s1 + $0x84] ss:$8 sps:$4 sm:$0xff]   ;;  %v4037_v34 = vld [vmem:[%s6084_s1 + $0x80] ss:$8 sps:$4 sm:$0xff]  }
   0xc   :  { %3076 = vmatpush1.bf16.msra.mxu0 %v4002_v11  ;;  %2776 = vmatprep.subr.bf16.mxu1 %v4003_v12  ;;  %v4032_v31 = vld [vmem:[%s6084_s1 + $0x770] ss:$8 sps:$4 sm:$0xff]   ;;  %v4035_v33 = vld [vmem:[%s6084_s1 + $0x784] ss:$8 sps:$4 sm:$0xff]   ;;  %v4038_v35 = vld [vmem:[%s6084_s1 + $0x780] ss:$8 sps:$4 sm:$0xff]  }
   0xd   :  { %3077 = vmatprep.subr.bf16.mxu0 %v4005_v13  ;;  %v4039_v36 = vld [vmem:[%s6084_s1 + $0x94] ss:$8 sps:$4 sm:$0xff]   ;;  %v4043_v38 = vld [vmem:[%s6084_s1 + $0x90] ss:$8 sps:$4 sm:$0xff]   ;;  %v4045_v40 = vld [vmem:[%s6084_s1 + $0xa4] ss:$8 sps:$4 sm:$0xff]  }
   0xe   :  { %v4041_v37 = vld [vmem:[%s6084_s1 + $0x794] ss:$8 sps:$4 sm:$0xff]   ;;  %v4044_v39 = vld [vmem:[%s6084_s1 + $0x790] ss:$8 sps:$4 sm:$0xff]   ;;  %v4047_v41 = vld [vmem:[%s6084_s1 + $0x7a4] ss:$8 sps:$4 sm:$0xff]  }
   0xf   :  { %2777 = vmatpush1.bf16.msra.mxu1 %v4007_v14  ;;  %v4049_v42 = vld [vmem:[%s6084_s1 + $0xa0] ss:$8 sps:$4 sm:$0xff]   ;;  %v4051_v44 = vld [vmem:[%s6084_s1 + $0xb4] ss:$8 sps:$4 sm:$0xff]   ;;  %v4055_v46 = vld [vmem:[%s6084_s1 + $0xb0] ss:$8 sps:$4 sm:$0xff]  }
  0x10   :  { %3078 = vmatpush1.bf16.msra.mxu0 %v4008_v15  ;;  %2778 = vmatprep.subr.bf16.mxu1 %v4009_v16  ;;  %v4050_v43 = vld [vmem:[%s6084_s1 + $0x7a0] ss:$8 sps:$4 sm:$0xff]   ;;  %v4053_v45 = vld [vmem:[%s6084_s1 + $0x7b4] ss:$8 sps:$4 sm:$0xff]   ;;  %v4056_v47 = vld [vmem:[%s6084_s1 + $0x7b0] ss:$8 sps:$4 sm:$0xff]  }
  0x11   :  { %3079 = vmatprep.subr.bf16.mxu0 %v4011_v17  ;;  %v4083_v48 = vld [vmem:[%s6085_s0 + $0x4] ss:$108 sps:$4 sm:$0xff]   ;;  %v4089_v51 = vld [vmem:[%s6085_s0 + $0x3c] ss:$108 sps:$4 sm:$0xff]   ;;  %v4081_v4 = vld [vmem:[%s6085_s0] ss:$108 sps:$4 sm:$0xff]  }
  0x12   :  { %v4057_v49 = vld [vmem:[%s6084_s1 + $0xc4] ss:$8 sps:$4 sm:$0xff]   ;;  %2802 = vmatprep.mubr.bf16.mxu1 %v4083_v48  ;;  %v4061_v52 = vld [vmem:[%s6084_s1 + $0xc0] ss:$8 sps:$4 sm:$0xff]   ;;  %v4063_v54 = vld [vmem:[%s6084_s1 + $0xd4] ss:$8 sps:$4 sm:$0xff]   ;;  %3103 = vmatprep.mubr.bf16.mxu0 %v4089_v51 }
  0x13   :  { %2779 = vmatpush1.bf16.msra.mxu1 %v4013_v18  ;;  %v4059_v50 = vld [vmem:[%s6084_s1 + $0x7c4] ss:$8 sps:$4 sm:$0xff]   ;;  %v4062_v53 = vld [vmem:[%s6084_s1 + $0x7c0] ss:$8 sps:$4 sm:$0xff]   ;;  %v4065_v55 = vld [vmem:[%s6084_s1 + $0x7d4] ss:$8 sps:$4 sm:$0xff]  }
  0x14   :  { %3080 = vmatpush1.bf16.msra.mxu0 %v4014_v19  ;;  %2780 = vmatprep.subr.bf16.mxu1 %v4015_v20  ;;  %v4067_v56 = vld [vmem:[%s6084_s1 + $0xd0] ss:$8 sps:$4 sm:$0xff]   ;;  %v4069_v58 = vld [vmem:[%s6084_s1 + $0xe4] ss:$8 sps:$4 sm:$0xff]   ;;  %v4073_v60 = vld [vmem:[%s6084_s1 + $0xe0] ss:$8 sps:$4 sm:$0xff]  }
  0x15   :  { %3081 = vmatprep.subr.bf16.mxu0 %v4017_v21  ;;  %v4068_v57 = vld [vmem:[%s6084_s1 + $0x7d0] ss:$8 sps:$4 sm:$0xff]   ;;  %v4071_v59 = vld [vmem:[%s6084_s1 + $0x7e4] ss:$8 sps:$4 sm:$0xff]   ;;  %v4074_v61 = vld [vmem:[%s6084_s1 + $0x7e0] ss:$8 sps:$4 sm:$0xff]  }
  0x16   :  { %v4075_v62 = vld [vmem:[%s6084_s1 + $0xf4] ss:$8 sps:$4 sm:$0xff]   ;;  %v4079_v0 = vld [vmem:[%s6084_s1 + $0xf0] ss:$8 sps:$4 sm:$0xff]   ;;  %v4086_v2 = vld [vmem:[%s6084_s1 + $0x104] ss:$8 sps:$4 sm:$0xff]  }
  0x17   :  { %2781 = vmatpush1.bf16.msra.mxu1 %v4019_v22  ;;  %v4077_v63 = vld [vmem:[%s6084_s1 + $0x7f4] ss:$8 sps:$4 sm:$0xff]   ;;  %v4080_v1 = vld [vmem:[%s6084_s1 + $0x7f0] ss:$8 sps:$4 sm:$0xff]   ;;  %v4092_v3 = vld [vmem:[%s6084_s1 + $0x804] ss:$8 sps:$4 sm:$0xff]  }
  0x18   :  { %3082 = vmatpush1.bf16.msra.mxu0 %v4020_v23  ;;  %2782 = vmatprep.subr.bf16.mxu1 %v4021_v24  ;;  %v4084_v5 = vld [vmem:[%s6084_s1 + $0x100] ss:$8 sps:$4 sm:$0xff]   ;;  %v4087_v6 = vld [vmem:[%s6085_s0 + $0x38] ss:$108 sps:$4 sm:$0xff]   ;;  %v4095_v8 = vld [vmem:[%s6084_s1 + $0x114] ss:$8 sps:$4 sm:$0xff]  }
  0x19   :  { %3083 = vmatprep.subr.bf16.mxu0 %v4023_v25  ;;  %v4090_v7 = vld [vmem:[%s6084_s1 + $0x800] ss:$8 sps:$4 sm:$0xff]   ;;  %v4098_v9 = vld [vmem:[%s6084_s1 + $0x814] ss:$8 sps:$4 sm:$0xff]   ;;  %v4093_v10 = vld [vmem:[%s6084_s1 + $0x110] ss:$8 sps:$4 sm:$0xff]  }
  0x1a   :  { %v4096_v11 = vld [vmem:[%s6084_s1 + $0x810] ss:$8 sps:$4 sm:$0xff]   ;;  %v4101_v12 = vld [vmem:[%s6084_s1 + $0x124] ss:$8 sps:$4 sm:$0xff]   ;;  %v4099_v14 = vld [vmem:[%s6084_s1 + $0x120] ss:$8 sps:$4 sm:$0xff]  }
  0x1b   :  { %2783 = vmatpush1.bf16.msra.mxu1 %v4025_v26  ;;  %v4104_v13 = vld [vmem:[%s6084_s1 + $0x824] ss:$8 sps:$4 sm:$0xff]   ;;  %v4102_v15 = vld [vmem:[%s6084_s1 + $0x820] ss:$8 sps:$4 sm:$0xff]   ;;  %v4107_v16 = vld [vmem:[%s6084_s1 + $0x134] ss:$8 sps:$4 sm:$0xff]  }
  0x1c   :  { %3084 = vmatpush1.bf16.msra.mxu0 %v4026_v27  ;;  %2784 = vmatprep.subr.bf16.mxu1 %v4027_v28  ;;  %v4110_v17 = vld [vmem:[%s6084_s1 + $0x834] ss:$8 sps:$4 sm:$0xff]   ;;  %v4105_v18 = vld [vmem:[%s6084_s1 + $0x130] ss:$8 sps:$4 sm:$0xff]   ;;  %v4113_v20 = vld [vmem:[%s6084_s1 + $0x144] ss:$8 sps:$4 sm:$0xff]  }
  0x1d   :  { %3085 = vmatprep.subr.bf16.mxu0 %v4029_v29  ;;  %v4108_v19 = vld [vmem:[%s6084_s1 + $0x830] ss:$8 sps:$4 sm:$0xff]   ;;  %v4116_v21 = vld [vmem:[%s6084_s1 + $0x844] ss:$8 sps:$4 sm:$0xff]   ;;  %v4111_v22 = vld [vmem:[%s6084_s1 + $0x140] ss:$8 sps:$4 sm:$0xff]  }
  0x1e   :  { %v4114_v23 = vld [vmem:[%s6084_s1 + $0x840] ss:$8 sps:$4 sm:$0xff]   ;;  %v4119_v24 = vld [vmem:[%s6084_s1 + $0x154] ss:$8 sps:$4 sm:$0xff]   ;;  %v4117_v26 = vld [vmem:[%s6084_s1 + $0x150] ss:$8 sps:$4 sm:$0xff]  }
  0x1f   :  { %2785 = vmatpush1.bf16.msra.mxu1 %v4031_v30  ;;  %v4122_v25 = vld [vmem:[%s6084_s1 + $0x854] ss:$8 sps:$4 sm:$0xff]   ;;  %v4120_v27 = vld [vmem:[%s6084_s1 + $0x850] ss:$8 sps:$4 sm:$0xff]   ;;  %v4125_v28 = vld [vmem:[%s6084_s1 + $0x164] ss:$8 sps:$4 sm:$0xff]  }
  0x20   :  { %3086 = vmatpush1.bf16.msra.mxu0 %v4032_v31  ;;  %2786 = vmatprep.subr.bf16.mxu1 %v4033_v32  ;;  %v4128_v29 = vld [vmem:[%s6084_s1 + $0x864] ss:$8 sps:$4 sm:$0xff]   ;;  %v4123_v30 = vld [vmem:[%s6084_s1 + $0x160] ss:$8 sps:$4 sm:$0xff]   ;;  %v4131_v32 = vld [vmem:[%s6084_s1 + $0x174] ss:$8 sps:$4 sm:$0xff]  }
  0x21   :  { %3087 = vmatprep.subr.bf16.mxu0 %v4035_v33  ;;  %v4126_v31 = vld [vmem:[%s6084_s1 + $0x860] ss:$8 sps:$4 sm:$0xff]   ;;  %v4134_v33 = vld [vmem:[%s6084_s1 + $0x874] ss:$8 sps:$4 sm:$0xff]  }
  0x22   :  { %v4147_v48 = vld [vmem:[%s6084_s1 + $0x1a0] ss:$8 sps:$4 sm:$0xff]   ;;  %v4158_v51 = vld [vmem:[%s6084_s1 + $0x8b4] ss:$8 sps:$4 sm:$0xff]  }
  0x23   :  { %2787 = vmatpush1.bf16.msra.mxu1 %v4037_v34  ;;  %v4185_v34 = vld [vmem:[%s6085_s0 + $0xc] ss:$108 sps:$4 sm:$0xff]  }
  0x24   :  { %3088 = vmatpush1.bf16.msra.mxu0 %v4038_v35  ;;  %2788 = vmatprep.subr.bf16.mxu1 %v4039_v36  ;;  %v4129_v35 = vld [vmem:[%s6084_s1 + $0x170] ss:$8 sps:$4 sm:$0xff]  }
  0x25   :  { %3089 = vmatprep.subr.bf16.mxu0 %v4041_v37  ;;  %v4132_v36 = vld [vmem:[%s6084_s1 + $0x870] ss:$8 sps:$4 sm:$0xff]  }
  0x26   :  { %v4191_v37 = vld [vmem:[%s6085_s0 + $0x44] ss:$108 sps:$4 sm:$0xff]  }
  0x27   :  { %2789 = vmatpush1.bf16.msra.mxu1 %v4043_v38  ;;  %v4137_v38 = vld [vmem:[%s6084_s1 + $0x184] ss:$8 sps:$4 sm:$0xff]  }
  0x28   :  { %3090 = vmatpush1.bf16.msra.mxu0 %v4044_v39  ;;  %2790 = vmatprep.subr.bf16.mxu1 %v4045_v40  ;;  %v4140_v39 = vld [vmem:[%s6084_s1 + $0x884] ss:$8 sps:$4 sm:$0xff]   ;;  %v4135_v40 = vld [vmem:[%s6084_s1 + $0x180] ss:$8 sps:$4 sm:$0xff]  }
  0x29   :  { %3091 = vmatprep.subr.bf16.mxu0 %v4047_v41  ;;  %v4138_v41 = vld [vmem:[%s6084_s1 + $0x880] ss:$8 sps:$4 sm:$0xff]  }
  0x2b   :  { %2791 = vmatpush1.bf16.msra.mxu1 %v4049_v42  ;;  %v4143_v42 = vld [vmem:[%s6084_s1 + $0x194] ss:$8 sps:$4 sm:$0xff]  }
  0x2c   :  { %3092 = vmatpush1.bf16.msra.mxu0 %v4050_v43  ;;  %2792 = vmatprep.subr.bf16.mxu1 %v4051_v44  ;;  %v4146_v43 = vld [vmem:[%s6084_s1 + $0x894] ss:$8 sps:$4 sm:$0xff]   ;;  %v4141_v44 = vld [vmem:[%s6084_s1 + $0x190] ss:$8 sps:$4 sm:$0xff]  }
  0x2d   :  { %3093 = vmatprep.subr.bf16.mxu0 %v4053_v45  ;;  %v4144_v45 = vld [vmem:[%s6084_s1 + $0x890] ss:$8 sps:$4 sm:$0xff]  }
  0x2f   :  { %2793 = vmatpush1.bf16.msra.mxu1 %v4055_v46  ;;  %v4149_v46 = vld [vmem:[%s6084_s1 + $0x1a4] ss:$8 sps:$4 sm:$0xff]  }
  0x30   :  { %3094 = vmatpush1.bf16.msra.mxu0 %v4056_v47  ;;  %2794 = vmatprep.subr.bf16.mxu1 %v4057_v49  ;;  %v4152_v47 = vld [vmem:[%s6084_s1 + $0x8a4] ss:$8 sps:$4 sm:$0xff]   ;;  %v4150_v49 = vld [vmem:[%s6084_s1 + $0x8a0] ss:$8 sps:$4 sm:$0xff]  }
  0x31   :  { %3095 = vmatprep.subr.bf16.mxu0 %v4059_v50  ;;  %v4155_v50 = vld [vmem:[%s6084_s1 + $0x1b4] ss:$8 sps:$4 sm:$0xff]  }
  0x33   :  { %2795 = vmatpush1.bf16.msra.mxu1 %v4061_v52  ;;  %v4153_v52 = vld [vmem:[%s6084_s1 + $0x1b0] ss:$8 sps:$4 sm:$0xff]  }
  0x34   :  { %3096 = vmatpush1.bf16.msra.mxu0 %v4062_v53  ;;  %2796 = vmatprep.subr.bf16.mxu1 %v4063_v54  ;;  %v4156_v53 = vld [vmem:[%s6084_s1 + $0x8b0] ss:$8 sps:$4 sm:$0xff]   ;;  %v4161_v54 = vld [vmem:[%s6084_s1 + $0x1c4] ss:$8 sps:$4 sm:$0xff]  }
  0x35   :  { %3097 = vmatprep.subr.bf16.mxu0 %v4065_v55  ;;  %v4164_v55 = vld [vmem:[%s6084_s1 + $0x8c4] ss:$8 sps:$4 sm:$0xff]  }
  0x37   :  { %2797 = vmatpush1.bf16.msra.mxu1 %v4067_v56  ;;  %v4159_v56 = vld [vmem:[%s6084_s1 + $0x1c0] ss:$8 sps:$4 sm:$0xff]  }
  0x38   :  { %3098 = vmatpush1.bf16.msra.mxu0 %v4068_v57  ;;  %2798 = vmatprep.subr.bf16.mxu1 %v4069_v58  ;;  %v4162_v57 = vld [vmem:[%s6084_s1 + $0x8c0] ss:$8 sps:$4 sm:$0xff]   ;;  %v4167_v58 = vld [vmem:[%s6084_s1 + $0x1d4] ss:$8 sps:$4 sm:$0xff]  }
  0x39   :  { %3099 = vmatprep.subr.bf16.mxu0 %v4071_v59  ;;  %v4170_v59 = vld [vmem:[%s6084_s1 + $0x8d4] ss:$8 sps:$4 sm:$0xff]  }
  0x3b   :  { %2799 = vmatpush1.bf16.msra.mxu1 %v4073_v60  ;;  %v4165_v60 = vld [vmem:[%s6084_s1 + $0x1d0] ss:$8 sps:$4 sm:$0xff]  }
  0x3c   :  { %3100 = vmatpush1.bf16.msra.mxu0 %v4074_v61  ;;  %2800 = vmatprep.subr.bf16.mxu1 %v4075_v62  ;;  %v4168_v61 = vld [vmem:[%s6084_s1 + $0x8d0] ss:$8 sps:$4 sm:$0xff]   ;;  %v4173_v62 = vld [vmem:[%s6084_s1 + $0x1e4] ss:$8 sps:$4 sm:$0xff]  }
  0x3d   :  { %3101 = vmatprep.subr.bf16.mxu0 %v4077_v63  ;;  %v4176_v63 = vld [vmem:[%s6084_s1 + $0x8e4] ss:$8 sps:$4 sm:$0xff]  }
  0x3f   :  { %2801 = vmatpush1.bf16.msra.mxu1 %v4079_v0  ;;  %v4171_v0 = vld [vmem:[%s6084_s1 + $0x1e0] ss:$8 sps:$4 sm:$0xff]  }
  0x40   :  { %3102 = vmatpush1.bf16.msra.mxu0 %v4080_v1  ;;  %2813 = vmatprep.subr.bf16.mxu1 %v4086_v2  ;;  %v4174_v1 = vld [vmem:[%s6084_s1 + $0x8e0] ss:$8 sps:$4 sm:$0xff]   ;;  %v4179_v2 = vld [vmem:[%s6084_s1 + $0x1f4] ss:$8 sps:$4 sm:$0xff]  }
  0x41   :  { %3114 = vmatprep.subr.bf16.mxu0 %v4092_v3  ;;  %v4182_v3 = vld [vmem:[%s6084_s1 + $0x8f4] ss:$8 sps:$4 sm:$0xff]  }
  0x42   :  { %2803 = vmatmul.mubr.bf16.vlgmr.msra.gmra.mrb[0].mxu1 %v4081_v4  ;;  %v4177_v4 = vld [vmem:[%s6084_s1 + $0x1f0] ss:$8 sps:$4 sm:$0xff]  }
  0x43   :  { %3104 = vmatmul.mubr.bf16.vlgmr.msra.gmra.mrb[0].mxu0 %v4087_v6  ;;  %2814 = vmatpush1.bf16.msra.mxu1 %v4084_v5  ;;  %v4180_v5 = vld [vmem:[%s6084_s1 + $0x8f0] ss:$8 sps:$4 sm:$0xff]   ;;  %v4188_v6 = vld [vmem:[%s6084_s1 + $0x204] ss:$8 sps:$4 sm:$0xff]  }
  0x44   :  { %3115 = vmatpush1.bf16.msra.mxu0 %v4090_v7  ;;  %2815 = vmatprep.subr.bf16.mxu1 %v4095_v8  ;;  %v4194_v7 = vld [vmem:[%s6084_s1 + $0x904] ss:$8 sps:$4 sm:$0xff]   ;;  %v4183_v8 = vld [vmem:[%s6085_s0 + $0x8] ss:$108 sps:$4 sm:$0xff]  }
  0x45   :  { %3116 = vmatprep.subr.bf16.mxu0 %v4098_v9  ;;  %2845 = vmatprep.mubr.bf16.mxu1 %v4185_v34  ;;  %v4186_v9 = vld [vmem:[%s6084_s1 + $0x200] ss:$8 sps:$4 sm:$0xff]   ;;  %v4227_v34 = vld [vmem:[%s6084_s1 + $0x264] ss:$8 sps:$4 sm:$0xff]  }
  0x46   :  { %3146 = vmatprep.mubr.bf16.mxu0 %v4191_v37  ;;  %v4228_v37 = vld [vmem:[%s6084_s1 + $0x960] ss:$8 sps:$4 sm:$0xff]  }
  0x47   :  { %2816 = vmatpush1.bf16.msra.mxu1 %v4093_v10  ;;  %v4189_v10 = vld [vmem:[%s6085_s0 + $0x40] ss:$108 sps:$4 sm:$0xff]  }
  0x48   :  { %3117 = vmatpush1.bf16.msra.mxu0 %v4096_v11  ;;  %2817 = vmatprep.subr.bf16.mxu1 %v4101_v12  ;;  %v4192_v11 = vld [vmem:[%s6084_s1 + $0x900] ss:$8 sps:$4 sm:$0xff]   ;;  %v4197_v12 = vld [vmem:[%s6084_s1 + $0x214] ss:$8 sps:$4 sm:$0xff]  }
  0x49   :  { %3118 = vmatprep.subr.bf16.mxu0 %v4104_v13  ;;  %v4200_v13 = vld [vmem:[%s6084_s1 + $0x914] ss:$8 sps:$4 sm:$0xff]  }
  0x4b   :  { %2818 = vmatpush1.bf16.msra.mxu1 %v4099_v14  ;;  %v4195_v14 = vld [vmem:[%s6084_s1 + $0x210] ss:$8 sps:$4 sm:$0xff]  }
  0x4c   :  { %3119 = vmatpush1.bf16.msra.mxu0 %v4102_v15  ;;  %2819 = vmatprep.subr.bf16.mxu1 %v4107_v16  ;;  %v4198_v15 = vld [vmem:[%s6084_s1 + $0x910] ss:$8 sps:$4 sm:$0xff]   ;;  %v4203_v16 = vld [vmem:[%s6084_s1 + $0x224] ss:$8 sps:$4 sm:$0xff]  }
  0x4d   :  { %3120 = vmatprep.subr.bf16.mxu0 %v4110_v17  ;;  %v4206_v17 = vld [vmem:[%s6084_s1 + $0x924] ss:$8 sps:$4 sm:$0xff]  }
  0x4f   :  { %2820 = vmatpush1.bf16.msra.mxu1 %v4105_v18  ;;  %v4201_v18 = vld [vmem:[%s6084_s1 + $0x220] ss:$8 sps:$4 sm:$0xff]  }
  0x50   :  { %3121 = vmatpush1.bf16.msra.mxu0 %v4108_v19  ;;  %2821 = vmatprep.subr.bf16.mxu1 %v4113_v20  ;;  %v4287_v19 = vld [vmem:[%s6085_s0 + $0x14] ss:$108 sps:$4 sm:$0xff]  }
  0x51   :  { %3122 = vmatprep.subr.bf16.mxu0 %v4116_v21  ;;  %v4204_v20 = vld [vmem:[%s6084_s1 + $0x920] ss:$8 sps:$4 sm:$0xff]   ;;  %v4209_v21 = vld [vmem:[%s6084_s1 + $0x234] ss:$8 sps:$4 sm:$0xff]  }
  0x53   :  { %2822 = vmatpush1.bf16.msra.mxu1 %v4111_v22  ;;  %v4212_v22 = vld [vmem:[%s6084_s1 + $0x934] ss:$8 sps:$4 sm:$0xff]  }
  0x54   :  { %3123 = vmatpush1.bf16.msra.mxu0 %v4114_v23  ;;  %2823 = vmatprep.subr.bf16.mxu1 %v4119_v24  ;;  %v4293_v23 = vld [vmem:[%s6085_s0 + $0x4c] ss:$108 sps:$4 sm:$0xff]  }
  0x55   :  { %3124 = vmatprep.subr.bf16.mxu0 %v4122_v25  ;;  %v4207_v24 = vld [vmem:[%s6084_s1 + $0x230] ss:$8 sps:$4 sm:$0xff]  }
  0x56   :  { %v4210_v25 = vld [vmem:[%s6084_s1 + $0x930] ss:$8 sps:$4 sm:$0xff]  }
  0x57   :  { %2824 = vmatpush1.bf16.msra.mxu1 %v4117_v26  ;;  %v4215_v26 = vld [vmem:[%s6084_s1 + $0x244] ss:$8 sps:$4 sm:$0xff]  }
  0x58   :  { %3125 = vmatpush1.bf16.msra.mxu0 %v4120_v27  ;;  %2825 = vmatprep.subr.bf16.mxu1 %v4125_v28  ;;  %v4218_v27 = vld [vmem:[%s6084_s1 + $0x944] ss:$8 sps:$4 sm:$0xff]   ;;  %v4213_v28 = vld [vmem:[%s6084_s1 + $0x240] ss:$8 sps:$4 sm:$0xff]  }
  0x59   :  { %3126 = vmatprep.subr.bf16.mxu0 %v4128_v29  ;;  %v4216_v29 = vld [vmem:[%s6084_s1 + $0x940] ss:$8 sps:$4 sm:$0xff]  }
  0x5b   :  { %2826 = vmatpush1.bf16.msra.mxu1 %v4123_v30  ;;  %v4221_v30 = vld [vmem:[%s6084_s1 + $0x254] ss:$8 sps:$4 sm:$0xff]  }
  0x5c   :  { %3127 = vmatpush1.bf16.msra.mxu0 %v4126_v31  ;;  %2827 = vmatprep.subr.bf16.mxu1 %v4131_v32  ;;  %v4224_v31 = vld [vmem:[%s6084_s1 + $0x954] ss:$8 sps:$4 sm:$0xff]   ;;  %v4219_v32 = vld [vmem:[%s6084_s1 + $0x250] ss:$8 sps:$4 sm:$0xff]  }
  0x5d   :  { %3128 = vmatprep.subr.bf16.mxu0 %v4134_v33  ;;  %v4222_v33 = vld [vmem:[%s6084_s1 + $0x950] ss:$8 sps:$4 sm:$0xff]  }
  0x5f   :  { %2828 = vmatpush1.bf16.msra.mxu1 %v4129_v35  ;;  %v4230_v35 = vld [vmem:[%s6084_s1 + $0x964] ss:$8 sps:$4 sm:$0xff]  }
  0x60   :  { %3129 = vmatpush1.bf16.msra.mxu0 %v4132_v36  ;;  %2829 = vmatprep.subr.bf16.mxu1 %v4137_v38  ;;  %v4225_v36 = vld [vmem:[%s6084_s1 + $0x260] ss:$8 sps:$4 sm:$0xff]   ;;  %v4233_v38 = vld [vmem:[%s6084_s1 + $0x274] ss:$8 sps:$4 sm:$0xff]  }
  0x61   :  { %3130 = vmatprep.subr.bf16.mxu0 %v4140_v39  ;;  %v4236_v39 = vld [vmem:[%s6084_s1 + $0x974] ss:$8 sps:$4 sm:$0xff]  }
  0x63   :  { %2830 = vmatpush1.bf16.msra.mxu1 %v4135_v40  ;;  %v4231_v40 = vld [vmem:[%s6084_s1 + $0x270] ss:$8 sps:$4 sm:$0xff]  }
  0x64   :  { %3131 = vmatpush1.bf16.msra.mxu0 %v4138_v41  ;;  %2831 = vmatprep.subr.bf16.mxu1 %v4143_v42  ;;  %v4234_v41 = vld [vmem:[%s6084_s1 + $0x970] ss:$8 sps:$4 sm:$0xff]   ;;  %v4239_v42 = vld [vmem:[%s6084_s1 + $0x284] ss:$8 sps:$4 sm:$0xff]  }
  0x65   :  { %3132 = vmatprep.subr.bf16.mxu0 %v4146_v43  ;;  %v4242_v43 = vld [vmem:[%s6084_s1 + $0x984] ss:$8 sps:$4 sm:$0xff]  }
  0x67   :  { %2832 = vmatpush1.bf16.msra.mxu1 %v4141_v44  ;;  %v4237_v44 = vld [vmem:[%s6084_s1 + $0x280] ss:$8 sps:$4 sm:$0xff]  }
  0x68   :  { %3133 = vmatpush1.bf16.msra.mxu0 %v4144_v45  ;;  %2833 = vmatprep.subr.bf16.mxu1 %v4149_v46  ;;  %v4240_v45 = vld [vmem:[%s6084_s1 + $0x980] ss:$8 sps:$4 sm:$0xff]   ;;  %v4245_v46 = vld [vmem:[%s6084_s1 + $0x294] ss:$8 sps:$4 sm:$0xff]  }
  0x69   :  { %3134 = vmatprep.subr.bf16.mxu0 %v4152_v47  ;;  %v4248_v47 = vld [vmem:[%s6084_s1 + $0x994] ss:$8 sps:$4 sm:$0xff]  }
  0x6b   :  { %2834 = vmatpush1.bf16.msra.mxu1 %v4147_v48  ;;  %v4243_v48 = vld [vmem:[%s6084_s1 + $0x290] ss:$8 sps:$4 sm:$0xff]  }
  0x6c   :  { %3135 = vmatpush1.bf16.msra.mxu0 %v4150_v49  ;;  %2835 = vmatprep.subr.bf16.mxu1 %v4155_v50  ;;  %v4246_v49 = vld [vmem:[%s6084_s1 + $0x990] ss:$8 sps:$4 sm:$0xff]   ;;  %v4251_v50 = vld [vmem:[%s6084_s1 + $0x2a4] ss:$8 sps:$4 sm:$0xff]  }
  0x6d   :  { %3136 = vmatprep.subr.bf16.mxu0 %v4158_v51  ;;  %v4254_v51 = vld [vmem:[%s6084_s1 + $0x9a4] ss:$8 sps:$4 sm:$0xff]  }
  0x6f   :  { %2836 = vmatpush1.bf16.msra.mxu1 %v4153_v52  ;;  %v4249_v52 = vld [vmem:[%s6084_s1 + $0x2a0] ss:$8 sps:$4 sm:$0xff]  }
  0x70   :  { %3137 = vmatpush1.bf16.msra.mxu0 %v4156_v53  ;;  %2837 = vmatprep.subr.bf16.mxu1 %v4161_v54  ;;  %v4252_v53 = vld [vmem:[%s6084_s1 + $0x9a0] ss:$8 sps:$4 sm:$0xff]   ;;  %v4257_v54 = vld [vmem:[%s6084_s1 + $0x2b4] ss:$8 sps:$4 sm:$0xff]  }
  0x71   :  { %3138 = vmatprep.subr.bf16.mxu0 %v4164_v55  ;;  %v4260_v55 = vld [vmem:[%s6084_s1 + $0x9b4] ss:$8 sps:$4 sm:$0xff]  }
  0x73   :  { %2838 = vmatpush1.bf16.msra.mxu1 %v4159_v56  ;;  %v4255_v56 = vld [vmem:[%s6084_s1 + $0x2b0] ss:$8 sps:$4 sm:$0xff]  }
  0x74   :  { %3139 = vmatpush1.bf16.msra.mxu0 %v4162_v57  ;;  %2839 = vmatprep.subr.bf16.mxu1 %v4167_v58  ;;  %v4258_v57 = vld [vmem:[%s6084_s1 + $0x9b0] ss:$8 sps:$4 sm:$0xff]   ;;  %v4263_v58 = vld [vmem:[%s6084_s1 + $0x2c4] ss:$8 sps:$4 sm:$0xff]  }
  0x75   :  { %3140 = vmatprep.subr.bf16.mxu0 %v4170_v59  ;;  %v4266_v59 = vld [vmem:[%s6084_s1 + $0x9c4] ss:$8 sps:$4 sm:$0xff]  }
  0x77   :  { %2840 = vmatpush1.bf16.msra.mxu1 %v4165_v60  ;;  %v4261_v60 = vld [vmem:[%s6084_s1 + $0x2c0] ss:$8 sps:$4 sm:$0xff]  }
  0x78   :  { %3141 = vmatpush1.bf16.msra.mxu0 %v4168_v61  ;;  %2841 = vmatprep.subr.bf16.mxu1 %v4173_v62  ;;  %v4264_v61 = vld [vmem:[%s6084_s1 + $0x9c0] ss:$8 sps:$4 sm:$0xff]   ;;  %v4269_v62 = vld [vmem:[%s6084_s1 + $0x2d4] ss:$8 sps:$4 sm:$0xff]  }
  0x79   :  { %3142 = vmatprep.subr.bf16.mxu0 %v4176_v63  ;;  %v4272_v63 = vld [vmem:[%s6084_s1 + $0x9d4] ss:$8 sps:$4 sm:$0xff]  }
  0x7b   :  { %2842 = vmatpush1.bf16.msra.mxu1 %v4171_v0  ;;  %v4267_v0 = vld [vmem:[%s6084_s1 + $0x2d0] ss:$8 sps:$4 sm:$0xff]  }
  0x7c   :  { %3143 = vmatpush1.bf16.msra.mxu0 %v4174_v1  ;;  %2843 = vmatprep.subr.bf16.mxu1 %v4179_v2  ;;  %v4270_v1 = vld [vmem:[%s6084_s1 + $0x9d0] ss:$8 sps:$4 sm:$0xff]   ;;  %v4275_v2 = vld [vmem:[%s6084_s1 + $0x2e4] ss:$8 sps:$4 sm:$0xff]  }
  0x7d   :  { %3144 = vmatprep.subr.bf16.mxu0 %v4182_v3  ;;  %v4278_v3 = vld [vmem:[%s6084_s1 + $0x9e4] ss:$8 sps:$4 sm:$0xff]  }
  0x7f   :  { %2844 = vmatpush1.bf16.msra.mxu1 %v4177_v4  ;;  %v4273_v4 = vld [vmem:[%s6084_s1 + $0x2e0] ss:$8 sps:$4 sm:$0xff]  }
  0x80   :  { %3145 = vmatpush1.bf16.msra.mxu0 %v4180_v5  ;;  %2856 = vmatprep.subr.bf16.mxu1 %v4188_v6  ;;  %v4276_v5 = vld [vmem:[%s6084_s1 + $0x9e0] ss:$8 sps:$4 sm:$0xff]   ;;  %v4281_v6 = vld [vmem:[%s6084_s1 + $0x2f4] ss:$8 sps:$4 sm:$0xff]  }
  0x81   :  { %3157 = vmatprep.subr.bf16.mxu0 %v4194_v7  ;;  %v4284_v7 = vld [vmem:[%s6084_s1 + $0x9f4] ss:$8 sps:$4 sm:$0xff]  }
  0x82   :  { %2846 = vmatmul.mubr.bf16.vlgmr.msra.gmra.mrb[0].mxu1 %v4183_v8  ;;  %v4279_v8 = vld [vmem:[%s6084_s1 + $0x2f0] ss:$8 sps:$4 sm:$0xff]  }
  0x83   :  { %3147 = vmatmul.mubr.bf16.vlgmr.msra.gmra.mrb[0].mxu0 %v4189_v10  ;;  %2857 = vmatpush1.bf16.msra.mxu1 %v4186_v9  ;;  %v4282_v9 = vld [vmem:[%s6084_s1 + $0x9f0] ss:$8 sps:$4 sm:$0xff]   ;;  %v4290_v10 = vld [vmem:[%s6084_s1 + $0x304] ss:$8 sps:$4 sm:$0xff]  }
  0x84   :  { %3158 = vmatpush1.bf16.msra.mxu0 %v4192_v11  ;;  %2858 = vmatprep.subr.bf16.mxu1 %v4197_v12  ;;  %v4296_v11 = vld [vmem:[%s6084_s1 + $0xa04] ss:$8 sps:$4 sm:$0xff]   ;;  %v4285_v12 = vld [vmem:[%s6085_s0 + $0x10] ss:$108 sps:$4 sm:$0xff]  }
  0x85   :  { %3159 = vmatprep.subr.bf16.mxu0 %v4200_v13  ;;  %2888 = vmatprep.mubr.bf16.mxu1 %v4287_v19  ;;  %v4288_v13 = vld [vmem:[%s6084_s1 + $0x300] ss:$8 sps:$4 sm:$0xff]  }
  0x86   :  { %3189 = vmatprep.mubr.bf16.mxu0 %v4293_v23  ;;  %v4395_v19 = vld [vmem:[%s6085_s0 + $0x54] ss:$108 sps:$4 sm:$0xff]   ;;  %v4308_v23 = vld [vmem:[%s6084_s1 + $0xa24] ss:$8 sps:$4 sm:$0xff]  }
  0x87   :  { %2859 = vmatpush1.bf16.msra.mxu1 %v4195_v14  ;;  %v4291_v14 = vld [vmem:[%s6085_s0 + $0x48] ss:$108 sps:$4 sm:$0xff]  }
  0x88   :  { %3160 = vmatpush1.bf16.msra.mxu0 %v4198_v15  ;;  %2860 = vmatprep.subr.bf16.mxu1 %v4203_v16  ;;  %v4294_v15 = vld [vmem:[%s6084_s1 + $0xa00] ss:$8 sps:$4 sm:$0xff]   ;;  %v4299_v16 = vld [vmem:[%s6084_s1 + $0x314] ss:$8 sps:$4 sm:$0xff]  }
  0x89   :  { %3161 = vmatprep.subr.bf16.mxu0 %v4206_v17  ;;  %v4302_v17 = vld [vmem:[%s6084_s1 + $0xa14] ss:$8 sps:$4 sm:$0xff]  }
  0x8b   :  { %2861 = vmatpush1.bf16.msra.mxu1 %v4201_v18  ;;  %v4389_v18 = vld [vmem:[%s6085_s0 + $0x1c] ss:$108 sps:$4 sm:$0xff]  }
  0x8c   :  { %3162 = vmatpush1.bf16.msra.mxu0 %v4204_v20  ;;  %2862 = vmatprep.subr.bf16.mxu1 %v4209_v21  ;;  %v4297_v20 = vld [vmem:[%s6084_s1 + $0x310] ss:$8 sps:$4 sm:$0xff]  }
  0x8d   :  { %3163 = vmatprep.subr.bf16.mxu0 %v4212_v22  ;;  %v4300_v21 = vld [vmem:[%s6084_s1 + $0xa10] ss:$8 sps:$4 sm:$0xff]   ;;  %v4305_v22 = vld [vmem:[%s6084_s1 + $0x324] ss:$8 sps:$4 sm:$0xff]  }
  0x8f   :  { %2863 = vmatpush1.bf16.msra.mxu1 %v4207_v24  ;;  %v4303_v24 = vld [vmem:[%s6084_s1 + $0x320] ss:$8 sps:$4 sm:$0xff]  }
  0x90   :  { %3164 = vmatpush1.bf16.msra.mxu0 %v4210_v25  ;;  %2864 = vmatprep.subr.bf16.mxu1 %v4215_v26  ;;  %v4306_v25 = vld [vmem:[%s6084_s1 + $0xa20] ss:$8 sps:$4 sm:$0xff]   ;;  %v4311_v26 = vld [vmem:[%s6084_s1 + $0x334] ss:$8 sps:$4 sm:$0xff]  }
  0x91   :  { %3165 = vmatprep.subr.bf16.mxu0 %v4218_v27  ;;  %v4314_v27 = vld [vmem:[%s6084_s1 + $0xa34] ss:$8 sps:$4 sm:$0xff]  }
  0x93   :  { %2865 = vmatpush1.bf16.msra.mxu1 %v4213_v28  ;;  %v4309_v28 = vld [vmem:[%s6084_s1 + $0x330] ss:$8 sps:$4 sm:$0xff]  }
  0x94   :  { %3166 = vmatpush1.bf16.msra.mxu0 %v4216_v29  ;;  %2866 = vmatprep.subr.bf16.mxu1 %v4221_v30  ;;  %v4312_v29 = vld [vmem:[%s6084_s1 + $0xa30] ss:$8 sps:$4 sm:$0xff]   ;;  %v4317_v30 = vld [vmem:[%s6084_s1 + $0x344] ss:$8 sps:$4 sm:$0xff]  }
  0x95   :  { %3167 = vmatprep.subr.bf16.mxu0 %v4224_v31  ;;  %v4320_v31 = vld [vmem:[%s6084_s1 + $0xa44] ss:$8 sps:$4 sm:$0xff]  }
  0x97   :  { %2867 = vmatpush1.bf16.msra.mxu1 %v4219_v32  ;;  %v4315_v32 = vld [vmem:[%s6084_s1 + $0x340] ss:$8 sps:$4 sm:$0xff]  }
  0x98   :  { %3168 = vmatpush1.bf16.msra.mxu0 %v4222_v33  ;;  %2868 = vmatprep.subr.bf16.mxu1 %v4227_v34  ;;  %v4318_v33 = vld [vmem:[%s6084_s1 + $0xa40] ss:$8 sps:$4 sm:$0xff]   ;;  %v4323_v34 = vld [vmem:[%s6084_s1 + $0x354] ss:$8 sps:$4 sm:$0xff]  }
  0x99   :  { %3169 = vmatprep.subr.bf16.mxu0 %v4230_v35  ;;  %v4326_v35 = vld [vmem:[%s6084_s1 + $0xa54] ss:$8 sps:$4 sm:$0xff]  }
  0x9b   :  { %2869 = vmatpush1.bf16.msra.mxu1 %v4225_v36  ;;  %v4321_v36 = vld [vmem:[%s6084_s1 + $0x350] ss:$8 sps:$4 sm:$0xff]  }
  0x9c   :  { %3170 = vmatpush1.bf16.msra.mxu0 %v4228_v37  ;;  %2870 = vmatprep.subr.bf16.mxu1 %v4233_v38  ;;  %v4324_v37 = vld [vmem:[%s6084_s1 + $0xa50] ss:$8 sps:$4 sm:$0xff]   ;;  %v4329_v38 = vld [vmem:[%s6084_s1 + $0x364] ss:$8 sps:$4 sm:$0xff]  }
  0x9d   :  { %3171 = vmatprep.subr.bf16.mxu0 %v4236_v39  ;;  %v4332_v39 = vld [vmem:[%s6084_s1 + $0xa64] ss:$8 sps:$4 sm:$0xff]  }
  0x9f   :  { %2871 = vmatpush1.bf16.msra.mxu1 %v4231_v40  ;;  %v4327_v40 = vld [vmem:[%s6084_s1 + $0x360] ss:$8 sps:$4 sm:$0xff]  }
  0xa0   :  { %3172 = vmatpush1.bf16.msra.mxu0 %v4234_v41  ;;  %2872 = vmatprep.subr.bf16.mxu1 %v4239_v42  ;;  %v4330_v41 = vld [vmem:[%s6084_s1 + $0xa60] ss:$8 sps:$4 sm:$0xff]   ;;  %v4335_v42 = vld [vmem:[%s6084_s1 + $0x374] ss:$8 sps:$4 sm:$0xff]  }
  0xa1   :  { %3173 = vmatprep.subr.bf16.mxu0 %v4242_v43  ;;  %v4338_v43 = vld [vmem:[%s6084_s1 + $0xa74] ss:$8 sps:$4 sm:$0xff]  }
  0xa3   :  { %2873 = vmatpush1.bf16.msra.mxu1 %v4237_v44  ;;  %v4333_v44 = vld [vmem:[%s6084_s1 + $0x370] ss:$8 sps:$4 sm:$0xff]  }
  0xa4   :  { %3174 = vmatpush1.bf16.msra.mxu0 %v4240_v45  ;;  %2874 = vmatprep.subr.bf16.mxu1 %v4245_v46  ;;  %v4336_v45 = vld [vmem:[%s6084_s1 + $0xa70] ss:$8 sps:$4 sm:$0xff]   ;;  %v4341_v46 = vld [vmem:[%s6084_s1 + $0x384] ss:$8 sps:$4 sm:$0xff]  }
  0xa5   :  { %3175 = vmatprep.subr.bf16.mxu0 %v4248_v47  ;;  %v4344_v47 = vld [vmem:[%s6084_s1 + $0xa84] ss:$8 sps:$4 sm:$0xff]  }
  0xa7   :  { %2875 = vmatpush1.bf16.msra.mxu1 %v4243_v48  ;;  %v4339_v48 = vld [vmem:[%s6084_s1 + $0x380] ss:$8 sps:$4 sm:$0xff]  }
  0xa8   :  { %3176 = vmatpush1.bf16.msra.mxu0 %v4246_v49  ;;  %2876 = vmatprep.subr.bf16.mxu1 %v4251_v50  ;;  %v4342_v49 = vld [vmem:[%s6084_s1 + $0xa80] ss:$8 sps:$4 sm:$0xff]   ;;  %v4347_v50 = vld [vmem:[%s6084_s1 + $0x394] ss:$8 sps:$4 sm:$0xff]  }
  0xa9   :  { %3177 = vmatprep.subr.bf16.mxu0 %v4254_v51  ;;  %v4350_v51 = vld [vmem:[%s6084_s1 + $0xa94] ss:$8 sps:$4 sm:$0xff]  }
  0xab   :  { %2877 = vmatpush1.bf16.msra.mxu1 %v4249_v52  ;;  %v4345_v52 = vld [vmem:[%s6084_s1 + $0x390] ss:$8 sps:$4 sm:$0xff]  }
  0xac   :  { %3178 = vmatpush1.bf16.msra.mxu0 %v4252_v53  ;;  %2878 = vmatprep.subr.bf16.mxu1 %v4257_v54  ;;  %v4348_v53 = vld [vmem:[%s6084_s1 + $0xa90] ss:$8 sps:$4 sm:$0xff]   ;;  %v4353_v54 = vld [vmem:[%s6084_s1 + $0x3a4] ss:$8 sps:$4 sm:$0xff]  }
  0xad   :  { %3179 = vmatprep.subr.bf16.mxu0 %v4260_v55  ;;  %v4356_v55 = vld [vmem:[%s6084_s1 + $0xaa4] ss:$8 sps:$4 sm:$0xff]  }
  0xaf   :  { %2879 = vmatpush1.bf16.msra.mxu1 %v4255_v56  ;;  %v4351_v56 = vld [vmem:[%s6084_s1 + $0x3a0] ss:$8 sps:$4 sm:$0xff]  }
  0xb0   :  { %3180 = vmatpush1.bf16.msra.mxu0 %v4258_v57  ;;  %2880 = vmatprep.subr.bf16.mxu1 %v4263_v58  ;;  %v4354_v57 = vld [vmem:[%s6084_s1 + $0xaa0] ss:$8 sps:$4 sm:$0xff]   ;;  %v4359_v58 = vld [vmem:[%s6084_s1 + $0x3b4] ss:$8 sps:$4 sm:$0xff]  }
  0xb1   :  { %3181 = vmatprep.subr.bf16.mxu0 %v4266_v59  ;;  %v4362_v59 = vld [vmem:[%s6084_s1 + $0xab4] ss:$8 sps:$4 sm:$0xff]  }
  0xb3   :  { %2881 = vmatpush1.bf16.msra.mxu1 %v4261_v60  ;;  %v4357_v60 = vld [vmem:[%s6084_s1 + $0x3b0] ss:$8 sps:$4 sm:$0xff]  }
  0xb4   :  { %3182 = vmatpush1.bf16.msra.mxu0 %v4264_v61  ;;  %2882 = vmatprep.subr.bf16.mxu1 %v4269_v62  ;;  %v4360_v61 = vld [vmem:[%s6084_s1 + $0xab0] ss:$8 sps:$4 sm:$0xff]   ;;  %v4365_v62 = vld [vmem:[%s6084_s1 + $0x3c4] ss:$8 sps:$4 sm:$0xff]  }
  0xb5   :  { %3183 = vmatprep.subr.bf16.mxu0 %v4272_v63  ;;  %v4368_v63 = vld [vmem:[%s6084_s1 + $0xac4] ss:$8 sps:$4 sm:$0xff]  }
  0xb7   :  { %2883 = vmatpush1.bf16.msra.mxu1 %v4267_v0  ;;  %v4363_v0 = vld [vmem:[%s6084_s1 + $0x3c0] ss:$8 sps:$4 sm:$0xff]  }
  0xb8   :  { %3184 = vmatpush1.bf16.msra.mxu0 %v4270_v1  ;;  %2884 = vmatprep.subr.bf16.mxu1 %v4275_v2  ;;  %v4366_v1 = vld [vmem:[%s6084_s1 + $0xac0] ss:$8 sps:$4 sm:$0xff]   ;;  %v4371_v2 = vld [vmem:[%s6084_s1 + $0x3d4] ss:$8 sps:$4 sm:$0xff]  }
  0xb9   :  { %3185 = vmatprep.subr.bf16.mxu0 %v4278_v3  ;;  %v4374_v3 = vld [vmem:[%s6084_s1 + $0xad4] ss:$8 sps:$4 sm:$0xff]  }
  0xbb   :  { %2885 = vmatpush1.bf16.msra.mxu1 %v4273_v4  ;;  %v4369_v4 = vld [vmem:[%s6084_s1 + $0x3d0] ss:$8 sps:$4 sm:$0xff]  }
  0xbc   :  { %3186 = vmatpush1.bf16.msra.mxu0 %v4276_v5  ;;  %2886 = vmatprep.subr.bf16.mxu1 %v4281_v6  ;;  %v4372_v5 = vld [vmem:[%s6084_s1 + $0xad0] ss:$8 sps:$4 sm:$0xff]   ;;  %v4377_v6 = vld [vmem:[%s6084_s1 + $0x3e4] ss:$8 sps:$4 sm:$0xff]  }
  0xbd   :  { %3187 = vmatprep.subr.bf16.mxu0 %v4284_v7  ;;  %v4380_v7 = vld [vmem:[%s6084_s1 + $0xae4] ss:$8 sps:$4 sm:$0xff]  }
  0xbf   :  { %2887 = vmatpush1.bf16.msra.mxu1 %v4279_v8  ;;  %v4375_v8 = vld [vmem:[%s6084_s1 + $0x3e0] ss:$8 sps:$4 sm:$0xff]  }
  0xc0   :  { %3188 = vmatpush1.bf16.msra.mxu0 %v4282_v9  ;;  %2899 = vmatprep.subr.bf16.mxu1 %v4290_v10  ;;  %v4378_v9 = vld [vmem:[%s6084_s1 + $0xae0] ss:$8 sps:$4 sm:$0xff]   ;;  %v4383_v10 = vld [vmem:[%s6084_s1 + $0x3f4] ss:$8 sps:$4 sm:$0xff]  }
  0xc1   :  { %3200 = vmatprep.subr.bf16.mxu0 %v4296_v11  ;;  %v4386_v11 = vld [vmem:[%s6084_s1 + $0xaf4] ss:$8 sps:$4 sm:$0xff]  }
  0xc2   :  { %2889 = vmatmul.mubr.bf16.vlgmr.msra.gmra.mrb[0].mxu1 %v4285_v12  ;;  %v4381_v12 = vld [vmem:[%s6084_s1 + $0x3f0] ss:$8 sps:$4 sm:$0xff]  }
  0xc3   :  { %3190 = vmatmul.mubr.bf16.vlgmr.msra.gmra.mrb[0].mxu0 %v4291_v14  ;;  %2900 = vmatpush1.bf16.msra.mxu1 %v4288_v13  ;;  %v4384_v13 = vld [vmem:[%s6084_s1 + $0xaf0] ss:$8 sps:$4 sm:$0xff]   ;;  %v4392_v14 = vld [vmem:[%s6084_s1 + $0x404] ss:$8 sps:$4 sm:$0xff]  }
  0xc4   :  { %3201 = vmatpush1.bf16.msra.mxu0 %v4294_v15  ;;  %2901 = vmatprep.subr.bf16.mxu1 %v4299_v16  ;;  %v4398_v15 = vld [vmem:[%s6084_s1 + $0xb04] ss:$8 sps:$4 sm:$0xff]  }
  0xc5   :  { %3202 = vmatprep.subr.bf16.mxu0 %v4302_v17  ;;  %2931 = vmatprep.mubr.bf16.mxu1 %v4389_v18  ;;  %v4387_v16 = vld [vmem:[%s6085_s0 + $0x18] ss:$108 sps:$4 sm:$0xff]   ;;  %v4390_v17 = vld [vmem:[%s6084_s1 + $0x400] ss:$8 sps:$4 sm:$0xff]   ;;  %v4393_v18 = vld [vmem:[%s6085_s0 + $0x50] ss:$108 sps:$4 sm:$0xff]  }
  0xc6   :  { %3232 = vmatprep.mubr.bf16.mxu0 %v4395_v19  ;;  %v4396_v19 = vld [vmem:[%s6084_s1 + $0xb00] ss:$8 sps:$4 sm:$0xff]  }
  0xc7   :  { %2902 = vmatpush1.bf16.msra.mxu1 %v4297_v20  ;;  %v4401_v20 = vld [vmem:[%s6084_s1 + $0x414] ss:$8 sps:$4 sm:$0xff]  }
  0xc8   :  { %3203 = vmatpush1.bf16.msra.mxu0 %v4300_v21  ;;  %2903 = vmatprep.subr.bf16.mxu1 %v4305_v22  ;;  %v4404_v21 = vld [vmem:[%s6084_s1 + $0xb14] ss:$8 sps:$4 sm:$0xff]   ;;  %v4491_v22 = vld [vmem:[%s6085_s0 + $0x24] ss:$108 sps:$4 sm:$0xff]  }
  0xc9   :  { %3204 = vmatprep.subr.bf16.mxu0 %v4308_v23  ;;  %v4497_v23 = vld [vmem:[%s6085_s0 + $0x5c] ss:$108 sps:$4 sm:$0xff]  }
  0xcb   :  { %2904 = vmatpush1.bf16.msra.mxu1 %v4303_v24  ;;  %v4399_v24 = vld [vmem:[%s6084_s1 + $0x410] ss:$8 sps:$4 sm:$0xff]  }
  0xcc   :  { %3205 = vmatpush1.bf16.msra.mxu0 %v4306_v25  ;;  %2905 = vmatprep.subr.bf16.mxu1 %v4311_v26  ;;  %v4402_v25 = vld [vmem:[%s6084_s1 + $0xb10] ss:$8 sps:$4 sm:$0xff]   ;;  %v4407_v26 = vld [vmem:[%s6084_s1 + $0x424] ss:$8 sps:$4 sm:$0xff]  }
  0xcd   :  { %3206 = vmatprep.subr.bf16.mxu0 %v4314_v27  ;;  %v4410_v27 = vld [vmem:[%s6084_s1 + $0xb24] ss:$8 sps:$4 sm:$0xff]  }
  0xcf   :  { %2906 = vmatpush1.bf16.msra.mxu1 %v4309_v28  ;;  %v4405_v28 = vld [vmem:[%s6084_s1 + $0x420] ss:$8 sps:$4 sm:$0xff]  }
  0xd0   :  { %3207 = vmatpush1.bf16.msra.mxu0 %v4312_v29  ;;  %2907 = vmatprep.subr.bf16.mxu1 %v4317_v30  ;;  %v4408_v29 = vld [vmem:[%s6084_s1 + $0xb20] ss:$8 sps:$4 sm:$0xff]   ;;  %v4413_v30 = vld [vmem:[%s6084_s1 + $0x434] ss:$8 sps:$4 sm:$0xff]  }
  0xd1   :  { %3208 = vmatprep.subr.bf16.mxu0 %v4320_v31  ;;  %v4416_v31 = vld [vmem:[%s6084_s1 + $0xb34] ss:$8 sps:$4 sm:$0xff]  }
  0xd3   :  { %2908 = vmatpush1.bf16.msra.mxu1 %v4315_v32  ;;  %v4411_v32 = vld [vmem:[%s6084_s1 + $0x430] ss:$8 sps:$4 sm:$0xff]  }
  0xd4   :  { %3209 = vmatpush1.bf16.msra.mxu0 %v4318_v33  ;;  %2909 = vmatprep.subr.bf16.mxu1 %v4323_v34  ;;  %v4414_v33 = vld [vmem:[%s6084_s1 + $0xb30] ss:$8 sps:$4 sm:$0xff]   ;;  %v4419_v34 = vld [vmem:[%s6084_s1 + $0x444] ss:$8 sps:$4 sm:$0xff]  }
  0xd5   :  { %3210 = vmatprep.subr.bf16.mxu0 %v4326_v35  ;;  %v4422_v35 = vld [vmem:[%s6084_s1 + $0xb44] ss:$8 sps:$4 sm:$0xff]  }
  0xd7   :  { %2910 = vmatpush1.bf16.msra.mxu1 %v4321_v36  ;;  %v4417_v36 = vld [vmem:[%s6084_s1 + $0x440] ss:$8 sps:$4 sm:$0xff]  }
  0xd8   :  { %3211 = vmatpush1.bf16.msra.mxu0 %v4324_v37  ;;  %2911 = vmatprep.subr.bf16.mxu1 %v4329_v38  ;;  %v4420_v37 = vld [vmem:[%s6084_s1 + $0xb40] ss:$8 sps:$4 sm:$0xff]   ;;  %v4425_v38 = vld [vmem:[%s6084_s1 + $0x454] ss:$8 sps:$4 sm:$0xff]  }
  0xd9   :  { %3212 = vmatprep.subr.bf16.mxu0 %v4332_v39  ;;  %v4428_v39 = vld [vmem:[%s6084_s1 + $0xb54] ss:$8 sps:$4 sm:$0xff]  }
  0xdb   :  { %2912 = vmatpush1.bf16.msra.mxu1 %v4327_v40  ;;  %v4423_v40 = vld [vmem:[%s6084_s1 + $0x450] ss:$8 sps:$4 sm:$0xff]  }
  0xdc   :  { %3213 = vmatpush1.bf16.msra.mxu0 %v4330_v41  ;;  %2913 = vmatprep.subr.bf16.mxu1 %v4335_v42  ;;  %v4426_v41 = vld [vmem:[%s6084_s1 + $0xb50] ss:$8 sps:$4 sm:$0xff]   ;;  %v4431_v42 = vld [vmem:[%s6084_s1 + $0x464] ss:$8 sps:$4 sm:$0xff]  }
  0xdd   :  { %3214 = vmatprep.subr.bf16.mxu0 %v4338_v43  ;;  %v4434_v43 = vld [vmem:[%s6084_s1 + $0xb64] ss:$8 sps:$4 sm:$0xff]  }
  0xdf   :  { %2914 = vmatpush1.bf16.msra.mxu1 %v4333_v44  ;;  %v4429_v44 = vld [vmem:[%s6084_s1 + $0x460] ss:$8 sps:$4 sm:$0xff]  }
  0xe0   :  { %3215 = vmatpush1.bf16.msra.mxu0 %v4336_v45  ;;  %2915 = vmatprep.subr.bf16.mxu1 %v4341_v46  ;;  %v4432_v45 = vld [vmem:[%s6084_s1 + $0xb60] ss:$8 sps:$4 sm:$0xff]   ;;  %v4437_v46 = vld [vmem:[%s6084_s1 + $0x474] ss:$8 sps:$4 sm:$0xff]  }
  0xe1   :  { %3216 = vmatprep.subr.bf16.mxu0 %v4344_v47  ;;  %v4440_v47 = vld [vmem:[%s6084_s1 + $0xb74] ss:$8 sps:$4 sm:$0xff]  }
  0xe3   :  { %2916 = vmatpush1.bf16.msra.mxu1 %v4339_v48  ;;  %v4435_v48 = vld [vmem:[%s6084_s1 + $0x470] ss:$8 sps:$4 sm:$0xff]  }
  0xe4   :  { %3217 = vmatpush1.bf16.msra.mxu0 %v4342_v49  ;;  %2917 = vmatprep.subr.bf16.mxu1 %v4347_v50  ;;  %v4438_v49 = vld [vmem:[%s6084_s1 + $0xb70] ss:$8 sps:$4 sm:$0xff]   ;;  %v4443_v50 = vld [vmem:[%s6084_s1 + $0x484] ss:$8 sps:$4 sm:$0xff]  }
  0xe5   :  { %3218 = vmatprep.subr.bf16.mxu0 %v4350_v51  ;;  %v4446_v51 = vld [vmem:[%s6084_s1 + $0xb84] ss:$8 sps:$4 sm:$0xff]  }
  0xe7   :  { %2918 = vmatpush1.bf16.msra.mxu1 %v4345_v52  ;;  %v4441_v52 = vld [vmem:[%s6084_s1 + $0x480] ss:$8 sps:$4 sm:$0xff]  }
  0xe8   :  { %3219 = vmatpush1.bf16.msra.mxu0 %v4348_v53  ;;  %2919 = vmatprep.subr.bf16.mxu1 %v4353_v54  ;;  %v4444_v53 = vld [vmem:[%s6084_s1 + $0xb80] ss:$8 sps:$4 sm:$0xff]   ;;  %v4449_v54 = vld [vmem:[%s6084_s1 + $0x494] ss:$8 sps:$4 sm:$0xff]  }
  0xe9   :  { %3220 = vmatprep.subr.bf16.mxu0 %v4356_v55  ;;  %v4452_v55 = vld [vmem:[%s6084_s1 + $0xb94] ss:$8 sps:$4 sm:$0xff]  }
  0xeb   :  { %2920 = vmatpush1.bf16.msra.mxu1 %v4351_v56  ;;  %v4447_v56 = vld [vmem:[%s6084_s1 + $0x490] ss:$8 sps:$4 sm:$0xff]  }
  0xec   :  { %3221 = vmatpush1.bf16.msra.mxu0 %v4354_v57  ;;  %2921 = vmatprep.subr.bf16.mxu1 %v4359_v58  ;;  %v4450_v57 = vld [vmem:[%s6084_s1 + $0xb90] ss:$8 sps:$4 sm:$0xff]   ;;  %v4455_v58 = vld [vmem:[%s6084_s1 + $0x4a4] ss:$8 sps:$4 sm:$0xff]  }
  0xed   :  { %3222 = vmatprep.subr.bf16.mxu0 %v4362_v59  ;;  %v4458_v59 = vld [vmem:[%s6084_s1 + $0xba4] ss:$8 sps:$4 sm:$0xff]  }
  0xef   :  { %2922 = vmatpush1.bf16.msra.mxu1 %v4357_v60  ;;  %v4453_v60 = vld [vmem:[%s6084_s1 + $0x4a0] ss:$8 sps:$4 sm:$0xff]  }
  0xf0   :  { %3223 = vmatpush1.bf16.msra.mxu0 %v4360_v61  ;;  %2923 = vmatprep.subr.bf16.mxu1 %v4365_v62  ;;  %v4456_v61 = vld [vmem:[%s6084_s1 + $0xba0] ss:$8 sps:$4 sm:$0xff]   ;;  %v4461_v62 = vld [vmem:[%s6084_s1 + $0x4b4] ss:$8 sps:$4 sm:$0xff]  }
  0xf1   :  { %3224 = vmatprep.subr.bf16.mxu0 %v4368_v63  ;;  %v4464_v63 = vld [vmem:[%s6084_s1 + $0xbb4] ss:$8 sps:$4 sm:$0xff]  }
  0xf3   :  { %2924 = vmatpush1.bf16.msra.mxu1 %v4363_v0  ;;  %v4459_v0 = vld [vmem:[%s6084_s1 + $0x4b0] ss:$8 sps:$4 sm:$0xff]  }
  0xf4   :  { %3225 = vmatpush1.bf16.msra.mxu0 %v4366_v1  ;;  %2925 = vmatprep.subr.bf16.mxu1 %v4371_v2  ;;  %v4462_v1 = vld [vmem:[%s6084_s1 + $0xbb0] ss:$8 sps:$4 sm:$0xff]   ;;  %v4467_v2 = vld [vmem:[%s6084_s1 + $0x4c4] ss:$8 sps:$4 sm:$0xff]  }
  0xf5   :  { %3226 = vmatprep.subr.bf16.mxu0 %v4374_v3  ;;  %v4470_v3 = vld [vmem:[%s6084_s1 + $0xbc4] ss:$8 sps:$4 sm:$0xff]  }
  0xf7   :  { %2926 = vmatpush1.bf16.msra.mxu1 %v4369_v4  ;;  %v4465_v4 = vld [vmem:[%s6084_s1 + $0x4c0] ss:$8 sps:$4 sm:$0xff]  }
  0xf8   :  { %3227 = vmatpush1.bf16.msra.mxu0 %v4372_v5  ;;  %2927 = vmatprep.subr.bf16.mxu1 %v4377_v6  ;;  %v4468_v5 = vld [vmem:[%s6084_s1 + $0xbc0] ss:$8 sps:$4 sm:$0xff]   ;;  %v4473_v6 = vld [vmem:[%s6084_s1 + $0x4d4] ss:$8 sps:$4 sm:$0xff]  }
  0xf9   :  { %3228 = vmatprep.subr.bf16.mxu0 %v4380_v7  ;;  %v4476_v7 = vld [vmem:[%s6084_s1 + $0xbd4] ss:$8 sps:$4 sm:$0xff]  }
  0xfb   :  { %2928 = vmatpush1.bf16.msra.mxu1 %v4375_v8  ;;  %v4471_v8 = vld [vmem:[%s6084_s1 + $0x4d0] ss:$8 sps:$4 sm:$0xff]  }
  0xfc   :  { %3229 = vmatpush1.bf16.msra.mxu0 %v4378_v9  ;;  %2929 = vmatprep.subr.bf16.mxu1 %v4383_v10  ;;  %v4474_v9 = vld [vmem:[%s6084_s1 + $0xbd0] ss:$8 sps:$4 sm:$0xff]   ;;  %v4479_v10 = vld [vmem:[%s6084_s1 + $0x4e4] ss:$8 sps:$4 sm:$0xff]  }
  0xfd   :  { %3230 = vmatprep.subr.bf16.mxu0 %v4386_v11  ;;  %v4482_v11 = vld [vmem:[%s6084_s1 + $0xbe4] ss:$8 sps:$4 sm:$0xff]  }
  0xff   :  { %2930 = vmatpush1.bf16.msra.mxu1 %v4381_v12  ;;  %v4477_v12 = vld [vmem:[%s6084_s1 + $0x4e0] ss:$8 sps:$4 sm:$0xff]  }
 0x100   :  { %3231 = vmatpush1.bf16.msra.mxu0 %v4384_v13  ;;  %2942 = vmatprep.subr.bf16.mxu1 %v4392_v14  ;;  %v4480_v13 = vld [vmem:[%s6084_s1 + $0xbe0] ss:$8 sps:$4 sm:$0xff]   ;;  %v4485_v14 = vld [vmem:[%s6084_s1 + $0x4f4] ss:$8 sps:$4 sm:$0xff]  }
 0x101   :  { %3243 = vmatprep.subr.bf16.mxu0 %v4398_v15  ;;  %v4488_v15 = vld [vmem:[%s6084_s1 + $0xbf4] ss:$8 sps:$4 sm:$0xff]  }
 0x102   :  { %2932 = vmatmul.mubr.bf16.vlgmr.msra.gmra.mrb[0].mxu1 %v4387_v16  ;;  %v4483_v16 = vld [vmem:[%s6084_s1 + $0x4f0] ss:$8 sps:$4 sm:$0xff]  }
 0x103   :  { %3233 = vmatmul.mubr.bf16.vlgmr.msra.gmra.mrb[0].mxu0 %v4393_v18  ;;  %2943 = vmatpush1.bf16.msra.mxu1 %v4390_v17  ;;  %v4486_v17 = vld [vmem:[%s6084_s1 + $0xbf0] ss:$8 sps:$4 sm:$0xff]   ;;  %v4494_v18 = vld [vmem:[%s6084_s1 + $0x504] ss:$8 sps:$4 sm:$0xff]  }
 0x104   :  { %3244 = vmatpush1.bf16.msra.mxu0 %v4396_v19  ;;  %2944 = vmatprep.subr.bf16.mxu1 %v4401_v20  ;;  %v4500_v19 = vld [vmem:[%s6084_s1 + $0xc04] ss:$8 sps:$4 sm:$0xff]  }
 0x105   :  { %3245 = vmatprep.subr.bf16.mxu0 %v4404_v21  ;;  %2974 = vmatprep.mubr.bf16.mxu1 %v4491_v22  ;;  %v4489_v20 = vld [vmem:[%s6085_s0 + $0x20] ss:$108 sps:$4 sm:$0xff]   ;;  %v4495_v21 = vld [vmem:[%s6085_s0 + $0x58] ss:$108 sps:$4 sm:$0xff]  }
 0x106   :  { %3275 = vmatprep.mubr.bf16.mxu0 %v4497_v23  ;;  %v4492_v22 = vld [vmem:[%s6084_s1 + $0x500] ss:$8 sps:$4 sm:$0xff]  }
 0x107   :  { %2945 = vmatpush1.bf16.msra.mxu1 %v4399_v24  ;;  %v4498_v23 = vld [vmem:[%s6084_s1 + $0xc00] ss:$8 sps:$4 sm:$0xff]   ;;  %v4503_v24 = vld [vmem:[%s6084_s1 + $0x514] ss:$8 sps:$4 sm:$0xff]  }
 0x108   :  { %3246 = vmatpush1.bf16.msra.mxu0 %v4402_v25  ;;  %2946 = vmatprep.subr.bf16.mxu1 %v4407_v26  ;;  %v4506_v25 = vld [vmem:[%s6084_s1 + $0xc14] ss:$8 sps:$4 sm:$0xff]   ;;  %v4593_v26 = vld [vmem:[%s6085_s0 + $0x2c] ss:$108 sps:$4 sm:$0xff]  }
 0x109   :  { %3247 = vmatprep.subr.bf16.mxu0 %v4410_v27  ;;  %v4599_v27 = vld [vmem:[%s6085_s0 + $0x64] ss:$108 sps:$4 sm:$0xff]  }
 0x10b   :  { %2947 = vmatpush1.bf16.msra.mxu1 %v4405_v28  ;;  %v4501_v28 = vld [vmem:[%s6084_s1 + $0x510] ss:$8 sps:$4 sm:$0xff]  }
 0x10c   :  { %3248 = vmatpush1.bf16.msra.mxu0 %v4408_v29  ;;  %2948 = vmatprep.subr.bf16.mxu1 %v4413_v30  ;;  %v4504_v29 = vld [vmem:[%s6084_s1 + $0xc10] ss:$8 sps:$4 sm:$0xff]   ;;  %v4509_v30 = vld [vmem:[%s6084_s1 + $0x524] ss:$8 sps:$4 sm:$0xff]  }
 0x10d   :  { %3249 = vmatprep.subr.bf16.mxu0 %v4416_v31  ;;  %v4512_v31 = vld [vmem:[%s6084_s1 + $0xc24] ss:$8 sps:$4 sm:$0xff]  }
 0x10f   :  { %2949 = vmatpush1.bf16.msra.mxu1 %v4411_v32  ;;  %v4507_v32 = vld [vmem:[%s6084_s1 + $0x520] ss:$8 sps:$4 sm:$0xff]  }
 0x110   :  { %3250 = vmatpush1.bf16.msra.mxu0 %v4414_v33  ;;  %2950 = vmatprep.subr.bf16.mxu1 %v4419_v34  ;;  %v4510_v33 = vld [vmem:[%s6084_s1 + $0xc20] ss:$8 sps:$4 sm:$0xff]   ;;  %v4515_v34 = vld [vmem:[%s6084_s1 + $0x534] ss:$8 sps:$4 sm:$0xff]  }
 0x111   :  { %3251 = vmatprep.subr.bf16.mxu0 %v4422_v35  ;;  %v4518_v35 = vld [vmem:[%s6084_s1 + $0xc34] ss:$8 sps:$4 sm:$0xff]  }
 0x113   :  { %2951 = vmatpush1.bf16.msra.mxu1 %v4417_v36  ;;  %v4513_v36 = vld [vmem:[%s6084_s1 + $0x530] ss:$8 sps:$4 sm:$0xff]  }
 0x114   :  { %3252 = vmatpush1.bf16.msra.mxu0 %v4420_v37  ;;  %2952 = vmatprep.subr.bf16.mxu1 %v4425_v38  ;;  %v4516_v37 = vld [vmem:[%s6084_s1 + $0xc30] ss:$8 sps:$4 sm:$0xff]   ;;  %v4521_v38 = vld [vmem:[%s6084_s1 + $0x544] ss:$8 sps:$4 sm:$0xff]  }
 0x115   :  { %3253 = vmatprep.subr.bf16.mxu0 %v4428_v39  ;;  %v4524_v39 = vld [vmem:[%s6084_s1 + $0xc44] ss:$8 sps:$4 sm:$0xff]  }
 0x117   :  { %2953 = vmatpush1.bf16.msra.mxu1 %v4423_v40  ;;  %v4519_v40 = vld [vmem:[%s6084_s1 + $0x540] ss:$8 sps:$4 sm:$0xff]  }
 0x118   :  { %3254 = vmatpush1.bf16.msra.mxu0 %v4426_v41  ;;  %2954 = vmatprep.subr.bf16.mxu1 %v4431_v42  ;;  %v4522_v41 = vld [vmem:[%s6084_s1 + $0xc40] ss:$8 sps:$4 sm:$0xff]   ;;  %v4527_v42 = vld [vmem:[%s6084_s1 + $0x554] ss:$8 sps:$4 sm:$0xff]  }
 0x119   :  { %3255 = vmatprep.subr.bf16.mxu0 %v4434_v43  ;;  %v4530_v43 = vld [vmem:[%s6084_s1 + $0xc54] ss:$8 sps:$4 sm:$0xff]  }
 0x11b   :  { %2955 = vmatpush1.bf16.msra.mxu1 %v4429_v44  ;;  %v4525_v44 = vld [vmem:[%s6084_s1 + $0x550] ss:$8 sps:$4 sm:$0xff]  }
 0x11c   :  { %3256 = vmatpush1.bf16.msra.mxu0 %v4432_v45  ;;  %2956 = vmatprep.subr.bf16.mxu1 %v4437_v46  ;;  %v4528_v45 = vld [vmem:[%s6084_s1 + $0xc50] ss:$8 sps:$4 sm:$0xff]   ;;  %v4533_v46 = vld [vmem:[%s6084_s1 + $0x564] ss:$8 sps:$4 sm:$0xff]  }
 0x11d   :  { %3257 = vmatprep.subr.bf16.mxu0 %v4440_v47  ;;  %v4536_v47 = vld [vmem:[%s6084_s1 + $0xc64] ss:$8 sps:$4 sm:$0xff]  }
 0x11f   :  { %2957 = vmatpush1.bf16.msra.mxu1 %v4435_v48  ;;  %v4531_v48 = vld [vmem:[%s6084_s1 + $0x560] ss:$8 sps:$4 sm:$0xff]  }
 0x120   :  { %3258 = vmatpush1.bf16.msra.mxu0 %v4438_v49  ;;  %2958 = vmatprep.subr.bf16.mxu1 %v4443_v50  ;;  %v4534_v49 = vld [vmem:[%s6084_s1 + $0xc60] ss:$8 sps:$4 sm:$0xff]   ;;  %v4539_v50 = vld [vmem:[%s6084_s1 + $0x574] ss:$8 sps:$4 sm:$0xff]  }
 0x121   :  { %3259 = vmatprep.subr.bf16.mxu0 %v4446_v51  ;;  %v4542_v51 = vld [vmem:[%s6084_s1 + $0xc74] ss:$8 sps:$4 sm:$0xff]  }
 0x123   :  { %2959 = vmatpush1.bf16.msra.mxu1 %v4441_v52  ;;  %v4537_v52 = vld [vmem:[%s6084_s1 + $0x570] ss:$8 sps:$4 sm:$0xff]  }
 0x124   :  { %3260 = vmatpush1.bf16.msra.mxu0 %v4444_v53  ;;  %2960 = vmatprep.subr.bf16.mxu1 %v4449_v54  ;;  %v4540_v53 = vld [vmem:[%s6084_s1 + $0xc70] ss:$8 sps:$4 sm:$0xff]   ;;  %v4545_v54 = vld [vmem:[%s6084_s1 + $0x584] ss:$8 sps:$4 sm:$0xff]  }
 0x125   :  { %3261 = vmatprep.subr.bf16.mxu0 %v4452_v55  ;;  %v4548_v55 = vld [vmem:[%s6084_s1 + $0xc84] ss:$8 sps:$4 sm:$0xff]  }
 0x127   :  { %2961 = vmatpush1.bf16.msra.mxu1 %v4447_v56  ;;  %v4543_v56 = vld [vmem:[%s6084_s1 + $0x580] ss:$8 sps:$4 sm:$0xff]  }
 0x128   :  { %3262 = vmatpush1.bf16.msra.mxu0 %v4450_v57  ;;  %2962 = vmatprep.subr.bf16.mxu1 %v4455_v58  ;;  %v4546_v57 = vld [vmem:[%s6084_s1 + $0xc80] ss:$8 sps:$4 sm:$0xff]   ;;  %v4551_v58 = vld [vmem:[%s6084_s1 + $0x594] ss:$8 sps:$4 sm:$0xff]  }
 0x129   :  { %3263 = vmatprep.subr.bf16.mxu0 %v4458_v59  ;;  %v4554_v59 = vld [vmem:[%s6084_s1 + $0xc94] ss:$8 sps:$4 sm:$0xff]  }
 0x12b   :  { %2963 = vmatpush1.bf16.msra.mxu1 %v4453_v60  ;;  %v4549_v60 = vld [vmem:[%s6084_s1 + $0x590] ss:$8 sps:$4 sm:$0xff]  }
 0x12c   :  { %3264 = vmatpush1.bf16.msra.mxu0 %v4456_v61  ;;  %2964 = vmatprep.subr.bf16.mxu1 %v4461_v62  ;;  %v4552_v61 = vld [vmem:[%s6084_s1 + $0xc90] ss:$8 sps:$4 sm:$0xff]   ;;  %v4557_v62 = vld [vmem:[%s6084_s1 + $0x5a4] ss:$8 sps:$4 sm:$0xff]  }
 0x12d   :  { %3265 = vmatprep.subr.bf16.mxu0 %v4464_v63  ;;  %v4560_v63 = vld [vmem:[%s6084_s1 + $0xca4] ss:$8 sps:$4 sm:$0xff]  }
 0x12f   :  { %2965 = vmatpush1.bf16.msra.mxu1 %v4459_v0  ;;  %v4555_v0 = vld [vmem:[%s6084_s1 + $0x5a0] ss:$8 sps:$4 sm:$0xff]  }
 0x130   :  { %3266 = vmatpush1.bf16.msra.mxu0 %v4462_v1  ;;  %2966 = vmatprep.subr.bf16.mxu1 %v4467_v2  ;;  %v4558_v1 = vld [vmem:[%s6084_s1 + $0xca0] ss:$8 sps:$4 sm:$0xff]   ;;  %v4563_v2 = vld [vmem:[%s6084_s1 + $0x5b4] ss:$8 sps:$4 sm:$0xff]  }
 0x131   :  { %3267 = vmatprep.subr.bf16.mxu0 %v4470_v3  ;;  %v4566_v3 = vld [vmem:[%s6084_s1 + $0xcb4] ss:$8 sps:$4 sm:$0xff]  }
 0x133   :  { %2967 = vmatpush1.bf16.msra.mxu1 %v4465_v4  ;;  %v4561_v4 = vld [vmem:[%s6084_s1 + $0x5b0] ss:$8 sps:$4 sm:$0xff]  }
 0x134   :  { %3268 = vmatpush1.bf16.msra.mxu0 %v4468_v5  ;;  %2968 = vmatprep.subr.bf16.mxu1 %v4473_v6  ;;  %v4564_v5 = vld [vmem:[%s6084_s1 + $0xcb0] ss:$8 sps:$4 sm:$0xff]   ;;  %v4569_v6 = vld [vmem:[%s6084_s1 + $0x5c4] ss:$8 sps:$4 sm:$0xff]  }
 0x135   :  { %3269 = vmatprep.subr.bf16.mxu0 %v4476_v7  ;;  %v4572_v7 = vld [vmem:[%s6084_s1 + $0xcc4] ss:$8 sps:$4 sm:$0xff]  }
 0x137   :  { %2969 = vmatpush1.bf16.msra.mxu1 %v4471_v8  ;;  %v4567_v8 = vld [vmem:[%s6084_s1 + $0x5c0] ss:$8 sps:$4 sm:$0xff]  }
 0x138   :  { %3270 = vmatpush1.bf16.msra.mxu0 %v4474_v9  ;;  %2970 = vmatprep.subr.bf16.mxu1 %v4479_v10  ;;  %v4570_v9 = vld [vmem:[%s6084_s1 + $0xcc0] ss:$8 sps:$4 sm:$0xff]   ;;  %v4575_v10 = vld [vmem:[%s6084_s1 + $0x5d4] ss:$8 sps:$4 sm:$0xff]  }
 0x139   :  { %3271 = vmatprep.subr.bf16.mxu0 %v4482_v11  ;;  %v4578_v11 = vld [vmem:[%s6084_s1 + $0xcd4] ss:$8 sps:$4 sm:$0xff]  }
 0x13b   :  { %2971 = vmatpush1.bf16.msra.mxu1 %v4477_v12  ;;  %v4573_v12 = vld [vmem:[%s6084_s1 + $0x5d0] ss:$8 sps:$4 sm:$0xff]  }
 0x13c   :  { %3272 = vmatpush1.bf16.msra.mxu0 %v4480_v13  ;;  %2972 = vmatprep.subr.bf16.mxu1 %v4485_v14  ;;  %v4576_v13 = vld [vmem:[%s6084_s1 + $0xcd0] ss:$8 sps:$4 sm:$0xff]   ;;  %v4581_v14 = vld [vmem:[%s6084_s1 + $0x5e4] ss:$8 sps:$4 sm:$0xff]  }
 0x13d   :  { %3273 = vmatprep.subr.bf16.mxu0 %v4488_v15  ;;  %v4584_v15 = vld [vmem:[%s6084_s1 + $0xce4] ss:$8 sps:$4 sm:$0xff]  }
 0x13f   :  { %2973 = vmatpush1.bf16.msra.mxu1 %v4483_v16  ;;  %v4579_v16 = vld [vmem:[%s6084_s1 + $0x5e0] ss:$8 sps:$4 sm:$0xff]  }
 0x140   :  { %3274 = vmatpush1.bf16.msra.mxu0 %v4486_v17  ;;  %2985 = vmatprep.subr.bf16.mxu1 %v4494_v18  ;;  %v4582_v17 = vld [vmem:[%s6084_s1 + $0xce0] ss:$8 sps:$4 sm:$0xff]   ;;  %v4587_v18 = vld [vmem:[%s6084_s1 + $0x5f4] ss:$8 sps:$4 sm:$0xff]  }
 0x141   :  { %3286 = vmatprep.subr.bf16.mxu0 %v4500_v19  ;;  %v4590_v19 = vld [vmem:[%s6084_s1 + $0xcf4] ss:$8 sps:$4 sm:$0xff]  }
 0x142   :  { %2975 = vmatmul.mubr.bf16.vlgmr.msra.gmra.mrb[0].mxu1 %v4489_v20  ;;  %v4585_v20 = vld [vmem:[%s6084_s1 + $0x5f0] ss:$8 sps:$4 sm:$0xff]  }
 0x143   :  { %3276 = vmatmul.mubr.bf16.vlgmr.msra.gmra.mrb[0].mxu0 %v4495_v21  ;;  %2986 = vmatpush1.bf16.msra.mxu1 %v4492_v22  ;;  %v4588_v21 = vld [vmem:[%s6084_s1 + $0xcf0] ss:$8 sps:$4 sm:$0xff]   ;;  %v4596_v22 = vld [vmem:[%s6084_s1 + $0x604] ss:$8 sps:$4 sm:$0xff]  }
 0x144   :  { %3287 = vmatpush1.bf16.msra.mxu0 %v4498_v23  ;;  %2987 = vmatprep.subr.bf16.mxu1 %v4503_v24  ;;  %v4602_v23 = vld [vmem:[%s6084_s1 + $0xd04] ss:$8 sps:$4 sm:$0xff]   ;;  %v4591_v24 = vld [vmem:[%s6085_s0 + $0x28] ss:$108 sps:$4 sm:$0xff]  }
 0x145   :  { %3288 = vmatprep.subr.bf16.mxu0 %v4506_v25  ;;  %3017 = vmatprep.mubr.bf16.mxu1 %v4593_v26  ;;  %v4597_v25 = vld [vmem:[%s6085_s0 + $0x60] ss:$108 sps:$4 sm:$0xff]  }
 0x146   :  { %3318 = vmatprep.mubr.bf16.mxu0 %v4599_v27  ;;  %v4594_v26 = vld [vmem:[%s6084_s1 + $0x600] ss:$8 sps:$4 sm:$0xff]  }
 0x147   :  { %2988 = vmatpush1.bf16.msra.mxu1 %v4501_v28  ;;  %v4600_v27 = vld [vmem:[%s6084_s1 + $0xd00] ss:$8 sps:$4 sm:$0xff]   ;;  %v4605_v28 = vld [vmem:[%s6084_s1 + $0x614] ss:$8 sps:$4 sm:$0xff]  }
 0x148   :  { %3289 = vmatpush1.bf16.msra.mxu0 %v4504_v29  ;;  %2989 = vmatprep.subr.bf16.mxu1 %v4509_v30  ;;  %v4608_v29 = vld [vmem:[%s6084_s1 + $0xd14] ss:$8 sps:$4 sm:$0xff]  }
 0x149   :  { %3290 = vmatprep.subr.bf16.mxu0 %v4512_v31  ;;  %v4672_v30 = vld [vmem:[%s6085_s0 + $0x34] ss:$108 sps:$4 sm:$0xff]   ;;  %v4603_v31 = vld [vmem:[%s6084_s1 + $0x610] ss:$8 sps:$4 sm:$0xff]  }
 0x14b   :  { %2990 = vmatpush1.bf16.msra.mxu1 %v4507_v32  ;;  %v4606_v32 = vld [vmem:[%s6084_s1 + $0xd10] ss:$8 sps:$4 sm:$0xff]  }
 0x14c   :  { %3291 = vmatpush1.bf16.msra.mxu0 %v4510_v33  ;;  %2991 = vmatprep.subr.bf16.mxu1 %v4515_v34  ;;  %v4611_v33 = vld [vmem:[%s6084_s1 + $0x624] ss:$8 sps:$4 sm:$0xff]  }
 0x14d   :  { %3292 = vmatprep.subr.bf16.mxu0 %v4518_v35  ;;  %v4614_v34 = vld [vmem:[%s6084_s1 + $0xd24] ss:$8 sps:$4 sm:$0xff]   ;;  %v4673_v35 = vmov 0  }
 0x14f   :  { %2992 = vmatpush1.bf16.msra.mxu1 %v4513_v36  ;;  %v4609_v36 = vld [vmem:[%s6084_s1 + $0x620] ss:$8 sps:$4 sm:$0xff]  }
 0x150   :  { %3293 = vmatpush1.bf16.msra.mxu0 %v4516_v37  ;;  %2993 = vmatprep.subr.bf16.mxu1 %v4521_v38  ;;  %v4612_v37 = vld [vmem:[%s6084_s1 + $0xd20] ss:$8 sps:$4 sm:$0xff]   ;;  %v4617_v38 = vld [vmem:[%s6084_s1 + $0x634] ss:$8 sps:$4 sm:$0xff]  }
 0x151   :  { %3294 = vmatprep.subr.bf16.mxu0 %v4524_v39  ;;  %v4620_v39 = vld [vmem:[%s6084_s1 + $0xd34] ss:$8 sps:$4 sm:$0xff]  }
 0x153   :  { %2994 = vmatpush1.bf16.msra.mxu1 %v4519_v40  ;;  %v4615_v40 = vld [vmem:[%s6084_s1 + $0x630] ss:$8 sps:$4 sm:$0xff]  }
 0x154   :  { %3295 = vmatpush1.bf16.msra.mxu0 %v4522_v41  ;;  %2995 = vmatprep.subr.bf16.mxu1 %v4527_v42  ;;  %v4618_v41 = vld [vmem:[%s6084_s1 + $0xd30] ss:$8 sps:$4 sm:$0xff]   ;;  %v4623_v42 = vld [vmem:[%s6084_s1 + $0x644] ss:$8 sps:$4 sm:$0xff]  }
 0x155   :  { %3296 = vmatprep.subr.bf16.mxu0 %v4530_v43  ;;  %v4626_v43 = vld [vmem:[%s6084_s1 + $0xd44] ss:$8 sps:$4 sm:$0xff]  }
 0x157   :  { %2996 = vmatpush1.bf16.msra.mxu1 %v4525_v44  ;;  %v4621_v44 = vld [vmem:[%s6084_s1 + $0x640] ss:$8 sps:$4 sm:$0xff]  }
 0x158   :  { %3297 = vmatpush1.bf16.msra.mxu0 %v4528_v45  ;;  %2997 = vmatprep.subr.bf16.mxu1 %v4533_v46  ;;  %v4624_v45 = vld [vmem:[%s6084_s1 + $0xd40] ss:$8 sps:$4 sm:$0xff]   ;;  %v4629_v46 = vld [vmem:[%s6084_s1 + $0x654] ss:$8 sps:$4 sm:$0xff]  }
 0x159   :  { %3298 = vmatprep.subr.bf16.mxu0 %v4536_v47  ;;  %v4632_v47 = vld [vmem:[%s6084_s1 + $0xd54] ss:$8 sps:$4 sm:$0xff]  }
 0x15b   :  { %2998 = vmatpush1.bf16.msra.mxu1 %v4531_v48  ;;  %v4627_v48 = vld [vmem:[%s6084_s1 + $0x650] ss:$8 sps:$4 sm:$0xff]  }
 0x15c   :  { %3299 = vmatpush1.bf16.msra.mxu0 %v4534_v49  ;;  %2999 = vmatprep.subr.bf16.mxu1 %v4539_v50  ;;  %v4630_v49 = vld [vmem:[%s6084_s1 + $0xd50] ss:$8 sps:$4 sm:$0xff]   ;;  %v4635_v50 = vld [vmem:[%s6084_s1 + $0x664] ss:$8 sps:$4 sm:$0xff]  }
 0x15d   :  { %3300 = vmatprep.subr.bf16.mxu0 %v4542_v51  ;;  %v4638_v51 = vld [vmem:[%s6084_s1 + $0xd64] ss:$8 sps:$4 sm:$0xff]  }
 0x15f   :  { %3000 = vmatpush1.bf16.msra.mxu1 %v4537_v52  ;;  %v4633_v52 = vld [vmem:[%s6084_s1 + $0x660] ss:$8 sps:$4 sm:$0xff]  }
 0x160   :  { %3301 = vmatpush1.bf16.msra.mxu0 %v4540_v53  ;;  %3001 = vmatprep.subr.bf16.mxu1 %v4545_v54  ;;  %v4636_v53 = vld [vmem:[%s6084_s1 + $0xd60] ss:$8 sps:$4 sm:$0xff]   ;;  %v4641_v54 = vld [vmem:[%s6084_s1 + $0x674] ss:$8 sps:$4 sm:$0xff]  }
 0x161   :  { %3302 = vmatprep.subr.bf16.mxu0 %v4548_v55  ;;  %v4644_v55 = vld [vmem:[%s6084_s1 + $0xd74] ss:$8 sps:$4 sm:$0xff]  }
 0x163   :  { %3002 = vmatpush1.bf16.msra.mxu1 %v4543_v56  ;;  %v4639_v56 = vld [vmem:[%s6084_s1 + $0x670] ss:$8 sps:$4 sm:$0xff]  }
 0x164   :  { %3303 = vmatpush1.bf16.msra.mxu0 %v4546_v57  ;;  %3003 = vmatprep.subr.bf16.mxu1 %v4551_v58  ;;  %v4642_v57 = vld [vmem:[%s6084_s1 + $0xd70] ss:$8 sps:$4 sm:$0xff]   ;;  %v4647_v58 = vld [vmem:[%s6084_s1 + $0x684] ss:$8 sps:$4 sm:$0xff]  }
 0x165   :  { %3304 = vmatprep.subr.bf16.mxu0 %v4554_v59  ;;  %v4648_v59 = vld [vmem:[%s6085_s0 + $0x68] ss:$108 sps:$4 sm:$0xff]  }
 0x167   :  { %3004 = vmatpush1.bf16.msra.mxu1 %v4549_v60  ;;  %v4645_v60 = vld [vmem:[%s6084_s1 + $0x680] ss:$8 sps:$4 sm:$0xff]  }
 0x168   :  { %3305 = vmatpush1.bf16.msra.mxu0 %v4552_v61  ;;  %3005 = vmatprep.subr.bf16.mxu1 %v4557_v62  ;;  %v4651_v61 = vld [vmem:[%s6084_s1 + $0x694] ss:$8 sps:$4 sm:$0xff]   ;;  %v4649_v62 = vld [vmem:[%s6084_s1 + $0x690] ss:$8 sps:$4 sm:$0xff]  }
 0x169   :  { %3306 = vmatprep.subr.bf16.mxu0 %v4560_v63  ;;  %v4654_v63 = vld [vmem:[%s6084_s1 + $0x6a4] ss:$8 sps:$4 sm:$0xff]  }
 0x16b   :  { %3006 = vmatpush1.bf16.msra.mxu1 %v4555_v0  ;;  %v4652_v0 = vld [vmem:[%s6084_s1 + $0x6a0] ss:$8 sps:$4 sm:$0xff]  }
 0x16c   :  { %3307 = vmatpush1.bf16.msra.mxu0 %v4558_v1  ;;  %3007 = vmatprep.subr.bf16.mxu1 %v4563_v2  ;;  %v4657_v1 = vld [vmem:[%s6084_s1 + $0x6b4] ss:$8 sps:$4 sm:$0xff]   ;;  %v4655_v2 = vld [vmem:[%s6084_s1 + $0x6b0] ss:$8 sps:$4 sm:$0xff]  }
 0x16d   :  { %3308 = vmatprep.subr.bf16.mxu0 %v4566_v3  ;;  %v4660_v3 = vld [vmem:[%s6084_s1 + $0x6c4] ss:$8 sps:$4 sm:$0xff]  }
 0x16f   :  { %3008 = vmatpush1.bf16.msra.mxu1 %v4561_v4  ;;  %v4658_v4 = vld [vmem:[%s6084_s1 + $0x6c0] ss:$8 sps:$4 sm:$0xff]  }
 0x170   :  { %3309 = vmatpush1.bf16.msra.mxu0 %v4564_v5  ;;  %3009 = vmatprep.subr.bf16.mxu1 %v4569_v6  ;;  %v4663_v5 = vld [vmem:[%s6084_s1 + $0x6d4] ss:$8 sps:$4 sm:$0xff]   ;;  %v4661_v6 = vld [vmem:[%s6084_s1 + $0x6d0] ss:$8 sps:$4 sm:$0xff]  }
 0x171   :  { %3310 = vmatprep.subr.bf16.mxu0 %v4572_v7  ;;  %v4666_v7 = vld [vmem:[%s6084_s1 + $0x6e4] ss:$8 sps:$4 sm:$0xff]  }
 0x173   :  { %3010 = vmatpush1.bf16.msra.mxu1 %v4567_v8  ;;  %v4664_v8 = vld [vmem:[%s6084_s1 + $0x6e0] ss:$8 sps:$4 sm:$0xff]  }
 0x174   :  { %3311 = vmatpush1.bf16.msra.mxu0 %v4570_v9  ;;  %3011 = vmatprep.subr.bf16.mxu1 %v4575_v10  ;;  %v4669_v9 = vld [vmem:[%s6084_s1 + $0x6f4] ss:$8 sps:$4 sm:$0xff]   ;;  %v4667_v10 = vld [vmem:[%s6084_s1 + $0x6f0] ss:$8 sps:$4 sm:$0xff]  }
 0x175   :  { %3312 = vmatprep.subr.bf16.mxu0 %v4578_v11  ;;  %v4670_v11 = vld [vmem:[%s6085_s0 + $0x30] ss:$108 sps:$4 sm:$0xff]  }
 0x177   :  { %3012 = vmatpush1.bf16.msra.mxu1 %v4573_v12 }
 0x178   :  { %3313 = vmatpush1.bf16.msra.mxu0 %v4576_v13  ;;  %3013 = vmatprep.subr.bf16.mxu1 %v4581_v14 }
 0x179   :  { %3314 = vmatprep.subr.bf16.mxu0 %v4584_v15 }
 0x17b   :  { %3014 = vmatpush1.bf16.msra.mxu1 %v4579_v16 }
 0x17c   :  { %3315 = vmatpush1.bf16.msra.mxu0 %v4582_v17  ;;  %3015 = vmatprep.subr.bf16.mxu1 %v4587_v18 }
 0x17d   :  { %3316 = vmatprep.subr.bf16.mxu0 %v4590_v19 }
 0x17f   :  { %3016 = vmatpush1.bf16.msra.mxu1 %v4585_v20 }
 0x180   :  { %3317 = vmatpush1.bf16.msra.mxu0 %v4588_v21  ;;  %3028 = vmatprep.subr.bf16.mxu1 %v4596_v22 }
 0x181   :  { %3329 = vmatprep.subr.bf16.mxu0 %v4602_v23 }
 0x182   :  { %3018 = vmatmul.mubr.bf16.vlgmr.msra.gmra.mrb[0].mxu1 %v4591_v24 }
 0x183   :  { %3319 = vmatmul.mubr.bf16.vlgmr.msra.gmra.mrb[0].mxu0 %v4597_v25  ;;  %3029 = vmatpush1.bf16.msra.mxu1 %v4594_v26 }
 0x184   :  { %3330 = vmatpush1.bf16.msra.mxu0 %v4600_v27  ;;  %3030 = vmatprep.subr.bf16.mxu1 %v4605_v28 }
 0x185   :  { %3331 = vmatprep.subr.bf16.mxu0 %v4608_v29  ;;  %3361 = vmatprep.mubr.bf16.mxu0 %v4673_v35 }
 0x186   :  { %3060 = vmatprep.mubr.bf16.mxu1 %v4672_v30 }
 0x187   :  { %3031 = vmatpush1.bf16.msra.mxu1 %v4603_v31 }
 0x188   :  { %3332 = vmatpush1.bf16.msra.mxu0 %v4606_v32  ;;  %3032 = vmatprep.subr.bf16.mxu1 %v4611_v33 }
 0x189   :  { %3333 = vmatprep.subr.bf16.mxu0 %v4614_v34 }
 0x18b   :  { %3033 = vmatpush1.bf16.msra.mxu1 %v4609_v36 }
 0x18c   :  { %3334 = vmatpush1.bf16.msra.mxu0 %v4612_v37  ;;  %3034 = vmatprep.subr.bf16.mxu1 %v4617_v38 }
 0x18d   :  { %3335 = vmatprep.subr.bf16.mxu0 %v4620_v39  ;;  %v4674_v39 = vmov 1966171168  }
 0x18f   :  { %3035 = vmatpush1.bf16.msra.mxu1 %v4615_v40  ;;  %v3404_v40 = vunpack.c.l.s4 %v4674_v39 }
 0x190   :  { %3336 = vmatpush1.bf16.msra.mxu0 %v4618_v41  ;;  %3036 = vmatprep.subr.bf16.mxu1 %v4623_v42  ;;  %v3406_v41 = vlaneseq }
 0x191   :  { %3337 = vmatprep.subr.bf16.mxu0 %v4626_v43 }
 0x192   :  { %vm3420_vm0 = vcmp.lt.s32.totalorder %v3406_v41, 256 }
 0x193   :  { %3037 = vmatpush1.bf16.msra.mxu1 %v4621_v44 }
 0x194   :  { %3338 = vmatpush1.bf16.msra.mxu0 %v4624_v45  ;;  %3038 = vmatprep.subr.bf16.mxu1 %v4629_v46 }
 0x195   :  { %3339 = vmatprep.subr.bf16.mxu0 %v4632_v47 }
 0x197   :  { %3039 = vmatpush1.bf16.msra.mxu1 %v4627_v48 }
 0x198   :  { %3340 = vmatpush1.bf16.msra.mxu0 %v4630_v49  ;;  %3040 = vmatprep.subr.bf16.mxu1 %v4635_v50  ;;  %v3405_v50 = vunpack.c.0.s8 %v3404_v40 }
 0x199   :  { %3341 = vmatprep.subr.bf16.mxu0 %v4638_v51  ;;  %v3407_v51 = vshrl.u32 %v3406_v41, 7 }
 0x19b   :  { %3041 = vmatpush1.bf16.msra.mxu1 %v4633_v52 }
 0x19c   :  { %3342 = vmatpush1.bf16.msra.mxu0 %v4636_v53  ;;  %3042 = vmatprep.subr.bf16.mxu1 %v4641_v54 }
 0x19d   :  { %3343 = vmatprep.subr.bf16.mxu0 %v4644_v55 }
 0x19f   :  { %3043 = vmatpush1.bf16.msra.mxu1 %v4639_v56 }
 0x1a0   :  { %3344 = vmatpush1.bf16.msra.mxu0 %v4642_v57  ;;  %3044 = vmatprep.subr.bf16.mxu1 %v4647_v58 }
 0x1a3   :  { %3362 = vmatmul.mubr.bf16.vlgmr.msra.gmra.mrb[0].mxu0 %v4648_v59  ;;  %3045 = vmatpush1.bf16.msra.mxu1 %v4645_v60  ;;  %v3408_v60 = vsub.s32 %v3405_v50, %v3407_v51 }
 0x1a4   :  { %3046 = vmatprep.subr.bf16.mxu1 %v4651_v61 }
 0x1a7   :  { %3047 = vmatpush1.bf16.msra.mxu1 %v4649_v62 }
 0x1a8   :  { %3048 = vmatprep.subr.bf16.mxu1 %v4654_v63 }
 0x1ab   :  { %3049 = vmatpush1.bf16.msra.mxu1 %v4652_v0 }
 0x1ac   :  { %3050 = vmatprep.subr.bf16.mxu1 %v4657_v1 }
 0x1af   :  { %3051 = vmatpush1.bf16.msra.mxu1 %v4655_v2 }
 0x1b0   :  { %3052 = vmatprep.subr.bf16.mxu1 %v4660_v3 }
 0x1b3   :  { %3053 = vmatpush1.bf16.msra.mxu1 %v4658_v4 }
 0x1b4   :  { %3054 = vmatprep.subr.bf16.mxu1 %v4663_v5 }
 0x1b7   :  { %3055 = vmatpush1.bf16.msra.mxu1 %v4661_v6 }
 0x1b8   :  { %3056 = vmatprep.subr.bf16.mxu1 %v4666_v7 }
 0x1bb   :  { %3057 = vmatpush1.bf16.msra.mxu1 %v4664_v8 }
 0x1bc   :  { %3058 = vmatprep.subr.bf16.mxu1 %v4669_v9 }
 0x1bf   :  { %3059 = vmatpush1.bf16.msra.mxu1 %v4667_v10 }
 0x1c2   :  { %3061 = vmatmul.mubr.bf16.vlgmr.msra.gmra.mrb[0].mxu1 %v4670_v11 }
 0x276   :  { %v3363_v12 = vpop.f32.mrb[0].mxu0 }
 0x277   :  { %v3365_v13 = vpop.f32.mrb[1].mxu0 }
 0x278   :  { %v3367_v14 = vpop.f32.mrb[2].mxu0 }
 0x279   :  { %v3369_v15 = vpop.f32.mrb[3].mxu0 }
 0x295   :  { %v3062_v16 = vpop.f32.mrb[0].mxu1 }
 0x296   :  { %v3931_v17 = vadd.f32 %v3363_v12, %v3062_v16  ;;  %v3064_v18 = vpop.f32.mrb[1].mxu1 }
 0x297   :  { %v3932_v19 = vadd.f32 %v3365_v13, %v3064_v18  ;;  %v3066_v20 = vpop.f32.mrb[2].mxu1 }
 0x298   :  { %v3933_v21 = vadd.f32 %v3367_v14, %v3066_v20  ;;  %v3068_v22 = vpop.f32.mrb[3].mxu1  ;;  %v3423_v25 = vmul.f32 %v3931_v17, %v3931_v17 }
 0x299   :  { %v3929_v23 = vpack.c.bf16 %v3932_v19, %v3931_v17  ;;  %v3934_v24 = vadd.f32 %v3369_v15, %v3068_v22  ;;  %v3424_v28 = vmul.f32 %v3932_v19, %v3932_v19 }
 0x29a   :  { %v3386_v26 = vadd.f32 %v3933_v21, %v3931_v17  ;;  %v3425_v27 = vmul.f32 %v3933_v21, %v3933_v21 }
 0x29b   :  { %3384 = vst [vmem:[%s6086_s2] sm:$0xff] %v3929_v23  ;;  %v3930_v29 = vpack.c.bf16 %v3934_v24, %v3933_v21  ;;  %v3393_v30 = vadd.f32 %v3934_v24, %v3932_v19  ;;  %v3426_v31 = vmul.f32 %v3934_v24, %v3934_v24 }
 0x29c   :  { %v3387_v32 = vrot.slane %v3386_v26, 4  ;;  %v3427_v33 = vadd.f32 %v3425_v27, %v3423_v25 }
 0x29d   :  { %3385 = vst [vmem:[%s6086_s2 + $0x8] sm:$0xff] %v3930_v29  ;;  %v3394_v34 = vrot.slane %v3393_v30, 4  ;;  %v3434_v35 = vadd.f32 %v3426_v31, %v3424_v28 }
 0x29e   :  { %v3388_v36 = vadd.f32 %v3387_v32, %v3386_v26  ;;  %v3428_v37 = vrot.slane %v3427_v33, 4 }
 0x29f   :  { %v3395_v38 = vadd.f32 %v3394_v34, %v3393_v30  ;;  %v3435_v42 = vrot.slane %v3434_v35, 4 }
 0x2a0   :  { %v3389_v43 = vrot.slane %v3388_v36, 2  ;;  %v3429_v44 = vadd.f32 %v3428_v37, %v3427_v33 }
 0x2a1   :  { %v3396_v45 = vrot.slane %v3395_v38, 2  ;;  %v3436_v46 = vadd.f32 %v3435_v42, %v3434_v35 }
 0x2a2   :  { %v3390_v47 = vadd.f32 %v3389_v43, %v3388_v36  ;;  %v3430_v48 = vrot.slane %v3429_v44, 2 }
 0x2a3   :  { %v3397_v49 = vadd.f32 %v3396_v45, %v3395_v38  ;;  %v3437_v52 = vrot.slane %v3436_v46, 2 }
 0x2a4   :  { %v3391_v53 = vrot.slane %v3390_v47, 1  ;;  %v3431_v54 = vadd.f32 %v3430_v48, %v3429_v44 }
 0x2a5   :  { %v3398_v55 = vrot.slane %v3397_v49, 1  ;;  %v3438_v56 = vadd.f32 %v3437_v52, %v3436_v46 }
 0x2a6   :  { %v3392_v57 = vadd.f32 %v3391_v53, %v3390_v47  ;;  %v3432_v58 = vrot.slane %v3431_v54, 1 }
 0x2a7   :  { %v3399_v59 = vadd.f32 %v3398_v55, %v3397_v49  ;;  %v3439_v61 = vrot.slane %v3438_v56, 1 }
 0x2a8   :  { %v3433_v62 = vadd.f32 %v3432_v58, %v3431_v54 }
 0x2a9   :  { %v3402_v63 = vcombine.low %v3392_v57, %v3399_v59  ;;  %v3440_v0 = vadd.f32 %v3439_v61, %v3438_v56 }
 0x2ab   :  { %v3409_v1 = vrot.slane %v3402_v63, %v3408_v60  ;;  %v3443_v2 = vcombine.low %v3433_v62, %v3440_v0 }
 0x2ad   :  { %v3416_v3 = vrot.slane %v3409_v1, %v3408_v60  ;;  %v3450_v4 = vrot.slane %v3443_v2, %v3408_v60 }
 0x2af   :  { %3422 = vst.msk [vmem:[%s6087_s3] sm:$0x3] %vm3420_vm0, %v3416_v3  ;;  %v3457_v5 = vrot.slane %v3450_v4, %v3408_v60 }
 0x2b1   :  { %3459 = vst.msk [vmem:[%s6087_s3 + $0x2] sm:$0x3] %vm3420_vm0, %v3457_v5 }

// kernel: _lambda_.15
= control target key start
LH: loop header
LB: loop body
LE: loop exit
PB: predicated region body
PF: predicated region fallthrough
CT: control target
= control target key end

     0   :  { %v22_v0 = vlaneseq  ;;  %s116_s0 = inlined_call_operand.vmem [shape: bf16[16,256], index: 0, kind: input, shape index: {}]   ;;  %s117_s1 = inlined_call_operand.vmem [shape: f32[1,256], index: 1, kind: input, shape index: {}]   ;;  %s118_s2 = inlined_call_operand.vmem [shape: f32[1,256], index: 2, kind: input, shape index: {}]   ;;  %s119_s3 = inlined_call_operand.vmem [shape: f32[16,256], index: 3, kind: output, shape index: {}]  }
   0x1   :  { %v14_v1 = vld [vmem:[%s116_s0] sm:$0xff]  ;;  %v15_v3 = vld [vmem:[%s116_s0 + $0x8] sm:$0xff] }
   0x2   :  { %v23_v2 = vshrl.u32 %v22_v0, 7  ;;  %v16_v4 = vunpack.c.l.bf16 %v14_v1  ;;  %v20_v5 = vld [vmem:[%s117_s1] sm:$0x3]  ;;  %v17_v7 = vunpack.c.h.bf16 %v14_v1  ;;  %v18_v10 = vunpack.c.l.bf16 %v15_v3 }
   0x3   :  { %v36_v6 = vld [vmem:[%s118_s2] sm:$0x3]  ;;  %v19_v11 = vunpack.c.h.bf16 %v15_v3 }
   0x4   :  { %v24_v8 = vsub.s32 0, %v23_v2  ;;  %v28_v9 = vsub.s32 1, %v23_v2 }
   0x6   :  { %v25_v12 = vrot.slane %v20_v5, %v24_v8  ;;  %v41_v13 = vrot.slane %v36_v6, %v24_v8  ;;  %v29_v14 = vrot.slane %v20_v5, %v28_v9  ;;  %v45_v15 = vrot.slane %v36_v6, %v28_v9 }
   0x8   :  { %v32_v16 = vmul.f32 %v25_v12, %v16_v4  ;;  %v33_v17 = vmul.f32 %v29_v14, %v17_v7  ;;  %v34_v18 = vmul.f32 %v25_v12, %v18_v10  ;;  %v35_v19 = vmul.f32 %v29_v14, %v19_v11 }
   0xa   :  { %v48_v20 = vadd.f32 %v41_v13, %v32_v16  ;;  %v49_v21 = vadd.f32 %v45_v15, %v33_v17  ;;  %v50_v22 = vadd.f32 %v41_v13, %v34_v18  ;;  %v51_v23 = vadd.f32 %v45_v15, %v35_v19 }
   0xc   :  { %vm52_vm0 = vcmp.ge.f32.partialorder %v48_v20, 0.0  ;;  %v56_v24 = vmul.f32 0.2, %v48_v20  ;;  %vm53_vm1 = vcmp.ge.f32.partialorder %v49_v21, 0.0  ;;  %v57_v25 = vmul.f32 0.2, %v49_v21 }
   0xd   :  { %vm54_vm2 = vcmp.ge.f32.partialorder %v50_v22, 0.0  ;;  %v58_v26 = vmul.f32 0.2, %v50_v22  ;;  %vm55_vm3 = vcmp.ge.f32.partialorder %v51_v23, 0.0  ;;  %v59_v27 = vmul.f32 0.2, %v51_v23 }
   0xe   :  { %v60_v28 = vsel %vm52_vm0, %v48_v20, %v56_v24  ;;  %v61_v29 = vsel %vm53_vm1, %v49_v21, %v57_v25 }
   0xf   :  { %64 = vst [vmem:[%s119_s3] sm:$0xff] %v60_v28  ;;  %65 = vst [vmem:[%s119_s3 + $0x8] sm:$0xff] %v61_v29  ;;  %v62_v30 = vsel %vm54_vm2, %v50_v22, %v58_v26  ;;  %v63_v31 = vsel %vm55_vm3, %v51_v23, %v59_v27 }
  0x10   :  { %66 = vst [vmem:[%s119_s3 + $0x10] sm:$0xff] %v62_v30  ;;  %67 = vst [vmem:[%s119_s3 + $0x18] sm:$0xff] %v63_v31 }

// kernel: _lambda_.14
= control target key start
LH: loop header
LB: loop body
LE: loop exit
PB: predicated region body
PF: predicated region fallthrough
CT: control target
= control target key end

     0   :  { %s11969_s1 = inlined_call_operand.vmem [shape: bf16[6912,256], index: 1, kind: input, shape index: {}]   ;;  %s11970_s0 = inlined_call_operand.vmem [shape: bf16[16,6912], index: 0, kind: input, shape index: {}]   ;;  %s11971_s2 = inlined_call_operand.vmem [shape: bf16[16,256], index: 2, kind: output, shape index: {0}]   ;;  %s11972_s3 = inlined_call_operand.vmem [shape: f32[1,1,512], index: 3, kind: output, shape index: {1}]  }
   0x1   :  { %v7805_v0 = vld [vmem:[%s11969_s1 + $0x4] ss:$8 sps:$4 sm:$0xff]   ;;  %v7809_v2 = vld [vmem:[%s11969_s1] ss:$8 sps:$4 sm:$0xff]   ;;  %v7811_v4 = vld [vmem:[%s11969_s1 + $0x14] ss:$8 sps:$4 sm:$0xff]  }
   0x2   :  { %v7807_v1 = vld [vmem:[%s11969_s1 + $0xd04] ss:$8 sps:$4 sm:$0xff]   ;;  %5521 = vmatprep.subr.bf16.mxu1 %v7805_v0  ;;  %v7810_v3 = vld [vmem:[%s11969_s1 + $0xd00] ss:$8 sps:$4 sm:$0xff]   ;;  %v7813_v5 = vld [vmem:[%s11969_s1 + $0xd14] ss:$8 sps:$4 sm:$0xff]  }
   0x3   :  { %6080 = vmatprep.subr.bf16.mxu0 %v7807_v1  ;;  %5522 = vmatpush1.bf16.msra.mxu1 %v7809_v2  ;;  %v7815_v6 = vld [vmem:[%s11969_s1 + $0x10] ss:$8 sps:$4 sm:$0xff]   ;;  %v7817_v8 = vld [vmem:[%s11969_s1 + $0x24] ss:$8 sps:$4 sm:$0xff]   ;;  %v7821_v10 = vld [vmem:[%s11969_s1 + $0x20] ss:$8 sps:$4 sm:$0xff]  }
   0x4   :  { %6081 = vmatpush1.bf16.msra.mxu0 %v7810_v3  ;;  %5523 = vmatprep.subr.bf16.mxu1 %v7811_v4  ;;  %v7816_v7 = vld [vmem:[%s11969_s1 + $0xd10] ss:$8 sps:$4 sm:$0xff]   ;;  %v7819_v9 = vld [vmem:[%s11969_s1 + $0xd24] ss:$8 sps:$4 sm:$0xff]   ;;  %v7822_v11 = vld [vmem:[%s11969_s1 + $0xd20] ss:$8 sps:$4 sm:$0xff]  }
   0x5   :  { %6082 = vmatprep.subr.bf16.mxu0 %v7813_v5  ;;  %v7823_v12 = vld [vmem:[%s11969_s1 + $0x34] ss:$8 sps:$4 sm:$0xff]   ;;  %v7827_v14 = vld [vmem:[%s11969_s1 + $0x30] ss:$8 sps:$4 sm:$0xff]   ;;  %v7829_v16 = vld [vmem:[%s11969_s1 + $0x44] ss:$8 sps:$4 sm:$0xff]  }
   0x6   :  { %v7825_v13 = vld [vmem:[%s11969_s1 + $0xd34] ss:$8 sps:$4 sm:$0xff]   ;;  %v7828_v15 = vld [vmem:[%s11969_s1 + $0xd30] ss:$8 sps:$4 sm:$0xff]   ;;  %v7831_v17 = vld [vmem:[%s11969_s1 + $0xd44] ss:$8 sps:$4 sm:$0xff]  }
   0x7   :  { %5524 = vmatpush1.bf16.msra.mxu1 %v7815_v6  ;;  %v7833_v18 = vld [vmem:[%s11969_s1 + $0x40] ss:$8 sps:$4 sm:$0xff]   ;;  %v7835_v20 = vld [vmem:[%s11969_s1 + $0x54] ss:$8 sps:$4 sm:$0xff]   ;;  %v7839_v22 = vld [vmem:[%s11969_s1 + $0x50] ss:$8 sps:$4 sm:$0xff]  }
   0x8   :  { %6083 = vmatpush1.bf16.msra.mxu0 %v7816_v7  ;;  %5525 = vmatprep.subr.bf16.mxu1 %v7817_v8  ;;  %v7834_v19 = vld [vmem:[%s11969_s1 + $0xd40] ss:$8 sps:$4 sm:$0xff]   ;;  %v7837_v21 = vld [vmem:[%s11969_s1 + $0xd54] ss:$8 sps:$4 sm:$0xff]   ;;  %v7840_v23 = vld [vmem:[%s11969_s1 + $0xd50] ss:$8 sps:$4 sm:$0xff]  }
   0x9   :  { %6084 = vmatprep.subr.bf16.mxu0 %v7819_v9  ;;  %v7841_v24 = vld [vmem:[%s11969_s1 + $0x64] ss:$8 sps:$4 sm:$0xff]   ;;  %v7845_v26 = vld [vmem:[%s11969_s1 + $0x60] ss:$8 sps:$4 sm:$0xff]   ;;  %v7847_v28 = vld [vmem:[%s11969_s1 + $0x74] ss:$8 sps:$4 sm:$0xff]  }
   0xa   :  { %v7843_v25 = vld [vmem:[%s11969_s1 + $0xd64] ss:$8 sps:$4 sm:$0xff]   ;;  %v7846_v27 = vld [vmem:[%s11969_s1 + $0xd60] ss:$8 sps:$4 sm:$0xff]   ;;  %v7849_v29 = vld [vmem:[%s11969_s1 + $0xd74] ss:$8 sps:$4 sm:$0xff]  }
   0xb   :  { %5526 = vmatpush1.bf16.msra.mxu1 %v7821_v10  ;;  %v7851_v30 = vld [vmem:[%s11969_s1 + $0x70] ss:$8 sps:$4 sm:$0xff]   ;;  %v7853_v32 = vld [vmem:[%s11969_s1 + $0x84] ss:$8 sps:$4 sm:$0xff]   ;;  %v7857_v34 = vld [vmem:[%s11969_s1 + $0x80] ss:$8 sps:$4 sm:$0xff]  }
   0xc   :  { %6085 = vmatpush1.bf16.msra.mxu0 %v7822_v11  ;;  %5527 = vmatprep.subr.bf16.mxu1 %v7823_v12  ;;  %v7852_v31 = vld [vmem:[%s11969_s1 + $0xd70] ss:$8 sps:$4 sm:$0xff]   ;;  %v7855_v33 = vld [vmem:[%s11969_s1 + $0xd84] ss:$8 sps:$4 sm:$0xff]   ;;  %v7858_v35 = vld [vmem:[%s11969_s1 + $0xd80] ss:$8 sps:$4 sm:$0xff]  }
   0xd   :  { %6086 = vmatprep.subr.bf16.mxu0 %v7825_v13  ;;  %v7859_v36 = vld [vmem:[%s11969_s1 + $0x94] ss:$8 sps:$4 sm:$0xff]   ;;  %v7863_v38 = vld [vmem:[%s11969_s1 + $0x90] ss:$8 sps:$4 sm:$0xff]   ;;  %v7865_v40 = vld [vmem:[%s11969_s1 + $0xa4] ss:$8 sps:$4 sm:$0xff]  }
   0xe   :  { %v7861_v37 = vld [vmem:[%s11969_s1 + $0xd94] ss:$8 sps:$4 sm:$0xff]   ;;  %v7864_v39 = vld [vmem:[%s11969_s1 + $0xd90] ss:$8 sps:$4 sm:$0xff]   ;;  %v7867_v41 = vld [vmem:[%s11969_s1 + $0xda4] ss:$8 sps:$4 sm:$0xff]  }
   0xf   :  { %5528 = vmatpush1.bf16.msra.mxu1 %v7827_v14  ;;  %v7869_v42 = vld [vmem:[%s11969_s1 + $0xa0] ss:$8 sps:$4 sm:$0xff]   ;;  %v7871_v44 = vld [vmem:[%s11969_s1 + $0xb4] ss:$8 sps:$4 sm:$0xff]   ;;  %v7875_v46 = vld [vmem:[%s11969_s1 + $0xb0] ss:$8 sps:$4 sm:$0xff]  }
  0x10   :  { %6087 = vmatpush1.bf16.msra.mxu0 %v7828_v15  ;;  %5529 = vmatprep.subr.bf16.mxu1 %v7829_v16  ;;  %v7870_v43 = vld [vmem:[%s11969_s1 + $0xda0] ss:$8 sps:$4 sm:$0xff]   ;;  %v7873_v45 = vld [vmem:[%s11969_s1 + $0xdb4] ss:$8 sps:$4 sm:$0xff]   ;;  %v7876_v47 = vld [vmem:[%s11969_s1 + $0xdb0] ss:$8 sps:$4 sm:$0xff]  }
  0x11   :  { %6088 = vmatprep.subr.bf16.mxu0 %v7831_v17  ;;  %v7903_v48 = vld [vmem:[%s11970_s0 + $0x4] ss:$216 sps:$4 sm:$0xff]   ;;  %v7881_v52 = vld [vmem:[%s11969_s1 + $0xc0] ss:$8 sps:$4 sm:$0xff]   ;;  %v7887_v56 = vld [vmem:[%s11969_s1 + $0xd0] ss:$8 sps:$4 sm:$0xff]  }
  0x12   :  { %v7877_v49 = vld [vmem:[%s11969_s1 + $0xc4] ss:$8 sps:$4 sm:$0xff]   ;;  %5553 = vmatprep.mubr.bf16.mxu1 %v7903_v48  ;;  %v7882_v53 = vld [vmem:[%s11969_s1 + $0xdc0] ss:$8 sps:$4 sm:$0xff]   ;;  %v7883_v54 = vld [vmem:[%s11969_s1 + $0xd4] ss:$8 sps:$4 sm:$0xff]  }
  0x13   :  { %5530 = vmatpush1.bf16.msra.mxu1 %v7833_v18  ;;  %v7879_v50 = vld [vmem:[%s11969_s1 + $0xdc4] ss:$8 sps:$4 sm:$0xff]   ;;  %v7885_v55 = vld [vmem:[%s11969_s1 + $0xdd4] ss:$8 sps:$4 sm:$0xff]   ;;  %v7888_v57 = vld [vmem:[%s11969_s1 + $0xdd0] ss:$8 sps:$4 sm:$0xff]  }
  0x14   :  { %6089 = vmatpush1.bf16.msra.mxu0 %v7834_v19  ;;  %5531 = vmatprep.subr.bf16.mxu1 %v7835_v20  ;;  %v7909_v51 = vld [vmem:[%s11970_s0 + $0x6c] ss:$216 sps:$4 sm:$0xff]   ;;  %v7893_v60 = vld [vmem:[%s11969_s1 + $0xe0] ss:$8 sps:$4 sm:$0xff]   ;;  %v7895_v62 = vld [vmem:[%s11969_s1 + $0xf4] ss:$8 sps:$4 sm:$0xff]  }
  0x15   :  { %6090 = vmatprep.subr.bf16.mxu0 %v7837_v21  ;;  %6112 = vmatprep.mubr.bf16.mxu0 %v7909_v51  ;;  %v7889_v58 = vld [vmem:[%s11969_s1 + $0xe4] ss:$8 sps:$4 sm:$0xff]   ;;  %v7894_v61 = vld [vmem:[%s11969_s1 + $0xde0] ss:$8 sps:$4 sm:$0xff]   ;;  %v7897_v63 = vld [vmem:[%s11969_s1 + $0xdf4] ss:$8 sps:$4 sm:$0xff]  }
  0x16   :  { %v7891_v59 = vld [vmem:[%s11969_s1 + $0xde4] ss:$8 sps:$4 sm:$0xff]   ;;  %v7899_v0 = vld [vmem:[%s11969_s1 + $0xf0] ss:$8 sps:$4 sm:$0xff]   ;;  %v7904_v5 = vld [vmem:[%s11969_s1 + $0x100] ss:$8 sps:$4 sm:$0xff]  }
  0x17   :  { %5532 = vmatpush1.bf16.msra.mxu1 %v7839_v22  ;;  %v7900_v1 = vld [vmem:[%s11969_s1 + $0xdf0] ss:$8 sps:$4 sm:$0xff]   ;;  %v7906_v2 = vld [vmem:[%s11969_s1 + $0x104] ss:$8 sps:$4 sm:$0xff]   ;;  %v7907_v6 = vld [vmem:[%s11970_s0 + $0x68] ss:$216 sps:$4 sm:$0xff]  }
  0x18   :  { %6091 = vmatpush1.bf16.msra.mxu0 %v7840_v23  ;;  %5533 = vmatprep.subr.bf16.mxu1 %v7841_v24  ;;  %v7912_v3 = vld [vmem:[%s11969_s1 + $0xe04] ss:$8 sps:$4 sm:$0xff]   ;;  %v7901_v4 = vld [vmem:[%s11970_s0] ss:$216 sps:$4 sm:$0xff]   ;;  %v7915_v8 = vld [vmem:[%s11969_s1 + $0x114] ss:$8 sps:$4 sm:$0xff]  }
  0x19   :  { %6092 = vmatprep.subr.bf16.mxu0 %v7843_v25  ;;  %v7910_v7 = vld [vmem:[%s11969_s1 + $0xe00] ss:$8 sps:$4 sm:$0xff]   ;;  %v7918_v9 = vld [vmem:[%s11969_s1 + $0xe14] ss:$8 sps:$4 sm:$0xff]   ;;  %v7913_v10 = vld [vmem:[%s11969_s1 + $0x110] ss:$8 sps:$4 sm:$0xff]  }
  0x1a   :  { %v7916_v11 = vld [vmem:[%s11969_s1 + $0xe10] ss:$8 sps:$4 sm:$0xff]   ;;  %v7921_v12 = vld [vmem:[%s11969_s1 + $0x124] ss:$8 sps:$4 sm:$0xff]   ;;  %v7919_v14 = vld [vmem:[%s11969_s1 + $0x120] ss:$8 sps:$4 sm:$0xff]  }
  0x1b   :  { %5534 = vmatpush1.bf16.msra.mxu1 %v7845_v26  ;;  %v7924_v13 = vld [vmem:[%s11969_s1 + $0xe24] ss:$8 sps:$4 sm:$0xff]   ;;  %v7922_v15 = vld [vmem:[%s11969_s1 + $0xe20] ss:$8 sps:$4 sm:$0xff]   ;;  %v7927_v16 = vld [vmem:[%s11969_s1 + $0x134] ss:$8 sps:$4 sm:$0xff]  }
  0x1c   :  { %6093 = vmatpush1.bf16.msra.mxu0 %v7846_v27  ;;  %5535 = vmatprep.subr.bf16.mxu1 %v7847_v28  ;;  %v7930_v17 = vld [vmem:[%s11969_s1 + $0xe34] ss:$8 sps:$4 sm:$0xff]   ;;  %v7925_v18 = vld [vmem:[%s11969_s1 + $0x130] ss:$8 sps:$4 sm:$0xff]   ;;  %v7933_v20 = vld [vmem:[%s11969_s1 + $0x144] ss:$8 sps:$4 sm:$0xff]  }
  0x1d   :  { %6094 = vmatprep.subr.bf16.mxu0 %v7849_v29  ;;  %v7928_v19 = vld [vmem:[%s11969_s1 + $0xe30] ss:$8 sps:$4 sm:$0xff]   ;;  %v7936_v21 = vld [vmem:[%s11969_s1 + $0xe44] ss:$8 sps:$4 sm:$0xff]   ;;  %v7931_v22 = vld [vmem:[%s11969_s1 + $0x140] ss:$8 sps:$4 sm:$0xff]  }
  0x1e   :  { %v7934_v23 = vld [vmem:[%s11969_s1 + $0xe40] ss:$8 sps:$4 sm:$0xff]   ;;  %v7939_v24 = vld [vmem:[%s11969_s1 + $0x154] ss:$8 sps:$4 sm:$0xff]   ;;  %v7937_v26 = vld [vmem:[%s11969_s1 + $0x150] ss:$8 sps:$4 sm:$0xff]  }
  0x1f   :  { %5536 = vmatpush1.bf16.msra.mxu1 %v7851_v30  ;;  %v7942_v25 = vld [vmem:[%s11969_s1 + $0xe54] ss:$8 sps:$4 sm:$0xff]   ;;  %v7940_v27 = vld [vmem:[%s11969_s1 + $0xe50] ss:$8 sps:$4 sm:$0xff]   ;;  %v7945_v28 = vld [vmem:[%s11969_s1 + $0x164] ss:$8 sps:$4 sm:$0xff]  }
  0x20   :  { %6095 = vmatpush1.bf16.msra.mxu0 %v7852_v31  ;;  %5537 = vmatprep.subr.bf16.mxu1 %v7853_v32  ;;  %v7948_v29 = vld [vmem:[%s11969_s1 + $0xe64] ss:$8 sps:$4 sm:$0xff]   ;;  %v7943_v30 = vld [vmem:[%s11969_s1 + $0x160] ss:$8 sps:$4 sm:$0xff]   ;;  %v7951_v32 = vld [vmem:[%s11969_s1 + $0x174] ss:$8 sps:$4 sm:$0xff]  }
  0x21   :  { %6096 = vmatprep.subr.bf16.mxu0 %v7855_v33  ;;  %v7946_v31 = vld [vmem:[%s11969_s1 + $0xe60] ss:$8 sps:$4 sm:$0xff]   ;;  %v7954_v33 = vld [vmem:[%s11969_s1 + $0xe74] ss:$8 sps:$4 sm:$0xff]  }
  0x22   :  { %v7967_v48 = vld [vmem:[%s11969_s1 + $0x1a0] ss:$8 sps:$4 sm:$0xff]   ;;  %v7978_v51 = vld [vmem:[%s11969_s1 + $0xeb4] ss:$8 sps:$4 sm:$0xff]  }
  0x23   :  { %5538 = vmatpush1.bf16.msra.mxu1 %v7857_v34  ;;  %v8005_v34 = vld [vmem:[%s11970_s0 + $0xc] ss:$216 sps:$4 sm:$0xff]  }
  0x24   :  { %6097 = vmatpush1.bf16.msra.mxu0 %v7858_v35  ;;  %5539 = vmatprep.subr.bf16.mxu1 %v7859_v36  ;;  %v7949_v35 = vld [vmem:[%s11969_s1 + $0x170] ss:$8 sps:$4 sm:$0xff]  }
  0x25   :  { %6098 = vmatprep.subr.bf16.mxu0 %v7861_v37  ;;  %v7952_v36 = vld [vmem:[%s11969_s1 + $0xe70] ss:$8 sps:$4 sm:$0xff]   ;;  %v8011_v37 = vld [vmem:[%s11970_s0 + $0x74] ss:$216 sps:$4 sm:$0xff]  }
  0x27   :  { %5540 = vmatpush1.bf16.msra.mxu1 %v7863_v38  ;;  %v7957_v38 = vld [vmem:[%s11969_s1 + $0x184] ss:$8 sps:$4 sm:$0xff]  }
  0x28   :  { %6099 = vmatpush1.bf16.msra.mxu0 %v7864_v39  ;;  %5541 = vmatprep.subr.bf16.mxu1 %v7865_v40  ;;  %v7960_v39 = vld [vmem:[%s11969_s1 + $0xe84] ss:$8 sps:$4 sm:$0xff]   ;;  %v7955_v40 = vld [vmem:[%s11969_s1 + $0x180] ss:$8 sps:$4 sm:$0xff]  }
  0x29   :  { %6100 = vmatprep.subr.bf16.mxu0 %v7867_v41  ;;  %v7958_v41 = vld [vmem:[%s11969_s1 + $0xe80] ss:$8 sps:$4 sm:$0xff]  }
  0x2b   :  { %5542 = vmatpush1.bf16.msra.mxu1 %v7869_v42  ;;  %v7963_v42 = vld [vmem:[%s11969_s1 + $0x194] ss:$8 sps:$4 sm:$0xff]  }
  0x2c   :  { %6101 = vmatpush1.bf16.msra.mxu0 %v7870_v43  ;;  %5543 = vmatprep.subr.bf16.mxu1 %v7871_v44  ;;  %v7966_v43 = vld [vmem:[%s11969_s1 + $0xe94] ss:$8 sps:$4 sm:$0xff]   ;;  %v7961_v44 = vld [vmem:[%s11969_s1 + $0x190] ss:$8 sps:$4 sm:$0xff]  }
  0x2d   :  { %6102 = vmatprep.subr.bf16.mxu0 %v7873_v45  ;;  %v7964_v45 = vld [vmem:[%s11969_s1 + $0xe90] ss:$8 sps:$4 sm:$0xff]  }
  0x2f   :  { %5544 = vmatpush1.bf16.msra.mxu1 %v7875_v46  ;;  %v7969_v46 = vld [vmem:[%s11969_s1 + $0x1a4] ss:$8 sps:$4 sm:$0xff]  }
  0x30   :  { %6103 = vmatpush1.bf16.msra.mxu0 %v7876_v47  ;;  %5545 = vmatprep.subr.bf16.mxu1 %v7877_v49  ;;  %v7972_v47 = vld [vmem:[%s11969_s1 + $0xea4] ss:$8 sps:$4 sm:$0xff]   ;;  %v7970_v49 = vld [vmem:[%s11969_s1 + $0xea0] ss:$8 sps:$4 sm:$0xff]  }
  0x31   :  { %6104 = vmatprep.subr.bf16.mxu0 %v7879_v50  ;;  %v7975_v50 = vld [vmem:[%s11969_s1 + $0x1b4] ss:$8 sps:$4 sm:$0xff]  }
  0x33   :  { %5546 = vmatpush1.bf16.msra.mxu1 %v7881_v52  ;;  %v7973_v52 = vld [vmem:[%s11969_s1 + $0x1b0] ss:$8 sps:$4 sm:$0xff]  }
  0x34   :  { %6105 = vmatpush1.bf16.msra.mxu0 %v7882_v53  ;;  %5547 = vmatprep.subr.bf16.mxu1 %v7883_v54  ;;  %v7976_v53 = vld [vmem:[%s11969_s1 + $0xeb0] ss:$8 sps:$4 sm:$0xff]   ;;  %v7981_v54 = vld [vmem:[%s11969_s1 + $0x1c4] ss:$8 sps:$4 sm:$0xff]  }
  0x35   :  { %6106 = vmatprep.subr.bf16.mxu0 %v7885_v55  ;;  %v7984_v55 = vld [vmem:[%s11969_s1 + $0xec4] ss:$8 sps:$4 sm:$0xff]  }
  0x37   :  { %5548 = vmatpush1.bf16.msra.mxu1 %v7887_v56  ;;  %v7979_v56 = vld [vmem:[%s11969_s1 + $0x1c0] ss:$8 sps:$4 sm:$0xff]  }
  0x38   :  { %6107 = vmatpush1.bf16.msra.mxu0 %v7888_v57  ;;  %5549 = vmatprep.subr.bf16.mxu1 %v7889_v58  ;;  %v7982_v57 = vld [vmem:[%s11969_s1 + $0xec0] ss:$8 sps:$4 sm:$0xff]   ;;  %v7987_v58 = vld [vmem:[%s11969_s1 + $0x1d4] ss:$8 sps:$4 sm:$0xff]  }
  0x39   :  { %6108 = vmatprep.subr.bf16.mxu0 %v7891_v59  ;;  %v7990_v59 = vld [vmem:[%s11969_s1 + $0xed4] ss:$8 sps:$4 sm:$0xff]  }
  0x3b   :  { %5550 = vmatpush1.bf16.msra.mxu1 %v7893_v60  ;;  %v7985_v60 = vld [vmem:[%s11969_s1 + $0x1d0] ss:$8 sps:$4 sm:$0xff]  }
  0x3c   :  { %6109 = vmatpush1.bf16.msra.mxu0 %v7894_v61  ;;  %5551 = vmatprep.subr.bf16.mxu1 %v7895_v62  ;;  %v7988_v61 = vld [vmem:[%s11969_s1 + $0xed0] ss:$8 sps:$4 sm:$0xff]   ;;  %v7993_v62 = vld [vmem:[%s11969_s1 + $0x1e4] ss:$8 sps:$4 sm:$0xff]  }
  0x3d   :  { %6110 = vmatprep.subr.bf16.mxu0 %v7897_v63  ;;  %v7996_v63 = vld [vmem:[%s11969_s1 + $0xee4] ss:$8 sps:$4 sm:$0xff]  }
  0x3f   :  { %5552 = vmatpush1.bf16.msra.mxu1 %v7899_v0  ;;  %v7991_v0 = vld [vmem:[%s11969_s1 + $0x1e0] ss:$8 sps:$4 sm:$0xff]  }
  0x40   :  { %6111 = vmatpush1.bf16.msra.mxu0 %v7900_v1  ;;  %5564 = vmatprep.subr.bf16.mxu1 %v7906_v2  ;;  %v7994_v1 = vld [vmem:[%s11969_s1 + $0xee0] ss:$8 sps:$4 sm:$0xff]   ;;  %v7999_v2 = vld [vmem:[%s11969_s1 + $0x1f4] ss:$8 sps:$4 sm:$0xff]  }
  0x41   :  { %6123 = vmatprep.subr.bf16.mxu0 %v7912_v3  ;;  %v8002_v3 = vld [vmem:[%s11969_s1 + $0xef4] ss:$8 sps:$4 sm:$0xff]  }
  0x42   :  { %5554 = vmatmul.mubr.bf16.vlgmr.msra.gmra.mrb[0].mxu1 %v7901_v4  ;;  %v7997_v4 = vld [vmem:[%s11969_s1 + $0x1f0] ss:$8 sps:$4 sm:$0xff]  }
  0x43   :  { %6113 = vmatmul.mubr.bf16.vlgmr.msra.gmra.mrb[0].mxu0 %v7907_v6  ;;  %5565 = vmatpush1.bf16.msra.mxu1 %v7904_v5  ;;  %v8000_v5 = vld [vmem:[%s11969_s1 + $0xef0] ss:$8 sps:$4 sm:$0xff]   ;;  %v8008_v6 = vld [vmem:[%s11969_s1 + $0x204] ss:$8 sps:$4 sm:$0xff]  }
  0x44   :  { %6124 = vmatpush1.bf16.msra.mxu0 %v7910_v7  ;;  %5566 = vmatprep.subr.bf16.mxu1 %v7915_v8  ;;  %v8014_v7 = vld [vmem:[%s11969_s1 + $0xf04] ss:$8 sps:$4 sm:$0xff]   ;;  %v8003_v8 = vld [vmem:[%s11970_s0 + $0x8] ss:$216 sps:$4 sm:$0xff]  }
  0x45   :  { %6125 = vmatprep.subr.bf16.mxu0 %v7918_v9  ;;  %5596 = vmatprep.mubr.bf16.mxu1 %v8005_v34  ;;  %v8006_v9 = vld [vmem:[%s11969_s1 + $0x200] ss:$8 sps:$4 sm:$0xff]   ;;  %v8047_v34 = vld [vmem:[%s11969_s1 + $0x264] ss:$8 sps:$4 sm:$0xff]  }
  0x46   :  { %6155 = vmatprep.mubr.bf16.mxu0 %v8011_v37  ;;  %v8048_v37 = vld [vmem:[%s11969_s1 + $0xf60] ss:$8 sps:$4 sm:$0xff]  }
  0x47   :  { %5567 = vmatpush1.bf16.msra.mxu1 %v7913_v10  ;;  %v8009_v10 = vld [vmem:[%s11970_s0 + $0x70] ss:$216 sps:$4 sm:$0xff]  }
  0x48   :  { %6126 = vmatpush1.bf16.msra.mxu0 %v7916_v11  ;;  %5568 = vmatprep.subr.bf16.mxu1 %v7921_v12  ;;  %v8012_v11 = vld [vmem:[%s11969_s1 + $0xf00] ss:$8 sps:$4 sm:$0xff]   ;;  %v8017_v12 = vld [vmem:[%s11969_s1 + $0x214] ss:$8 sps:$4 sm:$0xff]  }
  0x49   :  { %6127 = vmatprep.subr.bf16.mxu0 %v7924_v13  ;;  %v8020_v13 = vld [vmem:[%s11969_s1 + $0xf14] ss:$8 sps:$4 sm:$0xff]  }
  0x4b   :  { %5569 = vmatpush1.bf16.msra.mxu1 %v7919_v14  ;;  %v8015_v14 = vld [vmem:[%s11969_s1 + $0x210] ss:$8 sps:$4 sm:$0xff]  }
  0x4c   :  { %6128 = vmatpush1.bf16.msra.mxu0 %v7922_v15  ;;  %5570 = vmatprep.subr.bf16.mxu1 %v7927_v16  ;;  %v8018_v15 = vld [vmem:[%s11969_s1 + $0xf10] ss:$8 sps:$4 sm:$0xff]   ;;  %v8023_v16 = vld [vmem:[%s11969_s1 + $0x224] ss:$8 sps:$4 sm:$0xff]  }
  0x4d   :  { %6129 = vmatprep.subr.bf16.mxu0 %v7930_v17  ;;  %v8026_v17 = vld [vmem:[%s11969_s1 + $0xf24] ss:$8 sps:$4 sm:$0xff]  }
  0x4f   :  { %5571 = vmatpush1.bf16.msra.mxu1 %v7925_v18  ;;  %v8021_v18 = vld [vmem:[%s11969_s1 + $0x220] ss:$8 sps:$4 sm:$0xff]  }
  0x50   :  { %6130 = vmatpush1.bf16.msra.mxu0 %v7928_v19  ;;  %5572 = vmatprep.subr.bf16.mxu1 %v7933_v20  ;;  %v8107_v19 = vld [vmem:[%s11970_s0 + $0x14] ss:$216 sps:$4 sm:$0xff]   ;;  %v8024_v20 = vld [vmem:[%s11969_s1 + $0xf20] ss:$8 sps:$4 sm:$0xff]  }
  0x51   :  { %6131 = vmatprep.subr.bf16.mxu0 %v7936_v21  ;;  %v8029_v21 = vld [vmem:[%s11969_s1 + $0x234] ss:$8 sps:$4 sm:$0xff]  }
  0x53   :  { %5573 = vmatpush1.bf16.msra.mxu1 %v7931_v22  ;;  %v8032_v22 = vld [vmem:[%s11969_s1 + $0xf34] ss:$8 sps:$4 sm:$0xff]  }
  0x54   :  { %6132 = vmatpush1.bf16.msra.mxu0 %v7934_v23  ;;  %5574 = vmatprep.subr.bf16.mxu1 %v7939_v24  ;;  %v8113_v23 = vld [vmem:[%s11970_s0 + $0x7c] ss:$216 sps:$4 sm:$0xff]   ;;  %v8027_v24 = vld [vmem:[%s11969_s1 + $0x230] ss:$8 sps:$4 sm:$0xff]  }
  0x55   :  { %6133 = vmatprep.subr.bf16.mxu0 %v7942_v25  ;;  %v8030_v25 = vld [vmem:[%s11969_s1 + $0xf30] ss:$8 sps:$4 sm:$0xff]  }
  0x57   :  { %5575 = vmatpush1.bf16.msra.mxu1 %v7937_v26  ;;  %v8035_v26 = vld [vmem:[%s11969_s1 + $0x244] ss:$8 sps:$4 sm:$0xff]  }
  0x58   :  { %6134 = vmatpush1.bf16.msra.mxu0 %v7940_v27  ;;  %5576 = vmatprep.subr.bf16.mxu1 %v7945_v28  ;;  %v8038_v27 = vld [vmem:[%s11969_s1 + $0xf44] ss:$8 sps:$4 sm:$0xff]   ;;  %v8033_v28 = vld [vmem:[%s11969_s1 + $0x240] ss:$8 sps:$4 sm:$0xff]  }
  0x59   :  { %6135 = vmatprep.subr.bf16.mxu0 %v7948_v29  ;;  %v8036_v29 = vld [vmem:[%s11969_s1 + $0xf40] ss:$8 sps:$4 sm:$0xff]  }
  0x5b   :  { %5577 = vmatpush1.bf16.msra.mxu1 %v7943_v30  ;;  %v8041_v30 = vld [vmem:[%s11969_s1 + $0x254] ss:$8 sps:$4 sm:$0xff]  }
  0x5c   :  { %6136 = vmatpush1.bf16.msra.mxu0 %v7946_v31  ;;  %5578 = vmatprep.subr.bf16.mxu1 %v7951_v32  ;;  %v8044_v31 = vld [vmem:[%s11969_s1 + $0xf54] ss:$8 sps:$4 sm:$0xff]   ;;  %v8039_v32 = vld [vmem:[%s11969_s1 + $0x250] ss:$8 sps:$4 sm:$0xff]  }
  0x5d   :  { %6137 = vmatprep.subr.bf16.mxu0 %v7954_v33  ;;  %v8042_v33 = vld [vmem:[%s11969_s1 + $0xf50] ss:$8 sps:$4 sm:$0xff]  }
  0x5f   :  { %5579 = vmatpush1.bf16.msra.mxu1 %v7949_v35  ;;  %v8050_v35 = vld [vmem:[%s11969_s1 + $0xf64] ss:$8 sps:$4 sm:$0xff]  }
  0x60   :  { %6138 = vmatpush1.bf16.msra.mxu0 %v7952_v36  ;;  %5580 = vmatprep.subr.bf16.mxu1 %v7957_v38  ;;  %v8045_v36 = vld [vmem:[%s11969_s1 + $0x260] ss:$8 sps:$4 sm:$0xff]   ;;  %v8053_v38 = vld [vmem:[%s11969_s1 + $0x274] ss:$8 sps:$4 sm:$0xff]  }
  0x61   :  { %6139 = vmatprep.subr.bf16.mxu0 %v7960_v39  ;;  %v8056_v39 = vld [vmem:[%s11969_s1 + $0xf74] ss:$8 sps:$4 sm:$0xff]  }
  0x63   :  { %5581 = vmatpush1.bf16.msra.mxu1 %v7955_v40  ;;  %v8051_v40 = vld [vmem:[%s11969_s1 + $0x270] ss:$8 sps:$4 sm:$0xff]  }
  0x64   :  { %6140 = vmatpush1.bf16.msra.mxu0 %v7958_v41  ;;  %5582 = vmatprep.subr.bf16.mxu1 %v7963_v42  ;;  %v8054_v41 = vld [vmem:[%s11969_s1 + $0xf70] ss:$8 sps:$4 sm:$0xff]   ;;  %v8059_v42 = vld [vmem:[%s11969_s1 + $0x284] ss:$8 sps:$4 sm:$0xff]  }
  0x65   :  { %6141 = vmatprep.subr.bf16.mxu0 %v7966_v43  ;;  %v8062_v43 = vld [vmem:[%s11969_s1 + $0xf84] ss:$8 sps:$4 sm:$0xff]  }
  0x67   :  { %5583 = vmatpush1.bf16.msra.mxu1 %v7961_v44  ;;  %v8057_v44 = vld [vmem:[%s11969_s1 + $0x280] ss:$8 sps:$4 sm:$0xff]  }
  0x68   :  { %6142 = vmatpush1.bf16.msra.mxu0 %v7964_v45  ;;  %5584 = vmatprep.subr.bf16.mxu1 %v7969_v46  ;;  %v8060_v45 = vld [vmem:[%s11969_s1 + $0xf80] ss:$8 sps:$4 sm:$0xff]   ;;  %v8065_v46 = vld [vmem:[%s11969_s1 + $0x294] ss:$8 sps:$4 sm:$0xff]  }
  0x69   :  { %6143 = vmatprep.subr.bf16.mxu0 %v7972_v47  ;;  %v8068_v47 = vld [vmem:[%s11969_s1 + $0xf94] ss:$8 sps:$4 sm:$0xff]  }
  0x6b   :  { %5585 = vmatpush1.bf16.msra.mxu1 %v7967_v48  ;;  %v8063_v48 = vld [vmem:[%s11969_s1 + $0x290] ss:$8 sps:$4 sm:$0xff]  }
  0x6c   :  { %6144 = vmatpush1.bf16.msra.mxu0 %v7970_v49  ;;  %5586 = vmatprep.subr.bf16.mxu1 %v7975_v50  ;;  %v8066_v49 = vld [vmem:[%s11969_s1 + $0xf90] ss:$8 sps:$4 sm:$0xff]   ;;  %v8071_v50 = vld [vmem:[%s11969_s1 + $0x2a4] ss:$8 sps:$4 sm:$0xff]  }
  0x6d   :  { %6145 = vmatprep.subr.bf16.mxu0 %v7978_v51  ;;  %v8074_v51 = vld [vmem:[%s11969_s1 + $0xfa4] ss:$8 sps:$4 sm:$0xff]  }
  0x6f   :  { %5587 = vmatpush1.bf16.msra.mxu1 %v7973_v52  ;;  %v8069_v52 = vld [vmem:[%s11969_s1 + $0x2a0] ss:$8 sps:$4 sm:$0xff]  }
  0x70   :  { %6146 = vmatpush1.bf16.msra.mxu0 %v7976_v53  ;;  %5588 = vmatprep.subr.bf16.mxu1 %v7981_v54  ;;  %v8072_v53 = vld [vmem:[%s11969_s1 + $0xfa0] ss:$8 sps:$4 sm:$0xff]   ;;  %v8077_v54 = vld [vmem:[%s11969_s1 + $0x2b4] ss:$8 sps:$4 sm:$0xff]  }
  0x71   :  { %6147 = vmatprep.subr.bf16.mxu0 %v7984_v55  ;;  %v8080_v55 = vld [vmem:[%s11969_s1 + $0xfb4] ss:$8 sps:$4 sm:$0xff]  }
  0x73   :  { %5589 = vmatpush1.bf16.msra.mxu1 %v7979_v56  ;;  %v8075_v56 = vld [vmem:[%s11969_s1 + $0x2b0] ss:$8 sps:$4 sm:$0xff]  }
  0x74   :  { %6148 = vmatpush1.bf16.msra.mxu0 %v7982_v57  ;;  %5590 = vmatprep.subr.bf16.mxu1 %v7987_v58  ;;  %v8078_v57 = vld [vmem:[%s11969_s1 + $0xfb0] ss:$8 sps:$4 sm:$0xff]   ;;  %v8083_v58 = vld [vmem:[%s11969_s1 + $0x2c4] ss:$8 sps:$4 sm:$0xff]  }
  0x75   :  { %6149 = vmatprep.subr.bf16.mxu0 %v7990_v59  ;;  %v8086_v59 = vld [vmem:[%s11969_s1 + $0xfc4] ss:$8 sps:$4 sm:$0xff]  }
  0x77   :  { %5591 = vmatpush1.bf16.msra.mxu1 %v7985_v60  ;;  %v8081_v60 = vld [vmem:[%s11969_s1 + $0x2c0] ss:$8 sps:$4 sm:$0xff]  }
  0x78   :  { %6150 = vmatpush1.bf16.msra.mxu0 %v7988_v61  ;;  %5592 = vmatprep.subr.bf16.mxu1 %v7993_v62  ;;  %v8084_v61 = vld [vmem:[%s11969_s1 + $0xfc0] ss:$8 sps:$4 sm:$0xff]   ;;  %v8089_v62 = vld [vmem:[%s11969_s1 + $0x2d4] ss:$8 sps:$4 sm:$0xff]  }
  0x79   :  { %6151 = vmatprep.subr.bf16.mxu0 %v7996_v63  ;;  %v8092_v63 = vld [vmem:[%s11969_s1 + $0xfd4] ss:$8 sps:$4 sm:$0xff]  }
  0x7b   :  { %5593 = vmatpush1.bf16.msra.mxu1 %v7991_v0  ;;  %v8087_v0 = vld [vmem:[%s11969_s1 + $0x2d0] ss:$8 sps:$4 sm:$0xff]  }
  0x7c   :  { %6152 = vmatpush1.bf16.msra.mxu0 %v7994_v1  ;;  %5594 = vmatprep.subr.bf16.mxu1 %v7999_v2  ;;  %v8090_v1 = vld [vmem:[%s11969_s1 + $0xfd0] ss:$8 sps:$4 sm:$0xff]   ;;  %v8095_v2 = vld [vmem:[%s11969_s1 + $0x2e4] ss:$8 sps:$4 sm:$0xff]  }
  0x7d   :  { %6153 = vmatprep.subr.bf16.mxu0 %v8002_v3  ;;  %v8098_v3 = vld [vmem:[%s11969_s1 + $0xfe4] ss:$8 sps:$4 sm:$0xff]  }
  0x7f   :  { %5595 = vmatpush1.bf16.msra.mxu1 %v7997_v4  ;;  %v8093_v4 = vld [vmem:[%s11969_s1 + $0x2e0] ss:$8 sps:$4 sm:$0xff]  }
  0x80   :  { %6154 = vmatpush1.bf16.msra.mxu0 %v8000_v5  ;;  %5607 = vmatprep.subr.bf16.mxu1 %v8008_v6  ;;  %v8096_v5 = vld [vmem:[%s11969_s1 + $0xfe0] ss:$8 sps:$4 sm:$0xff]   ;;  %v8101_v6 = vld [vmem:[%s11969_s1 + $0x2f4] ss:$8 sps:$4 sm:$0xff]  }
  0x81   :  { %6166 = vmatprep.subr.bf16.mxu0 %v8014_v7  ;;  %v8104_v7 = vld [vmem:[%s11969_s1 + $0xff4] ss:$8 sps:$4 sm:$0xff]  }
  0x82   :  { %5597 = vmatmul.mubr.bf16.vlgmr.msra.gmra.mrb[0].mxu1 %v8003_v8  ;;  %v8099_v8 = vld [vmem:[%s11969_s1 + $0x2f0] ss:$8 sps:$4 sm:$0xff]  }
  0x83   :  { %6156 = vmatmul.mubr.bf16.vlgmr.msra.gmra.mrb[0].mxu0 %v8009_v10  ;;  %5608 = vmatpush1.bf16.msra.mxu1 %v8006_v9  ;;  %v8102_v9 = vld [vmem:[%s11969_s1 + $0xff0] ss:$8 sps:$4 sm:$0xff]   ;;  %v8110_v10 = vld [vmem:[%s11969_s1 + $0x304] ss:$8 sps:$4 sm:$0xff]  }
  0x84   :  { %6167 = vmatpush1.bf16.msra.mxu0 %v8012_v11  ;;  %5609 = vmatprep.subr.bf16.mxu1 %v8017_v12  ;;  %v8116_v11 = vld [vmem:[%s11969_s1 + $0x1004] ss:$8 sps:$4 sm:$0xff]   ;;  %v8105_v12 = vld [vmem:[%s11970_s0 + $0x10] ss:$216 sps:$4 sm:$0xff]  }
  0x85   :  { %6168 = vmatprep.subr.bf16.mxu0 %v8020_v13  ;;  %5639 = vmatprep.mubr.bf16.mxu1 %v8107_v19  ;;  %v8108_v13 = vld [vmem:[%s11969_s1 + $0x300] ss:$8 sps:$4 sm:$0xff]   ;;  %v8215_v19 = vld [vmem:[%s11970_s0 + $0x84] ss:$216 sps:$4 sm:$0xff]  }
  0x86   :  { %6198 = vmatprep.mubr.bf16.mxu0 %v8113_v23  ;;  %v8128_v23 = vld [vmem:[%s11969_s1 + $0x1024] ss:$8 sps:$4 sm:$0xff]  }
  0x87   :  { %5610 = vmatpush1.bf16.msra.mxu1 %v8015_v14  ;;  %v8111_v14 = vld [vmem:[%s11970_s0 + $0x78] ss:$216 sps:$4 sm:$0xff]  }
  0x88   :  { %6169 = vmatpush1.bf16.msra.mxu0 %v8018_v15  ;;  %5611 = vmatprep.subr.bf16.mxu1 %v8023_v16  ;;  %v8114_v15 = vld [vmem:[%s11969_s1 + $0x1000] ss:$8 sps:$4 sm:$0xff]   ;;  %v8119_v16 = vld [vmem:[%s11969_s1 + $0x314] ss:$8 sps:$4 sm:$0xff]  }
  0x89   :  { %6170 = vmatprep.subr.bf16.mxu0 %v8026_v17  ;;  %v8122_v17 = vld [vmem:[%s11969_s1 + $0x1014] ss:$8 sps:$4 sm:$0xff]  }
  0x8b   :  { %5612 = vmatpush1.bf16.msra.mxu1 %v8021_v18  ;;  %v8209_v18 = vld [vmem:[%s11970_s0 + $0x1c] ss:$216 sps:$4 sm:$0xff]  }
  0x8c   :  { %6171 = vmatpush1.bf16.msra.mxu0 %v8024_v20  ;;  %5613 = vmatprep.subr.bf16.mxu1 %v8029_v21  ;;  %v8117_v20 = vld [vmem:[%s11969_s1 + $0x310] ss:$8 sps:$4 sm:$0xff]  }
  0x8d   :  { %6172 = vmatprep.subr.bf16.mxu0 %v8032_v22  ;;  %v8120_v21 = vld [vmem:[%s11969_s1 + $0x1010] ss:$8 sps:$4 sm:$0xff]   ;;  %v8125_v22 = vld [vmem:[%s11969_s1 + $0x324] ss:$8 sps:$4 sm:$0xff]  }
  0x8f   :  { %5614 = vmatpush1.bf16.msra.mxu1 %v8027_v24  ;;  %v8123_v24 = vld [vmem:[%s11969_s1 + $0x320] ss:$8 sps:$4 sm:$0xff]  }
  0x90   :  { %6173 = vmatpush1.bf16.msra.mxu0 %v8030_v25  ;;  %5615 = vmatprep.subr.bf16.mxu1 %v8035_v26  ;;  %v8126_v25 = vld [vmem:[%s11969_s1 + $0x1020] ss:$8 sps:$4 sm:$0xff]   ;;  %v8131_v26 = vld [vmem:[%s11969_s1 + $0x334] ss:$8 sps:$4 sm:$0xff]  }
  0x91   :  { %6174 = vmatprep.subr.bf16.mxu0 %v8038_v27  ;;  %v8134_v27 = vld [vmem:[%s11969_s1 + $0x1034] ss:$8 sps:$4 sm:$0xff]  }
  0x93   :  { %5616 = vmatpush1.bf16.msra.mxu1 %v8033_v28  ;;  %v8129_v28 = vld [vmem:[%s11969_s1 + $0x330] ss:$8 sps:$4 sm:$0xff]  }
  0x94   :  { %6175 = vmatpush1.bf16.msra.mxu0 %v8036_v29  ;;  %5617 = vmatprep.subr.bf16.mxu1 %v8041_v30  ;;  %v8132_v29 = vld [vmem:[%s11969_s1 + $0x1030] ss:$8 sps:$4 sm:$0xff]   ;;  %v8137_v30 = vld [vmem:[%s11969_s1 + $0x344] ss:$8 sps:$4 sm:$0xff]  }
  0x95   :  { %6176 = vmatprep.subr.bf16.mxu0 %v8044_v31  ;;  %v8140_v31 = vld [vmem:[%s11969_s1 + $0x1044] ss:$8 sps:$4 sm:$0xff]  }
  0x97   :  { %5618 = vmatpush1.bf16.msra.mxu1 %v8039_v32  ;;  %v8135_v32 = vld [vmem:[%s11969_s1 + $0x340] ss:$8 sps:$4 sm:$0xff]  }
  0x98   :  { %6177 = vmatpush1.bf16.msra.mxu0 %v8042_v33  ;;  %5619 = vmatprep.subr.bf16.mxu1 %v8047_v34  ;;  %v8138_v33 = vld [vmem:[%s11969_s1 + $0x1040] ss:$8 sps:$4 sm:$0xff]   ;;  %v8143_v34 = vld [vmem:[%s11969_s1 + $0x354] ss:$8 sps:$4 sm:$0xff]  }
  0x99   :  { %6178 = vmatprep.subr.bf16.mxu0 %v8050_v35  ;;  %v8146_v35 = vld [vmem:[%s11969_s1 + $0x1054] ss:$8 sps:$4 sm:$0xff]  }
  0x9b   :  { %5620 = vmatpush1.bf16.msra.mxu1 %v8045_v36  ;;  %v8141_v36 = vld [vmem:[%s11969_s1 + $0x350] ss:$8 sps:$4 sm:$0xff]  }
  0x9c   :  { %6179 = vmatpush1.bf16.msra.mxu0 %v8048_v37  ;;  %5621 = vmatprep.subr.bf16.mxu1 %v8053_v38  ;;  %v8144_v37 = vld [vmem:[%s11969_s1 + $0x1050] ss:$8 sps:$4 sm:$0xff]   ;;  %v8149_v38 = vld [vmem:[%s11969_s1 + $0x364] ss:$8 sps:$4 sm:$0xff]  }
  0x9d   :  { %6180 = vmatprep.subr.bf16.mxu0 %v8056_v39  ;;  %v8152_v39 = vld [vmem:[%s11969_s1 + $0x1064] ss:$8 sps:$4 sm:$0xff]  }
  0x9f   :  { %5622 = vmatpush1.bf16.msra.mxu1 %v8051_v40  ;;  %v8147_v40 = vld [vmem:[%s11969_s1 + $0x360] ss:$8 sps:$4 sm:$0xff]  }
  0xa0   :  { %6181 = vmatpush1.bf16.msra.mxu0 %v8054_v41  ;;  %5623 = vmatprep.subr.bf16.mxu1 %v8059_v42  ;;  %v8150_v41 = vld [vmem:[%s11969_s1 + $0x1060] ss:$8 sps:$4 sm:$0xff]   ;;  %v8155_v42 = vld [vmem:[%s11969_s1 + $0x374] ss:$8 sps:$4 sm:$0xff]  }
  0xa1   :  { %6182 = vmatprep.subr.bf16.mxu0 %v8062_v43  ;;  %v8158_v43 = vld [vmem:[%s11969_s1 + $0x1074] ss:$8 sps:$4 sm:$0xff]  }
  0xa3   :  { %5624 = vmatpush1.bf16.msra.mxu1 %v8057_v44  ;;  %v8153_v44 = vld [vmem:[%s11969_s1 + $0x370] ss:$8 sps:$4 sm:$0xff]  }
  0xa4   :  { %6183 = vmatpush1.bf16.msra.mxu0 %v8060_v45  ;;  %5625 = vmatprep.subr.bf16.mxu1 %v8065_v46  ;;  %v8156_v45 = vld [vmem:[%s11969_s1 + $0x1070] ss:$8 sps:$4 sm:$0xff]   ;;  %v8161_v46 = vld [vmem:[%s11969_s1 + $0x384] ss:$8 sps:$4 sm:$0xff]  }
  0xa5   :  { %6184 = vmatprep.subr.bf16.mxu0 %v8068_v47  ;;  %v8164_v47 = vld [vmem:[%s11969_s1 + $0x1084] ss:$8 sps:$4 sm:$0xff]  }
  0xa7   :  { %5626 = vmatpush1.bf16.msra.mxu1 %v8063_v48  ;;  %v8159_v48 = vld [vmem:[%s11969_s1 + $0x380] ss:$8 sps:$4 sm:$0xff]  }
  0xa8   :  { %6185 = vmatpush1.bf16.msra.mxu0 %v8066_v49  ;;  %5627 = vmatprep.subr.bf16.mxu1 %v8071_v50  ;;  %v8162_v49 = vld [vmem:[%s11969_s1 + $0x1080] ss:$8 sps:$4 sm:$0xff]   ;;  %v8167_v50 = vld [vmem:[%s11969_s1 + $0x394] ss:$8 sps:$4 sm:$0xff]  }
  0xa9   :  { %6186 = vmatprep.subr.bf16.mxu0 %v8074_v51  ;;  %v8170_v51 = vld [vmem:[%s11969_s1 + $0x1094] ss:$8 sps:$4 sm:$0xff]  }
  0xab   :  { %5628 = vmatpush1.bf16.msra.mxu1 %v8069_v52  ;;  %v8165_v52 = vld [vmem:[%s11969_s1 + $0x390] ss:$8 sps:$4 sm:$0xff]  }
  0xac   :  { %6187 = vmatpush1.bf16.msra.mxu0 %v8072_v53  ;;  %5629 = vmatprep.subr.bf16.mxu1 %v8077_v54  ;;  %v8168_v53 = vld [vmem:[%s11969_s1 + $0x1090] ss:$8 sps:$4 sm:$0xff]   ;;  %v8173_v54 = vld [vmem:[%s11969_s1 + $0x3a4] ss:$8 sps:$4 sm:$0xff]  }
  0xad   :  { %6188 = vmatprep.subr.bf16.mxu0 %v8080_v55  ;;  %v8176_v55 = vld [vmem:[%s11969_s1 + $0x10a4] ss:$8 sps:$4 sm:$0xff]  }
  0xaf   :  { %5630 = vmatpush1.bf16.msra.mxu1 %v8075_v56  ;;  %v8171_v56 = vld [vmem:[%s11969_s1 + $0x3a0] ss:$8 sps:$4 sm:$0xff]  }
  0xb0   :  { %6189 = vmatpush1.bf16.msra.mxu0 %v8078_v57  ;;  %5631 = vmatprep.subr.bf16.mxu1 %v8083_v58  ;;  %v8174_v57 = vld [vmem:[%s11969_s1 + $0x10a0] ss:$8 sps:$4 sm:$0xff]   ;;  %v8179_v58 = vld [vmem:[%s11969_s1 + $0x3b4] ss:$8 sps:$4 sm:$0xff]  }
  0xb1   :  { %6190 = vmatprep.subr.bf16.mxu0 %v8086_v59  ;;  %v8182_v59 = vld [vmem:[%s11969_s1 + $0x10b4] ss:$8 sps:$4 sm:$0xff]  }
  0xb3   :  { %5632 = vmatpush1.bf16.msra.mxu1 %v8081_v60  ;;  %v8177_v60 = vld [vmem:[%s11969_s1 + $0x3b0] ss:$8 sps:$4 sm:$0xff]  }
  0xb4   :  { %6191 = vmatpush1.bf16.msra.mxu0 %v8084_v61  ;;  %5633 = vmatprep.subr.bf16.mxu1 %v8089_v62  ;;  %v8180_v61 = vld [vmem:[%s11969_s1 + $0x10b0] ss:$8 sps:$4 sm:$0xff]   ;;  %v8185_v62 = vld [vmem:[%s11969_s1 + $0x3c4] ss:$8 sps:$4 sm:$0xff]  }
  0xb5   :  { %6192 = vmatprep.subr.bf16.mxu0 %v8092_v63  ;;  %v8188_v63 = vld [vmem:[%s11969_s1 + $0x10c4] ss:$8 sps:$4 sm:$0xff]  }
  0xb7   :  { %5634 = vmatpush1.bf16.msra.mxu1 %v8087_v0  ;;  %v8183_v0 = vld [vmem:[%s11969_s1 + $0x3c0] ss:$8 sps:$4 sm:$0xff]  }
  0xb8   :  { %6193 = vmatpush1.bf16.msra.mxu0 %v8090_v1  ;;  %5635 = vmatprep.subr.bf16.mxu1 %v8095_v2  ;;  %v8186_v1 = vld [vmem:[%s11969_s1 + $0x10c0] ss:$8 sps:$4 sm:$0xff]   ;;  %v8191_v2 = vld [vmem:[%s11969_s1 + $0x3d4] ss:$8 sps:$4 sm:$0xff]  }
  0xb9   :  { %6194 = vmatprep.subr.bf16.mxu0 %v8098_v3  ;;  %v8194_v3 = vld [vmem:[%s11969_s1 + $0x10d4] ss:$8 sps:$4 sm:$0xff]  }
  0xbb   :  { %5636 = vmatpush1.bf16.msra.mxu1 %v8093_v4  ;;  %v8189_v4 = vld [vmem:[%s11969_s1 + $0x3d0] ss:$8 sps:$4 sm:$0xff]  }
  0xbc   :  { %6195 = vmatpush1.bf16.msra.mxu0 %v8096_v5  ;;  %5637 = vmatprep.subr.bf16.mxu1 %v8101_v6  ;;  %v8192_v5 = vld [vmem:[%s11969_s1 + $0x10d0] ss:$8 sps:$4 sm:$0xff]   ;;  %v8197_v6 = vld [vmem:[%s11969_s1 + $0x3e4] ss:$8 sps:$4 sm:$0xff]  }
  0xbd   :  { %6196 = vmatprep.subr.bf16.mxu0 %v8104_v7  ;;  %v8200_v7 = vld [vmem:[%s11969_s1 + $0x10e4] ss:$8 sps:$4 sm:$0xff]  }
  0xbf   :  { %5638 = vmatpush1.bf16.msra.mxu1 %v8099_v8  ;;  %v8195_v8 = vld [vmem:[%s11969_s1 + $0x3e0] ss:$8 sps:$4 sm:$0xff]  }
  0xc0   :  { %6197 = vmatpush1.bf16.msra.mxu0 %v8102_v9  ;;  %5650 = vmatprep.subr.bf16.mxu1 %v8110_v10  ;;  %v8198_v9 = vld [vmem:[%s11969_s1 + $0x10e0] ss:$8 sps:$4 sm:$0xff]   ;;  %v8203_v10 = vld [vmem:[%s11969_s1 + $0x3f4] ss:$8 sps:$4 sm:$0xff]  }
  0xc1   :  { %6209 = vmatprep.subr.bf16.mxu0 %v8116_v11  ;;  %v8206_v11 = vld [vmem:[%s11969_s1 + $0x10f4] ss:$8 sps:$4 sm:$0xff]  }
  0xc2   :  { %5640 = vmatmul.mubr.bf16.vlgmr.msra.gmra.mrb[0].mxu1 %v8105_v12  ;;  %v8201_v12 = vld [vmem:[%s11969_s1 + $0x3f0] ss:$8 sps:$4 sm:$0xff]  }
  0xc3   :  { %6199 = vmatmul.mubr.bf16.vlgmr.msra.gmra.mrb[0].mxu0 %v8111_v14  ;;  %5651 = vmatpush1.bf16.msra.mxu1 %v8108_v13  ;;  %v8204_v13 = vld [vmem:[%s11969_s1 + $0x10f0] ss:$8 sps:$4 sm:$0xff]   ;;  %v8212_v14 = vld [vmem:[%s11969_s1 + $0x404] ss:$8 sps:$4 sm:$0xff]  }
  0xc4   :  { %6210 = vmatpush1.bf16.msra.mxu0 %v8114_v15  ;;  %5652 = vmatprep.subr.bf16.mxu1 %v8119_v16  ;;  %v8218_v15 = vld [vmem:[%s11969_s1 + $0x1104] ss:$8 sps:$4 sm:$0xff]   ;;  %v8207_v16 = vld [vmem:[%s11970_s0 + $0x18] ss:$216 sps:$4 sm:$0xff]  }
  0xc5   :  { %6211 = vmatprep.subr.bf16.mxu0 %v8122_v17  ;;  %5682 = vmatprep.mubr.bf16.mxu1 %v8209_v18  ;;  %v8210_v17 = vld [vmem:[%s11969_s1 + $0x400] ss:$8 sps:$4 sm:$0xff]  }
  0xc6   :  { %6241 = vmatprep.mubr.bf16.mxu0 %v8215_v19  ;;  %v8213_v18 = vld [vmem:[%s11970_s0 + $0x80] ss:$216 sps:$4 sm:$0xff]  }
  0xc7   :  { %5653 = vmatpush1.bf16.msra.mxu1 %v8117_v20  ;;  %v8216_v19 = vld [vmem:[%s11969_s1 + $0x1100] ss:$8 sps:$4 sm:$0xff]   ;;  %v8221_v20 = vld [vmem:[%s11969_s1 + $0x414] ss:$8 sps:$4 sm:$0xff]  }
  0xc8   :  { %6212 = vmatpush1.bf16.msra.mxu0 %v8120_v21  ;;  %5654 = vmatprep.subr.bf16.mxu1 %v8125_v22  ;;  %v8224_v21 = vld [vmem:[%s11969_s1 + $0x1114] ss:$8 sps:$4 sm:$0xff]  }
  0xc9   :  { %6213 = vmatprep.subr.bf16.mxu0 %v8128_v23  ;;  %v8311_v22 = vld [vmem:[%s11970_s0 + $0x24] ss:$216 sps:$4 sm:$0xff]  }
  0xca   :  { %v8317_v23 = vld [vmem:[%s11970_s0 + $0x8c] ss:$216 sps:$4 sm:$0xff]  }
  0xcb   :  { %5655 = vmatpush1.bf16.msra.mxu1 %v8123_v24  ;;  %v8219_v24 = vld [vmem:[%s11969_s1 + $0x410] ss:$8 sps:$4 sm:$0xff]  }
  0xcc   :  { %6214 = vmatpush1.bf16.msra.mxu0 %v8126_v25  ;;  %5656 = vmatprep.subr.bf16.mxu1 %v8131_v26  ;;  %v8222_v25 = vld [vmem:[%s11969_s1 + $0x1110] ss:$8 sps:$4 sm:$0xff]   ;;  %v8227_v26 = vld [vmem:[%s11969_s1 + $0x424] ss:$8 sps:$4 sm:$0xff]  }
  0xcd   :  { %6215 = vmatprep.subr.bf16.mxu0 %v8134_v27  ;;  %v8230_v27 = vld [vmem:[%s11969_s1 + $0x1124] ss:$8 sps:$4 sm:$0xff]  }
  0xcf   :  { %5657 = vmatpush1.bf16.msra.mxu1 %v8129_v28  ;;  %v8225_v28 = vld [vmem:[%s11969_s1 + $0x420] ss:$8 sps:$4 sm:$0xff]  }
  0xd0   :  { %6216 = vmatpush1.bf16.msra.mxu0 %v8132_v29  ;;  %5658 = vmatprep.subr.bf16.mxu1 %v8137_v30  ;;  %v8228_v29 = vld [vmem:[%s11969_s1 + $0x1120] ss:$8 sps:$4 sm:$0xff]   ;;  %v8233_v30 = vld [vmem:[%s11969_s1 + $0x434] ss:$8 sps:$4 sm:$0xff]  }
  0xd1   :  { %6217 = vmatprep.subr.bf16.mxu0 %v8140_v31  ;;  %v8236_v31 = vld [vmem:[%s11969_s1 + $0x1134] ss:$8 sps:$4 sm:$0xff]  }
  0xd3   :  { %5659 = vmatpush1.bf16.msra.mxu1 %v8135_v32  ;;  %v8231_v32 = vld [vmem:[%s11969_s1 + $0x430] ss:$8 sps:$4 sm:$0xff]  }
  0xd4   :  { %6218 = vmatpush1.bf16.msra.mxu0 %v8138_v33  ;;  %5660 = vmatprep.subr.bf16.mxu1 %v8143_v34  ;;  %v8234_v33 = vld [vmem:[%s11969_s1 + $0x1130] ss:$8 sps:$4 sm:$0xff]   ;;  %v8239_v34 = vld [vmem:[%s11969_s1 + $0x444] ss:$8 sps:$4 sm:$0xff]  }
  0xd5   :  { %6219 = vmatprep.subr.bf16.mxu0 %v8146_v35  ;;  %v8242_v35 = vld [vmem:[%s11969_s1 + $0x1144] ss:$8 sps:$4 sm:$0xff]  }
  0xd7   :  { %5661 = vmatpush1.bf16.msra.mxu1 %v8141_v36  ;;  %v8237_v36 = vld [vmem:[%s11969_s1 + $0x440] ss:$8 sps:$4 sm:$0xff]  }
  0xd8   :  { %6220 = vmatpush1.bf16.msra.mxu0 %v8144_v37  ;;  %5662 = vmatprep.subr.bf16.mxu1 %v8149_v38  ;;  %v8240_v37 = vld [vmem:[%s11969_s1 + $0x1140] ss:$8 sps:$4 sm:$0xff]   ;;  %v8245_v38 = vld [vmem:[%s11969_s1 + $0x454] ss:$8 sps:$4 sm:$0xff]  }
  0xd9   :  { %6221 = vmatprep.subr.bf16.mxu0 %v8152_v39  ;;  %v8248_v39 = vld [vmem:[%s11969_s1 + $0x1154] ss:$8 sps:$4 sm:$0xff]  }
  0xdb   :  { %5663 = vmatpush1.bf16.msra.mxu1 %v8147_v40  ;;  %v8243_v40 = vld [vmem:[%s11969_s1 + $0x450] ss:$8 sps:$4 sm:$0xff]  }
  0xdc   :  { %6222 = vmatpush1.bf16.msra.mxu0 %v8150_v41  ;;  %5664 = vmatprep.subr.bf16.mxu1 %v8155_v42  ;;  %v8246_v41 = vld [vmem:[%s11969_s1 + $0x1150] ss:$8 sps:$4 sm:$0xff]   ;;  %v8251_v42 = vld [vmem:[%s11969_s1 + $0x464] ss:$8 sps:$4 sm:$0xff]  }
  0xdd   :  { %6223 = vmatprep.subr.bf16.mxu0 %v8158_v43  ;;  %v8254_v43 = vld [vmem:[%s11969_s1 + $0x1164] ss:$8 sps:$4 sm:$0xff]  }
  0xdf   :  { %5665 = vmatpush1.bf16.msra.mxu1 %v8153_v44  ;;  %v8249_v44 = vld [vmem:[%s11969_s1 + $0x460] ss:$8 sps:$4 sm:$0xff]  }
  0xe0   :  { %6224 = vmatpush1.bf16.msra.mxu0 %v8156_v45  ;;  %5666 = vmatprep.subr.bf16.mxu1 %v8161_v46  ;;  %v8252_v45 = vld [vmem:[%s11969_s1 + $0x1160] ss:$8 sps:$4 sm:$0xff]   ;;  %v8257_v46 = vld [vmem:[%s11969_s1 + $0x474] ss:$8 sps:$4 sm:$0xff]  }
  0xe1   :  { %6225 = vmatprep.subr.bf16.mxu0 %v8164_v47  ;;  %v8260_v47 = vld [vmem:[%s11969_s1 + $0x1174] ss:$8 sps:$4 sm:$0xff]  }
  0xe3   :  { %5667 = vmatpush1.bf16.msra.mxu1 %v8159_v48  ;;  %v8255_v48 = vld [vmem:[%s11969_s1 + $0x470] ss:$8 sps:$4 sm:$0xff]  }
  0xe4   :  { %6226 = vmatpush1.bf16.msra.mxu0 %v8162_v49  ;;  %5668 = vmatprep.subr.bf16.mxu1 %v8167_v50  ;;  %v8258_v49 = vld [vmem:[%s11969_s1 + $0x1170] ss:$8 sps:$4 sm:$0xff]   ;;  %v8263_v50 = vld [vmem:[%s11969_s1 + $0x484] ss:$8 sps:$4 sm:$0xff]  }
  0xe5   :  { %6227 = vmatprep.subr.bf16.mxu0 %v8170_v51  ;;  %v8266_v51 = vld [vmem:[%s11969_s1 + $0x1184] ss:$8 sps:$4 sm:$0xff]  }
  0xe7   :  { %5669 = vmatpush1.bf16.msra.mxu1 %v8165_v52  ;;  %v8261_v52 = vld [vmem:[%s11969_s1 + $0x480] ss:$8 sps:$4 sm:$0xff]  }
  0xe8   :  { %6228 = vmatpush1.bf16.msra.mxu0 %v8168_v53  ;;  %5670 = vmatprep.subr.bf16.mxu1 %v8173_v54  ;;  %v8264_v53 = vld [vmem:[%s11969_s1 + $0x1180] ss:$8 sps:$4 sm:$0xff]   ;;  %v8269_v54 = vld [vmem:[%s11969_s1 + $0x494] ss:$8 sps:$4 sm:$0xff]  }
  0xe9   :  { %6229 = vmatprep.subr.bf16.mxu0 %v8176_v55  ;;  %v8272_v55 = vld [vmem:[%s11969_s1 + $0x1194] ss:$8 sps:$4 sm:$0xff]  }
  0xeb   :  { %5671 = vmatpush1.bf16.msra.mxu1 %v8171_v56  ;;  %v8267_v56 = vld [vmem:[%s11969_s1 + $0x490] ss:$8 sps:$4 sm:$0xff]  }
  0xec   :  { %6230 = vmatpush1.bf16.msra.mxu0 %v8174_v57  ;;  %5672 = vmatprep.subr.bf16.mxu1 %v8179_v58  ;;  %v8270_v57 = vld [vmem:[%s11969_s1 + $0x1190] ss:$8 sps:$4 sm:$0xff]   ;;  %v8275_v58 = vld [vmem:[%s11969_s1 + $0x4a4] ss:$8 sps:$4 sm:$0xff]  }
  0xed   :  { %6231 = vmatprep.subr.bf16.mxu0 %v8182_v59  ;;  %v8278_v59 = vld [vmem:[%s11969_s1 + $0x11a4] ss:$8 sps:$4 sm:$0xff]  }
  0xef   :  { %5673 = vmatpush1.bf16.msra.mxu1 %v8177_v60  ;;  %v8273_v60 = vld [vmem:[%s11969_s1 + $0x4a0] ss:$8 sps:$4 sm:$0xff]  }
  0xf0   :  { %6232 = vmatpush1.bf16.msra.mxu0 %v8180_v61  ;;  %5674 = vmatprep.subr.bf16.mxu1 %v8185_v62  ;;  %v8276_v61 = vld [vmem:[%s11969_s1 + $0x11a0] ss:$8 sps:$4 sm:$0xff]   ;;  %v8281_v62 = vld [vmem:[%s11969_s1 + $0x4b4] ss:$8 sps:$4 sm:$0xff]  }
  0xf1   :  { %6233 = vmatprep.subr.bf16.mxu0 %v8188_v63  ;;  %v8284_v63 = vld [vmem:[%s11969_s1 + $0x11b4] ss:$8 sps:$4 sm:$0xff]  }
  0xf3   :  { %5675 = vmatpush1.bf16.msra.mxu1 %v8183_v0  ;;  %v8279_v0 = vld [vmem:[%s11969_s1 + $0x4b0] ss:$8 sps:$4 sm:$0xff]  }
  0xf4   :  { %6234 = vmatpush1.bf16.msra.mxu0 %v8186_v1  ;;  %5676 = vmatprep.subr.bf16.mxu1 %v8191_v2  ;;  %v8282_v1 = vld [vmem:[%s11969_s1 + $0x11b0] ss:$8 sps:$4 sm:$0xff]   ;;  %v8287_v2 = vld [vmem:[%s11969_s1 + $0x4c4] ss:$8 sps:$4 sm:$0xff]  }
  0xf5   :  { %6235 = vmatprep.subr.bf16.mxu0 %v8194_v3  ;;  %v8290_v3 = vld [vmem:[%s11969_s1 + $0x11c4] ss:$8 sps:$4 sm:$0xff]  }
  0xf7   :  { %5677 = vmatpush1.bf16.msra.mxu1 %v8189_v4  ;;  %v8285_v4 = vld [vmem:[%s11969_s1 + $0x4c0] ss:$8 sps:$4 sm:$0xff]  }
  0xf8   :  { %6236 = vmatpush1.bf16.msra.mxu0 %v8192_v5  ;;  %5678 = vmatprep.subr.bf16.mxu1 %v8197_v6  ;;  %v8288_v5 = vld [vmem:[%s11969_s1 + $0x11c0] ss:$8 sps:$4 sm:$0xff]   ;;  %v8293_v6 = vld [vmem:[%s11969_s1 + $0x4d4] ss:$8 sps:$4 sm:$0xff]  }
  0xf9   :  { %6237 = vmatprep.subr.bf16.mxu0 %v8200_v7  ;;  %v8296_v7 = vld [vmem:[%s11969_s1 + $0x11d4] ss:$8 sps:$4 sm:$0xff]  }
  0xfb   :  { %5679 = vmatpush1.bf16.msra.mxu1 %v8195_v8  ;;  %v8291_v8 = vld [vmem:[%s11969_s1 + $0x4d0] ss:$8 sps:$4 sm:$0xff]  }
  0xfc   :  { %6238 = vmatpush1.bf16.msra.mxu0 %v8198_v9  ;;  %5680 = vmatprep.subr.bf16.mxu1 %v8203_v10  ;;  %v8294_v9 = vld [vmem:[%s11969_s1 + $0x11d0] ss:$8 sps:$4 sm:$0xff]   ;;  %v8299_v10 = vld [vmem:[%s11969_s1 + $0x4e4] ss:$8 sps:$4 sm:$0xff]  }
  0xfd   :  { %6239 = vmatprep.subr.bf16.mxu0 %v8206_v11  ;;  %v8302_v11 = vld [vmem:[%s11969_s1 + $0x11e4] ss:$8 sps:$4 sm:$0xff]  }
  0xff   :  { %5681 = vmatpush1.bf16.msra.mxu1 %v8201_v12  ;;  %v8297_v12 = vld [vmem:[%s11969_s1 + $0x4e0] ss:$8 sps:$4 sm:$0xff]  }
 0x100   :  { %6240 = vmatpush1.bf16.msra.mxu0 %v8204_v13  ;;  %5693 = vmatprep.subr.bf16.mxu1 %v8212_v14  ;;  %v8300_v13 = vld [vmem:[%s11969_s1 + $0x11e0] ss:$8 sps:$4 sm:$0xff]   ;;  %v8305_v14 = vld [vmem:[%s11969_s1 + $0x4f4] ss:$8 sps:$4 sm:$0xff]  }
 0x101   :  { %6252 = vmatprep.subr.bf16.mxu0 %v8218_v15  ;;  %v8308_v15 = vld [vmem:[%s11969_s1 + $0x11f4] ss:$8 sps:$4 sm:$0xff]  }
 0x102   :  { %5683 = vmatmul.mubr.bf16.vlgmr.msra.gmra.mrb[0].mxu1 %v8207_v16  ;;  %v8303_v16 = vld [vmem:[%s11969_s1 + $0x4f0] ss:$8 sps:$4 sm:$0xff]  }
 0x103   :  { %6242 = vmatmul.mubr.bf16.vlgmr.msra.gmra.mrb[0].mxu0 %v8213_v18  ;;  %5694 = vmatpush1.bf16.msra.mxu1 %v8210_v17  ;;  %v8306_v17 = vld [vmem:[%s11969_s1 + $0x11f0] ss:$8 sps:$4 sm:$0xff]   ;;  %v8314_v18 = vld [vmem:[%s11969_s1 + $0x504] ss:$8 sps:$4 sm:$0xff]  }
 0x104   :  { %6253 = vmatpush1.bf16.msra.mxu0 %v8216_v19  ;;  %5695 = vmatprep.subr.bf16.mxu1 %v8221_v20  ;;  %v8309_v19 = vld [vmem:[%s11970_s0 + $0x20] ss:$216 sps:$4 sm:$0xff]  }
 0x105   :  { %6254 = vmatprep.subr.bf16.mxu0 %v8224_v21  ;;  %5725 = vmatprep.mubr.bf16.mxu1 %v8311_v22  ;;  %v8315_v20 = vld [vmem:[%s11970_s0 + $0x88] ss:$216 sps:$4 sm:$0xff]   ;;  %v8320_v21 = vld [vmem:[%s11969_s1 + $0x1204] ss:$8 sps:$4 sm:$0xff]  }
 0x106   :  { %6284 = vmatprep.mubr.bf16.mxu0 %v8317_v23  ;;  %v8312_v22 = vld [vmem:[%s11969_s1 + $0x500] ss:$8 sps:$4 sm:$0xff]  }
 0x107   :  { %5696 = vmatpush1.bf16.msra.mxu1 %v8219_v24  ;;  %v8318_v23 = vld [vmem:[%s11969_s1 + $0x1200] ss:$8 sps:$4 sm:$0xff]   ;;  %v8323_v24 = vld [vmem:[%s11969_s1 + $0x514] ss:$8 sps:$4 sm:$0xff]  }
 0x108   :  { %6255 = vmatpush1.bf16.msra.mxu0 %v8222_v25  ;;  %5697 = vmatprep.subr.bf16.mxu1 %v8227_v26  ;;  %v8326_v25 = vld [vmem:[%s11969_s1 + $0x1214] ss:$8 sps:$4 sm:$0xff]   ;;  %v8413_v26 = vld [vmem:[%s11970_s0 + $0x2c] ss:$216 sps:$4 sm:$0xff]  }
 0x109   :  { %6256 = vmatprep.subr.bf16.mxu0 %v8230_v27  ;;  %v8419_v27 = vld [vmem:[%s11970_s0 + $0x94] ss:$216 sps:$4 sm:$0xff]  }
 0x10b   :  { %5698 = vmatpush1.bf16.msra.mxu1 %v8225_v28  ;;  %v8321_v28 = vld [vmem:[%s11969_s1 + $0x510] ss:$8 sps:$4 sm:$0xff]  }
 0x10c   :  { %6257 = vmatpush1.bf16.msra.mxu0 %v8228_v29  ;;  %5699 = vmatprep.subr.bf16.mxu1 %v8233_v30  ;;  %v8324_v29 = vld [vmem:[%s11969_s1 + $0x1210] ss:$8 sps:$4 sm:$0xff]   ;;  %v8329_v30 = vld [vmem:[%s11969_s1 + $0x524] ss:$8 sps:$4 sm:$0xff]  }
 0x10d   :  { %6258 = vmatprep.subr.bf16.mxu0 %v8236_v31  ;;  %v8332_v31 = vld [vmem:[%s11969_s1 + $0x1224] ss:$8 sps:$4 sm:$0xff]  }
 0x10f   :  { %5700 = vmatpush1.bf16.msra.mxu1 %v8231_v32  ;;  %v8327_v32 = vld [vmem:[%s11969_s1 + $0x520] ss:$8 sps:$4 sm:$0xff]  }
 0x110   :  { %6259 = vmatpush1.bf16.msra.mxu0 %v8234_v33  ;;  %5701 = vmatprep.subr.bf16.mxu1 %v8239_v34  ;;  %v8330_v33 = vld [vmem:[%s11969_s1 + $0x1220] ss:$8 sps:$4 sm:$0xff]   ;;  %v8335_v34 = vld [vmem:[%s11969_s1 + $0x534] ss:$8 sps:$4 sm:$0xff]  }
 0x111   :  { %6260 = vmatprep.subr.bf16.mxu0 %v8242_v35  ;;  %v8338_v35 = vld [vmem:[%s11969_s1 + $0x1234] ss:$8 sps:$4 sm:$0xff]  }
 0x113   :  { %5702 = vmatpush1.bf16.msra.mxu1 %v8237_v36  ;;  %v8333_v36 = vld [vmem:[%s11969_s1 + $0x530] ss:$8 sps:$4 sm:$0xff]  }
 0x114   :  { %6261 = vmatpush1.bf16.msra.mxu0 %v8240_v37  ;;  %5703 = vmatprep.subr.bf16.mxu1 %v8245_v38  ;;  %v8336_v37 = vld [vmem:[%s11969_s1 + $0x1230] ss:$8 sps:$4 sm:$0xff]   ;;  %v8341_v38 = vld [vmem:[%s11969_s1 + $0x544] ss:$8 sps:$4 sm:$0xff]  }
 0x115   :  { %6262 = vmatprep.subr.bf16.mxu0 %v8248_v39  ;;  %v8344_v39 = vld [vmem:[%s11969_s1 + $0x1244] ss:$8 sps:$4 sm:$0xff]  }
 0x117   :  { %5704 = vmatpush1.bf16.msra.mxu1 %v8243_v40  ;;  %v8339_v40 = vld [vmem:[%s11969_s1 + $0x540] ss:$8 sps:$4 sm:$0xff]  }
 0x118   :  { %6263 = vmatpush1.bf16.msra.mxu0 %v8246_v41  ;;  %5705 = vmatprep.subr.bf16.mxu1 %v8251_v42  ;;  %v8342_v41 = vld [vmem:[%s11969_s1 + $0x1240] ss:$8 sps:$4 sm:$0xff]   ;;  %v8347_v42 = vld [vmem:[%s11969_s1 + $0x554] ss:$8 sps:$4 sm:$0xff]  }
 0x119   :  { %6264 = vmatprep.subr.bf16.mxu0 %v8254_v43  ;;  %v8350_v43 = vld [vmem:[%s11969_s1 + $0x1254] ss:$8 sps:$4 sm:$0xff]  }
 0x11b   :  { %5706 = vmatpush1.bf16.msra.mxu1 %v8249_v44  ;;  %v8345_v44 = vld [vmem:[%s11969_s1 + $0x550] ss:$8 sps:$4 sm:$0xff]  }
 0x11c   :  { %6265 = vmatpush1.bf16.msra.mxu0 %v8252_v45  ;;  %5707 = vmatprep.subr.bf16.mxu1 %v8257_v46  ;;  %v8348_v45 = vld [vmem:[%s11969_s1 + $0x1250] ss:$8 sps:$4 sm:$0xff]   ;;  %v8353_v46 = vld [vmem:[%s11969_s1 + $0x564] ss:$8 sps:$4 sm:$0xff]  }
 0x11d   :  { %6266 = vmatprep.subr.bf16.mxu0 %v8260_v47  ;;  %v8356_v47 = vld [vmem:[%s11969_s1 + $0x1264] ss:$8 sps:$4 sm:$0xff]  }
 0x11f   :  { %5708 = vmatpush1.bf16.msra.mxu1 %v8255_v48  ;;  %v8351_v48 = vld [vmem:[%s11969_s1 + $0x560] ss:$8 sps:$4 sm:$0xff]  }
 0x120   :  { %6267 = vmatpush1.bf16.msra.mxu0 %v8258_v49  ;;  %5709 = vmatprep.subr.bf16.mxu1 %v8263_v50  ;;  %v8354_v49 = vld [vmem:[%s11969_s1 + $0x1260] ss:$8 sps:$4 sm:$0xff]   ;;  %v8359_v50 = vld [vmem:[%s11969_s1 + $0x574] ss:$8 sps:$4 sm:$0xff]  }
 0x121   :  { %6268 = vmatprep.subr.bf16.mxu0 %v8266_v51  ;;  %v8362_v51 = vld [vmem:[%s11969_s1 + $0x1274] ss:$8 sps:$4 sm:$0xff]  }
 0x123   :  { %5710 = vmatpush1.bf16.msra.mxu1 %v8261_v52  ;;  %v8357_v52 = vld [vmem:[%s11969_s1 + $0x570] ss:$8 sps:$4 sm:$0xff]  }
 0x124   :  { %6269 = vmatpush1.bf16.msra.mxu0 %v8264_v53  ;;  %5711 = vmatprep.subr.bf16.mxu1 %v8269_v54  ;;  %v8360_v53 = vld [vmem:[%s11969_s1 + $0x1270] ss:$8 sps:$4 sm:$0xff]   ;;  %v8365_v54 = vld [vmem:[%s11969_s1 + $0x584] ss:$8 sps:$4 sm:$0xff]  }
 0x125   :  { %6270 = vmatprep.subr.bf16.mxu0 %v8272_v55  ;;  %v8368_v55 = vld [vmem:[%s11969_s1 + $0x1284] ss:$8 sps:$4 sm:$0xff]  }
 0x127   :  { %5712 = vmatpush1.bf16.msra.mxu1 %v8267_v56  ;;  %v8363_v56 = vld [vmem:[%s11969_s1 + $0x580] ss:$8 sps:$4 sm:$0xff]  }
 0x128   :  { %6271 = vmatpush1.bf16.msra.mxu0 %v8270_v57  ;;  %5713 = vmatprep.subr.bf16.mxu1 %v8275_v58  ;;  %v8366_v57 = vld [vmem:[%s11969_s1 + $0x1280] ss:$8 sps:$4 sm:$0xff]   ;;  %v8371_v58 = vld [vmem:[%s11969_s1 + $0x594] ss:$8 sps:$4 sm:$0xff]  }
 0x129   :  { %6272 = vmatprep.subr.bf16.mxu0 %v8278_v59  ;;  %v8374_v59 = vld [vmem:[%s11969_s1 + $0x1294] ss:$8 sps:$4 sm:$0xff]  }
 0x12b   :  { %5714 = vmatpush1.bf16.msra.mxu1 %v8273_v60  ;;  %v8369_v60 = vld [vmem:[%s11969_s1 + $0x590] ss:$8 sps:$4 sm:$0xff]  }
 0x12c   :  { %6273 = vmatpush1.bf16.msra.mxu0 %v8276_v61  ;;  %5715 = vmatprep.subr.bf16.mxu1 %v8281_v62  ;;  %v8372_v61 = vld [vmem:[%s11969_s1 + $0x1290] ss:$8 sps:$4 sm:$0xff]   ;;  %v8377_v62 = vld [vmem:[%s11969_s1 + $0x5a4] ss:$8 sps:$4 sm:$0xff]  }
 0x12d   :  { %6274 = vmatprep.subr.bf16.mxu0 %v8284_v63  ;;  %v8380_v63 = vld [vmem:[%s11969_s1 + $0x12a4] ss:$8 sps:$4 sm:$0xff]  }
 0x12f   :  { %5716 = vmatpush1.bf16.msra.mxu1 %v8279_v0  ;;  %v8375_v0 = vld [vmem:[%s11969_s1 + $0x5a0] ss:$8 sps:$4 sm:$0xff]  }
 0x130   :  { %6275 = vmatpush1.bf16.msra.mxu0 %v8282_v1  ;;  %5717 = vmatprep.subr.bf16.mxu1 %v8287_v2  ;;  %v8378_v1 = vld [vmem:[%s11969_s1 + $0x12a0] ss:$8 sps:$4 sm:$0xff]   ;;  %v8383_v2 = vld [vmem:[%s11969_s1 + $0x5b4] ss:$8 sps:$4 sm:$0xff]  }
 0x131   :  { %6276 = vmatprep.subr.bf16.mxu0 %v8290_v3  ;;  %v8386_v3 = vld [vmem:[%s11969_s1 + $0x12b4] ss:$8 sps:$4 sm:$0xff]  }
 0x133   :  { %5718 = vmatpush1.bf16.msra.mxu1 %v8285_v4  ;;  %v8381_v4 = vld [vmem:[%s11969_s1 + $0x5b0] ss:$8 sps:$4 sm:$0xff]  }
 0x134   :  { %6277 = vmatpush1.bf16.msra.mxu0 %v8288_v5  ;;  %5719 = vmatprep.subr.bf16.mxu1 %v8293_v6  ;;  %v8384_v5 = vld [vmem:[%s11969_s1 + $0x12b0] ss:$8 sps:$4 sm:$0xff]   ;;  %v8389_v6 = vld [vmem:[%s11969_s1 + $0x5c4] ss:$8 sps:$4 sm:$0xff]  }
 0x135   :  { %6278 = vmatprep.subr.bf16.mxu0 %v8296_v7  ;;  %v8392_v7 = vld [vmem:[%s11969_s1 + $0x12c4] ss:$8 sps:$4 sm:$0xff]  }
 0x137   :  { %5720 = vmatpush1.bf16.msra.mxu1 %v8291_v8  ;;  %v8387_v8 = vld [vmem:[%s11969_s1 + $0x5c0] ss:$8 sps:$4 sm:$0xff]  }
 0x138   :  { %6279 = vmatpush1.bf16.msra.mxu0 %v8294_v9  ;;  %5721 = vmatprep.subr.bf16.mxu1 %v8299_v10  ;;  %v8390_v9 = vld [vmem:[%s11969_s1 + $0x12c0] ss:$8 sps:$4 sm:$0xff]   ;;  %v8395_v10 = vld [vmem:[%s11969_s1 + $0x5d4] ss:$8 sps:$4 sm:$0xff]  }
 0x139   :  { %6280 = vmatprep.subr.bf16.mxu0 %v8302_v11  ;;  %v8398_v11 = vld [vmem:[%s11969_s1 + $0x12d4] ss:$8 sps:$4 sm:$0xff]  }
 0x13b   :  { %5722 = vmatpush1.bf16.msra.mxu1 %v8297_v12  ;;  %v8393_v12 = vld [vmem:[%s11969_s1 + $0x5d0] ss:$8 sps:$4 sm:$0xff]  }
 0x13c   :  { %6281 = vmatpush1.bf16.msra.mxu0 %v8300_v13  ;;  %5723 = vmatprep.subr.bf16.mxu1 %v8305_v14  ;;  %v8396_v13 = vld [vmem:[%s11969_s1 + $0x12d0] ss:$8 sps:$4 sm:$0xff]   ;;  %v8401_v14 = vld [vmem:[%s11969_s1 + $0x5e4] ss:$8 sps:$4 sm:$0xff]  }
 0x13d   :  { %6282 = vmatprep.subr.bf16.mxu0 %v8308_v15  ;;  %v8404_v15 = vld [vmem:[%s11969_s1 + $0x12e4] ss:$8 sps:$4 sm:$0xff]  }
 0x13f   :  { %5724 = vmatpush1.bf16.msra.mxu1 %v8303_v16  ;;  %v8399_v16 = vld [vmem:[%s11969_s1 + $0x5e0] ss:$8 sps:$4 sm:$0xff]  }
 0x140   :  { %6283 = vmatpush1.bf16.msra.mxu0 %v8306_v17  ;;  %5736 = vmatprep.subr.bf16.mxu1 %v8314_v18  ;;  %v8402_v17 = vld [vmem:[%s11969_s1 + $0x12e0] ss:$8 sps:$4 sm:$0xff]   ;;  %v8407_v18 = vld [vmem:[%s11969_s1 + $0x5f4] ss:$8 sps:$4 sm:$0xff]  }
 0x141   :  { %6295 = vmatprep.subr.bf16.mxu0 %v8320_v21  ;;  %v8408_v21 = vld [vmem:[%s11969_s1 + $0x12f0] ss:$8 sps:$4 sm:$0xff]  }
 0x142   :  { %5726 = vmatmul.mubr.bf16.vlgmr.msra.gmra.mrb[0].mxu1 %v8309_v19  ;;  %v8410_v19 = vld [vmem:[%s11969_s1 + $0x12f4] ss:$8 sps:$4 sm:$0xff]  }
 0x143   :  { %6285 = vmatmul.mubr.bf16.vlgmr.msra.gmra.mrb[0].mxu0 %v8315_v20  ;;  %5737 = vmatpush1.bf16.msra.mxu1 %v8312_v22  ;;  %v8405_v20 = vld [vmem:[%s11969_s1 + $0x5f0] ss:$8 sps:$4 sm:$0xff]   ;;  %v8416_v22 = vld [vmem:[%s11969_s1 + $0x604] ss:$8 sps:$4 sm:$0xff]  }
 0x144   :  { %6296 = vmatpush1.bf16.msra.mxu0 %v8318_v23  ;;  %5738 = vmatprep.subr.bf16.mxu1 %v8323_v24  ;;  %v8411_v23 = vld [vmem:[%s11970_s0 + $0x28] ss:$216 sps:$4 sm:$0xff]  }
 0x145   :  { %6297 = vmatprep.subr.bf16.mxu0 %v8326_v25  ;;  %5768 = vmatprep.mubr.bf16.mxu1 %v8413_v26  ;;  %v8417_v24 = vld [vmem:[%s11970_s0 + $0x90] ss:$216 sps:$4 sm:$0xff]   ;;  %v8422_v25 = vld [vmem:[%s11969_s1 + $0x1304] ss:$8 sps:$4 sm:$0xff]  }
 0x146   :  { %6327 = vmatprep.mubr.bf16.mxu0 %v8419_v27  ;;  %v8414_v26 = vld [vmem:[%s11969_s1 + $0x600] ss:$8 sps:$4 sm:$0xff]  }
 0x147   :  { %5739 = vmatpush1.bf16.msra.mxu1 %v8321_v28  ;;  %v8420_v27 = vld [vmem:[%s11969_s1 + $0x1300] ss:$8 sps:$4 sm:$0xff]   ;;  %v8425_v28 = vld [vmem:[%s11969_s1 + $0x614] ss:$8 sps:$4 sm:$0xff]  }
 0x148   :  { %6298 = vmatpush1.bf16.msra.mxu0 %v8324_v29  ;;  %5740 = vmatprep.subr.bf16.mxu1 %v8329_v30  ;;  %v8428_v29 = vld [vmem:[%s11969_s1 + $0x1314] ss:$8 sps:$4 sm:$0xff]  }
 0x149   :  { %6299 = vmatprep.subr.bf16.mxu0 %v8332_v31  ;;  %v8515_v30 = vld [vmem:[%s11970_s0 + $0x34] ss:$216 sps:$4 sm:$0xff]  }
 0x14a   :  { %v8521_v31 = vld [vmem:[%s11970_s0 + $0x9c] ss:$216 sps:$4 sm:$0xff]  }
 0x14b   :  { %5741 = vmatpush1.bf16.msra.mxu1 %v8327_v32  ;;  %v8423_v32 = vld [vmem:[%s11969_s1 + $0x610] ss:$8 sps:$4 sm:$0xff]  }
 0x14c   :  { %6300 = vmatpush1.bf16.msra.mxu0 %v8330_v33  ;;  %5742 = vmatprep.subr.bf16.mxu1 %v8335_v34  ;;  %v8426_v33 = vld [vmem:[%s11969_s1 + $0x1310] ss:$8 sps:$4 sm:$0xff]   ;;  %v8431_v34 = vld [vmem:[%s11969_s1 + $0x624] ss:$8 sps:$4 sm:$0xff]  }
 0x14d   :  { %6301 = vmatprep.subr.bf16.mxu0 %v8338_v35  ;;  %v8434_v35 = vld [vmem:[%s11969_s1 + $0x1324] ss:$8 sps:$4 sm:$0xff]  }
 0x14f   :  { %5743 = vmatpush1.bf16.msra.mxu1 %v8333_v36  ;;  %v8429_v36 = vld [vmem:[%s11969_s1 + $0x620] ss:$8 sps:$4 sm:$0xff]  }
 0x150   :  { %6302 = vmatpush1.bf16.msra.mxu0 %v8336_v37  ;;  %5744 = vmatprep.subr.bf16.mxu1 %v8341_v38  ;;  %v8432_v37 = vld [vmem:[%s11969_s1 + $0x1320] ss:$8 sps:$4 sm:$0xff]   ;;  %v8437_v38 = vld [vmem:[%s11969_s1 + $0x634] ss:$8 sps:$4 sm:$0xff]  }
 0x151   :  { %6303 = vmatprep.subr.bf16.mxu0 %v8344_v39  ;;  %v8440_v39 = vld [vmem:[%s11969_s1 + $0x1334] ss:$8 sps:$4 sm:$0xff]  }
 0x153   :  { %5745 = vmatpush1.bf16.msra.mxu1 %v8339_v40  ;;  %v8435_v40 = vld [vmem:[%s11969_s1 + $0x630] ss:$8 sps:$4 sm:$0xff]  }
 0x154   :  { %6304 = vmatpush1.bf16.msra.mxu0 %v8342_v41  ;;  %5746 = vmatprep.subr.bf16.mxu1 %v8347_v42  ;;  %v8438_v41 = vld [vmem:[%s11969_s1 + $0x1330] ss:$8 sps:$4 sm:$0xff]   ;;  %v8443_v42 = vld [vmem:[%s11969_s1 + $0x644] ss:$8 sps:$4 sm:$0xff]  }
 0x155   :  { %6305 = vmatprep.subr.bf16.mxu0 %v8350_v43  ;;  %v8446_v43 = vld [vmem:[%s11969_s1 + $0x1344] ss:$8 sps:$4 sm:$0xff]  }
 0x157   :  { %5747 = vmatpush1.bf16.msra.mxu1 %v8345_v44  ;;  %v8441_v44 = vld [vmem:[%s11969_s1 + $0x640] ss:$8 sps:$4 sm:$0xff]  }
 0x158   :  { %6306 = vmatpush1.bf16.msra.mxu0 %v8348_v45  ;;  %5748 = vmatprep.subr.bf16.mxu1 %v8353_v46  ;;  %v8444_v45 = vld [vmem:[%s11969_s1 + $0x1340] ss:$8 sps:$4 sm:$0xff]   ;;  %v8449_v46 = vld [vmem:[%s11969_s1 + $0x654] ss:$8 sps:$4 sm:$0xff]  }
 0x159   :  { %6307 = vmatprep.subr.bf16.mxu0 %v8356_v47  ;;  %v8452_v47 = vld [vmem:[%s11969_s1 + $0x1354] ss:$8 sps:$4 sm:$0xff]  }
 0x15b   :  { %5749 = vmatpush1.bf16.msra.mxu1 %v8351_v48  ;;  %v8447_v48 = vld [vmem:[%s11969_s1 + $0x650] ss:$8 sps:$4 sm:$0xff]  }
 0x15c   :  { %6308 = vmatpush1.bf16.msra.mxu0 %v8354_v49  ;;  %5750 = vmatprep.subr.bf16.mxu1 %v8359_v50  ;;  %v8450_v49 = vld [vmem:[%s11969_s1 + $0x1350] ss:$8 sps:$4 sm:$0xff]   ;;  %v8455_v50 = vld [vmem:[%s11969_s1 + $0x664] ss:$8 sps:$4 sm:$0xff]  }
 0x15d   :  { %6309 = vmatprep.subr.bf16.mxu0 %v8362_v51  ;;  %v8458_v51 = vld [vmem:[%s11969_s1 + $0x1364] ss:$8 sps:$4 sm:$0xff]  }
 0x15f   :  { %5751 = vmatpush1.bf16.msra.mxu1 %v8357_v52  ;;  %v8453_v52 = vld [vmem:[%s11969_s1 + $0x660] ss:$8 sps:$4 sm:$0xff]  }
 0x160   :  { %6310 = vmatpush1.bf16.msra.mxu0 %v8360_v53  ;;  %5752 = vmatprep.subr.bf16.mxu1 %v8365_v54  ;;  %v8456_v53 = vld [vmem:[%s11969_s1 + $0x1360] ss:$8 sps:$4 sm:$0xff]   ;;  %v8461_v54 = vld [vmem:[%s11969_s1 + $0x674] ss:$8 sps:$4 sm:$0xff]  }
 0x161   :  { %6311 = vmatprep.subr.bf16.mxu0 %v8368_v55  ;;  %v8464_v55 = vld [vmem:[%s11969_s1 + $0x1374] ss:$8 sps:$4 sm:$0xff]  }
 0x163   :  { %5753 = vmatpush1.bf16.msra.mxu1 %v8363_v56  ;;  %v8459_v56 = vld [vmem:[%s11969_s1 + $0x670] ss:$8 sps:$4 sm:$0xff]  }
 0x164   :  { %6312 = vmatpush1.bf16.msra.mxu0 %v8366_v57  ;;  %5754 = vmatprep.subr.bf16.mxu1 %v8371_v58  ;;  %v8462_v57 = vld [vmem:[%s11969_s1 + $0x1370] ss:$8 sps:$4 sm:$0xff]   ;;  %v8467_v58 = vld [vmem:[%s11969_s1 + $0x684] ss:$8 sps:$4 sm:$0xff]  }
 0x165   :  { %6313 = vmatprep.subr.bf16.mxu0 %v8374_v59  ;;  %v8470_v59 = vld [vmem:[%s11969_s1 + $0x1384] ss:$8 sps:$4 sm:$0xff]  }
 0x167   :  { %5755 = vmatpush1.bf16.msra.mxu1 %v8369_v60  ;;  %v8465_v60 = vld [vmem:[%s11969_s1 + $0x680] ss:$8 sps:$4 sm:$0xff]  }
 0x168   :  { %6314 = vmatpush1.bf16.msra.mxu0 %v8372_v61  ;;  %5756 = vmatprep.subr.bf16.mxu1 %v8377_v62  ;;  %v8468_v61 = vld [vmem:[%s11969_s1 + $0x1380] ss:$8 sps:$4 sm:$0xff]   ;;  %v8473_v62 = vld [vmem:[%s11969_s1 + $0x694] ss:$8 sps:$4 sm:$0xff]  }
 0x169   :  { %6315 = vmatprep.subr.bf16.mxu0 %v8380_v63  ;;  %v8476_v63 = vld [vmem:[%s11969_s1 + $0x1394] ss:$8 sps:$4 sm:$0xff]  }
 0x16b   :  { %5757 = vmatpush1.bf16.msra.mxu1 %v8375_v0  ;;  %v8471_v0 = vld [vmem:[%s11969_s1 + $0x690] ss:$8 sps:$4 sm:$0xff]  }
 0x16c   :  { %6316 = vmatpush1.bf16.msra.mxu0 %v8378_v1  ;;  %5758 = vmatprep.subr.bf16.mxu1 %v8383_v2  ;;  %v8474_v1 = vld [vmem:[%s11969_s1 + $0x1390] ss:$8 sps:$4 sm:$0xff]   ;;  %v8479_v2 = vld [vmem:[%s11969_s1 + $0x6a4] ss:$8 sps:$4 sm:$0xff]  }
 0x16d   :  { %6317 = vmatprep.subr.bf16.mxu0 %v8386_v3  ;;  %v8482_v3 = vld [vmem:[%s11969_s1 + $0x13a4] ss:$8 sps:$4 sm:$0xff]  }
 0x16f   :  { %5759 = vmatpush1.bf16.msra.mxu1 %v8381_v4  ;;  %v8477_v4 = vld [vmem:[%s11969_s1 + $0x6a0] ss:$8 sps:$4 sm:$0xff]  }
 0x170   :  { %6318 = vmatpush1.bf16.msra.mxu0 %v8384_v5  ;;  %5760 = vmatprep.subr.bf16.mxu1 %v8389_v6  ;;  %v8480_v5 = vld [vmem:[%s11969_s1 + $0x13a0] ss:$8 sps:$4 sm:$0xff]   ;;  %v8485_v6 = vld [vmem:[%s11969_s1 + $0x6b4] ss:$8 sps:$4 sm:$0xff]  }
 0x171   :  { %6319 = vmatprep.subr.bf16.mxu0 %v8392_v7  ;;  %v8488_v7 = vld [vmem:[%s11969_s1 + $0x13b4] ss:$8 sps:$4 sm:$0xff]  }
 0x173   :  { %5761 = vmatpush1.bf16.msra.mxu1 %v8387_v8  ;;  %v8483_v8 = vld [vmem:[%s11969_s1 + $0x6b0] ss:$8 sps:$4 sm:$0xff]  }
 0x174   :  { %6320 = vmatpush1.bf16.msra.mxu0 %v8390_v9  ;;  %5762 = vmatprep.subr.bf16.mxu1 %v8395_v10  ;;  %v8486_v9 = vld [vmem:[%s11969_s1 + $0x13b0] ss:$8 sps:$4 sm:$0xff]   ;;  %v8491_v10 = vld [vmem:[%s11969_s1 + $0x6c4] ss:$8 sps:$4 sm:$0xff]  }
 0x175   :  { %6321 = vmatprep.subr.bf16.mxu0 %v8398_v11  ;;  %v8494_v11 = vld [vmem:[%s11969_s1 + $0x13c4] ss:$8 sps:$4 sm:$0xff]  }
 0x177   :  { %5763 = vmatpush1.bf16.msra.mxu1 %v8393_v12  ;;  %v8489_v12 = vld [vmem:[%s11969_s1 + $0x6c0] ss:$8 sps:$4 sm:$0xff]  }
 0x178   :  { %6322 = vmatpush1.bf16.msra.mxu0 %v8396_v13  ;;  %5764 = vmatprep.subr.bf16.mxu1 %v8401_v14  ;;  %v8492_v13 = vld [vmem:[%s11969_s1 + $0x13c0] ss:$8 sps:$4 sm:$0xff]   ;;  %v8497_v14 = vld [vmem:[%s11969_s1 + $0x6d4] ss:$8 sps:$4 sm:$0xff]  }
 0x179   :  { %6323 = vmatprep.subr.bf16.mxu0 %v8404_v15  ;;  %v8500_v15 = vld [vmem:[%s11969_s1 + $0x13d4] ss:$8 sps:$4 sm:$0xff]  }
 0x17b   :  { %5765 = vmatpush1.bf16.msra.mxu1 %v8399_v16  ;;  %v8495_v16 = vld [vmem:[%s11969_s1 + $0x6d0] ss:$8 sps:$4 sm:$0xff]  }
 0x17c   :  { %6324 = vmatpush1.bf16.msra.mxu0 %v8402_v17  ;;  %5766 = vmatprep.subr.bf16.mxu1 %v8407_v18  ;;  %v8498_v17 = vld [vmem:[%s11969_s1 + $0x13d0] ss:$8 sps:$4 sm:$0xff]   ;;  %v8503_v18 = vld [vmem:[%s11969_s1 + $0x6e4] ss:$8 sps:$4 sm:$0xff]  }
 0x17d   :  { %6325 = vmatprep.subr.bf16.mxu0 %v8410_v19  ;;  %v8506_v19 = vld [vmem:[%s11969_s1 + $0x13e4] ss:$8 sps:$4 sm:$0xff]  }
 0x17f   :  { %5767 = vmatpush1.bf16.msra.mxu1 %v8405_v20  ;;  %v8501_v20 = vld [vmem:[%s11969_s1 + $0x6e0] ss:$8 sps:$4 sm:$0xff]  }
 0x180   :  { %6326 = vmatpush1.bf16.msra.mxu0 %v8408_v21  ;;  %5779 = vmatprep.subr.bf16.mxu1 %v8416_v22  ;;  %v8504_v21 = vld [vmem:[%s11969_s1 + $0x13e0] ss:$8 sps:$4 sm:$0xff]   ;;  %v8509_v22 = vld [vmem:[%s11969_s1 + $0x6f4] ss:$8 sps:$4 sm:$0xff]  }
 0x181   :  { %6338 = vmatprep.subr.bf16.mxu0 %v8422_v25  ;;  %v8510_v25 = vld [vmem:[%s11969_s1 + $0x13f0] ss:$8 sps:$4 sm:$0xff]  }
 0x182   :  { %5769 = vmatmul.mubr.bf16.vlgmr.msra.gmra.mrb[0].mxu1 %v8411_v23  ;;  %v8512_v23 = vld [vmem:[%s11969_s1 + $0x13f4] ss:$8 sps:$4 sm:$0xff]  }
 0x183   :  { %6328 = vmatmul.mubr.bf16.vlgmr.msra.gmra.mrb[0].mxu0 %v8417_v24  ;;  %5780 = vmatpush1.bf16.msra.mxu1 %v8414_v26  ;;  %v8507_v24 = vld [vmem:[%s11969_s1 + $0x6f0] ss:$8 sps:$4 sm:$0xff]   ;;  %v8518_v26 = vld [vmem:[%s11969_s1 + $0x704] ss:$8 sps:$4 sm:$0xff]  }
 0x184   :  { %6339 = vmatpush1.bf16.msra.mxu0 %v8420_v27  ;;  %5781 = vmatprep.subr.bf16.mxu1 %v8425_v28  ;;  %v8513_v27 = vld [vmem:[%s11970_s0 + $0x30] ss:$216 sps:$4 sm:$0xff]  }
 0x185   :  { %6340 = vmatprep.subr.bf16.mxu0 %v8428_v29  ;;  %5811 = vmatprep.mubr.bf16.mxu1 %v8515_v30  ;;  %v8519_v28 = vld [vmem:[%s11970_s0 + $0x98] ss:$216 sps:$4 sm:$0xff]   ;;  %v8524_v29 = vld [vmem:[%s11969_s1 + $0x1404] ss:$8 sps:$4 sm:$0xff]   ;;  %v8516_v30 = vld [vmem:[%s11969_s1 + $0x700] ss:$8 sps:$4 sm:$0xff]  }
 0x186   :  { %6370 = vmatprep.mubr.bf16.mxu0 %v8521_v31  ;;  %v8522_v31 = vld [vmem:[%s11969_s1 + $0x1400] ss:$8 sps:$4 sm:$0xff]  }
 0x187   :  { %5782 = vmatpush1.bf16.msra.mxu1 %v8423_v32  ;;  %v8527_v32 = vld [vmem:[%s11969_s1 + $0x714] ss:$8 sps:$4 sm:$0xff]  }
 0x188   :  { %6341 = vmatpush1.bf16.msra.mxu0 %v8426_v33  ;;  %5783 = vmatprep.subr.bf16.mxu1 %v8431_v34  ;;  %v8530_v33 = vld [vmem:[%s11969_s1 + $0x1414] ss:$8 sps:$4 sm:$0xff]  }
 0x189   :  { %6342 = vmatprep.subr.bf16.mxu0 %v8434_v35  ;;  %v8617_v34 = vld [vmem:[%s11970_s0 + $0x3c] ss:$216 sps:$4 sm:$0xff]  }
 0x18a   :  { %v8623_v35 = vld [vmem:[%s11970_s0 + $0xa4] ss:$216 sps:$4 sm:$0xff]  }
 0x18b   :  { %5784 = vmatpush1.bf16.msra.mxu1 %v8429_v36  ;;  %v8525_v36 = vld [vmem:[%s11969_s1 + $0x710] ss:$8 sps:$4 sm:$0xff]  }
 0x18c   :  { %6343 = vmatpush1.bf16.msra.mxu0 %v8432_v37  ;;  %5785 = vmatprep.subr.bf16.mxu1 %v8437_v38  ;;  %v8528_v37 = vld [vmem:[%s11969_s1 + $0x1410] ss:$8 sps:$4 sm:$0xff]   ;;  %v8533_v38 = vld [vmem:[%s11969_s1 + $0x724] ss:$8 sps:$4 sm:$0xff]  }
 0x18d   :  { %6344 = vmatprep.subr.bf16.mxu0 %v8440_v39  ;;  %v8536_v39 = vld [vmem:[%s11969_s1 + $0x1424] ss:$8 sps:$4 sm:$0xff]  }
 0x18f   :  { %5786 = vmatpush1.bf16.msra.mxu1 %v8435_v40  ;;  %v8531_v40 = vld [vmem:[%s11969_s1 + $0x720] ss:$8 sps:$4 sm:$0xff]  }
 0x190   :  { %6345 = vmatpush1.bf16.msra.mxu0 %v8438_v41  ;;  %5787 = vmatprep.subr.bf16.mxu1 %v8443_v42  ;;  %v8534_v41 = vld [vmem:[%s11969_s1 + $0x1420] ss:$8 sps:$4 sm:$0xff]   ;;  %v8539_v42 = vld [vmem:[%s11969_s1 + $0x734] ss:$8 sps:$4 sm:$0xff]  }
 0x191   :  { %6346 = vmatprep.subr.bf16.mxu0 %v8446_v43  ;;  %v8542_v43 = vld [vmem:[%s11969_s1 + $0x1434] ss:$8 sps:$4 sm:$0xff]  }
 0x193   :  { %5788 = vmatpush1.bf16.msra.mxu1 %v8441_v44  ;;  %v8537_v44 = vld [vmem:[%s11969_s1 + $0x730] ss:$8 sps:$4 sm:$0xff]  }
 0x194   :  { %6347 = vmatpush1.bf16.msra.mxu0 %v8444_v45  ;;  %5789 = vmatprep.subr.bf16.mxu1 %v8449_v46  ;;  %v8540_v45 = vld [vmem:[%s11969_s1 + $0x1430] ss:$8 sps:$4 sm:$0xff]   ;;  %v8545_v46 = vld [vmem:[%s11969_s1 + $0x744] ss:$8 sps:$4 sm:$0xff]  }
 0x195   :  { %6348 = vmatprep.subr.bf16.mxu0 %v8452_v47  ;;  %v8548_v47 = vld [vmem:[%s11969_s1 + $0x1444] ss:$8 sps:$4 sm:$0xff]  }
 0x197   :  { %5790 = vmatpush1.bf16.msra.mxu1 %v8447_v48  ;;  %v8543_v48 = vld [vmem:[%s11969_s1 + $0x740] ss:$8 sps:$4 sm:$0xff]  }
 0x198   :  { %6349 = vmatpush1.bf16.msra.mxu0 %v8450_v49  ;;  %5791 = vmatprep.subr.bf16.mxu1 %v8455_v50  ;;  %v8546_v49 = vld [vmem:[%s11969_s1 + $0x1440] ss:$8 sps:$4 sm:$0xff]   ;;  %v8551_v50 = vld [vmem:[%s11969_s1 + $0x754] ss:$8 sps:$4 sm:$0xff]  }
 0x199   :  { %6350 = vmatprep.subr.bf16.mxu0 %v8458_v51  ;;  %v8554_v51 = vld [vmem:[%s11969_s1 + $0x1454] ss:$8 sps:$4 sm:$0xff]  }
 0x19b   :  { %5792 = vmatpush1.bf16.msra.mxu1 %v8453_v52  ;;  %v8549_v52 = vld [vmem:[%s11969_s1 + $0x750] ss:$8 sps:$4 sm:$0xff]  }
 0x19c   :  { %6351 = vmatpush1.bf16.msra.mxu0 %v8456_v53  ;;  %5793 = vmatprep.subr.bf16.mxu1 %v8461_v54  ;;  %v8552_v53 = vld [vmem:[%s11969_s1 + $0x1450] ss:$8 sps:$4 sm:$0xff]   ;;  %v8557_v54 = vld [vmem:[%s11969_s1 + $0x764] ss:$8 sps:$4 sm:$0xff]  }
 0x19d   :  { %6352 = vmatprep.subr.bf16.mxu0 %v8464_v55  ;;  %v8560_v55 = vld [vmem:[%s11969_s1 + $0x1464] ss:$8 sps:$4 sm:$0xff]  }
 0x19f   :  { %5794 = vmatpush1.bf16.msra.mxu1 %v8459_v56  ;;  %v8555_v56 = vld [vmem:[%s11969_s1 + $0x760] ss:$8 sps:$4 sm:$0xff]  }
 0x1a0   :  { %6353 = vmatpush1.bf16.msra.mxu0 %v8462_v57  ;;  %5795 = vmatprep.subr.bf16.mxu1 %v8467_v58  ;;  %v8558_v57 = vld [vmem:[%s11969_s1 + $0x1460] ss:$8 sps:$4 sm:$0xff]   ;;  %v8563_v58 = vld [vmem:[%s11969_s1 + $0x774] ss:$8 sps:$4 sm:$0xff]  }
 0x1a1   :  { %6354 = vmatprep.subr.bf16.mxu0 %v8470_v59  ;;  %v8566_v59 = vld [vmem:[%s11969_s1 + $0x1474] ss:$8 sps:$4 sm:$0xff]  }
 0x1a3   :  { %5796 = vmatpush1.bf16.msra.mxu1 %v8465_v60  ;;  %v8561_v60 = vld [vmem:[%s11969_s1 + $0x770] ss:$8 sps:$4 sm:$0xff]  }
 0x1a4   :  { %6355 = vmatpush1.bf16.msra.mxu0 %v8468_v61  ;;  %5797 = vmatprep.subr.bf16.mxu1 %v8473_v62  ;;  %v8564_v61 = vld [vmem:[%s11969_s1 + $0x1470] ss:$8 sps:$4 sm:$0xff]   ;;  %v8569_v62 = vld [vmem:[%s11969_s1 + $0x784] ss:$8 sps:$4 sm:$0xff]  }
 0x1a5   :  { %6356 = vmatprep.subr.bf16.mxu0 %v8476_v63  ;;  %v8572_v63 = vld [vmem:[%s11969_s1 + $0x1484] ss:$8 sps:$4 sm:$0xff]  }
 0x1a7   :  { %5798 = vmatpush1.bf16.msra.mxu1 %v8471_v0  ;;  %v8567_v0 = vld [vmem:[%s11969_s1 + $0x780] ss:$8 sps:$4 sm:$0xff]  }
 0x1a8   :  { %6357 = vmatpush1.bf16.msra.mxu0 %v8474_v1  ;;  %5799 = vmatprep.subr.bf16.mxu1 %v8479_v2  ;;  %v8570_v1 = vld [vmem:[%s11969_s1 + $0x1480] ss:$8 sps:$4 sm:$0xff]   ;;  %v8575_v2 = vld [vmem:[%s11969_s1 + $0x794] ss:$8 sps:$4 sm:$0xff]  }
 0x1a9   :  { %6358 = vmatprep.subr.bf16.mxu0 %v8482_v3  ;;  %v8578_v3 = vld [vmem:[%s11969_s1 + $0x1494] ss:$8 sps:$4 sm:$0xff]  }
 0x1ab   :  { %5800 = vmatpush1.bf16.msra.mxu1 %v8477_v4  ;;  %v8573_v4 = vld [vmem:[%s11969_s1 + $0x790] ss:$8 sps:$4 sm:$0xff]  }
 0x1ac   :  { %6359 = vmatpush1.bf16.msra.mxu0 %v8480_v5  ;;  %5801 = vmatprep.subr.bf16.mxu1 %v8485_v6  ;;  %v8576_v5 = vld [vmem:[%s11969_s1 + $0x1490] ss:$8 sps:$4 sm:$0xff]   ;;  %v8581_v6 = vld [vmem:[%s11969_s1 + $0x7a4] ss:$8 sps:$4 sm:$0xff]  }
 0x1ad   :  { %6360 = vmatprep.subr.bf16.mxu0 %v8488_v7  ;;  %v8584_v7 = vld [vmem:[%s11969_s1 + $0x14a4] ss:$8 sps:$4 sm:$0xff]  }
 0x1af   :  { %5802 = vmatpush1.bf16.msra.mxu1 %v8483_v8  ;;  %v8579_v8 = vld [vmem:[%s11969_s1 + $0x7a0] ss:$8 sps:$4 sm:$0xff]  }
 0x1b0   :  { %6361 = vmatpush1.bf16.msra.mxu0 %v8486_v9  ;;  %5803 = vmatprep.subr.bf16.mxu1 %v8491_v10  ;;  %v8582_v9 = vld [vmem:[%s11969_s1 + $0x14a0] ss:$8 sps:$4 sm:$0xff]   ;;  %v8587_v10 = vld [vmem:[%s11969_s1 + $0x7b4] ss:$8 sps:$4 sm:$0xff]  }
 0x1b1   :  { %6362 = vmatprep.subr.bf16.mxu0 %v8494_v11  ;;  %v8590_v11 = vld [vmem:[%s11969_s1 + $0x14b4] ss:$8 sps:$4 sm:$0xff]  }
 0x1b3   :  { %5804 = vmatpush1.bf16.msra.mxu1 %v8489_v12  ;;  %v8585_v12 = vld [vmem:[%s11969_s1 + $0x7b0] ss:$8 sps:$4 sm:$0xff]  }
 0x1b4   :  { %6363 = vmatpush1.bf16.msra.mxu0 %v8492_v13  ;;  %5805 = vmatprep.subr.bf16.mxu1 %v8497_v14  ;;  %v8588_v13 = vld [vmem:[%s11969_s1 + $0x14b0] ss:$8 sps:$4 sm:$0xff]   ;;  %v8593_v14 = vld [vmem:[%s11969_s1 + $0x7c4] ss:$8 sps:$4 sm:$0xff]  }
 0x1b5   :  { %6364 = vmatprep.subr.bf16.mxu0 %v8500_v15  ;;  %v8596_v15 = vld [vmem:[%s11969_s1 + $0x14c4] ss:$8 sps:$4 sm:$0xff]  }
 0x1b7   :  { %5806 = vmatpush1.bf16.msra.mxu1 %v8495_v16  ;;  %v8591_v16 = vld [vmem:[%s11969_s1 + $0x7c0] ss:$8 sps:$4 sm:$0xff]  }
 0x1b8   :  { %6365 = vmatpush1.bf16.msra.mxu0 %v8498_v17  ;;  %5807 = vmatprep.subr.bf16.mxu1 %v8503_v18  ;;  %v8594_v17 = vld [vmem:[%s11969_s1 + $0x14c0] ss:$8 sps:$4 sm:$0xff]   ;;  %v8599_v18 = vld [vmem:[%s11969_s1 + $0x7d4] ss:$8 sps:$4 sm:$0xff]  }
 0x1b9   :  { %6366 = vmatprep.subr.bf16.mxu0 %v8506_v19  ;;  %v8602_v19 = vld [vmem:[%s11969_s1 + $0x14d4] ss:$8 sps:$4 sm:$0xff]  }
 0x1bb   :  { %5808 = vmatpush1.bf16.msra.mxu1 %v8501_v20  ;;  %v8597_v20 = vld [vmem:[%s11969_s1 + $0x7d0] ss:$8 sps:$4 sm:$0xff]  }
 0x1bc   :  { %6367 = vmatpush1.bf16.msra.mxu0 %v8504_v21  ;;  %5809 = vmatprep.subr.bf16.mxu1 %v8509_v22  ;;  %v8600_v21 = vld [vmem:[%s11969_s1 + $0x14d0] ss:$8 sps:$4 sm:$0xff]   ;;  %v8605_v22 = vld [vmem:[%s11969_s1 + $0x7e4] ss:$8 sps:$4 sm:$0xff]  }
 0x1bd   :  { %6368 = vmatprep.subr.bf16.mxu0 %v8512_v23  ;;  %v8608_v23 = vld [vmem:[%s11969_s1 + $0x14e4] ss:$8 sps:$4 sm:$0xff]  }
 0x1bf   :  { %5810 = vmatpush1.bf16.msra.mxu1 %v8507_v24  ;;  %v8603_v24 = vld [vmem:[%s11969_s1 + $0x7e0] ss:$8 sps:$4 sm:$0xff]  }
 0x1c0   :  { %6369 = vmatpush1.bf16.msra.mxu0 %v8510_v25  ;;  %5822 = vmatprep.subr.bf16.mxu1 %v8518_v26  ;;  %v8606_v25 = vld [vmem:[%s11969_s1 + $0x14e0] ss:$8 sps:$4 sm:$0xff]   ;;  %v8611_v26 = vld [vmem:[%s11969_s1 + $0x7f4] ss:$8 sps:$4 sm:$0xff]  }
 0x1c1   :  { %6381 = vmatprep.subr.bf16.mxu0 %v8524_v29  ;;  %v8612_v29 = vld [vmem:[%s11969_s1 + $0x14f0] ss:$8 sps:$4 sm:$0xff]  }
 0x1c2   :  { %5812 = vmatmul.mubr.bf16.vlgmr.msra.gmra.mrb[0].mxu1 %v8513_v27  ;;  %v8614_v27 = vld [vmem:[%s11969_s1 + $0x14f4] ss:$8 sps:$4 sm:$0xff]  }
 0x1c3   :  { %6371 = vmatmul.mubr.bf16.vlgmr.msra.gmra.mrb[0].mxu0 %v8519_v28  ;;  %5823 = vmatpush1.bf16.msra.mxu1 %v8516_v30  ;;  %v8609_v28 = vld [vmem:[%s11969_s1 + $0x7f0] ss:$8 sps:$4 sm:$0xff]   ;;  %v8620_v30 = vld [vmem:[%s11969_s1 + $0x804] ss:$8 sps:$4 sm:$0xff]  }
 0x1c4   :  { %6382 = vmatpush1.bf16.msra.mxu0 %v8522_v31  ;;  %5824 = vmatprep.subr.bf16.mxu1 %v8527_v32  ;;  %v8615_v31 = vld [vmem:[%s11970_s0 + $0x38] ss:$216 sps:$4 sm:$0xff]  }
 0x1c5   :  { %6383 = vmatprep.subr.bf16.mxu0 %v8530_v33  ;;  %5854 = vmatprep.mubr.bf16.mxu1 %v8617_v34  ;;  %v8621_v32 = vld [vmem:[%s11970_s0 + $0xa0] ss:$216 sps:$4 sm:$0xff]   ;;  %v8626_v33 = vld [vmem:[%s11969_s1 + $0x1504] ss:$8 sps:$4 sm:$0xff]  }
 0x1c6   :  { %6413 = vmatprep.mubr.bf16.mxu0 %v8623_v35  ;;  %v8618_v34 = vld [vmem:[%s11969_s1 + $0x800] ss:$8 sps:$4 sm:$0xff]  }
 0x1c7   :  { %5825 = vmatpush1.bf16.msra.mxu1 %v8525_v36  ;;  %v8624_v35 = vld [vmem:[%s11969_s1 + $0x1500] ss:$8 sps:$4 sm:$0xff]   ;;  %v8629_v36 = vld [vmem:[%s11969_s1 + $0x814] ss:$8 sps:$4 sm:$0xff]  }
 0x1c8   :  { %6384 = vmatpush1.bf16.msra.mxu0 %v8528_v37  ;;  %5826 = vmatprep.subr.bf16.mxu1 %v8533_v38  ;;  %v8632_v37 = vld [vmem:[%s11969_s1 + $0x1514] ss:$8 sps:$4 sm:$0xff]  }
 0x1c9   :  { %6385 = vmatprep.subr.bf16.mxu0 %v8536_v39  ;;  %v8719_v38 = vld [vmem:[%s11970_s0 + $0x44] ss:$216 sps:$4 sm:$0xff]  }
 0x1ca   :  { %v8725_v39 = vld [vmem:[%s11970_s0 + $0xac] ss:$216 sps:$4 sm:$0xff]  }
 0x1cb   :  { %5827 = vmatpush1.bf16.msra.mxu1 %v8531_v40  ;;  %v8627_v40 = vld [vmem:[%s11969_s1 + $0x810] ss:$8 sps:$4 sm:$0xff]  }
 0x1cc   :  { %6386 = vmatpush1.bf16.msra.mxu0 %v8534_v41  ;;  %5828 = vmatprep.subr.bf16.mxu1 %v8539_v42  ;;  %v8630_v41 = vld [vmem:[%s11969_s1 + $0x1510] ss:$8 sps:$4 sm:$0xff]   ;;  %v8635_v42 = vld [vmem:[%s11969_s1 + $0x824] ss:$8 sps:$4 sm:$0xff]  }
 0x1cd   :  { %6387 = vmatprep.subr.bf16.mxu0 %v8542_v43  ;;  %v8638_v43 = vld [vmem:[%s11969_s1 + $0x1524] ss:$8 sps:$4 sm:$0xff]  }
 0x1cf   :  { %5829 = vmatpush1.bf16.msra.mxu1 %v8537_v44  ;;  %v8633_v44 = vld [vmem:[%s11969_s1 + $0x820] ss:$8 sps:$4 sm:$0xff]  }
 0x1d0   :  { %6388 = vmatpush1.bf16.msra.mxu0 %v8540_v45  ;;  %5830 = vmatprep.subr.bf16.mxu1 %v8545_v46  ;;  %v8636_v45 = vld [vmem:[%s11969_s1 + $0x1520] ss:$8 sps:$4 sm:$0xff]   ;;  %v8641_v46 = vld [vmem:[%s11969_s1 + $0x834] ss:$8 sps:$4 sm:$0xff]  }
 0x1d1   :  { %6389 = vmatprep.subr.bf16.mxu0 %v8548_v47  ;;  %v8644_v47 = vld [vmem:[%s11969_s1 + $0x1534] ss:$8 sps:$4 sm:$0xff]  }
 0x1d3   :  { %5831 = vmatpush1.bf16.msra.mxu1 %v8543_v48  ;;  %v8639_v48 = vld [vmem:[%s11969_s1 + $0x830] ss:$8 sps:$4 sm:$0xff]  }
 0x1d4   :  { %6390 = vmatpush1.bf16.msra.mxu0 %v8546_v49  ;;  %5832 = vmatprep.subr.bf16.mxu1 %v8551_v50  ;;  %v8642_v49 = vld [vmem:[%s11969_s1 + $0x1530] ss:$8 sps:$4 sm:$0xff]   ;;  %v8647_v50 = vld [vmem:[%s11969_s1 + $0x844] ss:$8 sps:$4 sm:$0xff]  }
 0x1d5   :  { %6391 = vmatprep.subr.bf16.mxu0 %v8554_v51  ;;  %v8650_v51 = vld [vmem:[%s11969_s1 + $0x1544] ss:$8 sps:$4 sm:$0xff]  }
 0x1d7   :  { %5833 = vmatpush1.bf16.msra.mxu1 %v8549_v52  ;;  %v8645_v52 = vld [vmem:[%s11969_s1 + $0x840] ss:$8 sps:$4 sm:$0xff]  }
 0x1d8   :  { %6392 = vmatpush1.bf16.msra.mxu0 %v8552_v53  ;;  %5834 = vmatprep.subr.bf16.mxu1 %v8557_v54  ;;  %v8648_v53 = vld [vmem:[%s11969_s1 + $0x1540] ss:$8 sps:$4 sm:$0xff]   ;;  %v8653_v54 = vld [vmem:[%s11969_s1 + $0x854] ss:$8 sps:$4 sm:$0xff]  }
 0x1d9   :  { %6393 = vmatprep.subr.bf16.mxu0 %v8560_v55  ;;  %v8656_v55 = vld [vmem:[%s11969_s1 + $0x1554] ss:$8 sps:$4 sm:$0xff]  }
 0x1db   :  { %5835 = vmatpush1.bf16.msra.mxu1 %v8555_v56  ;;  %v8651_v56 = vld [vmem:[%s11969_s1 + $0x850] ss:$8 sps:$4 sm:$0xff]  }
 0x1dc   :  { %6394 = vmatpush1.bf16.msra.mxu0 %v8558_v57  ;;  %5836 = vmatprep.subr.bf16.mxu1 %v8563_v58  ;;  %v8654_v57 = vld [vmem:[%s11969_s1 + $0x1550] ss:$8 sps:$4 sm:$0xff]   ;;  %v8659_v58 = vld [vmem:[%s11969_s1 + $0x864] ss:$8 sps:$4 sm:$0xff]  }
 0x1dd   :  { %6395 = vmatprep.subr.bf16.mxu0 %v8566_v59  ;;  %v8662_v59 = vld [vmem:[%s11969_s1 + $0x1564] ss:$8 sps:$4 sm:$0xff]  }
 0x1df   :  { %5837 = vmatpush1.bf16.msra.mxu1 %v8561_v60  ;;  %v8657_v60 = vld [vmem:[%s11969_s1 + $0x860] ss:$8 sps:$4 sm:$0xff]  }
 0x1e0   :  { %6396 = vmatpush1.bf16.msra.mxu0 %v8564_v61  ;;  %5838 = vmatprep.subr.bf16.mxu1 %v8569_v62  ;;  %v8660_v61 = vld [vmem:[%s11969_s1 + $0x1560] ss:$8 sps:$4 sm:$0xff]   ;;  %v8665_v62 = vld [vmem:[%s11969_s1 + $0x874] ss:$8 sps:$4 sm:$0xff]  }
 0x1e1   :  { %6397 = vmatprep.subr.bf16.mxu0 %v8572_v63  ;;  %v8668_v63 = vld [vmem:[%s11969_s1 + $0x1574] ss:$8 sps:$4 sm:$0xff]  }
 0x1e3   :  { %5839 = vmatpush1.bf16.msra.mxu1 %v8567_v0  ;;  %v8663_v0 = vld [vmem:[%s11969_s1 + $0x870] ss:$8 sps:$4 sm:$0xff]  }
 0x1e4   :  { %6398 = vmatpush1.bf16.msra.mxu0 %v8570_v1  ;;  %5840 = vmatprep.subr.bf16.mxu1 %v8575_v2  ;;  %v8666_v1 = vld [vmem:[%s11969_s1 + $0x1570] ss:$8 sps:$4 sm:$0xff]   ;;  %v8671_v2 = vld [vmem:[%s11969_s1 + $0x884] ss:$8 sps:$4 sm:$0xff]  }
 0x1e5   :  { %6399 = vmatprep.subr.bf16.mxu0 %v8578_v3  ;;  %v8674_v3 = vld [vmem:[%s11969_s1 + $0x1584] ss:$8 sps:$4 sm:$0xff]  }
 0x1e7   :  { %5841 = vmatpush1.bf16.msra.mxu1 %v8573_v4  ;;  %v8669_v4 = vld [vmem:[%s11969_s1 + $0x880] ss:$8 sps:$4 sm:$0xff]  }
 0x1e8   :  { %6400 = vmatpush1.bf16.msra.mxu0 %v8576_v5  ;;  %5842 = vmatprep.subr.bf16.mxu1 %v8581_v6  ;;  %v8672_v5 = vld [vmem:[%s11969_s1 + $0x1580] ss:$8 sps:$4 sm:$0xff]   ;;  %v8677_v6 = vld [vmem:[%s11969_s1 + $0x894] ss:$8 sps:$4 sm:$0xff]  }
 0x1e9   :  { %6401 = vmatprep.subr.bf16.mxu0 %v8584_v7  ;;  %v8680_v7 = vld [vmem:[%s11969_s1 + $0x1594] ss:$8 sps:$4 sm:$0xff]  }
 0x1eb   :  { %5843 = vmatpush1.bf16.msra.mxu1 %v8579_v8  ;;  %v8675_v8 = vld [vmem:[%s11969_s1 + $0x890] ss:$8 sps:$4 sm:$0xff]  }
 0x1ec   :  { %6402 = vmatpush1.bf16.msra.mxu0 %v8582_v9  ;;  %5844 = vmatprep.subr.bf16.mxu1 %v8587_v10  ;;  %v8678_v9 = vld [vmem:[%s11969_s1 + $0x1590] ss:$8 sps:$4 sm:$0xff]   ;;  %v8683_v10 = vld [vmem:[%s11969_s1 + $0x8a4] ss:$8 sps:$4 sm:$0xff]  }
 0x1ed   :  { %6403 = vmatprep.subr.bf16.mxu0 %v8590_v11  ;;  %v8686_v11 = vld [vmem:[%s11969_s1 + $0x15a4] ss:$8 sps:$4 sm:$0xff]  }
 0x1ef   :  { %5845 = vmatpush1.bf16.msra.mxu1 %v8585_v12  ;;  %v8681_v12 = vld [vmem:[%s11969_s1 + $0x8a0] ss:$8 sps:$4 sm:$0xff]  }
 0x1f0   :  { %6404 = vmatpush1.bf16.msra.mxu0 %v8588_v13  ;;  %5846 = vmatprep.subr.bf16.mxu1 %v8593_v14  ;;  %v8684_v13 = vld [vmem:[%s11969_s1 + $0x15a0] ss:$8 sps:$4 sm:$0xff]   ;;  %v8689_v14 = vld [vmem:[%s11969_s1 + $0x8b4] ss:$8 sps:$4 sm:$0xff]  }
 0x1f1   :  { %6405 = vmatprep.subr.bf16.mxu0 %v8596_v15  ;;  %v8692_v15 = vld [vmem:[%s11969_s1 + $0x15b4] ss:$8 sps:$4 sm:$0xff]  }
 0x1f3   :  { %5847 = vmatpush1.bf16.msra.mxu1 %v8591_v16  ;;  %v8687_v16 = vld [vmem:[%s11969_s1 + $0x8b0] ss:$8 sps:$4 sm:$0xff]  }
 0x1f4   :  { %6406 = vmatpush1.bf16.msra.mxu0 %v8594_v17  ;;  %5848 = vmatprep.subr.bf16.mxu1 %v8599_v18  ;;  %v8690_v17 = vld [vmem:[%s11969_s1 + $0x15b0] ss:$8 sps:$4 sm:$0xff]   ;;  %v8695_v18 = vld [vmem:[%s11969_s1 + $0x8c4] ss:$8 sps:$4 sm:$0xff]  }
 0x1f5   :  { %6407 = vmatprep.subr.bf16.mxu0 %v8602_v19  ;;  %v8698_v19 = vld [vmem:[%s11969_s1 + $0x15c4] ss:$8 sps:$4 sm:$0xff]  }
 0x1f7   :  { %5849 = vmatpush1.bf16.msra.mxu1 %v8597_v20  ;;  %v8693_v20 = vld [vmem:[%s11969_s1 + $0x8c0] ss:$8 sps:$4 sm:$0xff]  }
 0x1f8   :  { %6408 = vmatpush1.bf16.msra.mxu0 %v8600_v21  ;;  %5850 = vmatprep.subr.bf16.mxu1 %v8605_v22  ;;  %v8696_v21 = vld [vmem:[%s11969_s1 + $0x15c0] ss:$8 sps:$4 sm:$0xff]   ;;  %v8701_v22 = vld [vmem:[%s11969_s1 + $0x8d4] ss:$8 sps:$4 sm:$0xff]  }
 0x1f9   :  { %6409 = vmatprep.subr.bf16.mxu0 %v8608_v23  ;;  %v8704_v23 = vld [vmem:[%s11969_s1 + $0x15d4] ss:$8 sps:$4 sm:$0xff]  }
 0x1fb   :  { %5851 = vmatpush1.bf16.msra.mxu1 %v8603_v24  ;;  %v8699_v24 = vld [vmem:[%s11969_s1 + $0x8d0] ss:$8 sps:$4 sm:$0xff]  }
 0x1fc   :  { %6410 = vmatpush1.bf16.msra.mxu0 %v8606_v25  ;;  %5852 = vmatprep.subr.bf16.mxu1 %v8611_v26  ;;  %v8702_v25 = vld [vmem:[%s11969_s1 + $0x15d0] ss:$8 sps:$4 sm:$0xff]   ;;  %v8707_v26 = vld [vmem:[%s11969_s1 + $0x8e4] ss:$8 sps:$4 sm:$0xff]  }
 0x1fd   :  { %6411 = vmatprep.subr.bf16.mxu0 %v8614_v27  ;;  %v8710_v27 = vld [vmem:[%s11969_s1 + $0x15e4] ss:$8 sps:$4 sm:$0xff]  }
 0x1ff   :  { %5853 = vmatpush1.bf16.msra.mxu1 %v8609_v28  ;;  %v8705_v28 = vld [vmem:[%s11969_s1 + $0x8e0] ss:$8 sps:$4 sm:$0xff]  }
 0x200   :  { %6412 = vmatpush1.bf16.msra.mxu0 %v8612_v29  ;;  %5865 = vmatprep.subr.bf16.mxu1 %v8620_v30  ;;  %v8708_v29 = vld [vmem:[%s11969_s1 + $0x15e0] ss:$8 sps:$4 sm:$0xff]   ;;  %v8713_v30 = vld [vmem:[%s11969_s1 + $0x8f4] ss:$8 sps:$4 sm:$0xff]  }
 0x201   :  { %6424 = vmatprep.subr.bf16.mxu0 %v8626_v33  ;;  %v8714_v33 = vld [vmem:[%s11969_s1 + $0x15f0] ss:$8 sps:$4 sm:$0xff]  }
 0x202   :  { %5855 = vmatmul.mubr.bf16.vlgmr.msra.gmra.mrb[0].mxu1 %v8615_v31  ;;  %v8716_v31 = vld [vmem:[%s11969_s1 + $0x15f4] ss:$8 sps:$4 sm:$0xff]  }
 0x203   :  { %6414 = vmatmul.mubr.bf16.vlgmr.msra.gmra.mrb[0].mxu0 %v8621_v32  ;;  %5866 = vmatpush1.bf16.msra.mxu1 %v8618_v34  ;;  %v8711_v32 = vld [vmem:[%s11969_s1 + $0x8f0] ss:$8 sps:$4 sm:$0xff]   ;;  %v8722_v34 = vld [vmem:[%s11969_s1 + $0x904] ss:$8 sps:$4 sm:$0xff]  }
 0x204   :  { %6425 = vmatpush1.bf16.msra.mxu0 %v8624_v35  ;;  %5867 = vmatprep.subr.bf16.mxu1 %v8629_v36  ;;  %v8728_v35 = vld [vmem:[%s11969_s1 + $0x1604] ss:$8 sps:$4 sm:$0xff]   ;;  %v8717_v36 = vld [vmem:[%s11970_s0 + $0x40] ss:$216 sps:$4 sm:$0xff]  }
 0x205   :  { %6426 = vmatprep.subr.bf16.mxu0 %v8632_v37  ;;  %5897 = vmatprep.mubr.bf16.mxu1 %v8719_v38  ;;  %v8723_v37 = vld [vmem:[%s11970_s0 + $0xa8] ss:$216 sps:$4 sm:$0xff]  }
 0x206   :  { %6456 = vmatprep.mubr.bf16.mxu0 %v8725_v39  ;;  %v8720_v38 = vld [vmem:[%s11969_s1 + $0x900] ss:$8 sps:$4 sm:$0xff]  }
 0x207   :  { %5868 = vmatpush1.bf16.msra.mxu1 %v8627_v40  ;;  %v8726_v39 = vld [vmem:[%s11969_s1 + $0x1600] ss:$8 sps:$4 sm:$0xff]   ;;  %v8731_v40 = vld [vmem:[%s11969_s1 + $0x914] ss:$8 sps:$4 sm:$0xff]  }
 0x208   :  { %6427 = vmatpush1.bf16.msra.mxu0 %v8630_v41  ;;  %5869 = vmatprep.subr.bf16.mxu1 %v8635_v42  ;;  %v8734_v41 = vld [vmem:[%s11969_s1 + $0x1614] ss:$8 sps:$4 sm:$0xff]   ;;  %v8821_v42 = vld [vmem:[%s11970_s0 + $0x4c] ss:$216 sps:$4 sm:$0xff]  }
 0x209   :  { %6428 = vmatprep.subr.bf16.mxu0 %v8638_v43  ;;  %v8827_v43 = vld [vmem:[%s11970_s0 + $0xb4] ss:$216 sps:$4 sm:$0xff]  }
 0x20b   :  { %5870 = vmatpush1.bf16.msra.mxu1 %v8633_v44  ;;  %v8729_v44 = vld [vmem:[%s11969_s1 + $0x910] ss:$8 sps:$4 sm:$0xff]  }
 0x20c   :  { %6429 = vmatpush1.bf16.msra.mxu0 %v8636_v45  ;;  %5871 = vmatprep.subr.bf16.mxu1 %v8641_v46  ;;  %v8732_v45 = vld [vmem:[%s11969_s1 + $0x1610] ss:$8 sps:$4 sm:$0xff]   ;;  %v8737_v46 = vld [vmem:[%s11969_s1 + $0x924] ss:$8 sps:$4 sm:$0xff]  }
 0x20d   :  { %6430 = vmatprep.subr.bf16.mxu0 %v8644_v47  ;;  %v8740_v47 = vld [vmem:[%s11969_s1 + $0x1624] ss:$8 sps:$4 sm:$0xff]  }
 0x20f   :  { %5872 = vmatpush1.bf16.msra.mxu1 %v8639_v48  ;;  %v8735_v48 = vld [vmem:[%s11969_s1 + $0x920] ss:$8 sps:$4 sm:$0xff]  }
 0x210   :  { %6431 = vmatpush1.bf16.msra.mxu0 %v8642_v49  ;;  %5873 = vmatprep.subr.bf16.mxu1 %v8647_v50  ;;  %v8738_v49 = vld [vmem:[%s11969_s1 + $0x1620] ss:$8 sps:$4 sm:$0xff]   ;;  %v8743_v50 = vld [vmem:[%s11969_s1 + $0x934] ss:$8 sps:$4 sm:$0xff]  }
 0x211   :  { %6432 = vmatprep.subr.bf16.mxu0 %v8650_v51  ;;  %v8746_v51 = vld [vmem:[%s11969_s1 + $0x1634] ss:$8 sps:$4 sm:$0xff]  }
 0x213   :  { %5874 = vmatpush1.bf16.msra.mxu1 %v8645_v52  ;;  %v8741_v52 = vld [vmem:[%s11969_s1 + $0x930] ss:$8 sps:$4 sm:$0xff]  }
 0x214   :  { %6433 = vmatpush1.bf16.msra.mxu0 %v8648_v53  ;;  %5875 = vmatprep.subr.bf16.mxu1 %v8653_v54  ;;  %v8744_v53 = vld [vmem:[%s11969_s1 + $0x1630] ss:$8 sps:$4 sm:$0xff]   ;;  %v8749_v54 = vld [vmem:[%s11969_s1 + $0x944] ss:$8 sps:$4 sm:$0xff]  }
 0x215   :  { %6434 = vmatprep.subr.bf16.mxu0 %v8656_v55  ;;  %v8752_v55 = vld [vmem:[%s11969_s1 + $0x1644] ss:$8 sps:$4 sm:$0xff]  }
 0x217   :  { %5876 = vmatpush1.bf16.msra.mxu1 %v8651_v56  ;;  %v8747_v56 = vld [vmem:[%s11969_s1 + $0x940] ss:$8 sps:$4 sm:$0xff]  }
 0x218   :  { %6435 = vmatpush1.bf16.msra.mxu0 %v8654_v57  ;;  %5877 = vmatprep.subr.bf16.mxu1 %v8659_v58  ;;  %v8750_v57 = vld [vmem:[%s11969_s1 + $0x1640] ss:$8 sps:$4 sm:$0xff]   ;;  %v8755_v58 = vld [vmem:[%s11969_s1 + $0x954] ss:$8 sps:$4 sm:$0xff]  }
 0x219   :  { %6436 = vmatprep.subr.bf16.mxu0 %v8662_v59  ;;  %v8758_v59 = vld [vmem:[%s11969_s1 + $0x1654] ss:$8 sps:$4 sm:$0xff]  }
 0x21b   :  { %5878 = vmatpush1.bf16.msra.mxu1 %v8657_v60  ;;  %v8753_v60 = vld [vmem:[%s11969_s1 + $0x950] ss:$8 sps:$4 sm:$0xff]  }
 0x21c   :  { %6437 = vmatpush1.bf16.msra.mxu0 %v8660_v61  ;;  %5879 = vmatprep.subr.bf16.mxu1 %v8665_v62  ;;  %v8756_v61 = vld [vmem:[%s11969_s1 + $0x1650] ss:$8 sps:$4 sm:$0xff]   ;;  %v8761_v62 = vld [vmem:[%s11969_s1 + $0x964] ss:$8 sps:$4 sm:$0xff]  }
 0x21d   :  { %6438 = vmatprep.subr.bf16.mxu0 %v8668_v63  ;;  %v8764_v63 = vld [vmem:[%s11969_s1 + $0x1664] ss:$8 sps:$4 sm:$0xff]  }
 0x21f   :  { %5880 = vmatpush1.bf16.msra.mxu1 %v8663_v0  ;;  %v8759_v0 = vld [vmem:[%s11969_s1 + $0x960] ss:$8 sps:$4 sm:$0xff]  }
 0x220   :  { %6439 = vmatpush1.bf16.msra.mxu0 %v8666_v1  ;;  %5881 = vmatprep.subr.bf16.mxu1 %v8671_v2  ;;  %v8762_v1 = vld [vmem:[%s11969_s1 + $0x1660] ss:$8 sps:$4 sm:$0xff]   ;;  %v8767_v2 = vld [vmem:[%s11969_s1 + $0x974] ss:$8 sps:$4 sm:$0xff]  }
 0x221   :  { %6440 = vmatprep.subr.bf16.mxu0 %v8674_v3  ;;  %v8770_v3 = vld [vmem:[%s11969_s1 + $0x1674] ss:$8 sps:$4 sm:$0xff]  }
 0x223   :  { %5882 = vmatpush1.bf16.msra.mxu1 %v8669_v4  ;;  %v8765_v4 = vld [vmem:[%s11969_s1 + $0x970] ss:$8 sps:$4 sm:$0xff]  }
 0x224   :  { %6441 = vmatpush1.bf16.msra.mxu0 %v8672_v5  ;;  %5883 = vmatprep.subr.bf16.mxu1 %v8677_v6  ;;  %v8768_v5 = vld [vmem:[%s11969_s1 + $0x1670] ss:$8 sps:$4 sm:$0xff]   ;;  %v8773_v6 = vld [vmem:[%s11969_s1 + $0x984] ss:$8 sps:$4 sm:$0xff]  }
 0x225   :  { %6442 = vmatprep.subr.bf16.mxu0 %v8680_v7  ;;  %v8776_v7 = vld [vmem:[%s11969_s1 + $0x1684] ss:$8 sps:$4 sm:$0xff]  }
 0x227   :  { %5884 = vmatpush1.bf16.msra.mxu1 %v8675_v8  ;;  %v8771_v8 = vld [vmem:[%s11969_s1 + $0x980] ss:$8 sps:$4 sm:$0xff]  }
 0x228   :  { %6443 = vmatpush1.bf16.msra.mxu0 %v8678_v9  ;;  %5885 = vmatprep.subr.bf16.mxu1 %v8683_v10  ;;  %v8774_v9 = vld [vmem:[%s11969_s1 + $0x1680] ss:$8 sps:$4 sm:$0xff]   ;;  %v8779_v10 = vld [vmem:[%s11969_s1 + $0x994] ss:$8 sps:$4 sm:$0xff]  }
 0x229   :  { %6444 = vmatprep.subr.bf16.mxu0 %v8686_v11  ;;  %v8782_v11 = vld [vmem:[%s11969_s1 + $0x1694] ss:$8 sps:$4 sm:$0xff]  }
 0x22b   :  { %5886 = vmatpush1.bf16.msra.mxu1 %v8681_v12  ;;  %v8777_v12 = vld [vmem:[%s11969_s1 + $0x990] ss:$8 sps:$4 sm:$0xff]  }
 0x22c   :  { %6445 = vmatpush1.bf16.msra.mxu0 %v8684_v13  ;;  %5887 = vmatprep.subr.bf16.mxu1 %v8689_v14  ;;  %v8780_v13 = vld [vmem:[%s11969_s1 + $0x1690] ss:$8 sps:$4 sm:$0xff]   ;;  %v8785_v14 = vld [vmem:[%s11969_s1 + $0x9a4] ss:$8 sps:$4 sm:$0xff]  }
 0x22d   :  { %6446 = vmatprep.subr.bf16.mxu0 %v8692_v15  ;;  %v8788_v15 = vld [vmem:[%s11969_s1 + $0x16a4] ss:$8 sps:$4 sm:$0xff]  }
 0x22f   :  { %5888 = vmatpush1.bf16.msra.mxu1 %v8687_v16  ;;  %v8783_v16 = vld [vmem:[%s11969_s1 + $0x9a0] ss:$8 sps:$4 sm:$0xff]  }
 0x230   :  { %6447 = vmatpush1.bf16.msra.mxu0 %v8690_v17  ;;  %5889 = vmatprep.subr.bf16.mxu1 %v8695_v18  ;;  %v8786_v17 = vld [vmem:[%s11969_s1 + $0x16a0] ss:$8 sps:$4 sm:$0xff]   ;;  %v8791_v18 = vld [vmem:[%s11969_s1 + $0x9b4] ss:$8 sps:$4 sm:$0xff]  }
 0x231   :  { %6448 = vmatprep.subr.bf16.mxu0 %v8698_v19  ;;  %v8794_v19 = vld [vmem:[%s11969_s1 + $0x16b4] ss:$8 sps:$4 sm:$0xff]  }
 0x233   :  { %5890 = vmatpush1.bf16.msra.mxu1 %v8693_v20  ;;  %v8789_v20 = vld [vmem:[%s11969_s1 + $0x9b0] ss:$8 sps:$4 sm:$0xff]  }
 0x234   :  { %6449 = vmatpush1.bf16.msra.mxu0 %v8696_v21  ;;  %5891 = vmatprep.subr.bf16.mxu1 %v8701_v22  ;;  %v8792_v21 = vld [vmem:[%s11969_s1 + $0x16b0] ss:$8 sps:$4 sm:$0xff]   ;;  %v8797_v22 = vld [vmem:[%s11969_s1 + $0x9c4] ss:$8 sps:$4 sm:$0xff]  }
 0x235   :  { %6450 = vmatprep.subr.bf16.mxu0 %v8704_v23  ;;  %v8800_v23 = vld [vmem:[%s11969_s1 + $0x16c4] ss:$8 sps:$4 sm:$0xff]  }
 0x237   :  { %5892 = vmatpush1.bf16.msra.mxu1 %v8699_v24  ;;  %v8795_v24 = vld [vmem:[%s11969_s1 + $0x9c0] ss:$8 sps:$4 sm:$0xff]  }
 0x238   :  { %6451 = vmatpush1.bf16.msra.mxu0 %v8702_v25  ;;  %5893 = vmatprep.subr.bf16.mxu1 %v8707_v26  ;;  %v8798_v25 = vld [vmem:[%s11969_s1 + $0x16c0] ss:$8 sps:$4 sm:$0xff]   ;;  %v8803_v26 = vld [vmem:[%s11969_s1 + $0x9d4] ss:$8 sps:$4 sm:$0xff]  }
 0x239   :  { %6452 = vmatprep.subr.bf16.mxu0 %v8710_v27  ;;  %v8806_v27 = vld [vmem:[%s11969_s1 + $0x16d4] ss:$8 sps:$4 sm:$0xff]  }
 0x23b   :  { %5894 = vmatpush1.bf16.msra.mxu1 %v8705_v28  ;;  %v8801_v28 = vld [vmem:[%s11969_s1 + $0x9d0] ss:$8 sps:$4 sm:$0xff]  }
 0x23c   :  { %6453 = vmatpush1.bf16.msra.mxu0 %v8708_v29  ;;  %5895 = vmatprep.subr.bf16.mxu1 %v8713_v30  ;;  %v8804_v29 = vld [vmem:[%s11969_s1 + $0x16d0] ss:$8 sps:$4 sm:$0xff]   ;;  %v8809_v30 = vld [vmem:[%s11969_s1 + $0x9e4] ss:$8 sps:$4 sm:$0xff]  }
 0x23d   :  { %6454 = vmatprep.subr.bf16.mxu0 %v8716_v31  ;;  %v8812_v31 = vld [vmem:[%s11969_s1 + $0x16e4] ss:$8 sps:$4 sm:$0xff]  }
 0x23f   :  { %5896 = vmatpush1.bf16.msra.mxu1 %v8711_v32  ;;  %v8807_v32 = vld [vmem:[%s11969_s1 + $0x9e0] ss:$8 sps:$4 sm:$0xff]  }
 0x240   :  { %6455 = vmatpush1.bf16.msra.mxu0 %v8714_v33  ;;  %5908 = vmatprep.subr.bf16.mxu1 %v8722_v34  ;;  %v8810_v33 = vld [vmem:[%s11969_s1 + $0x16e0] ss:$8 sps:$4 sm:$0xff]   ;;  %v8815_v34 = vld [vmem:[%s11969_s1 + $0x9f4] ss:$8 sps:$4 sm:$0xff]  }
 0x241   :  { %6467 = vmatprep.subr.bf16.mxu0 %v8728_v35  ;;  %v8818_v35 = vld [vmem:[%s11969_s1 + $0x16f4] ss:$8 sps:$4 sm:$0xff]  }
 0x242   :  { %5898 = vmatmul.mubr.bf16.vlgmr.msra.gmra.mrb[0].mxu1 %v8717_v36  ;;  %v8813_v36 = vld [vmem:[%s11969_s1 + $0x9f0] ss:$8 sps:$4 sm:$0xff]  }
 0x243   :  { %6457 = vmatmul.mubr.bf16.vlgmr.msra.gmra.mrb[0].mxu0 %v8723_v37  ;;  %5909 = vmatpush1.bf16.msra.mxu1 %v8720_v38  ;;  %v8816_v37 = vld [vmem:[%s11969_s1 + $0x16f0] ss:$8 sps:$4 sm:$0xff]   ;;  %v8824_v38 = vld [vmem:[%s11969_s1 + $0xa04] ss:$8 sps:$4 sm:$0xff]  }
 0x244   :  { %6468 = vmatpush1.bf16.msra.mxu0 %v8726_v39  ;;  %5910 = vmatprep.subr.bf16.mxu1 %v8731_v40  ;;  %v8830_v39 = vld [vmem:[%s11969_s1 + $0x1704] ss:$8 sps:$4 sm:$0xff]   ;;  %v8819_v40 = vld [vmem:[%s11970_s0 + $0x48] ss:$216 sps:$4 sm:$0xff]  }
 0x245   :  { %6469 = vmatprep.subr.bf16.mxu0 %v8734_v41  ;;  %5940 = vmatprep.mubr.bf16.mxu1 %v8821_v42  ;;  %v8825_v41 = vld [vmem:[%s11970_s0 + $0xb0] ss:$216 sps:$4 sm:$0xff]  }
 0x246   :  { %6499 = vmatprep.mubr.bf16.mxu0 %v8827_v43  ;;  %v8822_v42 = vld [vmem:[%s11969_s1 + $0xa00] ss:$8 sps:$4 sm:$0xff]  }
 0x247   :  { %5911 = vmatpush1.bf16.msra.mxu1 %v8729_v44  ;;  %v8828_v43 = vld [vmem:[%s11969_s1 + $0x1700] ss:$8 sps:$4 sm:$0xff]   ;;  %v8833_v44 = vld [vmem:[%s11969_s1 + $0xa14] ss:$8 sps:$4 sm:$0xff]  }
 0x248   :  { %6470 = vmatpush1.bf16.msra.mxu0 %v8732_v45  ;;  %5912 = vmatprep.subr.bf16.mxu1 %v8737_v46  ;;  %v8836_v45 = vld [vmem:[%s11969_s1 + $0x1714] ss:$8 sps:$4 sm:$0xff]  }
 0x249   :  { %6471 = vmatprep.subr.bf16.mxu0 %v8740_v47  ;;  %v8923_v46 = vld [vmem:[%s11970_s0 + $0x54] ss:$216 sps:$4 sm:$0xff]  }
 0x24a   :  { %v8929_v47 = vld [vmem:[%s11970_s0 + $0xbc] ss:$216 sps:$4 sm:$0xff]  }
 0x24b   :  { %5913 = vmatpush1.bf16.msra.mxu1 %v8735_v48  ;;  %v8831_v48 = vld [vmem:[%s11969_s1 + $0xa10] ss:$8 sps:$4 sm:$0xff]  }
 0x24c   :  { %6472 = vmatpush1.bf16.msra.mxu0 %v8738_v49  ;;  %5914 = vmatprep.subr.bf16.mxu1 %v8743_v50  ;;  %v8834_v49 = vld [vmem:[%s11969_s1 + $0x1710] ss:$8 sps:$4 sm:$0xff]   ;;  %v8839_v50 = vld [vmem:[%s11969_s1 + $0xa24] ss:$8 sps:$4 sm:$0xff]  }
 0x24d   :  { %6473 = vmatprep.subr.bf16.mxu0 %v8746_v51  ;;  %v8842_v51 = vld [vmem:[%s11969_s1 + $0x1724] ss:$8 sps:$4 sm:$0xff]  }
 0x24f   :  { %5915 = vmatpush1.bf16.msra.mxu1 %v8741_v52  ;;  %v8837_v52 = vld [vmem:[%s11969_s1 + $0xa20] ss:$8 sps:$4 sm:$0xff]  }
 0x250   :  { %6474 = vmatpush1.bf16.msra.mxu0 %v8744_v53  ;;  %5916 = vmatprep.subr.bf16.mxu1 %v8749_v54  ;;  %v8840_v53 = vld [vmem:[%s11969_s1 + $0x1720] ss:$8 sps:$4 sm:$0xff]   ;;  %v8845_v54 = vld [vmem:[%s11969_s1 + $0xa34] ss:$8 sps:$4 sm:$0xff]  }
 0x251   :  { %6475 = vmatprep.subr.bf16.mxu0 %v8752_v55  ;;  %v8848_v55 = vld [vmem:[%s11969_s1 + $0x1734] ss:$8 sps:$4 sm:$0xff]  }
 0x253   :  { %5917 = vmatpush1.bf16.msra.mxu1 %v8747_v56  ;;  %v8843_v56 = vld [vmem:[%s11969_s1 + $0xa30] ss:$8 sps:$4 sm:$0xff]  }
 0x254   :  { %6476 = vmatpush1.bf16.msra.mxu0 %v8750_v57  ;;  %5918 = vmatprep.subr.bf16.mxu1 %v8755_v58  ;;  %v8846_v57 = vld [vmem:[%s11969_s1 + $0x1730] ss:$8 sps:$4 sm:$0xff]   ;;  %v8851_v58 = vld [vmem:[%s11969_s1 + $0xa44] ss:$8 sps:$4 sm:$0xff]  }
 0x255   :  { %6477 = vmatprep.subr.bf16.mxu0 %v8758_v59  ;;  %v8854_v59 = vld [vmem:[%s11969_s1 + $0x1744] ss:$8 sps:$4 sm:$0xff]  }
 0x257   :  { %5919 = vmatpush1.bf16.msra.mxu1 %v8753_v60  ;;  %v8849_v60 = vld [vmem:[%s11969_s1 + $0xa40] ss:$8 sps:$4 sm:$0xff]  }
 0x258   :  { %6478 = vmatpush1.bf16.msra.mxu0 %v8756_v61  ;;  %5920 = vmatprep.subr.bf16.mxu1 %v8761_v62  ;;  %v8852_v61 = vld [vmem:[%s11969_s1 + $0x1740] ss:$8 sps:$4 sm:$0xff]   ;;  %v8857_v62 = vld [vmem:[%s11969_s1 + $0xa54] ss:$8 sps:$4 sm:$0xff]  }
 0x259   :  { %6479 = vmatprep.subr.bf16.mxu0 %v8764_v63  ;;  %v8860_v63 = vld [vmem:[%s11969_s1 + $0x1754] ss:$8 sps:$4 sm:$0xff]  }
 0x25b   :  { %5921 = vmatpush1.bf16.msra.mxu1 %v8759_v0  ;;  %v8855_v0 = vld [vmem:[%s11969_s1 + $0xa50] ss:$8 sps:$4 sm:$0xff]  }
 0x25c   :  { %6480 = vmatpush1.bf16.msra.mxu0 %v8762_v1  ;;  %5922 = vmatprep.subr.bf16.mxu1 %v8767_v2  ;;  %v8858_v1 = vld [vmem:[%s11969_s1 + $0x1750] ss:$8 sps:$4 sm:$0xff]   ;;  %v8863_v2 = vld [vmem:[%s11969_s1 + $0xa64] ss:$8 sps:$4 sm:$0xff]  }
 0x25d   :  { %6481 = vmatprep.subr.bf16.mxu0 %v8770_v3  ;;  %v8866_v3 = vld [vmem:[%s11969_s1 + $0x1764] ss:$8 sps:$4 sm:$0xff]  }
 0x25f   :  { %5923 = vmatpush1.bf16.msra.mxu1 %v8765_v4  ;;  %v8861_v4 = vld [vmem:[%s11969_s1 + $0xa60] ss:$8 sps:$4 sm:$0xff]  }
 0x260   :  { %6482 = vmatpush1.bf16.msra.mxu0 %v8768_v5  ;;  %5924 = vmatprep.subr.bf16.mxu1 %v8773_v6  ;;  %v8864_v5 = vld [vmem:[%s11969_s1 + $0x1760] ss:$8 sps:$4 sm:$0xff]   ;;  %v8869_v6 = vld [vmem:[%s11969_s1 + $0xa74] ss:$8 sps:$4 sm:$0xff]  }
 0x261   :  { %6483 = vmatprep.subr.bf16.mxu0 %v8776_v7  ;;  %v8872_v7 = vld [vmem:[%s11969_s1 + $0x1774] ss:$8 sps:$4 sm:$0xff]  }
 0x263   :  { %5925 = vmatpush1.bf16.msra.mxu1 %v8771_v8  ;;  %v8867_v8 = vld [vmem:[%s11969_s1 + $0xa70] ss:$8 sps:$4 sm:$0xff]  }
 0x264   :  { %6484 = vmatpush1.bf16.msra.mxu0 %v8774_v9  ;;  %5926 = vmatprep.subr.bf16.mxu1 %v8779_v10  ;;  %v8870_v9 = vld [vmem:[%s11969_s1 + $0x1770] ss:$8 sps:$4 sm:$0xff]   ;;  %v8875_v10 = vld [vmem:[%s11969_s1 + $0xa84] ss:$8 sps:$4 sm:$0xff]  }
 0x265   :  { %6485 = vmatprep.subr.bf16.mxu0 %v8782_v11  ;;  %v8878_v11 = vld [vmem:[%s11969_s1 + $0x1784] ss:$8 sps:$4 sm:$0xff]  }
 0x267   :  { %5927 = vmatpush1.bf16.msra.mxu1 %v8777_v12  ;;  %v8873_v12 = vld [vmem:[%s11969_s1 + $0xa80] ss:$8 sps:$4 sm:$0xff]  }
 0x268   :  { %6486 = vmatpush1.bf16.msra.mxu0 %v8780_v13  ;;  %5928 = vmatprep.subr.bf16.mxu1 %v8785_v14  ;;  %v8876_v13 = vld [vmem:[%s11969_s1 + $0x1780] ss:$8 sps:$4 sm:$0xff]   ;;  %v8881_v14 = vld [vmem:[%s11969_s1 + $0xa94] ss:$8 sps:$4 sm:$0xff]  }
 0x269   :  { %6487 = vmatprep.subr.bf16.mxu0 %v8788_v15  ;;  %v8884_v15 = vld [vmem:[%s11969_s1 + $0x1794] ss:$8 sps:$4 sm:$0xff]  }
 0x26b   :  { %5929 = vmatpush1.bf16.msra.mxu1 %v8783_v16  ;;  %v8879_v16 = vld [vmem:[%s11969_s1 + $0xa90] ss:$8 sps:$4 sm:$0xff]  }
 0x26c   :  { %6488 = vmatpush1.bf16.msra.mxu0 %v8786_v17  ;;  %5930 = vmatprep.subr.bf16.mxu1 %v8791_v18  ;;  %v8882_v17 = vld [vmem:[%s11969_s1 + $0x1790] ss:$8 sps:$4 sm:$0xff]   ;;  %v8887_v18 = vld [vmem:[%s11969_s1 + $0xaa4] ss:$8 sps:$4 sm:$0xff]  }
 0x26d   :  { %6489 = vmatprep.subr.bf16.mxu0 %v8794_v19  ;;  %v8890_v19 = vld [vmem:[%s11969_s1 + $0x17a4] ss:$8 sps:$4 sm:$0xff]  }
 0x26f   :  { %5931 = vmatpush1.bf16.msra.mxu1 %v8789_v20  ;;  %v8885_v20 = vld [vmem:[%s11969_s1 + $0xaa0] ss:$8 sps:$4 sm:$0xff]  }
 0x270   :  { %6490 = vmatpush1.bf16.msra.mxu0 %v8792_v21  ;;  %5932 = vmatprep.subr.bf16.mxu1 %v8797_v22  ;;  %v8888_v21 = vld [vmem:[%s11969_s1 + $0x17a0] ss:$8 sps:$4 sm:$0xff]   ;;  %v8893_v22 = vld [vmem:[%s11969_s1 + $0xab4] ss:$8 sps:$4 sm:$0xff]  }
 0x271   :  { %6491 = vmatprep.subr.bf16.mxu0 %v8800_v23  ;;  %v8896_v23 = vld [vmem:[%s11969_s1 + $0x17b4] ss:$8 sps:$4 sm:$0xff]  }
 0x273   :  { %5933 = vmatpush1.bf16.msra.mxu1 %v8795_v24  ;;  %v8891_v24 = vld [vmem:[%s11969_s1 + $0xab0] ss:$8 sps:$4 sm:$0xff]  }
 0x274   :  { %6492 = vmatpush1.bf16.msra.mxu0 %v8798_v25  ;;  %5934 = vmatprep.subr.bf16.mxu1 %v8803_v26  ;;  %v8894_v25 = vld [vmem:[%s11969_s1 + $0x17b0] ss:$8 sps:$4 sm:$0xff]   ;;  %v8899_v26 = vld [vmem:[%s11969_s1 + $0xac4] ss:$8 sps:$4 sm:$0xff]  }
 0x275   :  { %6493 = vmatprep.subr.bf16.mxu0 %v8806_v27  ;;  %v8902_v27 = vld [vmem:[%s11969_s1 + $0x17c4] ss:$8 sps:$4 sm:$0xff]  }
 0x277   :  { %5935 = vmatpush1.bf16.msra.mxu1 %v8801_v28  ;;  %v8897_v28 = vld [vmem:[%s11969_s1 + $0xac0] ss:$8 sps:$4 sm:$0xff]  }
 0x278   :  { %6494 = vmatpush1.bf16.msra.mxu0 %v8804_v29  ;;  %5936 = vmatprep.subr.bf16.mxu1 %v8809_v30  ;;  %v8900_v29 = vld [vmem:[%s11969_s1 + $0x17c0] ss:$8 sps:$4 sm:$0xff]   ;;  %v8905_v30 = vld [vmem:[%s11969_s1 + $0xad4] ss:$8 sps:$4 sm:$0xff]  }
 0x279   :  { %6495 = vmatprep.subr.bf16.mxu0 %v8812_v31  ;;  %v8908_v31 = vld [vmem:[%s11969_s1 + $0x17d4] ss:$8 sps:$4 sm:$0xff]  }
 0x27b   :  { %5937 = vmatpush1.bf16.msra.mxu1 %v8807_v32  ;;  %v8903_v32 = vld [vmem:[%s11969_s1 + $0xad0] ss:$8 sps:$4 sm:$0xff]  }
 0x27c   :  { %6496 = vmatpush1.bf16.msra.mxu0 %v8810_v33  ;;  %5938 = vmatprep.subr.bf16.mxu1 %v8815_v34  ;;  %v8906_v33 = vld [vmem:[%s11969_s1 + $0x17d0] ss:$8 sps:$4 sm:$0xff]   ;;  %v8911_v34 = vld [vmem:[%s11969_s1 + $0xae4] ss:$8 sps:$4 sm:$0xff]  }
 0x27d   :  { %6497 = vmatprep.subr.bf16.mxu0 %v8818_v35  ;;  %v8914_v35 = vld [vmem:[%s11969_s1 + $0x17e4] ss:$8 sps:$4 sm:$0xff]  }
 0x27f   :  { %5939 = vmatpush1.bf16.msra.mxu1 %v8813_v36  ;;  %v8909_v36 = vld [vmem:[%s11969_s1 + $0xae0] ss:$8 sps:$4 sm:$0xff]  }
 0x280   :  { %6498 = vmatpush1.bf16.msra.mxu0 %v8816_v37  ;;  %5951 = vmatprep.subr.bf16.mxu1 %v8824_v38  ;;  %v8912_v37 = vld [vmem:[%s11969_s1 + $0x17e0] ss:$8 sps:$4 sm:$0xff]   ;;  %v8917_v38 = vld [vmem:[%s11969_s1 + $0xaf4] ss:$8 sps:$4 sm:$0xff]  }
 0x281   :  { %6510 = vmatprep.subr.bf16.mxu0 %v8830_v39  ;;  %v8920_v39 = vld [vmem:[%s11969_s1 + $0x17f4] ss:$8 sps:$4 sm:$0xff]  }
 0x282   :  { %5941 = vmatmul.mubr.bf16.vlgmr.msra.gmra.mrb[0].mxu1 %v8819_v40  ;;  %v8915_v40 = vld [vmem:[%s11969_s1 + $0xaf0] ss:$8 sps:$4 sm:$0xff]  }
 0x283   :  { %6500 = vmatmul.mubr.bf16.vlgmr.msra.gmra.mrb[0].mxu0 %v8825_v41  ;;  %5952 = vmatpush1.bf16.msra.mxu1 %v8822_v42  ;;  %v8918_v41 = vld [vmem:[%s11969_s1 + $0x17f0] ss:$8 sps:$4 sm:$0xff]   ;;  %v8926_v42 = vld [vmem:[%s11969_s1 + $0xb04] ss:$8 sps:$4 sm:$0xff]  }
 0x284   :  { %6511 = vmatpush1.bf16.msra.mxu0 %v8828_v43  ;;  %5953 = vmatprep.subr.bf16.mxu1 %v8833_v44  ;;  %v8932_v43 = vld [vmem:[%s11969_s1 + $0x1804] ss:$8 sps:$4 sm:$0xff]   ;;  %v8921_v44 = vld [vmem:[%s11970_s0 + $0x50] ss:$216 sps:$4 sm:$0xff]  }
 0x285   :  { %6512 = vmatprep.subr.bf16.mxu0 %v8836_v45  ;;  %5983 = vmatprep.mubr.bf16.mxu1 %v8923_v46  ;;  %v8927_v45 = vld [vmem:[%s11970_s0 + $0xb8] ss:$216 sps:$4 sm:$0xff]   ;;  %v8924_v46 = vld [vmem:[%s11969_s1 + $0xb00] ss:$8 sps:$4 sm:$0xff]  }
 0x286   :  { %6542 = vmatprep.mubr.bf16.mxu0 %v8929_v47  ;;  %v8930_v47 = vld [vmem:[%s11969_s1 + $0x1800] ss:$8 sps:$4 sm:$0xff]  }
 0x287   :  { %5954 = vmatpush1.bf16.msra.mxu1 %v8831_v48  ;;  %v8935_v48 = vld [vmem:[%s11969_s1 + $0xb14] ss:$8 sps:$4 sm:$0xff]  }
 0x288   :  { %6513 = vmatpush1.bf16.msra.mxu0 %v8834_v49  ;;  %5955 = vmatprep.subr.bf16.mxu1 %v8839_v50  ;;  %v8938_v49 = vld [vmem:[%s11969_s1 + $0x1814] ss:$8 sps:$4 sm:$0xff]  }
 0x289   :  { %6514 = vmatprep.subr.bf16.mxu0 %v8842_v51  ;;  %v9025_v50 = vld [vmem:[%s11970_s0 + $0x5c] ss:$216 sps:$4 sm:$0xff]  }
 0x28a   :  { %v9031_v51 = vld [vmem:[%s11970_s0 + $0xc4] ss:$216 sps:$4 sm:$0xff]  }
 0x28b   :  { %5956 = vmatpush1.bf16.msra.mxu1 %v8837_v52  ;;  %v8933_v52 = vld [vmem:[%s11969_s1 + $0xb10] ss:$8 sps:$4 sm:$0xff]  }
 0x28c   :  { %6515 = vmatpush1.bf16.msra.mxu0 %v8840_v53  ;;  %5957 = vmatprep.subr.bf16.mxu1 %v8845_v54  ;;  %v8936_v53 = vld [vmem:[%s11969_s1 + $0x1810] ss:$8 sps:$4 sm:$0xff]   ;;  %v8941_v54 = vld [vmem:[%s11969_s1 + $0xb24] ss:$8 sps:$4 sm:$0xff]  }
 0x28d   :  { %6516 = vmatprep.subr.bf16.mxu0 %v8848_v55  ;;  %v8944_v55 = vld [vmem:[%s11969_s1 + $0x1824] ss:$8 sps:$4 sm:$0xff]  }
 0x28f   :  { %5958 = vmatpush1.bf16.msra.mxu1 %v8843_v56  ;;  %v8939_v56 = vld [vmem:[%s11969_s1 + $0xb20] ss:$8 sps:$4 sm:$0xff]  }
 0x290   :  { %6517 = vmatpush1.bf16.msra.mxu0 %v8846_v57  ;;  %5959 = vmatprep.subr.bf16.mxu1 %v8851_v58  ;;  %v8942_v57 = vld [vmem:[%s11969_s1 + $0x1820] ss:$8 sps:$4 sm:$0xff]   ;;  %v8947_v58 = vld [vmem:[%s11969_s1 + $0xb34] ss:$8 sps:$4 sm:$0xff]  }
 0x291   :  { %6518 = vmatprep.subr.bf16.mxu0 %v8854_v59  ;;  %v8950_v59 = vld [vmem:[%s11969_s1 + $0x1834] ss:$8 sps:$4 sm:$0xff]  }
 0x293   :  { %5960 = vmatpush1.bf16.msra.mxu1 %v8849_v60  ;;  %v8945_v60 = vld [vmem:[%s11969_s1 + $0xb30] ss:$8 sps:$4 sm:$0xff]  }
 0x294   :  { %6519 = vmatpush1.bf16.msra.mxu0 %v8852_v61  ;;  %5961 = vmatprep.subr.bf16.mxu1 %v8857_v62  ;;  %v8948_v61 = vld [vmem:[%s11969_s1 + $0x1830] ss:$8 sps:$4 sm:$0xff]   ;;  %v8953_v62 = vld [vmem:[%s11969_s1 + $0xb44] ss:$8 sps:$4 sm:$0xff]  }
 0x295   :  { %6520 = vmatprep.subr.bf16.mxu0 %v8860_v63  ;;  %v8956_v63 = vld [vmem:[%s11969_s1 + $0x1844] ss:$8 sps:$4 sm:$0xff]  }
 0x297   :  { %5962 = vmatpush1.bf16.msra.mxu1 %v8855_v0  ;;  %v8951_v0 = vld [vmem:[%s11969_s1 + $0xb40] ss:$8 sps:$4 sm:$0xff]  }
 0x298   :  { %6521 = vmatpush1.bf16.msra.mxu0 %v8858_v1  ;;  %5963 = vmatprep.subr.bf16.mxu1 %v8863_v2  ;;  %v8954_v1 = vld [vmem:[%s11969_s1 + $0x1840] ss:$8 sps:$4 sm:$0xff]   ;;  %v8959_v2 = vld [vmem:[%s11969_s1 + $0xb54] ss:$8 sps:$4 sm:$0xff]  }
 0x299   :  { %6522 = vmatprep.subr.bf16.mxu0 %v8866_v3  ;;  %v8962_v3 = vld [vmem:[%s11969_s1 + $0x1854] ss:$8 sps:$4 sm:$0xff]  }
 0x29b   :  { %5964 = vmatpush1.bf16.msra.mxu1 %v8861_v4  ;;  %v8957_v4 = vld [vmem:[%s11969_s1 + $0xb50] ss:$8 sps:$4 sm:$0xff]  }
 0x29c   :  { %6523 = vmatpush1.bf16.msra.mxu0 %v8864_v5  ;;  %5965 = vmatprep.subr.bf16.mxu1 %v8869_v6  ;;  %v8960_v5 = vld [vmem:[%s11969_s1 + $0x1850] ss:$8 sps:$4 sm:$0xff]   ;;  %v8965_v6 = vld [vmem:[%s11969_s1 + $0xb64] ss:$8 sps:$4 sm:$0xff]  }
 0x29d   :  { %6524 = vmatprep.subr.bf16.mxu0 %v8872_v7  ;;  %v8968_v7 = vld [vmem:[%s11969_s1 + $0x1864] ss:$8 sps:$4 sm:$0xff]  }
 0x29f   :  { %5966 = vmatpush1.bf16.msra.mxu1 %v8867_v8  ;;  %v8963_v8 = vld [vmem:[%s11969_s1 + $0xb60] ss:$8 sps:$4 sm:$0xff]  }
 0x2a0   :  { %6525 = vmatpush1.bf16.msra.mxu0 %v8870_v9  ;;  %5967 = vmatprep.subr.bf16.mxu1 %v8875_v10  ;;  %v8966_v9 = vld [vmem:[%s11969_s1 + $0x1860] ss:$8 sps:$4 sm:$0xff]   ;;  %v8971_v10 = vld [vmem:[%s11969_s1 + $0xb74] ss:$8 sps:$4 sm:$0xff]  }
 0x2a1   :  { %6526 = vmatprep.subr.bf16.mxu0 %v8878_v11  ;;  %v8974_v11 = vld [vmem:[%s11969_s1 + $0x1874] ss:$8 sps:$4 sm:$0xff]  }
 0x2a3   :  { %5968 = vmatpush1.bf16.msra.mxu1 %v8873_v12  ;;  %v8969_v12 = vld [vmem:[%s11969_s1 + $0xb70] ss:$8 sps:$4 sm:$0xff]  }
 0x2a4   :  { %6527 = vmatpush1.bf16.msra.mxu0 %v8876_v13  ;;  %5969 = vmatprep.subr.bf16.mxu1 %v8881_v14  ;;  %v8972_v13 = vld [vmem:[%s11969_s1 + $0x1870] ss:$8 sps:$4 sm:$0xff]   ;;  %v8977_v14 = vld [vmem:[%s11969_s1 + $0xb84] ss:$8 sps:$4 sm:$0xff]  }
 0x2a5   :  { %6528 = vmatprep.subr.bf16.mxu0 %v8884_v15  ;;  %v8980_v15 = vld [vmem:[%s11969_s1 + $0x1884] ss:$8 sps:$4 sm:$0xff]  }
 0x2a7   :  { %5970 = vmatpush1.bf16.msra.mxu1 %v8879_v16  ;;  %v8975_v16 = vld [vmem:[%s11969_s1 + $0xb80] ss:$8 sps:$4 sm:$0xff]  }
 0x2a8   :  { %6529 = vmatpush1.bf16.msra.mxu0 %v8882_v17  ;;  %5971 = vmatprep.subr.bf16.mxu1 %v8887_v18  ;;  %v8978_v17 = vld [vmem:[%s11969_s1 + $0x1880] ss:$8 sps:$4 sm:$0xff]   ;;  %v8983_v18 = vld [vmem:[%s11969_s1 + $0xb94] ss:$8 sps:$4 sm:$0xff]  }
 0x2a9   :  { %6530 = vmatprep.subr.bf16.mxu0 %v8890_v19  ;;  %v8986_v19 = vld [vmem:[%s11969_s1 + $0x1894] ss:$8 sps:$4 sm:$0xff]  }
 0x2ab   :  { %5972 = vmatpush1.bf16.msra.mxu1 %v8885_v20  ;;  %v8981_v20 = vld [vmem:[%s11969_s1 + $0xb90] ss:$8 sps:$4 sm:$0xff]  }
 0x2ac   :  { %6531 = vmatpush1.bf16.msra.mxu0 %v8888_v21  ;;  %5973 = vmatprep.subr.bf16.mxu1 %v8893_v22  ;;  %v8984_v21 = vld [vmem:[%s11969_s1 + $0x1890] ss:$8 sps:$4 sm:$0xff]   ;;  %v8989_v22 = vld [vmem:[%s11969_s1 + $0xba4] ss:$8 sps:$4 sm:$0xff]  }
 0x2ad   :  { %6532 = vmatprep.subr.bf16.mxu0 %v8896_v23  ;;  %v8992_v23 = vld [vmem:[%s11969_s1 + $0x18a4] ss:$8 sps:$4 sm:$0xff]  }
 0x2af   :  { %5974 = vmatpush1.bf16.msra.mxu1 %v8891_v24  ;;  %v8987_v24 = vld [vmem:[%s11969_s1 + $0xba0] ss:$8 sps:$4 sm:$0xff]  }
 0x2b0   :  { %6533 = vmatpush1.bf16.msra.mxu0 %v8894_v25  ;;  %5975 = vmatprep.subr.bf16.mxu1 %v8899_v26  ;;  %v8990_v25 = vld [vmem:[%s11969_s1 + $0x18a0] ss:$8 sps:$4 sm:$0xff]   ;;  %v8995_v26 = vld [vmem:[%s11969_s1 + $0xbb4] ss:$8 sps:$4 sm:$0xff]  }
 0x2b1   :  { %6534 = vmatprep.subr.bf16.mxu0 %v8902_v27  ;;  %v8998_v27 = vld [vmem:[%s11969_s1 + $0x18b4] ss:$8 sps:$4 sm:$0xff]  }
 0x2b3   :  { %5976 = vmatpush1.bf16.msra.mxu1 %v8897_v28  ;;  %v8993_v28 = vld [vmem:[%s11969_s1 + $0xbb0] ss:$8 sps:$4 sm:$0xff]  }
 0x2b4   :  { %6535 = vmatpush1.bf16.msra.mxu0 %v8900_v29  ;;  %5977 = vmatprep.subr.bf16.mxu1 %v8905_v30  ;;  %v8996_v29 = vld [vmem:[%s11969_s1 + $0x18b0] ss:$8 sps:$4 sm:$0xff]   ;;  %v9001_v30 = vld [vmem:[%s11969_s1 + $0xbc4] ss:$8 sps:$4 sm:$0xff]  }
 0x2b5   :  { %6536 = vmatprep.subr.bf16.mxu0 %v8908_v31  ;;  %v9004_v31 = vld [vmem:[%s11969_s1 + $0x18c4] ss:$8 sps:$4 sm:$0xff]  }
 0x2b7   :  { %5978 = vmatpush1.bf16.msra.mxu1 %v8903_v32  ;;  %v8999_v32 = vld [vmem:[%s11969_s1 + $0xbc0] ss:$8 sps:$4 sm:$0xff]  }
 0x2b8   :  { %6537 = vmatpush1.bf16.msra.mxu0 %v8906_v33  ;;  %5979 = vmatprep.subr.bf16.mxu1 %v8911_v34  ;;  %v9002_v33 = vld [vmem:[%s11969_s1 + $0x18c0] ss:$8 sps:$4 sm:$0xff]   ;;  %v9007_v34 = vld [vmem:[%s11969_s1 + $0xbd4] ss:$8 sps:$4 sm:$0xff]  }
 0x2b9   :  { %6538 = vmatprep.subr.bf16.mxu0 %v8914_v35  ;;  %v9010_v35 = vld [vmem:[%s11969_s1 + $0x18d4] ss:$8 sps:$4 sm:$0xff]  }
 0x2bb   :  { %5980 = vmatpush1.bf16.msra.mxu1 %v8909_v36  ;;  %v9005_v36 = vld [vmem:[%s11969_s1 + $0xbd0] ss:$8 sps:$4 sm:$0xff]  }
 0x2bc   :  { %6539 = vmatpush1.bf16.msra.mxu0 %v8912_v37  ;;  %5981 = vmatprep.subr.bf16.mxu1 %v8917_v38  ;;  %v9008_v37 = vld [vmem:[%s11969_s1 + $0x18d0] ss:$8 sps:$4 sm:$0xff]   ;;  %v9013_v38 = vld [vmem:[%s11969_s1 + $0xbe4] ss:$8 sps:$4 sm:$0xff]  }
 0x2bd   :  { %6540 = vmatprep.subr.bf16.mxu0 %v8920_v39  ;;  %v9016_v39 = vld [vmem:[%s11969_s1 + $0x18e4] ss:$8 sps:$4 sm:$0xff]  }
 0x2bf   :  { %5982 = vmatpush1.bf16.msra.mxu1 %v8915_v40  ;;  %v9011_v40 = vld [vmem:[%s11969_s1 + $0xbe0] ss:$8 sps:$4 sm:$0xff]  }
 0x2c0   :  { %6541 = vmatpush1.bf16.msra.mxu0 %v8918_v41  ;;  %5994 = vmatprep.subr.bf16.mxu1 %v8926_v42  ;;  %v9014_v41 = vld [vmem:[%s11969_s1 + $0x18e0] ss:$8 sps:$4 sm:$0xff]   ;;  %v9019_v42 = vld [vmem:[%s11969_s1 + $0xbf4] ss:$8 sps:$4 sm:$0xff]  }
 0x2c1   :  { %6553 = vmatprep.subr.bf16.mxu0 %v8932_v43  ;;  %v9022_v43 = vld [vmem:[%s11969_s1 + $0x18f4] ss:$8 sps:$4 sm:$0xff]  }
 0x2c2   :  { %5984 = vmatmul.mubr.bf16.vlgmr.msra.gmra.mrb[0].mxu1 %v8921_v44  ;;  %v9017_v44 = vld [vmem:[%s11969_s1 + $0xbf0] ss:$8 sps:$4 sm:$0xff]  }
 0x2c3   :  { %6543 = vmatmul.mubr.bf16.vlgmr.msra.gmra.mrb[0].mxu0 %v8927_v45  ;;  %5995 = vmatpush1.bf16.msra.mxu1 %v8924_v46  ;;  %v9020_v45 = vld [vmem:[%s11969_s1 + $0x18f0] ss:$8 sps:$4 sm:$0xff]   ;;  %v9028_v46 = vld [vmem:[%s11969_s1 + $0xc04] ss:$8 sps:$4 sm:$0xff]  }
 0x2c4   :  { %6554 = vmatpush1.bf16.msra.mxu0 %v8930_v47  ;;  %5996 = vmatprep.subr.bf16.mxu1 %v8935_v48  ;;  %v9034_v47 = vld [vmem:[%s11969_s1 + $0x1904] ss:$8 sps:$4 sm:$0xff]   ;;  %v9023_v48 = vld [vmem:[%s11970_s0 + $0x58] ss:$216 sps:$4 sm:$0xff]  }
 0x2c5   :  { %6555 = vmatprep.subr.bf16.mxu0 %v8938_v49  ;;  %6026 = vmatprep.mubr.bf16.mxu1 %v9025_v50  ;;  %v9029_v49 = vld [vmem:[%s11970_s0 + $0xc0] ss:$216 sps:$4 sm:$0xff]  }
 0x2c6   :  { %6585 = vmatprep.mubr.bf16.mxu0 %v9031_v51  ;;  %v9026_v50 = vld [vmem:[%s11969_s1 + $0xc00] ss:$8 sps:$4 sm:$0xff]  }
 0x2c7   :  { %5997 = vmatpush1.bf16.msra.mxu1 %v8933_v52  ;;  %v9032_v51 = vld [vmem:[%s11969_s1 + $0x1900] ss:$8 sps:$4 sm:$0xff]   ;;  %v9037_v52 = vld [vmem:[%s11969_s1 + $0xc14] ss:$8 sps:$4 sm:$0xff]  }
 0x2c8   :  { %6556 = vmatpush1.bf16.msra.mxu0 %v8936_v53  ;;  %5998 = vmatprep.subr.bf16.mxu1 %v8941_v54  ;;  %v9040_v53 = vld [vmem:[%s11969_s1 + $0x1914] ss:$8 sps:$4 sm:$0xff]  }
 0x2c9   :  { %6557 = vmatprep.subr.bf16.mxu0 %v8944_v55  ;;  %v9127_v54 = vld [vmem:[%s11970_s0 + $0x64] ss:$216 sps:$4 sm:$0xff]  }
 0x2ca   :  { %v9130_v55 = vld [vmem:[%s11970_s0 + $0xcc] ss:$216 sps:$4 sm:$0xff]  }
 0x2cb   :  { %5999 = vmatpush1.bf16.msra.mxu1 %v8939_v56  ;;  %v9035_v56 = vld [vmem:[%s11969_s1 + $0xc10] ss:$8 sps:$4 sm:$0xff]  }
 0x2cc   :  { %6558 = vmatpush1.bf16.msra.mxu0 %v8942_v57  ;;  %6000 = vmatprep.subr.bf16.mxu1 %v8947_v58  ;;  %v9038_v57 = vld [vmem:[%s11969_s1 + $0x1910] ss:$8 sps:$4 sm:$0xff]   ;;  %v9043_v58 = vld [vmem:[%s11969_s1 + $0xc24] ss:$8 sps:$4 sm:$0xff]  }
 0x2cd   :  { %6559 = vmatprep.subr.bf16.mxu0 %v8950_v59  ;;  %v9046_v59 = vld [vmem:[%s11969_s1 + $0x1924] ss:$8 sps:$4 sm:$0xff]  }
 0x2cf   :  { %6001 = vmatpush1.bf16.msra.mxu1 %v8945_v60  ;;  %v9041_v60 = vld [vmem:[%s11969_s1 + $0xc20] ss:$8 sps:$4 sm:$0xff]  }
 0x2d0   :  { %6560 = vmatpush1.bf16.msra.mxu0 %v8948_v61  ;;  %6002 = vmatprep.subr.bf16.mxu1 %v8953_v62  ;;  %v9044_v61 = vld [vmem:[%s11969_s1 + $0x1920] ss:$8 sps:$4 sm:$0xff]   ;;  %v9049_v62 = vld [vmem:[%s11969_s1 + $0xc34] ss:$8 sps:$4 sm:$0xff]  }
 0x2d1   :  { %6561 = vmatprep.subr.bf16.mxu0 %v8956_v63  ;;  %v9052_v63 = vld [vmem:[%s11969_s1 + $0x1934] ss:$8 sps:$4 sm:$0xff]  }
 0x2d3   :  { %6003 = vmatpush1.bf16.msra.mxu1 %v8951_v0  ;;  %v9047_v0 = vld [vmem:[%s11969_s1 + $0xc30] ss:$8 sps:$4 sm:$0xff]  }
 0x2d4   :  { %6562 = vmatpush1.bf16.msra.mxu0 %v8954_v1  ;;  %6004 = vmatprep.subr.bf16.mxu1 %v8959_v2  ;;  %v9050_v1 = vld [vmem:[%s11969_s1 + $0x1930] ss:$8 sps:$4 sm:$0xff]   ;;  %v9055_v2 = vld [vmem:[%s11969_s1 + $0xc44] ss:$8 sps:$4 sm:$0xff]  }
 0x2d5   :  { %6563 = vmatprep.subr.bf16.mxu0 %v8962_v3  ;;  %v9058_v3 = vld [vmem:[%s11969_s1 + $0x1944] ss:$8 sps:$4 sm:$0xff]  }
 0x2d7   :  { %6005 = vmatpush1.bf16.msra.mxu1 %v8957_v4  ;;  %v9053_v4 = vld [vmem:[%s11969_s1 + $0xc40] ss:$8 sps:$4 sm:$0xff]  }
 0x2d8   :  { %6564 = vmatpush1.bf16.msra.mxu0 %v8960_v5  ;;  %6006 = vmatprep.subr.bf16.mxu1 %v8965_v6  ;;  %v9056_v5 = vld [vmem:[%s11969_s1 + $0x1940] ss:$8 sps:$4 sm:$0xff]   ;;  %v9061_v6 = vld [vmem:[%s11969_s1 + $0xc54] ss:$8 sps:$4 sm:$0xff]  }
 0x2d9   :  { %6565 = vmatprep.subr.bf16.mxu0 %v8968_v7  ;;  %v9064_v7 = vld [vmem:[%s11969_s1 + $0x1954] ss:$8 sps:$4 sm:$0xff]  }
 0x2db   :  { %6007 = vmatpush1.bf16.msra.mxu1 %v8963_v8  ;;  %v9059_v8 = vld [vmem:[%s11969_s1 + $0xc50] ss:$8 sps:$4 sm:$0xff]  }
 0x2dc   :  { %6566 = vmatpush1.bf16.msra.mxu0 %v8966_v9  ;;  %6008 = vmatprep.subr.bf16.mxu1 %v8971_v10  ;;  %v9062_v9 = vld [vmem:[%s11969_s1 + $0x1950] ss:$8 sps:$4 sm:$0xff]   ;;  %v9067_v10 = vld [vmem:[%s11969_s1 + $0xc64] ss:$8 sps:$4 sm:$0xff]  }
 0x2dd   :  { %6567 = vmatprep.subr.bf16.mxu0 %v8974_v11  ;;  %v9070_v11 = vld [vmem:[%s11969_s1 + $0x1964] ss:$8 sps:$4 sm:$0xff]  }
 0x2df   :  { %6009 = vmatpush1.bf16.msra.mxu1 %v8969_v12  ;;  %v9065_v12 = vld [vmem:[%s11969_s1 + $0xc60] ss:$8 sps:$4 sm:$0xff]  }
 0x2e0   :  { %6568 = vmatpush1.bf16.msra.mxu0 %v8972_v13  ;;  %6010 = vmatprep.subr.bf16.mxu1 %v8977_v14  ;;  %v9068_v13 = vld [vmem:[%s11969_s1 + $0x1960] ss:$8 sps:$4 sm:$0xff]   ;;  %v9073_v14 = vld [vmem:[%s11969_s1 + $0xc74] ss:$8 sps:$4 sm:$0xff]  }
 0x2e1   :  { %6569 = vmatprep.subr.bf16.mxu0 %v8980_v15  ;;  %v9076_v15 = vld [vmem:[%s11969_s1 + $0x1974] ss:$8 sps:$4 sm:$0xff]  }
 0x2e3   :  { %6011 = vmatpush1.bf16.msra.mxu1 %v8975_v16  ;;  %v9071_v16 = vld [vmem:[%s11969_s1 + $0xc70] ss:$8 sps:$4 sm:$0xff]  }
 0x2e4   :  { %6570 = vmatpush1.bf16.msra.mxu0 %v8978_v17  ;;  %6012 = vmatprep.subr.bf16.mxu1 %v8983_v18  ;;  %v9074_v17 = vld [vmem:[%s11969_s1 + $0x1970] ss:$8 sps:$4 sm:$0xff]   ;;  %v9079_v18 = vld [vmem:[%s11969_s1 + $0xc84] ss:$8 sps:$4 sm:$0xff]  }
 0x2e5   :  { %6571 = vmatprep.subr.bf16.mxu0 %v8986_v19  ;;  %v9082_v19 = vld [vmem:[%s11969_s1 + $0x1984] ss:$8 sps:$4 sm:$0xff]  }
 0x2e7   :  { %6013 = vmatpush1.bf16.msra.mxu1 %v8981_v20  ;;  %v9077_v20 = vld [vmem:[%s11969_s1 + $0xc80] ss:$8 sps:$4 sm:$0xff]  }
 0x2e8   :  { %6572 = vmatpush1.bf16.msra.mxu0 %v8984_v21  ;;  %6014 = vmatprep.subr.bf16.mxu1 %v8989_v22  ;;  %v9080_v21 = vld [vmem:[%s11969_s1 + $0x1980] ss:$8 sps:$4 sm:$0xff]   ;;  %v9085_v22 = vld [vmem:[%s11969_s1 + $0xc94] ss:$8 sps:$4 sm:$0xff]  }
 0x2e9   :  { %6573 = vmatprep.subr.bf16.mxu0 %v8992_v23  ;;  %v9088_v23 = vld [vmem:[%s11969_s1 + $0x1994] ss:$8 sps:$4 sm:$0xff]  }
 0x2eb   :  { %6015 = vmatpush1.bf16.msra.mxu1 %v8987_v24  ;;  %v9083_v24 = vld [vmem:[%s11969_s1 + $0xc90] ss:$8 sps:$4 sm:$0xff]  }
 0x2ec   :  { %6574 = vmatpush1.bf16.msra.mxu0 %v8990_v25  ;;  %6016 = vmatprep.subr.bf16.mxu1 %v8995_v26  ;;  %v9086_v25 = vld [vmem:[%s11969_s1 + $0x1990] ss:$8 sps:$4 sm:$0xff]   ;;  %v9091_v26 = vld [vmem:[%s11969_s1 + $0xca4] ss:$8 sps:$4 sm:$0xff]  }
 0x2ed   :  { %6575 = vmatprep.subr.bf16.mxu0 %v8998_v27  ;;  %v9094_v27 = vld [vmem:[%s11969_s1 + $0x19a4] ss:$8 sps:$4 sm:$0xff]  }
 0x2ef   :  { %6017 = vmatpush1.bf16.msra.mxu1 %v8993_v28  ;;  %v9089_v28 = vld [vmem:[%s11969_s1 + $0xca0] ss:$8 sps:$4 sm:$0xff]  }
 0x2f0   :  { %6576 = vmatpush1.bf16.msra.mxu0 %v8996_v29  ;;  %6018 = vmatprep.subr.bf16.mxu1 %v9001_v30  ;;  %v9092_v29 = vld [vmem:[%s11969_s1 + $0x19a0] ss:$8 sps:$4 sm:$0xff]   ;;  %v9097_v30 = vld [vmem:[%s11969_s1 + $0xcb4] ss:$8 sps:$4 sm:$0xff]  }
 0x2f1   :  { %6577 = vmatprep.subr.bf16.mxu0 %v9004_v31  ;;  %v9100_v31 = vld [vmem:[%s11969_s1 + $0x19b4] ss:$8 sps:$4 sm:$0xff]  }
 0x2f3   :  { %6019 = vmatpush1.bf16.msra.mxu1 %v8999_v32  ;;  %v9095_v32 = vld [vmem:[%s11969_s1 + $0xcb0] ss:$8 sps:$4 sm:$0xff]  }
 0x2f4   :  { %6578 = vmatpush1.bf16.msra.mxu0 %v9002_v33  ;;  %6020 = vmatprep.subr.bf16.mxu1 %v9007_v34  ;;  %v9098_v33 = vld [vmem:[%s11969_s1 + $0x19b0] ss:$8 sps:$4 sm:$0xff]   ;;  %v9103_v34 = vld [vmem:[%s11969_s1 + $0xcc4] ss:$8 sps:$4 sm:$0xff]  }
 0x2f5   :  { %6579 = vmatprep.subr.bf16.mxu0 %v9010_v35  ;;  %v9106_v35 = vld [vmem:[%s11969_s1 + $0x19c4] ss:$8 sps:$4 sm:$0xff]  }
 0x2f7   :  { %6021 = vmatpush1.bf16.msra.mxu1 %v9005_v36  ;;  %v9101_v36 = vld [vmem:[%s11969_s1 + $0xcc0] ss:$8 sps:$4 sm:$0xff]  }
 0x2f8   :  { %6580 = vmatpush1.bf16.msra.mxu0 %v9008_v37  ;;  %6022 = vmatprep.subr.bf16.mxu1 %v9013_v38  ;;  %v9104_v37 = vld [vmem:[%s11969_s1 + $0x19c0] ss:$8 sps:$4 sm:$0xff]   ;;  %v9109_v38 = vld [vmem:[%s11969_s1 + $0xcd4] ss:$8 sps:$4 sm:$0xff]  }
 0x2f9   :  { %6581 = vmatprep.subr.bf16.mxu0 %v9016_v39  ;;  %v9112_v39 = vld [vmem:[%s11969_s1 + $0x19d4] ss:$8 sps:$4 sm:$0xff]  }
 0x2fb   :  { %6023 = vmatpush1.bf16.msra.mxu1 %v9011_v40  ;;  %v9107_v40 = vld [vmem:[%s11969_s1 + $0xcd0] ss:$8 sps:$4 sm:$0xff]  }
 0x2fc   :  { %6582 = vmatpush1.bf16.msra.mxu0 %v9014_v41  ;;  %6024 = vmatprep.subr.bf16.mxu1 %v9019_v42  ;;  %v9110_v41 = vld [vmem:[%s11969_s1 + $0x19d0] ss:$8 sps:$4 sm:$0xff]   ;;  %v9115_v42 = vld [vmem:[%s11969_s1 + $0xce4] ss:$8 sps:$4 sm:$0xff]  }
 0x2fd   :  { %6583 = vmatprep.subr.bf16.mxu0 %v9022_v43  ;;  %v9118_v43 = vld [vmem:[%s11969_s1 + $0x19e4] ss:$8 sps:$4 sm:$0xff]  }
 0x2ff   :  { %6025 = vmatpush1.bf16.msra.mxu1 %v9017_v44  ;;  %v9113_v44 = vld [vmem:[%s11969_s1 + $0xce0] ss:$8 sps:$4 sm:$0xff]  }
 0x300   :  { %6584 = vmatpush1.bf16.msra.mxu0 %v9020_v45  ;;  %6037 = vmatprep.subr.bf16.mxu1 %v9028_v46  ;;  %v9116_v45 = vld [vmem:[%s11969_s1 + $0x19e0] ss:$8 sps:$4 sm:$0xff]   ;;  %v9121_v46 = vld [vmem:[%s11969_s1 + $0xcf4] ss:$8 sps:$4 sm:$0xff]  }
 0x301   :  { %6596 = vmatprep.subr.bf16.mxu0 %v9034_v47  ;;  %v9124_v47 = vld [vmem:[%s11969_s1 + $0x19f4] ss:$8 sps:$4 sm:$0xff]  }
 0x302   :  { %6027 = vmatmul.mubr.bf16.vlgmr.msra.gmra.mrb[0].mxu1 %v9023_v48  ;;  %v9119_v48 = vld [vmem:[%s11969_s1 + $0xcf0] ss:$8 sps:$4 sm:$0xff]  }
 0x303   :  { %6586 = vmatmul.mubr.bf16.vlgmr.msra.gmra.mrb[0].mxu0 %v9029_v49  ;;  %6038 = vmatpush1.bf16.msra.mxu1 %v9026_v50  ;;  %v9122_v49 = vld [vmem:[%s11969_s1 + $0x19f0] ss:$8 sps:$4 sm:$0xff]   ;;  %v9133_v50 = vld [vmem:[%s11969_s1 + $0x1a04] ss:$8 sps:$4 sm:$0xff]  }
 0x304   :  { %6597 = vmatpush1.bf16.msra.mxu0 %v9032_v51  ;;  %6039 = vmatprep.subr.bf16.mxu1 %v9037_v52  ;;  %v9125_v51 = vld [vmem:[%s11970_s0 + $0x60] ss:$216 sps:$4 sm:$0xff]  }
 0x305   :  { %6598 = vmatprep.subr.bf16.mxu0 %v9040_v53  ;;  %6069 = vmatprep.mubr.bf16.mxu1 %v9127_v54  ;;  %v9128_v52 = vld [vmem:[%s11970_s0 + $0xc8] ss:$216 sps:$4 sm:$0xff]   ;;  %v9181_v54 = vld [vmem:[%s11970_s0 + $0xd4] ss:$216 sps:$4 sm:$0xff]  }
 0x306   :  { %6628 = vmatprep.mubr.bf16.mxu0 %v9130_v55  ;;  %v9131_v53 = vld [vmem:[%s11969_s1 + $0x1a00] ss:$8 sps:$4 sm:$0xff]   ;;  %v9136_v55 = vld [vmem:[%s11969_s1 + $0x1a14] ss:$8 sps:$4 sm:$0xff]  }
 0x307   :  { %6040 = vmatpush1.bf16.msra.mxu1 %v9035_v56  ;;  %v9134_v56 = vld [vmem:[%s11969_s1 + $0x1a10] ss:$8 sps:$4 sm:$0xff]  }
 0x308   :  { %6599 = vmatpush1.bf16.msra.mxu0 %v9038_v57  ;;  %6041 = vmatprep.subr.bf16.mxu1 %v9043_v58  ;;  %v9139_v57 = vld [vmem:[%s11969_s1 + $0x1a24] ss:$8 sps:$4 sm:$0xff]   ;;  %v9137_v58 = vld [vmem:[%s11969_s1 + $0x1a20] ss:$8 sps:$4 sm:$0xff]  }
 0x309   :  { %6600 = vmatprep.subr.bf16.mxu0 %v9046_v59  ;;  %v9142_v59 = vld [vmem:[%s11969_s1 + $0x1a34] ss:$8 sps:$4 sm:$0xff]  }
 0x30b   :  { %6042 = vmatpush1.bf16.msra.mxu1 %v9041_v60  ;;  %v9140_v60 = vld [vmem:[%s11969_s1 + $0x1a30] ss:$8 sps:$4 sm:$0xff]  }
 0x30c   :  { %6601 = vmatpush1.bf16.msra.mxu0 %v9044_v61  ;;  %6043 = vmatprep.subr.bf16.mxu1 %v9049_v62  ;;  %v9145_v61 = vld [vmem:[%s11969_s1 + $0x1a44] ss:$8 sps:$4 sm:$0xff]   ;;  %v9143_v62 = vld [vmem:[%s11969_s1 + $0x1a40] ss:$8 sps:$4 sm:$0xff]  }
 0x30d   :  { %6602 = vmatprep.subr.bf16.mxu0 %v9052_v63  ;;  %v9148_v63 = vld [vmem:[%s11969_s1 + $0x1a54] ss:$8 sps:$4 sm:$0xff]  }
 0x30f   :  { %6044 = vmatpush1.bf16.msra.mxu1 %v9047_v0  ;;  %v9146_v0 = vld [vmem:[%s11969_s1 + $0x1a50] ss:$8 sps:$4 sm:$0xff]  }
 0x310   :  { %6603 = vmatpush1.bf16.msra.mxu0 %v9050_v1  ;;  %6045 = vmatprep.subr.bf16.mxu1 %v9055_v2  ;;  %v9151_v1 = vld [vmem:[%s11969_s1 + $0x1a64] ss:$8 sps:$4 sm:$0xff]   ;;  %v9149_v2 = vld [vmem:[%s11969_s1 + $0x1a60] ss:$8 sps:$4 sm:$0xff]  }
 0x311   :  { %6604 = vmatprep.subr.bf16.mxu0 %v9058_v3  ;;  %v9154_v3 = vld [vmem:[%s11969_s1 + $0x1a74] ss:$8 sps:$4 sm:$0xff]  }
 0x313   :  { %6046 = vmatpush1.bf16.msra.mxu1 %v9053_v4  ;;  %v9152_v4 = vld [vmem:[%s11969_s1 + $0x1a70] ss:$8 sps:$4 sm:$0xff]  }
 0x314   :  { %6605 = vmatpush1.bf16.msra.mxu0 %v9056_v5  ;;  %6047 = vmatprep.subr.bf16.mxu1 %v9061_v6  ;;  %v9157_v5 = vld [vmem:[%s11969_s1 + $0x1a84] ss:$8 sps:$4 sm:$0xff]   ;;  %v9155_v6 = vld [vmem:[%s11969_s1 + $0x1a80] ss:$8 sps:$4 sm:$0xff]  }
 0x315   :  { %6606 = vmatprep.subr.bf16.mxu0 %v9064_v7  ;;  %v9160_v7 = vld [vmem:[%s11969_s1 + $0x1a94] ss:$8 sps:$4 sm:$0xff]  }
 0x317   :  { %6048 = vmatpush1.bf16.msra.mxu1 %v9059_v8  ;;  %v9158_v8 = vld [vmem:[%s11969_s1 + $0x1a90] ss:$8 sps:$4 sm:$0xff]  }
 0x318   :  { %6607 = vmatpush1.bf16.msra.mxu0 %v9062_v9  ;;  %6049 = vmatprep.subr.bf16.mxu1 %v9067_v10  ;;  %v9163_v9 = vld [vmem:[%s11969_s1 + $0x1aa4] ss:$8 sps:$4 sm:$0xff]   ;;  %v9161_v10 = vld [vmem:[%s11969_s1 + $0x1aa0] ss:$8 sps:$4 sm:$0xff]  }
 0x319   :  { %6608 = vmatprep.subr.bf16.mxu0 %v9070_v11  ;;  %v9166_v11 = vld [vmem:[%s11969_s1 + $0x1ab4] ss:$8 sps:$4 sm:$0xff]  }
 0x31b   :  { %6050 = vmatpush1.bf16.msra.mxu1 %v9065_v12  ;;  %v9164_v12 = vld [vmem:[%s11969_s1 + $0x1ab0] ss:$8 sps:$4 sm:$0xff]  }
 0x31c   :  { %6609 = vmatpush1.bf16.msra.mxu0 %v9068_v13  ;;  %6051 = vmatprep.subr.bf16.mxu1 %v9073_v14  ;;  %v9169_v13 = vld [vmem:[%s11969_s1 + $0x1ac4] ss:$8 sps:$4 sm:$0xff]   ;;  %v9167_v14 = vld [vmem:[%s11969_s1 + $0x1ac0] ss:$8 sps:$4 sm:$0xff]  }
 0x31d   :  { %6610 = vmatprep.subr.bf16.mxu0 %v9076_v15  ;;  %v9172_v15 = vld [vmem:[%s11969_s1 + $0x1ad4] ss:$8 sps:$4 sm:$0xff]  }
 0x31f   :  { %6052 = vmatpush1.bf16.msra.mxu1 %v9071_v16  ;;  %v9170_v16 = vld [vmem:[%s11969_s1 + $0x1ad0] ss:$8 sps:$4 sm:$0xff]  }
 0x320   :  { %6611 = vmatpush1.bf16.msra.mxu0 %v9074_v17  ;;  %6053 = vmatprep.subr.bf16.mxu1 %v9079_v18  ;;  %v9175_v17 = vld [vmem:[%s11969_s1 + $0x1ae4] ss:$8 sps:$4 sm:$0xff]   ;;  %v9173_v18 = vld [vmem:[%s11969_s1 + $0x1ae0] ss:$8 sps:$4 sm:$0xff]  }
 0x321   :  { %6612 = vmatprep.subr.bf16.mxu0 %v9082_v19  ;;  %v9178_v19 = vld [vmem:[%s11969_s1 + $0x1af4] ss:$8 sps:$4 sm:$0xff]  }
 0x323   :  { %6054 = vmatpush1.bf16.msra.mxu1 %v9077_v20  ;;  %v9176_v20 = vld [vmem:[%s11969_s1 + $0x1af0] ss:$8 sps:$4 sm:$0xff]  }
 0x324   :  { %6613 = vmatpush1.bf16.msra.mxu0 %v9080_v21  ;;  %6055 = vmatprep.subr.bf16.mxu1 %v9085_v22  ;;  %v9179_v21 = vld [vmem:[%s11970_s0 + $0xd0] ss:$216 sps:$4 sm:$0xff]  }
 0x325   :  { %6614 = vmatprep.subr.bf16.mxu0 %v9088_v23 }
 0x327   :  { %6056 = vmatpush1.bf16.msra.mxu1 %v9083_v24 }
 0x328   :  { %6615 = vmatpush1.bf16.msra.mxu0 %v9086_v25  ;;  %6057 = vmatprep.subr.bf16.mxu1 %v9091_v26 }
 0x329   :  { %6616 = vmatprep.subr.bf16.mxu0 %v9094_v27 }
 0x32b   :  { %6058 = vmatpush1.bf16.msra.mxu1 %v9089_v28 }
 0x32c   :  { %6617 = vmatpush1.bf16.msra.mxu0 %v9092_v29  ;;  %6059 = vmatprep.subr.bf16.mxu1 %v9097_v30 }
 0x32d   :  { %6618 = vmatprep.subr.bf16.mxu0 %v9100_v31 }
 0x32f   :  { %6060 = vmatpush1.bf16.msra.mxu1 %v9095_v32 }
 0x330   :  { %6619 = vmatpush1.bf16.msra.mxu0 %v9098_v33  ;;  %6061 = vmatprep.subr.bf16.mxu1 %v9103_v34 }
 0x331   :  { %6620 = vmatprep.subr.bf16.mxu0 %v9106_v35 }
 0x333   :  { %6062 = vmatpush1.bf16.msra.mxu1 %v9101_v36 }
 0x334   :  { %6621 = vmatpush1.bf16.msra.mxu0 %v9104_v37  ;;  %6063 = vmatprep.subr.bf16.mxu1 %v9109_v38 }
 0x335   :  { %6622 = vmatprep.subr.bf16.mxu0 %v9112_v39 }
 0x337   :  { %6064 = vmatpush1.bf16.msra.mxu1 %v9107_v40 }
 0x338   :  { %6623 = vmatpush1.bf16.msra.mxu0 %v9110_v41  ;;  %6065 = vmatprep.subr.bf16.mxu1 %v9115_v42 }
 0x339   :  { %6624 = vmatprep.subr.bf16.mxu0 %v9118_v43 }
 0x33b   :  { %6066 = vmatpush1.bf16.msra.mxu1 %v9113_v44 }
 0x33c   :  { %6625 = vmatpush1.bf16.msra.mxu0 %v9116_v45  ;;  %6067 = vmatprep.subr.bf16.mxu1 %v9121_v46 }
 0x33d   :  { %6626 = vmatprep.subr.bf16.mxu0 %v9124_v47 }
 0x33f   :  { %6068 = vmatpush1.bf16.msra.mxu1 %v9119_v48 }
 0x340   :  { %6627 = vmatpush1.bf16.msra.mxu0 %v9122_v49  ;;  %v9182_v49 = vmov 1966171168  }
 0x341   :  { %6639 = vmatprep.subr.bf16.mxu0 %v9133_v50  ;;  %v6714_v50 = vunpack.c.l.s4 %v9182_v49 }
 0x342   :  { %6070 = vmatmul.mubr.bf16.vlgmr.msra.gmra.mrb[0].mxu1 %v9125_v51  ;;  %v6716_v51 = vlaneseq }
 0x343   :  { %6629 = vmatmul.mubr.bf16.vlgmr.msra.gmra.mrb[0].mxu0 %v9128_v52 }
 0x344   :  { %6640 = vmatpush1.bf16.msra.mxu0 %v9131_v53  ;;  %6671 = vmatprep.mubr.bf16.mxu0 %v9181_v54  ;;  %vm6730_vm0 = vcmp.lt.s32.totalorder %v6716_v51, 256 }
 0x345   :  { %6641 = vmatprep.subr.bf16.mxu0 %v9136_v55 }
 0x348   :  { %6642 = vmatpush1.bf16.msra.mxu0 %v9134_v56 }
 0x349   :  { %6643 = vmatprep.subr.bf16.mxu0 %v9139_v57 }
 0x34c   :  { %6644 = vmatpush1.bf16.msra.mxu0 %v9137_v58 }
 0x34d   :  { %6645 = vmatprep.subr.bf16.mxu0 %v9142_v59 }
 0x350   :  { %6646 = vmatpush1.bf16.msra.mxu0 %v9140_v60  ;;  %v6715_v60 = vunpack.c.0.s8 %v6714_v50 }
 0x351   :  { %6647 = vmatprep.subr.bf16.mxu0 %v9145_v61  ;;  %v6717_v61 = vshrl.u32 %v6716_v51, 7 }
 0x354   :  { %6648 = vmatpush1.bf16.msra.mxu0 %v9143_v62 }
 0x355   :  { %6649 = vmatprep.subr.bf16.mxu0 %v9148_v63 }
 0x358   :  { %6650 = vmatpush1.bf16.msra.mxu0 %v9146_v0 }
 0x359   :  { %6651 = vmatprep.subr.bf16.mxu0 %v9151_v1 }
 0x35c   :  { %6652 = vmatpush1.bf16.msra.mxu0 %v9149_v2 }
 0x35d   :  { %6653 = vmatprep.subr.bf16.mxu0 %v9154_v3 }
 0x360   :  { %6654 = vmatpush1.bf16.msra.mxu0 %v9152_v4 }
 0x361   :  { %6655 = vmatprep.subr.bf16.mxu0 %v9157_v5 }
 0x364   :  { %6656 = vmatpush1.bf16.msra.mxu0 %v9155_v6  ;;  %v6718_v6 = vsub.s32 %v6715_v60, %v6717_v61 }
 0x365   :  { %6657 = vmatprep.subr.bf16.mxu0 %v9160_v7 }
 0x368   :  { %6658 = vmatpush1.bf16.msra.mxu0 %v9158_v8 }
 0x369   :  { %6659 = vmatprep.subr.bf16.mxu0 %v9163_v9 }
 0x36c   :  { %6660 = vmatpush1.bf16.msra.mxu0 %v9161_v10 }
 0x36d   :  { %6661 = vmatprep.subr.bf16.mxu0 %v9166_v11 }
 0x370   :  { %6662 = vmatpush1.bf16.msra.mxu0 %v9164_v12 }
 0x371   :  { %6663 = vmatprep.subr.bf16.mxu0 %v9169_v13 }
 0x374   :  { %6664 = vmatpush1.bf16.msra.mxu0 %v9167_v14 }
 0x375   :  { %6665 = vmatprep.subr.bf16.mxu0 %v9172_v15 }
 0x378   :  { %6666 = vmatpush1.bf16.msra.mxu0 %v9170_v16 }
 0x379   :  { %6667 = vmatprep.subr.bf16.mxu0 %v9175_v17 }
 0x37c   :  { %6668 = vmatpush1.bf16.msra.mxu0 %v9173_v18 }
 0x37d   :  { %6669 = vmatprep.subr.bf16.mxu0 %v9178_v19 }
 0x380   :  { %6670 = vmatpush1.bf16.msra.mxu0 %v9176_v20 }
 0x383   :  { %6672 = vmatmul.mubr.bf16.vlgmr.msra.gmra.mrb[0].mxu0 %v9179_v21 }
 0x415   :  { %v6071_v22 = vpop.f32.mrb[0].mxu1 }
 0x416   :  { %v6073_v23 = vpop.f32.mrb[1].mxu1 }
 0x417   :  { %v6075_v24 = vpop.f32.mrb[2].mxu1 }
 0x418   :  { %v6077_v25 = vpop.f32.mrb[3].mxu1 }
 0x456   :  { %v6673_v26 = vpop.f32.mrb[0].mxu0 }
 0x457   :  { %v7700_v27 = vadd.f32 %v6673_v26, %v6071_v22  ;;  %v6675_v28 = vpop.f32.mrb[1].mxu0 }
 0x458   :  { %v7701_v29 = vadd.f32 %v6675_v28, %v6073_v23  ;;  %v6677_v30 = vpop.f32.mrb[2].mxu0 }
 0x459   :  { %v7702_v31 = vadd.f32 %v6677_v30, %v6075_v24  ;;  %v6679_v32 = vpop.f32.mrb[3].mxu0  ;;  %v6733_v35 = vmul.f32 %v7700_v27, %v7700_v27 }
 0x45a   :  { %v7698_v33 = vpack.c.bf16 %v7701_v29, %v7700_v27  ;;  %v7703_v34 = vadd.f32 %v6679_v32, %v6077_v25  ;;  %v6734_v38 = vmul.f32 %v7701_v29, %v7701_v29 }
 0x45b   :  { %v6696_v36 = vadd.f32 %v7702_v31, %v7700_v27  ;;  %v6735_v37 = vmul.f32 %v7702_v31, %v7702_v31 }
 0x45c   :  { %6694 = vst [vmem:[%s11971_s2] sm:$0xff] %v7698_v33  ;;  %v7699_v39 = vpack.c.bf16 %v7703_v34, %v7702_v31  ;;  %v6703_v40 = vadd.f32 %v7703_v34, %v7701_v29  ;;  %v6736_v41 = vmul.f32 %v7703_v34, %v7703_v34 }
 0x45d   :  { %v6697_v42 = vrot.slane %v6696_v36, 4  ;;  %v6737_v43 = vadd.f32 %v6735_v37, %v6733_v35 }
 0x45e   :  { %6695 = vst [vmem:[%s11971_s2 + $0x8] sm:$0xff] %v7699_v39  ;;  %v6704_v44 = vrot.slane %v6703_v40, 4  ;;  %v6744_v45 = vadd.f32 %v6736_v41, %v6734_v38 }
 0x45f   :  { %v6698_v46 = vadd.f32 %v6697_v42, %v6696_v36  ;;  %v6738_v47 = vrot.slane %v6737_v43, 4 }
 0x460   :  { %v6705_v48 = vadd.f32 %v6704_v44, %v6703_v40  ;;  %v6745_v52 = vrot.slane %v6744_v45, 4 }
 0x461   :  { %v6699_v53 = vrot.slane %v6698_v46, 2  ;;  %v6739_v54 = vadd.f32 %v6738_v47, %v6737_v43 }
 0x462   :  { %v6706_v55 = vrot.slane %v6705_v48, 2  ;;  %v6746_v56 = vadd.f32 %v6745_v52, %v6744_v45 }
 0x463   :  { %v6700_v57 = vadd.f32 %v6699_v53, %v6698_v46  ;;  %v6740_v58 = vrot.slane %v6739_v54, 2 }
 0x464   :  { %v6707_v59 = vadd.f32 %v6706_v55, %v6705_v48  ;;  %v6747_v62 = vrot.slane %v6746_v56, 2 }
 0x465   :  { %v6701_v63 = vrot.slane %v6700_v57, 1  ;;  %v6741_v0 = vadd.f32 %v6740_v58, %v6739_v54 }
 0x466   :  { %v6708_v1 = vrot.slane %v6707_v59, 1  ;;  %v6748_v2 = vadd.f32 %v6747_v62, %v6746_v56 }
 0x467   :  { %v6702_v3 = vadd.f32 %v6701_v63, %v6700_v57  ;;  %v6742_v4 = vrot.slane %v6741_v0, 1 }
 0x468   :  { %v6709_v5 = vadd.f32 %v6708_v1, %v6707_v59  ;;  %v6749_v7 = vrot.slane %v6748_v2, 1 }
 0x469   :  { %v6743_v8 = vadd.f32 %v6742_v4, %v6741_v0 }
 0x46a   :  { %v6712_v9 = vcombine.low %v6702_v3, %v6709_v5  ;;  %v6750_v10 = vadd.f32 %v6749_v7, %v6748_v2 }
 0x46c   :  { %v6719_v11 = vrot.slane %v6712_v9, %v6718_v6  ;;  %v6753_v12 = vcombine.low %v6743_v8, %v6750_v10 }
 0x46e   :  { %v6726_v13 = vrot.slane %v6719_v11, %v6718_v6  ;;  %v6760_v14 = vrot.slane %v6753_v12, %v6718_v6 }
 0x470   :  { %6732 = vst.msk [vmem:[%s11972_s3] sm:$0x3] %vm6730_vm0, %v6726_v13  ;;  %v6767_v15 = vrot.slane %v6760_v14, %v6718_v6 }
 0x472   :  { %6769 = vst.msk [vmem:[%s11972_s3 + $0x2] sm:$0x3] %vm6730_vm0, %v6767_v15 }

</bundles_post_ra>
